<compile_context>
chip_gen: v5e
topology: v5e:2x2
jax: 0.10.0
libtpu: 0.0.40
codegen_flags: <defaults>
</compile_context>

<pallas_src>
import functools

import jax
import jax.numpy as jnp
import numpy as np
from jax import lax
from jax.experimental import pallas as pl
from jax.experimental.pallas import tpu as pltpu


def _dlstm_kernel(hinit_ref, cinit_ref,
                  w0x_ref, w0h_ref, b0_ref,
                  w1x_ref, w1h_ref, b1_ref,
                  wout_ref, bout_ref,
                  out_ref, stage_ref,
                  *, hidden_size, num_blocks, block_unroll):
    """Whole decoder forward in one invocation (batch=1, all operands resident in VMEM)."""
    H = hidden_size

    # Loop-invariant, full-ref weight loads (operands already split host-side).
    w0x = w0x_ref[...]          # (H, 4H) bf16  layer-0 W_ih^T (g columns pre-scaled by 2)
    w0h = w0h_ref[...]          # (H, 4H) bf16  layer-0 W_hh^T
    w1x = w1x_ref[...]          # (H, 4H) bf16  layer-1 W_ih^T
    w1h = w1h_ref[...]          # (H, 4H) bf16  layer-1 W_hh^T
    b0 = b0_ref[...]            # (1, 4H) f32   fused b_ih + b_hh (g block * 2)
    b1 = b1_ref[...]            # (1, 4H) f32
    wout = wout_ref[...]        # (H, D)  bf16  out.weight^T
    bout = bout_ref[...]        # (1, D)  f32

    def mxu(a, w):
        # bf16 x bf16 MXU feed, f32 accumulation.
        return jnp.dot(a.astype(w.dtype), w, preferred_element_type=jnp.float32)

    def gate_math(gates, c):
        # One full-width sigmoid covers i, f, g, o: tanh(z) == 2*sigmoid(2z) - 1
        # (g-gate preactivation was pre-scaled by exactly 2 in the packed weights/bias).
        s = jax.nn.sigmoid(gates)
        i_g = s[:, 0 * H:1 * H]
        f_g = s[:, 1 * H:2 * H]
        g_g = 2.0 * s[:, 2 * H:3 * H] - 1.0
        o_g = s[:, 3 * H:4 * H]
        c_new = f_g * c + i_g * g_g
        h_new = o_g * jnp.tanh(c_new)
        return h_new, c_new

    h0_init = hinit_ref[0:1, :]
    c0_init = cinit_ref[0:1, :]
    h1_init = hinit_ref[1:2, :]
    c1_init = cinit_ref[1:2, :]

    # Carry the recurrent (W_hh) gate partials instead of h itself; they are computed
    # as soon as h0 / h1 exist and consumed one step later, taking them off the serial
    # critical path of every step.
    carry0 = (jnp.zeros((1, H), jnp.float32),   # x_0 = zeros(1, hidden)
              mxu(h0_init, w0h),                # hh0 = h0_init @ W_hh0^T
              c0_init,
              mxu(h1_init, w1h),                # hh1 = h1_init @ W_hh1^T
              c1_init)

    def block(blk, carry):
        x, hh0, c0, hh1, c1 = carry
        # 8 fully-unrolled steps -> straight-line code; MXU pushes, EUP ops and stores of
        # adjacent steps co-issue.
        for i in range(8):
            # Layer 0: only the x-side K=H dot is on the critical path.
            h0, c0 = gate_math(mxu(x, w0x) + hh0 + b0, c0)
            hh0 = mxu(h0, w0h)                    # needed at step t+1; overlaps layer 1
            # Layer 1 (dropout p=0.0 between layers is identity).
            h1, c1 = gate_math(mxu(h0, w1x) + hh1 + b1, c1)
            hh1 = mxu(h1, w1h)                    # needed at step t+1; overlaps feedback
            stage_ref[pl.ds(i, 1), :] = h1        # off-critical-path staging row store
            # Autoregressive feedback: x_{t+1} = self.out(last_h).
            x = mxu(h1, wout) + bout
        # One dense (8, 128)-aligned tile store per 8 steps.
        row0 = pl.multiple_of(blk * 8, 8)
        out_ref[pl.ds(row0, 8), :] = stage_ref[...]
        return x, hh0, c0, hh1, c1

    lax.fori_loop(0, num_blocks, block, carry0, unroll=block_unroll)


def _pack_cell(params, layer, hidden_size, wdtype):
    """Split/transpose one LSTMCell into W_ih^T, W_hh^T (wdtype) and a fused f32 bias.

    The g-gate (cell candidate) columns are scaled by exactly 2 so the kernel can use a
    single sigmoid for all four gates (tanh(z) == 2*sigmoid(2z) - 1); power-of-two
    scaling is numerically exact, also in bf16.
    """
    H = hidden_size
    gate_scale = jnp.concatenate(
        [jnp.ones((1, 2 * H), jnp.float32),
         jnp.full((1, H), 2.0, jnp.float32),
         jnp.ones((1, H), jnp.float32)], axis=1)                       # i, f | g*2 | o
    w_ih = params[f"weight_ih_l{layer}"].astype(jnp.float32)           # (4H, D_in)
    w_hh = params[f"weight_hh_l{layer}"].astype(jnp.float32)           # (4H, H)
    b = (params[f"bias_ih_l{layer}"] + params[f"bias_hh_l{layer}"]).reshape(1, 4 * H)
    wx = (w_ih.T * gate_scale).astype(wdtype)                          # (D_in, 4H)
    wh = (w_hh.T * gate_scale).astype(wdtype)                          # (H, 4H)
    b = (b.astype(jnp.float32) * gate_scale)                           # (1, 4H) f32
    return wx, wh, b


def dlstm_forward(seq_len, init_hidden, params):
    """Mirror of dLSTM.forward: (seq_len, (h[2,1,H], c[2,1,H])) -> [seq_len, 1, H]."""
    h0, c0 = init_hidden
    num_layers, batch, H = h0.shape
    assert num_layers == 2 and batch == 1, "decoder assumes 2 layers, batch size 1"
    D = params["out_weight"].shape[0]
    # The PyTorch module feeds zeros(1, hidden) into LSTMCell(input_size, hidden), so it
    # implicitly requires input_size == hidden_size.
    assert D == H, "dLSTM requires input_size == hidden_size"

    wdtype = jnp.bfloat16   # native MXU input on v5e/v6e/v7x; halves resident weight VMEM
    w0x, w0h, b0 = _pack_cell(params, 0, H, wdtype)
    w1x, w1h, b1 = _pack_cell(params, 1, H, wdtype)
    wout = params["out_weight"].T.astype(wdtype)                     # (H, D)
    bout = params["out_bias"].reshape(1, D).astype(jnp.float32)      # (1, D)
    h_init = h0.reshape(num_layers, H).astype(jnp.float32)
    c_init = c0.reshape(num_layers, H).astype(jnp.float32)

    # Pad the sequence to a multiple of 8 so every output store is a full aligned tile;
    # the (few) extra steps are computed and discarded.
    seq_pad = max(8, ((seq_len + 7) // 8) * 8)
    num_blocks = seq_pad // 8
    block_unroll = True if num_blocks <= 4 else 1

    operands = (h_init, c_init, w0x, w0h, b0, w1x, w1h, b1, wout, bout)
    resident_bytes = sum(int(a.size) * a.dtype.itemsize for a in operands)
    resident_bytes += seq_pad * H * 4 + 8 * H * 4        # output buffer + stage scratch
    vmem_limit = int(min(128 << 20, max(32 << 20, 2 * resident_bytes + (8 << 20))))

    vmem = pl.BlockSpec(memory_space=pltpu.MemorySpace.VMEM)
    out = pl.pallas_call(
        functools.partial(_dlstm_kernel, hidden_size=H,
                          num_blocks=num_blocks, block_unroll=block_unroll),
        out_shape=jax.ShapeDtypeStruct((seq_pad, H), jnp.float32),
        in_specs=[vmem] * len(operands),
        out_specs=vmem,
        scratch_shapes=[pltpu.VMEM((8, H), jnp.float32)],
        compiler_params=pltpu.CompilerParams(vmem_limit_bytes=vmem_limit),
    )(*operands)
    return out[:seq_len].reshape(seq_len, 1, H)


def init_params(key, input_size, hidden_size):
    """Deterministic PyTorch-style uniform(-1/sqrt(H), 1/sqrt(H)) init."""
    H = hidden_size
    D = input_size

    def uniform(k, shape, bound):
        return jax.random.uniform(k, shape, jnp.float32, -bound, bound)

    keys = iter(jax.random.split(key, 10))
    params = {}
    k_cell = 1.0 / float(H) ** 0.5
    for layer, in_sz in ((0, D), (1, H)):
        params[f"weight_ih_l{layer}"] = uniform(next(keys), (4 * H, in_sz), k_cell)
        params[f"weight_hh_l{layer}"] = uniform(next(keys), (4 * H, H), k_cell)
        params[f"bias_ih_l{layer}"] = uniform(next(keys), (4 * H,), k_cell)
        params[f"bias_hh_l{layer}"] = uniform(next(keys), (4 * H,), k_cell)
    k_out = 1.0 / float(H) ** 0.5                                    # Linear(hidden->input)
    params["out_weight"] = uniform(next(keys), (D, H), k_out)
    params["out_bias"] = uniform(next(keys), (D,), k_out)
    return params


def dlstm_reference(seq_len, init_hidden, params):
    """Ground-truth float64 NumPy replica of dLSTM.forward (StackedLSTMCell + Linear)."""
    def sigmoid(z):
        return 1.0 / (1.0 + np.exp(-z))

    h_init, c_init = init_hidden
    H = h_init.shape[2]
    h = [np.asarray(h_init[l, 0], np.float64) for l in range(2)]
    c = [np.asarray(c_init[l, 0], np.float64) for l in range(2)]
    p = {k: np.asarray(v, np.float64) for k, v in params.items()}

    x = np.zeros((H,), np.float64)
    outs = []
    for _ in range(seq_len):
        inp = x
        for l in range(2):
            gates = (p[f"weight_ih_l{l}"] @ inp + p[f"bias_ih_l{l}"]
                     + p[f"weight_hh_l{l}"] @ h[l] + p[f"bias_hh_l{l}"])
            i_g = sigmoid(gates[0 * H:1 * H])
            f_g = sigmoid(gates[1 * H:2 * H])
            g_g = np.tanh(gates[2 * H:3 * H])
            o_g = sigmoid(gates[3 * H:4 * H])
            c[l] = f_g * c[l] + i_g * g_g
            h[l] = o_g * np.tanh(c[l])
            inp = h[l]                     # dropout(p=0.0) between layers is identity
        outs.append(h[1].copy())
        x = p["out_weight"] @ h[1] + p["out_bias"]
    return np.stack(outs)[:, None, :]      # [seq_len, 1, H]


if __name__ == "__main__":
    seq_len, hidden_size = 8, 128          # small, lane-dense demo shapes (module default: 2048)
    key = jax.random.PRNGKey(0)
    pkey, hkey, ckey = jax.random.split(key, 3)

    params = init_params(pkey, hidden_size, hidden_size)
    h0 = 0.1 * jax.random.normal(hkey, (2, 1, hidden_size), jnp.float32)
    c0 = 0.1 * jax.random.normal(ckey, (2, 1, hidden_size), jnp.float32)

    out_features = dlstm_forward(seq_len, (h0, c0), params)
    out_features = jax.block_until_ready(out_features)
    assert out_features.shape == (seq_len, 1, hidden_size)

    ref = dlstm_reference(seq_len, (h0, c0), params)
    # bf16 weights / MXU-operand casts -> looser tolerance than the all-f32 variant.
    np.testing.assert_allclose(np.asarray(out_features, np.float64), ref,
                               atol=1e-2, rtol=1e-2)

    print("KERNEL_OK")
</pallas_src>

<mosaic_0001>
module attributes {stable_mosaic.version = 11 : i64} {
  func.func @_dlstm_kernel(%arg0: memref<2x128xf32, #tpu.memory_space<vmem>>, %arg1: memref<2x128xf32, #tpu.memory_space<vmem>>, %arg2: memref<128x512xbf16, #tpu.memory_space<vmem>>, %arg3: memref<128x512xbf16, #tpu.memory_space<vmem>>, %arg4: memref<1x512xf32, #tpu.memory_space<vmem>>, %arg5: memref<128x512xbf16, #tpu.memory_space<vmem>>, %arg6: memref<128x512xbf16, #tpu.memory_space<vmem>>, %arg7: memref<1x512xf32, #tpu.memory_space<vmem>>, %arg8: memref<128x128xbf16, #tpu.memory_space<vmem>>, %arg9: memref<1x128xf32, #tpu.memory_space<vmem>>, %arg10: memref<8x128xf32, #tpu.memory_space<vmem>>, %arg11: memref<8x128xf32, #tpu.memory_space<vmem>>) attributes {dimension_semantics = [], scalar_prefetch = 0 : i64, scratch_operands = 1 : i64, tpu.core_type = #tpu.core_type<tc>} {
    %c0 = arith.constant 0 : index
    %c0_0 = arith.constant 0 : index
    %0 = vector.load %arg2[%c0, %c0_0] : memref<128x512xbf16, #tpu.memory_space<vmem>>, vector<128x512xbf16>
    %c0_1 = arith.constant 0 : index
    %c0_2 = arith.constant 0 : index
    %1 = vector.load %arg3[%c0_1, %c0_2] : memref<128x512xbf16, #tpu.memory_space<vmem>>, vector<128x512xbf16>
    %c0_3 = arith.constant 0 : index
    %c0_4 = arith.constant 0 : index
    %2 = vector.load %arg5[%c0_3, %c0_4] : memref<128x512xbf16, #tpu.memory_space<vmem>>, vector<128x512xbf16>
    %c0_5 = arith.constant 0 : index
    %c0_6 = arith.constant 0 : index
    %3 = vector.load %arg6[%c0_5, %c0_6] : memref<128x512xbf16, #tpu.memory_space<vmem>>, vector<128x512xbf16>
    %c0_7 = arith.constant 0 : index
    %c0_8 = arith.constant 0 : index
    %4 = vector.load %arg4[%c0_7, %c0_8] : memref<1x512xf32, #tpu.memory_space<vmem>>, vector<1x512xf32>
    %c0_9 = arith.constant 0 : index
    %c0_10 = arith.constant 0 : index
    %5 = vector.load %arg7[%c0_9, %c0_10] : memref<1x512xf32, #tpu.memory_space<vmem>>, vector<1x512xf32>
    %c0_11 = arith.constant 0 : index
    %c0_12 = arith.constant 0 : index
    %6 = vector.load %arg8[%c0_11, %c0_12] : memref<128x128xbf16, #tpu.memory_space<vmem>>, vector<128x128xbf16>
    %c0_13 = arith.constant 0 : index
    %c0_14 = arith.constant 0 : index
    %7 = vector.load %arg9[%c0_13, %c0_14] : memref<1x128xf32, #tpu.memory_space<vmem>>, vector<1x128xf32>
    %c0_15 = arith.constant 0 : index
    %c0_16 = arith.constant 0 : index
    %8 = vector.load %arg0[%c0_15, %c0_16] : memref<2x128xf32, #tpu.memory_space<vmem>>, vector<1x128xf32>
    %c0_17 = arith.constant 0 : index
    %c0_18 = arith.constant 0 : index
    %9 = vector.load %arg1[%c0_17, %c0_18] : memref<2x128xf32, #tpu.memory_space<vmem>>, vector<1x128xf32>
    %c1 = arith.constant 1 : index
    %c0_19 = arith.constant 0 : index
    %10 = vector.load %arg0[%c1, %c0_19] : memref<2x128xf32, #tpu.memory_space<vmem>>, vector<1x128xf32>
    %c1_20 = arith.constant 1 : index
    %c0_21 = arith.constant 0 : index
    %11 = vector.load %arg1[%c1_20, %c0_21] : memref<2x128xf32, #tpu.memory_space<vmem>>, vector<1x128xf32>
    %cst = arith.constant 0.000000e+00 : f32
    %12 = vector.broadcast %cst : f32 to vector<1x128xf32>
    %13 = arith.truncf %8 : vector<1x128xf32> to vector<1x128xbf16>
    %cst_22 = arith.constant dense<0.000000e+00> : vector<1x512xf32>
    %14 = tpu.matmul %13, %1, %cst_22 {dimension_numbers = #tpu.dot_dimension_numbers<[1], [0], [0], [1], [0, 0, 1, 1], [], []>} : vector<1x128xbf16>, vector<128x512xbf16>, vector<1x512xf32> -> vector<1x512xf32>
    %15 = arith.truncf %10 : vector<1x128xf32> to vector<1x128xbf16>
    %cst_23 = arith.constant dense<0.000000e+00> : vector<1x512xf32>
    %16 = tpu.matmul %15, %3, %cst_23 {dimension_numbers = #tpu.dot_dimension_numbers<[1], [0], [0], [1], [0, 0, 1, 1], [], []>} : vector<1x128xbf16>, vector<128x512xbf16>, vector<1x512xf32> -> vector<1x512xf32>
    %c0_i32 = arith.constant 0 : i32
    %17 = arith.truncf %12 : vector<1x128xf32> to vector<1x128xbf16>
    %cst_24 = arith.constant dense<0.000000e+00> : vector<1x512xf32>
    %18 = tpu.matmul %17, %0, %cst_24 {dimension_numbers = #tpu.dot_dimension_numbers<[1], [0], [0], [1], [0, 0, 1, 1], [], []>} : vector<1x128xbf16>, vector<128x512xbf16>, vector<1x512xf32> -> vector<1x512xf32>
    %19 = arith.addf %18, %14 : vector<1x512xf32>
    %20 = arith.addf %19, %4 : vector<1x512xf32>
    %21 = arith.negf %20 : vector<1x512xf32>
    %22 = math.exp %21 : vector<1x512xf32>
    %cst_25 = arith.constant 1.000000e+00 : f32
    %23 = vector.broadcast %cst_25 : f32 to vector<1x512xf32>
    %24 = arith.addf %23, %22 : vector<1x512xf32>
    %25 = arith.divf %23, %24 : vector<1x512xf32>
    %26 = vector.extract_strided_slice %25 {offsets = [0, 0], sizes = [1, 128], strides = [1, 1]} : vector<1x512xf32> to vector<1x128xf32>
    %27 = vector.extract_strided_slice %25 {offsets = [0, 128], sizes = [1, 128], strides = [1, 1]} : vector<1x512xf32> to vector<1x128xf32>
    %28 = vector.extract_strided_slice %25 {offsets = [0, 256], sizes = [1, 128], strides = [1, 1]} : vector<1x512xf32> to vector<1x128xf32>
    %cst_26 = arith.constant 2.000000e+00 : f32
    %29 = vector.broadcast %cst_26 : f32 to vector<1x128xf32>
    %30 = arith.mulf %29, %28 : vector<1x128xf32>
    %cst_27 = arith.constant 1.000000e+00 : f32
    %31 = vector.broadcast %cst_27 : f32 to vector<1x128xf32>
    %32 = arith.subf %30, %31 : vector<1x128xf32>
    %33 = vector.extract_strided_slice %25 {offsets = [0, 384], sizes = [1, 128], strides = [1, 1]} : vector<1x512xf32> to vector<1x128xf32>
    %34 = arith.mulf %27, %9 : vector<1x128xf32>
    %35 = arith.mulf %26, %32 : vector<1x128xf32>
    %36 = arith.addf %34, %35 : vector<1x128xf32>
    %37 = math.tanh %36 : vector<1x128xf32>
    %38 = arith.mulf %33, %37 : vector<1x128xf32>
    %39 = arith.truncf %38 : vector<1x128xf32> to vector<1x128xbf16>
    %cst_28 = arith.constant dense<0.000000e+00> : vector<1x512xf32>
    %40 = tpu.matmul %39, %1, %cst_28 {dimension_numbers = #tpu.dot_dimension_numbers<[1], [0], [0], [1], [0, 0, 1, 1], [], []>} : vector<1x128xbf16>, vector<128x512xbf16>, vector<1x512xf32> -> vector<1x512xf32>
    %41 = arith.truncf %38 : vector<1x128xf32> to vector<1x128xbf16>
    %cst_29 = arith.constant dense<0.000000e+00> : vector<1x512xf32>
    %42 = tpu.matmul %41, %2, %cst_29 {dimension_numbers = #tpu.dot_dimension_numbers<[1], [0], [0], [1], [0, 0, 1, 1], [], []>} : vector<1x128xbf16>, vector<128x512xbf16>, vector<1x512xf32> -> vector<1x512xf32>
    %43 = arith.addf %42, %16 : vector<1x512xf32>
    %44 = arith.addf %43, %5 : vector<1x512xf32>
    %45 = arith.negf %44 : vector<1x512xf32>
    %46 = math.exp %45 : vector<1x512xf32>
    %cst_30 = arith.constant 1.000000e+00 : f32
    %47 = vector.broadcast %cst_30 : f32 to vector<1x512xf32>
    %48 = arith.addf %47, %46 : vector<1x512xf32>
    %49 = arith.divf %47, %48 : vector<1x512xf32>
    %50 = vector.extract_strided_slice %49 {offsets = [0, 0], sizes = [1, 128], strides = [1, 1]} : vector<1x512xf32> to vector<1x128xf32>
    %51 = vector.extract_strided_slice %49 {offsets = [0, 128], sizes = [1, 128], strides = [1, 1]} : vector<1x512xf32> to vector<1x128xf32>
    %52 = vector.extract_strided_slice %49 {offsets = [0, 256], sizes = [1, 128], strides = [1, 1]} : vector<1x512xf32> to vector<1x128xf32>
    %cst_31 = arith.constant 2.000000e+00 : f32
    %53 = vector.broadcast %cst_31 : f32 to vector<1x128xf32>
    %54 = arith.mulf %53, %52 : vector<1x128xf32>
    %cst_32 = arith.constant 1.000000e+00 : f32
    %55 = vector.broadcast %cst_32 : f32 to vector<1x128xf32>
    %56 = arith.subf %54, %55 : vector<1x128xf32>
    %57 = vector.extract_strided_slice %49 {offsets = [0, 384], sizes = [1, 128], strides = [1, 1]} : vector<1x512xf32> to vector<1x128xf32>
    %58 = arith.mulf %51, %11 : vector<1x128xf32>
    %59 = arith.mulf %50, %56 : vector<1x128xf32>
    %60 = arith.addf %58, %59 : vector<1x128xf32>
    %61 = math.tanh %60 : vector<1x128xf32>
    %62 = arith.mulf %57, %61 : vector<1x128xf32>
    %63 = arith.truncf %62 : vector<1x128xf32> to vector<1x128xbf16>
    %cst_33 = arith.constant dense<0.000000e+00> : vector<1x512xf32>
    %64 = tpu.matmul %63, %3, %cst_33 {dimension_numbers = #tpu.dot_dimension_numbers<[1], [0], [0], [1], [0, 0, 1, 1], [], []>} : vector<1x128xbf16>, vector<128x512xbf16>, vector<1x512xf32> -> vector<1x512xf32>
    %c0_34 = arith.constant 0 : index
    %c0_35 = arith.constant 0 : index
    %65 = vector.load %arg11[%c0_34, %c0_35] : memref<8x128xf32, #tpu.memory_space<vmem>>, vector<1x128xf32>
    tpu.vector_store %arg11[%c0_34, %c0_35], %62 {strides = array<i32>} : memref<8x128xf32, #tpu.memory_space<vmem>>, vector<1x128xf32>,
    %66 = arith.truncf %62 : vector<1x128xf32> to vector<1x128xbf16>
    %cst_36 = arith.constant dense<0.000000e+00> : vector<1x128xf32>
    %67 = tpu.matmul %66, %6, %cst_36 {dimension_numbers = #tpu.dot_dimension_numbers<[1], [0], [0], [1], [0, 0, 1, 1], [], []>} : vector<1x128xbf16>, vector<128x128xbf16>, vector<1x128xf32> -> vector<1x128xf32>
    %68 = arith.addf %67, %7 : vector<1x128xf32>
    %69 = arith.truncf %68 : vector<1x128xf32> to vector<1x128xbf16>
    %cst_37 = arith.constant dense<0.000000e+00> : vector<1x512xf32>
    %70 = tpu.matmul %69, %0, %cst_37 {dimension_numbers = #tpu.dot_dimension_numbers<[1], [0], [0], [1], [0, 0, 1, 1], [], []>} : vector<1x128xbf16>, vector<128x512xbf16>, vector<1x512xf32> -> vector<1x512xf32>
    %71 = arith.addf %70, %40 : vector<1x512xf32>
    %72 = arith.addf %71, %4 : vector<1x512xf32>
    %73 = arith.negf %72 : vector<1x512xf32>
    %74 = math.exp %73 : vector<1x512xf32>
    %cst_38 = arith.constant 1.000000e+00 : f32
    %75 = vector.broadcast %cst_38 : f32 to vector<1x512xf32>
    %76 = arith.addf %75, %74 : vector<1x512xf32>
    %77 = arith.divf %75, %76 : vector<1x512xf32>
    %78 = vector.extract_strided_slice %77 {offsets = [0, 0], sizes = [1, 128], strides = [1, 1]} : vector<1x512xf32> to vector<1x128xf32>
    %79 = vector.extract_strided_slice %77 {offsets = [0, 128], sizes = [1, 128], strides = [1, 1]} : vector<1x512xf32> to vector<1x128xf32>
    %80 = vector.extract_strided_slice %77 {offsets = [0, 256], sizes = [1, 128], strides = [1, 1]} : vector<1x512xf32> to vector<1x128xf32>
    %cst_39 = arith.constant 2.000000e+00 : f32
    %81 = vector.broadcast %cst_39 : f32 to vector<1x128xf32>
    %82 = arith.mulf %81, %80 : vector<1x128xf32>
    %cst_40 = arith.constant 1.000000e+00 : f32
    %83 = vector.broadcast %cst_40 : f32 to vector<1x128xf32>
    %84 = arith.subf %82, %83 : vector<1x128xf32>
    %85 = vector.extract_strided_slice %77 {offsets = [0, 384], sizes = [1, 128], strides = [1, 1]} : vector<1x512xf32> to vector<1x128xf32>
    %86 = arith.mulf %79, %36 : vector<1x128xf32>
    %87 = arith.mulf %78, %84 : vector<1x128xf32>
    %88 = arith.addf %86, %87 : vector<1x128xf32>
    %89 = math.tanh %88 : vector<1x128xf32>
    %90 = arith.mulf %85, %89 : vector<1x128xf32>
    %91 = arith.truncf %90 : vector<1x128xf32> to vector<1x128xbf16>
    %cst_41 = arith.constant dense<0.000000e+00> : vector<1x512xf32>
    %92 = tpu.matmul %91, %1, %cst_41 {dimension_numbers = #tpu.dot_dimension_numbers<[1], [0], [0], [1], [0, 0, 1, 1], [], []>} : vector<1x128xbf16>, vector<128x512xbf16>, vector<1x512xf32> -> vector<1x512xf32>
    %93 = arith.truncf %90 : vector<1x128xf32> to vector<1x128xbf16>
    %cst_42 = arith.constant dense<0.000000e+00> : vector<1x512xf32>
    %94 = tpu.matmul %93, %2, %cst_42 {dimension_numbers = #tpu.dot_dimension_numbers<[1], [0], [0], [1], [0, 0, 1, 1], [], []>} : vector<1x128xbf16>, vector<128x512xbf16>, vector<1x512xf32> -> vector<1x512xf32>
    %95 = arith.addf %94, %64 : vector<1x512xf32>
    %96 = arith.addf %95, %5 : vector<1x512xf32>
    %97 = arith.negf %96 : vector<1x512xf32>
    %98 = math.exp %97 : vector<1x512xf32>
    %cst_43 = arith.constant 1.000000e+00 : f32
    %99 = vector.broadcast %cst_43 : f32 to vector<1x512xf32>
    %100 = arith.addf %99, %98 : vector<1x512xf32>
    %101 = arith.divf %99, %100 : vector<1x512xf32>
    %102 = vector.extract_strided_slice %101 {offsets = [0, 0], sizes = [1, 128], strides = [1, 1]} : vector<1x512xf32> to vector<1x128xf32>
    %103 = vector.extract_strided_slice %101 {offsets = [0, 128], sizes = [1, 128], strides = [1, 1]} : vector<1x512xf32> to vector<1x128xf32>
    %104 = vector.extract_strided_slice %101 {offsets = [0, 256], sizes = [1, 128], strides = [1, 1]} : vector<1x512xf32> to vector<1x128xf32>
    %cst_44 = arith.constant 2.000000e+00 : f32
    %105 = vector.broadcast %cst_44 : f32 to vector<1x128xf32>
    %106 = arith.mulf %105, %104 : vector<1x128xf32>
    %cst_45 = arith.constant 1.000000e+00 : f32
    %107 = vector.broadcast %cst_45 : f32 to vector<1x128xf32>
    %108 = arith.subf %106, %107 : vector<1x128xf32>
    %109 = vector.extract_strided_slice %101 {offsets = [0, 384], sizes = [1, 128], strides = [1, 1]} : vector<1x512xf32> to vector<1x128xf32>
    %110 = arith.mulf %103, %60 : vector<1x128xf32>
    %111 = arith.mulf %102, %108 : vector<1x128xf32>
    %112 = arith.addf %110, %111 : vector<1x128xf32>
    %113 = math.tanh %112 : vector<1x128xf32>
    %114 = arith.mulf %109, %113 : vector<1x128xf32>
    %115 = arith.truncf %114 : vector<1x128xf32> to vector<1x128xbf16>
    %cst_46 = arith.constant dense<0.000000e+00> : vector<1x512xf32>
    %116 = tpu.matmul %115, %3, %cst_46 {dimension_numbers = #tpu.dot_dimension_numbers<[1], [0], [0], [1], [0, 0, 1, 1], [], []>} : vector<1x128xbf16>, vector<128x512xbf16>, vector<1x512xf32> -> vector<1x512xf32>
    %c1_47 = arith.constant 1 : index
    %c0_48 = arith.constant 0 : index
    %117 = vector.load %arg11[%c1_47, %c0_48] : memref<8x128xf32, #tpu.memory_space<vmem>>, vector<1x128xf32>
    tpu.vector_store %arg11[%c1_47, %c0_48], %114 {strides = array<i32>} : memref<8x128xf32, #tpu.memory_space<vmem>>, vector<1x128xf32>,
    %118 = arith.truncf %114 : vector<1x128xf32> to vector<1x128xbf16>
    %cst_49 = arith.constant dense<0.000000e+00> : vector<1x128xf32>
    %119 = tpu.matmul %118, %6, %cst_49 {dimension_numbers = #tpu.dot_dimension_numbers<[1], [0], [0], [1], [0, 0, 1, 1], [], []>} : vector<1x128xbf16>, vector<128x128xbf16>, vector<1x128xf32> -> vector<1x128xf32>
    %120 = arith.addf %119, %7 : vector<1x128xf32>
    %121 = arith.truncf %120 : vector<1x128xf32> to vector<1x128xbf16>
    %cst_50 = arith.constant dense<0.000000e+00> : vector<1x512xf32>
    %122 = tpu.matmul %121, %0, %cst_50 {dimension_numbers = #tpu.dot_dimension_numbers<[1], [0], [0], [1], [0, 0, 1, 1], [], []>} : vector<1x128xbf16>, vector<128x512xbf16>, vector<1x512xf32> -> vector<1x512xf32>
    %123 = arith.addf %122, %92 : vector<1x512xf32>
    %124 = arith.addf %123, %4 : vector<1x512xf32>
    %125 = arith.negf %124 : vector<1x512xf32>
    %126 = math.exp %125 : vector<1x512xf32>
    %cst_51 = arith.constant 1.000000e+00 : f32
    %127 = vector.broadcast %cst_51 : f32 to vector<1x512xf32>
    %128 = arith.addf %127, %126 : vector<1x512xf32>
    %129 = arith.divf %127, %128 : vector<1x512xf32>
    %130 = vector.extract_strided_slice %129 {offsets = [0, 0], sizes = [1, 128], strides = [1, 1]} : vector<1x512xf32> to vector<1x128xf32>
    %131 = vector.extract_strided_slice %129 {offsets = [0, 128], sizes = [1, 128], strides = [1, 1]} : vector<1x512xf32> to vector<1x128xf32>
    %132 = vector.extract_strided_slice %129 {offsets = [0, 256], sizes = [1, 128], strides = [1, 1]} : vector<1x512xf32> to vector<1x128xf32>
    %cst_52 = arith.constant 2.000000e+00 : f32
    %133 = vector.broadcast %cst_52 : f32 to vector<1x128xf32>
    %134 = arith.mulf %133, %132 : vector<1x128xf32>
    %cst_53 = arith.constant 1.000000e+00 : f32
    %135 = vector.broadcast %cst_53 : f32 to vector<1x128xf32>
    %136 = arith.subf %134, %135 : vector<1x128xf32>
    %137 = vector.extract_strided_slice %129 {offsets = [0, 384], sizes = [1, 128], strides = [1, 1]} : vector<1x512xf32> to vector<1x128xf32>
    %138 = arith.mulf %131, %88 : vector<1x128xf32>
    %139 = arith.mulf %130, %136 : vector<1x128xf32>
    %140 = arith.addf %138, %139 : vector<1x128xf32>
    %141 = math.tanh %140 : vector<1x128xf32>
    %142 = arith.mulf %137, %141 : vector<1x128xf32>
    %143 = arith.truncf %142 : vector<1x128xf32> to vector<1x128xbf16>
    %cst_54 = arith.constant dense<0.000000e+00> : vector<1x512xf32>
    %144 = tpu.matmul %143, %1, %cst_54 {dimension_numbers = #tpu.dot_dimension_numbers<[1], [0], [0], [1], [0, 0, 1, 1], [], []>} : vector<1x128xbf16>, vector<128x512xbf16>, vector<1x512xf32> -> vector<1x512xf32>
    %145 = arith.truncf %142 : vector<1x128xf32> to vector<1x128xbf16>
    %cst_55 = arith.constant dense<0.000000e+00> : vector<1x512xf32>
    %146 = tpu.matmul %145, %2, %cst_55 {dimension_numbers = #tpu.dot_dimension_numbers<[1], [0], [0], [1], [0, 0, 1, 1], [], []>} : vector<1x128xbf16>, vector<128x512xbf16>, vector<1x512xf32> -> vector<1x512xf32>
    %147 = arith.addf %146, %116 : vector<1x512xf32>
    %148 = arith.addf %147, %5 : vector<1x512xf32>
    %149 = arith.negf %148 : vector<1x512xf32>
    %150 = math.exp %149 : vector<1x512xf32>
    %cst_56 = arith.constant 1.000000e+00 : f32
    %151 = vector.broadcast %cst_56 : f32 to vector<1x512xf32>
    %152 = arith.addf %151, %150 : vector<1x512xf32>
    %153 = arith.divf %151, %152 : vector<1x512xf32>
    %154 = vector.extract_strided_slice %153 {offsets = [0, 0], sizes = [1, 128], strides = [1, 1]} : vector<1x512xf32> to vector<1x128xf32>
    %155 = vector.extract_strided_slice %153 {offsets = [0, 128], sizes = [1, 128], strides = [1, 1]} : vector<1x512xf32> to vector<1x128xf32>
    %156 = vector.extract_strided_slice %153 {offsets = [0, 256], sizes = [1, 128], strides = [1, 1]} : vector<1x512xf32> to vector<1x128xf32>
    %cst_57 = arith.constant 2.000000e+00 : f32
    %157 = vector.broadcast %cst_57 : f32 to vector<1x128xf32>
    %158 = arith.mulf %157, %156 : vector<1x128xf32>
    %cst_58 = arith.constant 1.000000e+00 : f32
    %159 = vector.broadcast %cst_58 : f32 to vector<1x128xf32>
    %160 = arith.subf %158, %159 : vector<1x128xf32>
    %161 = vector.extract_strided_slice %153 {offsets = [0, 384], sizes = [1, 128], strides = [1, 1]} : vector<1x512xf32> to vector<1x128xf32>
    %162 = arith.mulf %155, %112 : vector<1x128xf32>
    %163 = arith.mulf %154, %160 : vector<1x128xf32>
    %164 = arith.addf %162, %163 : vector<1x128xf32>
    %165 = math.tanh %164 : vector<1x128xf32>
    %166 = arith.mulf %161, %165 : vector<1x128xf32>
    %167 = arith.truncf %166 : vector<1x128xf32> to vector<1x128xbf16>
    %cst_59 = arith.constant dense<0.000000e+00> : vector<1x512xf32>
    %168 = tpu.matmul %167, %3, %cst_59 {dimension_numbers = #tpu.dot_dimension_numbers<[1], [0], [0], [1], [0, 0, 1, 1], [], []>} : vector<1x128xbf16>, vector<128x512xbf16>, vector<1x512xf32> -> vector<1x512xf32>
    %c2 = arith.constant 2 : index
    %c0_60 = arith.constant 0 : index
    %169 = vector.load %arg11[%c2, %c0_60] : memref<8x128xf32, #tpu.memory_space<vmem>>, vector<1x128xf32>
    tpu.vector_store %arg11[%c2, %c0_60], %166 {strides = array<i32>} : memref<8x128xf32, #tpu.memory_space<vmem>>, vector<1x128xf32>,
    %170 = arith.truncf %166 : vector<1x128xf32> to vector<1x128xbf16>
    %cst_61 = arith.constant dense<0.000000e+00> : vector<1x128xf32>
    %171 = tpu.matmul %170, %6, %cst_61 {dimension_numbers = #tpu.dot_dimension_numbers<[1], [0], [0], [1], [0, 0, 1, 1], [], []>} : vector<1x128xbf16>, vector<128x128xbf16>, vector<1x128xf32> -> vector<1x128xf32>
    %172 = arith.addf %171, %7 : vector<1x128xf32>
    %173 = arith.truncf %172 : vector<1x128xf32> to vector<1x128xbf16>
    %cst_62 = arith.constant dense<0.000000e+00> : vector<1x512xf32>
    %174 = tpu.matmul %173, %0, %cst_62 {dimension_numbers = #tpu.dot_dimension_numbers<[1], [0], [0], [1], [0, 0, 1, 1], [], []>} : vector<1x128xbf16>, vector<128x512xbf16>, vector<1x512xf32> -> vector<1x512xf32>
    %175 = arith.addf %174, %144 : vector<1x512xf32>
    %176 = arith.addf %175, %4 : vector<1x512xf32>
    %177 = arith.negf %176 : vector<1x512xf32>
    %178 = math.exp %177 : vector<1x512xf32>
    %cst_63 = arith.constant 1.000000e+00 : f32
    %179 = vector.broadcast %cst_63 : f32 to vector<1x512xf32>
    %180 = arith.addf %179, %178 : vector<1x512xf32>
    %181 = arith.divf %179, %180 : vector<1x512xf32>
    %182 = vector.extract_strided_slice %181 {offsets = [0, 0], sizes = [1, 128], strides = [1, 1]} : vector<1x512xf32> to vector<1x128xf32>
    %183 = vector.extract_strided_slice %181 {offsets = [0, 128], sizes = [1, 128], strides = [1, 1]} : vector<1x512xf32> to vector<1x128xf32>
    %184 = vector.extract_strided_slice %181 {offsets = [0, 256], sizes = [1, 128], strides = [1, 1]} : vector<1x512xf32> to vector<1x128xf32>
    %cst_64 = arith.constant 2.000000e+00 : f32
    %185 = vector.broadcast %cst_64 : f32 to vector<1x128xf32>
    %186 = arith.mulf %185, %184 : vector<1x128xf32>
    %cst_65 = arith.constant 1.000000e+00 : f32
    %187 = vector.broadcast %cst_65 : f32 to vector<1x128xf32>
    %188 = arith.subf %186, %187 : vector<1x128xf32>
    %189 = vector.extract_strided_slice %181 {offsets = [0, 384], sizes = [1, 128], strides = [1, 1]} : vector<1x512xf32> to vector<1x128xf32>
    %190 = arith.mulf %183, %140 : vector<1x128xf32>
    %191 = arith.mulf %182, %188 : vector<1x128xf32>
    %192 = arith.addf %190, %191 : vector<1x128xf32>
    %193 = math.tanh %192 : vector<1x128xf32>
    %194 = arith.mulf %189, %193 : vector<1x128xf32>
    %195 = arith.truncf %194 : vector<1x128xf32> to vector<1x128xbf16>
    %cst_66 = arith.constant dense<0.000000e+00> : vector<1x512xf32>
    %196 = tpu.matmul %195, %1, %cst_66 {dimension_numbers = #tpu.dot_dimension_numbers<[1], [0], [0], [1], [0, 0, 1, 1], [], []>} : vector<1x128xbf16>, vector<128x512xbf16>, vector<1x512xf32> -> vector<1x512xf32>
    %197 = arith.truncf %194 : vector<1x128xf32> to vector<1x128xbf16>
    %cst_67 = arith.constant dense<0.000000e+00> : vector<1x512xf32>
    %198 = tpu.matmul %197, %2, %cst_67 {dimension_numbers = #tpu.dot_dimension_numbers<[1], [0], [0], [1], [0, 0, 1, 1], [], []>} : vector<1x128xbf16>, vector<128x512xbf16>, vector<1x512xf32> -> vector<1x512xf32>
    %199 = arith.addf %198, %168 : vector<1x512xf32>
    %200 = arith.addf %199, %5 : vector<1x512xf32>
    %201 = arith.negf %200 : vector<1x512xf32>
    %202 = math.exp %201 : vector<1x512xf32>
    %cst_68 = arith.constant 1.000000e+00 : f32
    %203 = vector.broadcast %cst_68 : f32 to vector<1x512xf32>
    %204 = arith.addf %203, %202 : vector<1x512xf32>
    %205 = arith.divf %203, %204 : vector<1x512xf32>
    %206 = vector.extract_strided_slice %205 {offsets = [0, 0], sizes = [1, 128], strides = [1, 1]} : vector<1x512xf32> to vector<1x128xf32>
    %207 = vector.extract_strided_slice %205 {offsets = [0, 128], sizes = [1, 128], strides = [1, 1]} : vector<1x512xf32> to vector<1x128xf32>
    %208 = vector.extract_strided_slice %205 {offsets = [0, 256], sizes = [1, 128], strides = [1, 1]} : vector<1x512xf32> to vector<1x128xf32>
    %cst_69 = arith.constant 2.000000e+00 : f32
    %209 = vector.broadcast %cst_69 : f32 to vector<1x128xf32>
    %210 = arith.mulf %209, %208 : vector<1x128xf32>
    %cst_70 = arith.constant 1.000000e+00 : f32
    %211 = vector.broadcast %cst_70 : f32 to vector<1x128xf32>
    %212 = arith.subf %210, %211 : vector<1x128xf32>
    %213 = vector.extract_strided_slice %205 {offsets = [0, 384], sizes = [1, 128], strides = [1, 1]} : vector<1x512xf32> to vector<1x128xf32>
    %214 = arith.mulf %207, %164 : vector<1x128xf32>
    %215 = arith.mulf %206, %212 : vector<1x128xf32>
    %216 = arith.addf %214, %215 : vector<1x128xf32>
    %217 = math.tanh %216 : vector<1x128xf32>
    %218 = arith.mulf %213, %217 : vector<1x128xf32>
    %219 = arith.truncf %218 : vector<1x128xf32> to vector<1x128xbf16>
    %cst_71 = arith.constant dense<0.000000e+00> : vector<1x512xf32>
    %220 = tpu.matmul %219, %3, %cst_71 {dimension_numbers = #tpu.dot_dimension_numbers<[1], [0], [0], [1], [0, 0, 1, 1], [], []>} : vector<1x128xbf16>, vector<128x512xbf16>, vector<1x512xf32> -> vector<1x512xf32>
    %c3 = arith.constant 3 : index
    %c0_72 = arith.constant 0 : index
    %221 = vector.load %arg11[%c3, %c0_72] : memref<8x128xf32, #tpu.memory_space<vmem>>, vector<1x128xf32>
    tpu.vector_store %arg11[%c3, %c0_72], %218 {strides = array<i32>} : memref<8x128xf32, #tpu.memory_space<vmem>>, vector<1x128xf32>,
    %222 = arith.truncf %218 : vector<1x128xf32> to vector<1x128xbf16>
    %cst_73 = arith.constant dense<0.000000e+00> : vector<1x128xf32>
    %223 = tpu.matmul %222, %6, %cst_73 {dimension_numbers = #tpu.dot_dimension_numbers<[1], [0], [0], [1], [0, 0, 1, 1], [], []>} : vector<1x128xbf16>, vector<128x128xbf16>, vector<1x128xf32> -> vector<1x128xf32>
    %224 = arith.addf %223, %7 : vector<1x128xf32>
    %225 = arith.truncf %224 : vector<1x128xf32> to vector<1x128xbf16>
    %cst_74 = arith.constant dense<0.000000e+00> : vector<1x512xf32>
    %226 = tpu.matmul %225, %0, %cst_74 {dimension_numbers = #tpu.dot_dimension_numbers<[1], [0], [0], [1], [0, 0, 1, 1], [], []>} : vector<1x128xbf16>, vector<128x512xbf16>, vector<1x512xf32> -> vector<1x512xf32>
    %227 = arith.addf %226, %196 : vector<1x512xf32>
    %228 = arith.addf %227, %4 : vector<1x512xf32>
    %229 = arith.negf %228 : vector<1x512xf32>
    %230 = math.exp %229 : vector<1x512xf32>
    %cst_75 = arith.constant 1.000000e+00 : f32
    %231 = vector.broadcast %cst_75 : f32 to vector<1x512xf32>
    %232 = arith.addf %231, %230 : vector<1x512xf32>
    %233 = arith.divf %231, %232 : vector<1x512xf32>
    %234 = vector.extract_strided_slice %233 {offsets = [0, 0], sizes = [1, 128], strides = [1, 1]} : vector<1x512xf32> to vector<1x128xf32>
    %235 = vector.extract_strided_slice %233 {offsets = [0, 128], sizes = [1, 128], strides = [1, 1]} : vector<1x512xf32> to vector<1x128xf32>
    %236 = vector.extract_strided_slice %233 {offsets = [0, 256], sizes = [1, 128], strides = [1, 1]} : vector<1x512xf32> to vector<1x128xf32>
    %cst_76 = arith.constant 2.000000e+00 : f32
    %237 = vector.broadcast %cst_76 : f32 to vector<1x128xf32>
    %238 = arith.mulf %237, %236 : vector<1x128xf32>
    %cst_77 = arith.constant 1.000000e+00 : f32
    %239 = vector.broadcast %cst_77 : f32 to vector<1x128xf32>
    %240 = arith.subf %238, %239 : vector<1x128xf32>
    %241 = vector.extract_strided_slice %233 {offsets = [0, 384], sizes = [1, 128], strides = [1, 1]} : vector<1x512xf32> to vector<1x128xf32>
    %242 = arith.mulf %235, %192 : vector<1x128xf32>
    %243 = arith.mulf %234, %240 : vector<1x128xf32>
    %244 = arith.addf %242, %243 : vector<1x128xf32>
    %245 = math.tanh %244 : vector<1x128xf32>
    %246 = arith.mulf %241, %245 : vector<1x128xf32>
    %247 = arith.truncf %246 : vector<1x128xf32> to vector<1x128xbf16>
    %cst_78 = arith.constant dense<0.000000e+00> : vector<1x512xf32>
    %248 = tpu.matmul %247, %1, %cst_78 {dimension_numbers = #tpu.dot_dimension_numbers<[1], [0], [0], [1], [0, 0, 1, 1], [], []>} : vector<1x128xbf16>, vector<128x512xbf16>, vector<1x512xf32> -> vector<1x512xf32>
    %249 = arith.truncf %246 : vector<1x128xf32> to vector<1x128xbf16>
    %cst_79 = arith.constant dense<0.000000e+00> : vector<1x512xf32>
    %250 = tpu.matmul %249, %2, %cst_79 {dimension_numbers = #tpu.dot_dimension_numbers<[1], [0], [0], [1], [0, 0, 1, 1], [], []>} : vector<1x128xbf16>, vector<128x512xbf16>, vector<1x512xf32> -> vector<1x512xf32>
    %251 = arith.addf %250, %220 : vector<1x512xf32>
    %252 = arith.addf %251, %5 : vector<1x512xf32>
    %253 = arith.negf %252 : vector<1x512xf32>
    %254 = math.exp %253 : vector<1x512xf32>
    %cst_80 = arith.constant 1.000000e+00 : f32
    %255 = vector.broadcast %cst_80 : f32 to vector<1x512xf32>
    %256 = arith.addf %255, %254 : vector<1x512xf32>
    %257 = arith.divf %255, %256 : vector<1x512xf32>
    %258 = vector.extract_strided_slice %257 {offsets = [0, 0], sizes = [1, 128], strides = [1, 1]} : vector<1x512xf32> to vector<1x128xf32>
    %259 = vector.extract_strided_slice %257 {offsets = [0, 128], sizes = [1, 128], strides = [1, 1]} : vector<1x512xf32> to vector<1x128xf32>
    %260 = vector.extract_strided_slice %257 {offsets = [0, 256], sizes = [1, 128], strides = [1, 1]} : vector<1x512xf32> to vector<1x128xf32>
    %cst_81 = arith.constant 2.000000e+00 : f32
    %261 = vector.broadcast %cst_81 : f32 to vector<1x128xf32>
    %262 = arith.mulf %261, %260 : vector<1x128xf32>
    %cst_82 = arith.constant 1.000000e+00 : f32
    %263 = vector.broadcast %cst_82 : f32 to vector<1x128xf32>
    %264 = arith.subf %262, %263 : vector<1x128xf32>
    %265 = vector.extract_strided_slice %257 {offsets = [0, 384], sizes = [1, 128], strides = [1, 1]} : vector<1x512xf32> to vector<1x128xf32>
    %266 = arith.mulf %259, %216 : vector<1x128xf32>
    %267 = arith.mulf %258, %264 : vector<1x128xf32>
    %268 = arith.addf %266, %267 : vector<1x128xf32>
    %269 = math.tanh %268 : vector<1x128xf32>
    %270 = arith.mulf %265, %269 : vector<1x128xf32>
    %271 = arith.truncf %270 : vector<1x128xf32> to vector<1x128xbf16>
    %cst_83 = arith.constant dense<0.000000e+00> : vector<1x512xf32>
    %272 = tpu.matmul %271, %3, %cst_83 {dimension_numbers = #tpu.dot_dimension_numbers<[1], [0], [0], [1], [0, 0, 1, 1], [], []>} : vector<1x128xbf16>, vector<128x512xbf16>, vector<1x512xf32> -> vector<1x512xf32>
    %c4 = arith.constant 4 : index
    %c0_84 = arith.constant 0 : index
    %273 = vector.load %arg11[%c4, %c0_84] : memref<8x128xf32, #tpu.memory_space<vmem>>, vector<1x128xf32>
    tpu.vector_store %arg11[%c4, %c0_84], %270 {strides = array<i32>} : memref<8x128xf32, #tpu.memory_space<vmem>>, vector<1x128xf32>,
    %274 = arith.truncf %270 : vector<1x128xf32> to vector<1x128xbf16>
    %cst_85 = arith.constant dense<0.000000e+00> : vector<1x128xf32>
    %275 = tpu.matmul %274, %6, %cst_85 {dimension_numbers = #tpu.dot_dimension_numbers<[1], [0], [0], [1], [0, 0, 1, 1], [], []>} : vector<1x128xbf16>, vector<128x128xbf16>, vector<1x128xf32> -> vector<1x128xf32>
    %276 = arith.addf %275, %7 : vector<1x128xf32>
    %277 = arith.truncf %276 : vector<1x128xf32> to vector<1x128xbf16>
    %cst_86 = arith.constant dense<0.000000e+00> : vector<1x512xf32>
    %278 = tpu.matmul %277, %0, %cst_86 {dimension_numbers = #tpu.dot_dimension_numbers<[1], [0], [0], [1], [0, 0, 1, 1], [], []>} : vector<1x128xbf16>, vector<128x512xbf16>, vector<1x512xf32> -> vector<1x512xf32>
    %279 = arith.addf %278, %248 : vector<1x512xf32>
    %280 = arith.addf %279, %4 : vector<1x512xf32>
    %281 = arith.negf %280 : vector<1x512xf32>
    %282 = math.exp %281 : vector<1x512xf32>
    %cst_87 = arith.constant 1.000000e+00 : f32
    %283 = vector.broadcast %cst_87 : f32 to vector<1x512xf32>
    %284 = arith.addf %283, %282 : vector<1x512xf32>
    %285 = arith.divf %283, %284 : vector<1x512xf32>
    %286 = vector.extract_strided_slice %285 {offsets = [0, 0], sizes = [1, 128], strides = [1, 1]} : vector<1x512xf32> to vector<1x128xf32>
    %287 = vector.extract_strided_slice %285 {offsets = [0, 128], sizes = [1, 128], strides = [1, 1]} : vector<1x512xf32> to vector<1x128xf32>
    %288 = vector.extract_strided_slice %285 {offsets = [0, 256], sizes = [1, 128], strides = [1, 1]} : vector<1x512xf32> to vector<1x128xf32>
    %cst_88 = arith.constant 2.000000e+00 : f32
    %289 = vector.broadcast %cst_88 : f32 to vector<1x128xf32>
    %290 = arith.mulf %289, %288 : vector<1x128xf32>
    %cst_89 = arith.constant 1.000000e+00 : f32
    %291 = vector.broadcast %cst_89 : f32 to vector<1x128xf32>
    %292 = arith.subf %290, %291 : vector<1x128xf32>
    %293 = vector.extract_strided_slice %285 {offsets = [0, 384], sizes = [1, 128], strides = [1, 1]} : vector<1x512xf32> to vector<1x128xf32>
    %294 = arith.mulf %287, %244 : vector<1x128xf32>
    %295 = arith.mulf %286, %292 : vector<1x128xf32>
    %296 = arith.addf %294, %295 : vector<1x128xf32>
    %297 = math.tanh %296 : vector<1x128xf32>
    %298 = arith.mulf %293, %297 : vector<1x128xf32>
    %299 = arith.truncf %298 : vector<1x128xf32> to vector<1x128xbf16>
    %cst_90 = arith.constant dense<0.000000e+00> : vector<1x512xf32>
    %300 = tpu.matmul %299, %1, %cst_90 {dimension_numbers = #tpu.dot_dimension_numbers<[1], [0], [0], [1], [0, 0, 1, 1], [], []>} : vector<1x128xbf16>, vector<128x512xbf16>, vector<1x512xf32> -> vector<1x512xf32>
    %301 = arith.truncf %298 : vector<1x128xf32> to vector<1x128xbf16>
    %cst_91 = arith.constant dense<0.000000e+00> : vector<1x512xf32>
    %302 = tpu.matmul %301, %2, %cst_91 {dimension_numbers = #tpu.dot_dimension_numbers<[1], [0], [0], [1], [0, 0, 1, 1], [], []>} : vector<1x128xbf16>, vector<128x512xbf16>, vector<1x512xf32> -> vector<1x512xf32>
    %303 = arith.addf %302, %272 : vector<1x512xf32>
    %304 = arith.addf %303, %5 : vector<1x512xf32>
    %305 = arith.negf %304 : vector<1x512xf32>
    %306 = math.exp %305 : vector<1x512xf32>
    %cst_92 = arith.constant 1.000000e+00 : f32
    %307 = vector.broadcast %cst_92 : f32 to vector<1x512xf32>
    %308 = arith.addf %307, %306 : vector<1x512xf32>
    %309 = arith.divf %307, %308 : vector<1x512xf32>
    %310 = vector.extract_strided_slice %309 {offsets = [0, 0], sizes = [1, 128], strides = [1, 1]} : vector<1x512xf32> to vector<1x128xf32>
    %311 = vector.extract_strided_slice %309 {offsets = [0, 128], sizes = [1, 128], strides = [1, 1]} : vector<1x512xf32> to vector<1x128xf32>
    %312 = vector.extract_strided_slice %309 {offsets = [0, 256], sizes = [1, 128], strides = [1, 1]} : vector<1x512xf32> to vector<1x128xf32>
    %cst_93 = arith.constant 2.000000e+00 : f32
    %313 = vector.broadcast %cst_93 : f32 to vector<1x128xf32>
    %314 = arith.mulf %313, %312 : vector<1x128xf32>
    %cst_94 = arith.constant 1.000000e+00 : f32
    %315 = vector.broadcast %cst_94 : f32 to vector<1x128xf32>
    %316 = arith.subf %314, %315 : vector<1x128xf32>
    %317 = vector.extract_strided_slice %309 {offsets = [0, 384], sizes = [1, 128], strides = [1, 1]} : vector<1x512xf32> to vector<1x128xf32>
    %318 = arith.mulf %311, %268 : vector<1x128xf32>
    %319 = arith.mulf %310, %316 : vector<1x128xf32>
    %320 = arith.addf %318, %319 : vector<1x128xf32>
    %321 = math.tanh %320 : vector<1x128xf32>
    %322 = arith.mulf %317, %321 : vector<1x128xf32>
    %323 = arith.truncf %322 : vector<1x128xf32> to vector<1x128xbf16>
    %cst_95 = arith.constant dense<0.000000e+00> : vector<1x512xf32>
    %324 = tpu.matmul %323, %3, %cst_95 {dimension_numbers = #tpu.dot_dimension_numbers<[1], [0], [0], [1], [0, 0, 1, 1], [], []>} : vector<1x128xbf16>, vector<128x512xbf16>, vector<1x512xf32> -> vector<1x512xf32>
    %c5 = arith.constant 5 : index
    %c0_96 = arith.constant 0 : index
    %325 = vector.load %arg11[%c5, %c0_96] : memref<8x128xf32, #tpu.memory_space<vmem>>, vector<1x128xf32>
    tpu.vector_store %arg11[%c5, %c0_96], %322 {strides = array<i32>} : memref<8x128xf32, #tpu.memory_space<vmem>>, vector<1x128xf32>,
    %326 = arith.truncf %322 : vector<1x128xf32> to vector<1x128xbf16>
    %cst_97 = arith.constant dense<0.000000e+00> : vector<1x128xf32>
    %327 = tpu.matmul %326, %6, %cst_97 {dimension_numbers = #tpu.dot_dimension_numbers<[1], [0], [0], [1], [0, 0, 1, 1], [], []>} : vector<1x128xbf16>, vector<128x128xbf16>, vector<1x128xf32> -> vector<1x128xf32>
    %328 = arith.addf %327, %7 : vector<1x128xf32>
    %329 = arith.truncf %328 : vector<1x128xf32> to vector<1x128xbf16>
    %cst_98 = arith.constant dense<0.000000e+00> : vector<1x512xf32>
    %330 = tpu.matmul %329, %0, %cst_98 {dimension_numbers = #tpu.dot_dimension_numbers<[1], [0], [0], [1], [0, 0, 1, 1], [], []>} : vector<1x128xbf16>, vector<128x512xbf16>, vector<1x512xf32> -> vector<1x512xf32>
    %331 = arith.addf %330, %300 : vector<1x512xf32>
    %332 = arith.addf %331, %4 : vector<1x512xf32>
    %333 = arith.negf %332 : vector<1x512xf32>
    %334 = math.exp %333 : vector<1x512xf32>
    %cst_99 = arith.constant 1.000000e+00 : f32
    %335 = vector.broadcast %cst_99 : f32 to vector<1x512xf32>
    %336 = arith.addf %335, %334 : vector<1x512xf32>
    %337 = arith.divf %335, %336 : vector<1x512xf32>
    %338 = vector.extract_strided_slice %337 {offsets = [0, 0], sizes = [1, 128], strides = [1, 1]} : vector<1x512xf32> to vector<1x128xf32>
    %339 = vector.extract_strided_slice %337 {offsets = [0, 128], sizes = [1, 128], strides = [1, 1]} : vector<1x512xf32> to vector<1x128xf32>
    %340 = vector.extract_strided_slice %337 {offsets = [0, 256], sizes = [1, 128], strides = [1, 1]} : vector<1x512xf32> to vector<1x128xf32>
    %cst_100 = arith.constant 2.000000e+00 : f32
    %341 = vector.broadcast %cst_100 : f32 to vector<1x128xf32>
    %342 = arith.mulf %341, %340 : vector<1x128xf32>
    %cst_101 = arith.constant 1.000000e+00 : f32
    %343 = vector.broadcast %cst_101 : f32 to vector<1x128xf32>
    %344 = arith.subf %342, %343 : vector<1x128xf32>
    %345 = vector.extract_strided_slice %337 {offsets = [0, 384], sizes = [1, 128], strides = [1, 1]} : vector<1x512xf32> to vector<1x128xf32>
    %346 = arith.mulf %339, %296 : vector<1x128xf32>
    %347 = arith.mulf %338, %344 : vector<1x128xf32>
    %348 = arith.addf %346, %347 : vector<1x128xf32>
    %349 = math.tanh %348 : vector<1x128xf32>
    %350 = arith.mulf %345, %349 : vector<1x128xf32>
    %351 = arith.truncf %350 : vector<1x128xf32> to vector<1x128xbf16>
    %cst_102 = arith.constant dense<0.000000e+00> : vector<1x512xf32>
    %352 = tpu.matmul %351, %1, %cst_102 {dimension_numbers = #tpu.dot_dimension_numbers<[1], [0], [0], [1], [0, 0, 1, 1], [], []>} : vector<1x128xbf16>, vector<128x512xbf16>, vector<1x512xf32> -> vector<1x512xf32>
    %353 = arith.truncf %350 : vector<1x128xf32> to vector<1x128xbf16>
    %cst_103 = arith.constant dense<0.000000e+00> : vector<1x512xf32>
    %354 = tpu.matmul %353, %2, %cst_103 {dimension_numbers = #tpu.dot_dimension_numbers<[1], [0], [0], [1], [0, 0, 1, 1], [], []>} : vector<1x128xbf16>, vector<128x512xbf16>, vector<1x512xf32> -> vector<1x512xf32>
    %355 = arith.addf %354, %324 : vector<1x512xf32>
    %356 = arith.addf %355, %5 : vector<1x512xf32>
    %357 = arith.negf %356 : vector<1x512xf32>
    %358 = math.exp %357 : vector<1x512xf32>
    %cst_104 = arith.constant 1.000000e+00 : f32
    %359 = vector.broadcast %cst_104 : f32 to vector<1x512xf32>
    %360 = arith.addf %359, %358 : vector<1x512xf32>
    %361 = arith.divf %359, %360 : vector<1x512xf32>
    %362 = vector.extract_strided_slice %361 {offsets = [0, 0], sizes = [1, 128], strides = [1, 1]} : vector<1x512xf32> to vector<1x128xf32>
    %363 = vector.extract_strided_slice %361 {offsets = [0, 128], sizes = [1, 128], strides = [1, 1]} : vector<1x512xf32> to vector<1x128xf32>
    %364 = vector.extract_strided_slice %361 {offsets = [0, 256], sizes = [1, 128], strides = [1, 1]} : vector<1x512xf32> to vector<1x128xf32>
    %cst_105 = arith.constant 2.000000e+00 : f32
    %365 = vector.broadcast %cst_105 : f32 to vector<1x128xf32>
    %366 = arith.mulf %365, %364 : vector<1x128xf32>
    %cst_106 = arith.constant 1.000000e+00 : f32
    %367 = vector.broadcast %cst_106 : f32 to vector<1x128xf32>
    %368 = arith.subf %366, %367 : vector<1x128xf32>
    %369 = vector.extract_strided_slice %361 {offsets = [0, 384], sizes = [1, 128], strides = [1, 1]} : vector<1x512xf32> to vector<1x128xf32>
    %370 = arith.mulf %363, %320 : vector<1x128xf32>
    %371 = arith.mulf %362, %368 : vector<1x128xf32>
    %372 = arith.addf %370, %371 : vector<1x128xf32>
    %373 = math.tanh %372 : vector<1x128xf32>
    %374 = arith.mulf %369, %373 : vector<1x128xf32>
    %375 = arith.truncf %374 : vector<1x128xf32> to vector<1x128xbf16>
    %cst_107 = arith.constant dense<0.000000e+00> : vector<1x512xf32>
    %376 = tpu.matmul %375, %3, %cst_107 {dimension_numbers = #tpu.dot_dimension_numbers<[1], [0], [0], [1], [0, 0, 1, 1], [], []>} : vector<1x128xbf16>, vector<128x512xbf16>, vector<1x512xf32> -> vector<1x512xf32>
    %c6 = arith.constant 6 : index
    %c0_108 = arith.constant 0 : index
    %377 = vector.load %arg11[%c6, %c0_108] : memref<8x128xf32, #tpu.memory_space<vmem>>, vector<1x128xf32>
    tpu.vector_store %arg11[%c6, %c0_108], %374 {strides = array<i32>} : memref<8x128xf32, #tpu.memory_space<vmem>>, vector<1x128xf32>,
    %378 = arith.truncf %374 : vector<1x128xf32> to vector<1x128xbf16>
    %cst_109 = arith.constant dense<0.000000e+00> : vector<1x128xf32>
    %379 = tpu.matmul %378, %6, %cst_109 {dimension_numbers = #tpu.dot_dimension_numbers<[1], [0], [0], [1], [0, 0, 1, 1], [], []>} : vector<1x128xbf16>, vector<128x128xbf16>, vector<1x128xf32> -> vector<1x128xf32>
    %380 = arith.addf %379, %7 : vector<1x128xf32>
    %381 = arith.truncf %380 : vector<1x128xf32> to vector<1x128xbf16>
    %cst_110 = arith.constant dense<0.000000e+00> : vector<1x512xf32>
    %382 = tpu.matmul %381, %0, %cst_110 {dimension_numbers = #tpu.dot_dimension_numbers<[1], [0], [0], [1], [0, 0, 1, 1], [], []>} : vector<1x128xbf16>, vector<128x512xbf16>, vector<1x512xf32> -> vector<1x512xf32>
    %383 = arith.addf %382, %352 : vector<1x512xf32>
    %384 = arith.addf %383, %4 : vector<1x512xf32>
    %385 = arith.negf %384 : vector<1x512xf32>
    %386 = math.exp %385 : vector<1x512xf32>
    %cst_111 = arith.constant 1.000000e+00 : f32
    %387 = vector.broadcast %cst_111 : f32 to vector<1x512xf32>
    %388 = arith.addf %387, %386 : vector<1x512xf32>
    %389 = arith.divf %387, %388 : vector<1x512xf32>
    %390 = vector.extract_strided_slice %389 {offsets = [0, 0], sizes = [1, 128], strides = [1, 1]} : vector<1x512xf32> to vector<1x128xf32>
    %391 = vector.extract_strided_slice %389 {offsets = [0, 128], sizes = [1, 128], strides = [1, 1]} : vector<1x512xf32> to vector<1x128xf32>
    %392 = vector.extract_strided_slice %389 {offsets = [0, 256], sizes = [1, 128], strides = [1, 1]} : vector<1x512xf32> to vector<1x128xf32>
    %cst_112 = arith.constant 2.000000e+00 : f32
    %393 = vector.broadcast %cst_112 : f32 to vector<1x128xf32>
    %394 = arith.mulf %393, %392 : vector<1x128xf32>
    %cst_113 = arith.constant 1.000000e+00 : f32
    %395 = vector.broadcast %cst_113 : f32 to vector<1x128xf32>
    %396 = arith.subf %394, %395 : vector<1x128xf32>
    %397 = vector.extract_strided_slice %389 {offsets = [0, 384], sizes = [1, 128], strides = [1, 1]} : vector<1x512xf32> to vector<1x128xf32>
    %398 = arith.mulf %391, %348 : vector<1x128xf32>
    %399 = arith.mulf %390, %396 : vector<1x128xf32>
    %400 = arith.addf %398, %399 : vector<1x128xf32>
    %401 = math.tanh %400 : vector<1x128xf32>
    %402 = arith.mulf %397, %401 : vector<1x128xf32>
    %403 = arith.truncf %402 : vector<1x128xf32> to vector<1x128xbf16>
    %cst_114 = arith.constant dense<0.000000e+00> : vector<1x512xf32>
    %404 = tpu.matmul %403, %1, %cst_114 {dimension_numbers = #tpu.dot_dimension_numbers<[1], [0], [0], [1], [0, 0, 1, 1], [], []>} : vector<1x128xbf16>, vector<128x512xbf16>, vector<1x512xf32> -> vector<1x512xf32>
    %405 = arith.truncf %402 : vector<1x128xf32> to vector<1x128xbf16>
    %cst_115 = arith.constant dense<0.000000e+00> : vector<1x512xf32>
    %406 = tpu.matmul %405, %2, %cst_115 {dimension_numbers = #tpu.dot_dimension_numbers<[1], [0], [0], [1], [0, 0, 1, 1], [], []>} : vector<1x128xbf16>, vector<128x512xbf16>, vector<1x512xf32> -> vector<1x512xf32>
    %407 = arith.addf %406, %376 : vector<1x512xf32>
    %408 = arith.addf %407, %5 : vector<1x512xf32>
    %409 = arith.negf %408 : vector<1x512xf32>
    %410 = math.exp %409 : vector<1x512xf32>
    %cst_116 = arith.constant 1.000000e+00 : f32
    %411 = vector.broadcast %cst_116 : f32 to vector<1x512xf32>
    %412 = arith.addf %411, %410 : vector<1x512xf32>
    %413 = arith.divf %411, %412 : vector<1x512xf32>
    %414 = vector.extract_strided_slice %413 {offsets = [0, 0], sizes = [1, 128], strides = [1, 1]} : vector<1x512xf32> to vector<1x128xf32>
    %415 = vector.extract_strided_slice %413 {offsets = [0, 128], sizes = [1, 128], strides = [1, 1]} : vector<1x512xf32> to vector<1x128xf32>
    %416 = vector.extract_strided_slice %413 {offsets = [0, 256], sizes = [1, 128], strides = [1, 1]} : vector<1x512xf32> to vector<1x128xf32>
    %cst_117 = arith.constant 2.000000e+00 : f32
    %417 = vector.broadcast %cst_117 : f32 to vector<1x128xf32>
    %418 = arith.mulf %417, %416 : vector<1x128xf32>
    %cst_118 = arith.constant 1.000000e+00 : f32
    %419 = vector.broadcast %cst_118 : f32 to vector<1x128xf32>
    %420 = arith.subf %418, %419 : vector<1x128xf32>
    %421 = vector.extract_strided_slice %413 {offsets = [0, 384], sizes = [1, 128], strides = [1, 1]} : vector<1x512xf32> to vector<1x128xf32>
    %422 = arith.mulf %415, %372 : vector<1x128xf32>
    %423 = arith.mulf %414, %420 : vector<1x128xf32>
    %424 = arith.addf %422, %423 : vector<1x128xf32>
    %425 = math.tanh %424 : vector<1x128xf32>
    %426 = arith.mulf %421, %425 : vector<1x128xf32>
    %427 = arith.truncf %426 : vector<1x128xf32> to vector<1x128xbf16>
    %cst_119 = arith.constant dense<0.000000e+00> : vector<1x512xf32>
    %428 = tpu.matmul %427, %3, %cst_119 {dimension_numbers = #tpu.dot_dimension_numbers<[1], [0], [0], [1], [0, 0, 1, 1], [], []>} : vector<1x128xbf16>, vector<128x512xbf16>, vector<1x512xf32> -> vector<1x512xf32>
    %c7 = arith.constant 7 : index
    %c0_120 = arith.constant 0 : index
    %429 = vector.load %arg11[%c7, %c0_120] : memref<8x128xf32, #tpu.memory_space<vmem>>, vector<1x128xf32>
    tpu.vector_store %arg11[%c7, %c0_120], %426 {strides = array<i32>} : memref<8x128xf32, #tpu.memory_space<vmem>>, vector<1x128xf32>,
    %430 = arith.truncf %426 : vector<1x128xf32> to vector<1x128xbf16>
    %cst_121 = arith.constant dense<0.000000e+00> : vector<1x128xf32>
    %431 = tpu.matmul %430, %6, %cst_121 {dimension_numbers = #tpu.dot_dimension_numbers<[1], [0], [0], [1], [0, 0, 1, 1], [], []>} : vector<1x128xbf16>, vector<128x128xbf16>, vector<1x128xf32> -> vector<1x128xf32>
    %432 = arith.addf %431, %7 : vector<1x128xf32>
    %c8_i32 = arith.constant 8 : i32
    %433 = arith.muli %c0_i32, %c8_i32 : i32
    %434 = tpu.assume_multiple %433, 8 : i32
    %c0_122 = arith.constant 0 : index
    %c0_123 = arith.constant 0 : index
    %435 = vector.load %arg11[%c0_122, %c0_123] : memref<8x128xf32, #tpu.memory_space<vmem>>, vector<8x128xf32>
    %436 = arith.index_cast %434 : i32 to index
    %c0_124 = arith.constant 0 : index
    %437 = vector.load %arg10[%436, %c0_124] : memref<8x128xf32, #tpu.memory_space<vmem>>, vector<8x128xf32>
    tpu.vector_store %arg10[%436, %c0_124], %435 {strides = array<i32>} : memref<8x128xf32, #tpu.memory_space<vmem>>, vector<8x128xf32>,
    %c1_i32 = arith.constant 1 : i32
    return
  }
}

</mosaic_0001>

<bundles_post_ra>
// kernel: tpu_custom_call.1
= control target key start
LH: loop header
LB: loop body
LE: loop exit
PB: predicated region body
PF: predicated region fallthrough
CT: control target
= control target key end

     0   :  { %15 = vsyncpa [#allocation4], 0  ;;  %s7636_s0 = inlined_call_operand.hbm [shape: f32[2,128], index: 0, kind: input, shape index: {}]   ;;  %s7637_s1 = inlined_call_operand.hbm [shape: f32[2,128], index: 1, kind: input, shape index: {}]   ;;  %s7638_s2 = inlined_call_operand.hbm [shape: bf16[128,512], index: 2, kind: input, shape index: {}]   ;;  %s7639_s3 = inlined_call_operand.hbm [shape: bf16[128,512], index: 3, kind: input, shape index: {}]   ;;  %s7640_s4 = inlined_call_operand.hbm [shape: f32[1,512], index: 4, kind: input, shape index: {}]   ;;  %s7641_s5 = inlined_call_operand.hbm [shape: bf16[128,512], index: 5, kind: input, shape index: {}]   ;;  %s7642_s6 = inlined_call_operand.hbm [shape: bf16[128,512], index: 6, kind: input, shape index: {}]   ;;  %s7643_s7 = inlined_call_operand.vmem [shape: f32[1,512], index: 7, kind: input, shape index: {}]   ;;  %s7644_s8 = inlined_call_operand.hbm [shape: bf16[128,128], index: 8, kind: input, shape index: {}]   ;;  %s7645_s9 = inlined_call_operand.vmem [shape: f32[1,128], index: 9, kind: input, shape index: {}]   ;;  %s7646_s10 = inlined_call_operand.hbm [shape: f32[8,128], index: 10, kind: output, shape index: {}]  }
   0x1   :  { %16 = vsyncpa [#allocation7], 0 }
   0x2   :  { %17 = vsyncpa [#allocation10], 0 }
   0x3   :  { %18 = vsyncpa [#allocation13], 0 }
   0x4   :  { %19 = vsyncpa [#allocation16], 0  ;;  %s37_s15 = sshll.u32 %s7637_s1, 4  ;;  %s38_s15 = int_to_ptr.hbm [resolvable:$true] %s37_s15 }
   0x5   :  { %20 = vsyncpa [#allocation5], 0  ;;  %s5532_s16 = smov [#allocation6]   ;;  %s60_s20 = sshll.u32 %s7639_s3, 4  ;;  %s61_s20 = int_to_ptr.hbm [resolvable:$true] %s60_s20 }
   0x6   :  { %s39_s17 = sshll.u32 %s5532_s16, 4  ;;  %s5533_s21 = smov [#allocation9]   ;;  %s40_s17 = int_to_ptr.vmem [resolvable:$true] %s39_s17 }
   0x7   :  { %42 = dma.hbm_to_vmem [thread:$0]  %s38_s15, 32, %s40_s17, [#allocation7]  }
   0x8   :  { %s62_s22 = sshll.u32 %s5533_s21, 4  ;;  %s84_s25 = sshll.u32 %s7641_s5, 4  ;;  %s63_s22 = int_to_ptr.vmem [resolvable:$true] %s62_s22  ;;  %s85_s25 = int_to_ptr.hbm [resolvable:$true] %s84_s25 }
   0x9   :  { %s5534_s1 = smov 256   ;;  %s5535_s26 = smov 16  }
   0xa   :  { %68 = dma.hbm_to_vmem [thread:$0]  %s61_s20, 4096, %s63_s22, [#allocation10], %s5534_s1, %s5534_s1, %s5535_s26  }
   0xb   :  { %s26_s29 = sshll.u32 %s7636_s0, 4  ;;  %s5536_s3 = smov [#allocation12]   ;;  %s27_s29 = int_to_ptr.hbm [resolvable:$true] %s26_s29 }
   0xc   :  { %s86_s30 = sshll.u32 %s5536_s3, 4  ;;  %s5537_s5 = smov [#allocation3]   ;;  %s87_s30 = int_to_ptr.vmem [resolvable:$true] %s86_s30 }
   0xd   :  { %92 = dma.hbm_to_vmem [thread:$0]  %s85_s25, 4096, %s87_s30, [#allocation13], %s5534_s1, %s5534_s1, %s5535_s26  }
   0xe   :  { %s28_s11 = sshll.u32 %s5537_s5, 4  ;;  %s47_s14 = sshll.u32 %s7638_s2, 4  ;;  %s29_s11 = int_to_ptr.vmem [resolvable:$true] %s28_s11  ;;  %s48_s14 = int_to_ptr.hbm [resolvable:$true] %s47_s14 }
   0xf   :  { %31 = dma.hbm_to_vmem [thread:$0]  %s27_s29, 32, %s29_s11, [#allocation4]  }
  0x10   :  { %s74_s0 = sshll.u32 %s7640_s4, 4  ;;  %s5538_s17 = smov [#allocation8]   ;;  %s75_s0 = int_to_ptr.hbm [resolvable:$true] %s74_s0 }
  0x11   :  { %s49_s18 = sshll.u32 %s5538_s17, 4  ;;  %s5539_s19 = smov [#allocation11]   ;;  %s50_s18 = int_to_ptr.vmem [resolvable:$true] %s49_s18 }
  0x12   :  { %55 = dma.hbm_to_vmem [thread:$0]  %s48_s14, 4096, %s50_s18, [#allocation7], %s5534_s1, %s5534_s1, %s5535_s26  }
  0x13   :  { %s76_s20 = sshll.u32 %s5539_s19, 4  ;;  %s97_s2 = sshll.u32 %s7642_s6, 4  ;;  %s77_s20 = int_to_ptr.vmem [resolvable:$true] %s76_s20  ;;  %s98_s2 = int_to_ptr.hbm [resolvable:$true] %s97_s2 }
  0x14   :  { %79 = dma.hbm_to_vmem [thread:$0]  %s75_s0, 64, %s77_s20, [#allocation10]  }
  0x15   :  { %s112_s4 = sshll.u32 %s7644_s8, 4  ;;  %s5540_s25 = smov [#allocation14]   ;;  %s113_s4 = int_to_ptr.hbm [resolvable:$true] %s112_s4 }
  0x16   :  { %s99_s27 = sshll.u32 %s5540_s25, 4  ;;  %s5541_s28 = smov [#allocation15]   ;;  %s100_s27 = int_to_ptr.vmem [resolvable:$true] %s99_s27 }
  0x17   :  { %105 = dma.hbm_to_vmem [thread:$0]  %s98_s2, 4096, %s100_s27, [#allocation13], %s5534_s1, %s5534_s1, %s5535_s26  }
  0x18   :  { %s114_s29 = sshll.u32 %s5541_s28, 4  ;;  %s5542_s3 = smov 64   ;;  %s115_s29 = int_to_ptr.vmem [resolvable:$true] %s114_s29 }
  0x19   :  { %s5543_s6 = smov 4  }
  0x1a   :  { %120 = dma.hbm_to_vmem [thread:$0]  %s113_s4, 1024, %s115_s29, [#allocation16], %s5542_s3, %s5542_s3, %s5543_s6  }
  0x1b   :  { %5520 = dma.done.wait [#allocation4], 32  }
  0x1c   :  { %5521 = vsyncadd [#allocation4], 4294967264 }
  0x1d   :  { %5522 = dma.done.wait [#allocation7], 4128  }
  0x1e   :  { %5523 = vsyncadd [#allocation7], 4294963168 }
  0x1f   :  { %5524 = dma.done.wait [#allocation10], 4160  }
  0x20   :  { %5525 = vsyncadd [#allocation10], 4294963136 }
  0x21   :  { %5526 = dma.done.wait [#allocation13], 8192  }
  0x22   :  { %5527 = vsyncadd [#allocation13], 4294959104 }
  0x23   :  { %5528 = dma.done.wait [#allocation16], 1024  }
  0x24   :  { %5529 = vsyncadd [#allocation16], 4294966272  ;;  %v4329_v0 = vld [vmem:[#allocation9 + $0xe0] sm:$0xf]  ;;  %v4901_v1 = vld [vmem:[#allocation9 + $0xec] sm:$0xf0] }
  0x25   :  { %v4899_v2 = vld [vmem:[#allocation9 + $0xe4] sm:$0xf]  ;;  %v5637_v3 = vor.u32 %v4901_v1, %v4329_v0  ;;  %v4331_v4 = vld [vmem:[#allocation9 + $0xf0] sm:$0xf0]  ;;  %v4337_v5 = vld [vmem:[#allocation9 + $0xe8] sm:$0xf] }
  0x26   :  { %v4902_v6 = vld [vmem:[#allocation9 + $0xf4] sm:$0xf0]  ;;  %v5639_v7 = vor.u32 %v4899_v2, %v4331_v4  ;;  %v4900_v9 = vld [vmem:[#allocation9 + $0xec] sm:$0xf]  ;;  %v4339_v10 = vld [vmem:[#allocation9 + $0xf8] sm:$0xf0] }
  0x27   :  { %v5641_v8 = vor.u32 %v4902_v6, %v4337_v5  ;;  %v4313_v11 = vld [vmem:[#allocation9 + $0xc0] sm:$0xf]  ;;  %468 = vmatpush.bf16.msra.mxu0 %v5637_v3  ;;  %v5644_v12 = vor.u32 %v4900_v9, %v4339_v10  ;;  %v4897_v13 = vld [vmem:[#allocation9 + $0xcc] sm:$0xf0]  ;;  %v4895_v14 = vld [vmem:[#allocation9 + $0xc4] sm:$0xf] }
  0x28   :  { %v4315_v15 = vld [vmem:[#allocation9 + $0xd0] sm:$0xf0]  ;;  %481 = vmatpush.bf16.msra.mxu1 %v5639_v7  ;;  %v5648_v16 = vor.u32 %v4897_v13, %v4313_v11  ;;  %v4321_v18 = vld [vmem:[#allocation9 + $0xc8] sm:$0xf]  ;;  %v4898_v19 = vld [vmem:[#allocation9 + $0xd4] sm:$0xf0] }
  0x29   :  { %7923 = vst [vmem:[#allocation24_spill] sm:$0xff] %v5644_v12  ;;  %494 = vmatpush.bf16.msra.mxu2 %v5641_v8  ;;  %v5650_v17 = vor.u32 %v4895_v14, %v4315_v15  ;;  %v4896_v20 = vld [vmem:[#allocation9 + $0xcc] sm:$0xf]  ;;  %507 = vmatpush.bf16.msra.mxu3 %v5644_v12  ;;  %v5653_v21 = vor.u32 %v4898_v19, %v4321_v18  ;;  %v4323_v22 = vld [vmem:[#allocation9 + $0xd8] sm:$0xf0]  ;;  %s4201_s17 = sshll.u32 %s7646_s10, 4  ;;  %s4202_s17 = int_to_ptr.hbm [resolvable:$true] %s4201_s17 }
  0x2a   :  { %v4297_v23 = vld [vmem:[#allocation9 + $0xa0] sm:$0xf]  ;;  %v4893_v24 = vld [vmem:[#allocation9 + $0xac] sm:$0xf0]  ;;  %v5655_v25 = vor.u32 %v4896_v20, %v4323_v22  ;;  %v4891_v26 = vld [vmem:[#allocation9 + $0xa4] sm:$0xf] }
  0x2b   :  { %v4299_v27 = vld [vmem:[#allocation9 + $0xb0] sm:$0xf0]  ;;  %v4305_v28 = vld [vmem:[#allocation9 + $0xa8] sm:$0xf]  ;;  %469 = vmatpush.bf16.msra.mxu0 %v5648_v16  ;;  %v5658_v29 = vor.u32 %v4893_v24, %v4297_v23  ;;  %v4894_v30 = vld [vmem:[#allocation9 + $0xb4] sm:$0xf0] }
  0x2c   :  { %7924 = vst [vmem:[#allocation25_spill] sm:$0xff] %v5655_v25  ;;  %v4892_v31 = vld [vmem:[#allocation9 + $0xac] sm:$0xf]  ;;  %v4307_v32 = vld [vmem:[#allocation9 + $0xb8] sm:$0xf0]  ;;  %482 = vmatpush.bf16.msra.mxu1 %v5650_v17  ;;  %v5662_v33 = vor.u32 %v4891_v26, %v4299_v27  ;;  %v5664_v34 = vor.u32 %v4894_v30, %v4305_v28 }
  0x2d   :  { %495 = vmatpush.bf16.msra.mxu2 %v5653_v21  ;;  %v4281_v35 = vld [vmem:[#allocation9 + $0x80] sm:$0xf]  ;;  %v4889_v36 = vld [vmem:[#allocation9 + $0x8c] sm:$0xf0]  ;;  %v4887_v37 = vld [vmem:[#allocation9 + $0x84] sm:$0xf]  ;;  %508 = vmatpush.bf16.msra.mxu3 %v5655_v25  ;;  %v5667_v38 = vor.u32 %v4892_v31, %v4307_v32 }
  0x2e   :  { %7925 = vst [vmem:[#allocation26_spill] sm:$0xff] %v5662_v33  ;;  %v4283_v39 = vld [vmem:[#allocation9 + $0x90] sm:$0xf0]  ;;  %v4289_v40 = vld [vmem:[#allocation9 + $0x88] sm:$0xf]  ;;  %v5670_v44 = vor.u32 %v4889_v36, %v4281_v35 }
  0x2f   :  { %7926 = vst [vmem:[#allocation27_spill] sm:$0xff] %v5664_v34  ;;  %v4890_v41 = vld [vmem:[#allocation9 + $0x94] sm:$0xf0]  ;;  %v4888_v42 = vld [vmem:[#allocation9 + $0x8c] sm:$0xf]  ;;  %470 = vmatpush.bf16.msra.mxu0 %v5658_v29  ;;  %v5674_v45 = vor.u32 %v4887_v37, %v4283_v39 }
  0x30   :  { %7927 = vst [vmem:[#allocation28_spill] sm:$0xff] %v5667_v38  ;;  %v4291_v43 = vld [vmem:[#allocation9 + $0x98] sm:$0xf0]  ;;  %483 = vmatpush.bf16.msra.mxu1 %v5662_v33  ;;  %v5676_v46 = vor.u32 %v4890_v41, %v4289_v40  ;;  %v4265_v47 = vld [vmem:[#allocation9 + $0x60] sm:$0xf] }
  0x31   :  { %7928 = vst [vmem:[#allocation29_spill] sm:$0xff] %v5670_v44  ;;  %496 = vmatpush.bf16.msra.mxu2 %v5664_v34  ;;  %v4885_v48 = vld [vmem:[#allocation9 + $0x6c] sm:$0xf0]  ;;  %v4883_v49 = vld [vmem:[#allocation9 + $0x64] sm:$0xf]  ;;  %509 = vmatpush.bf16.msra.mxu3 %v5667_v38  ;;  %v5679_v50 = vor.u32 %v4888_v42, %v4291_v43 }
  0x32   :  { %7929 = vst [vmem:[#allocation30_spill] sm:$0xff] %v5674_v45  ;;  %v4267_v51 = vld [vmem:[#allocation9 + $0x70] sm:$0xf0]  ;;  %v4273_v52 = vld [vmem:[#allocation9 + $0x68] sm:$0xf]  ;;  %v5682_v56 = vor.u32 %v4885_v48, %v4265_v47 }
  0x33   :  { %7930 = vst [vmem:[#allocation31_spill] sm:$0xff] %v5676_v46  ;;  %v4886_v53 = vld [vmem:[#allocation9 + $0x74] sm:$0xf0]  ;;  %v4884_v54 = vld [vmem:[#allocation9 + $0x6c] sm:$0xf]  ;;  %471 = vmatpush.bf16.msra.mxu0 %v5670_v44  ;;  %v5686_v57 = vor.u32 %v4883_v49, %v4267_v51 }
  0x34   :  { %7931 = vst [vmem:[#allocation32_spill] sm:$0xff] %v5679_v50  ;;  %v4275_v55 = vld [vmem:[#allocation9 + $0x78] sm:$0xf0]  ;;  %484 = vmatpush.bf16.msra.mxu1 %v5674_v45  ;;  %v5688_v58 = vor.u32 %v4886_v53, %v4273_v52  ;;  %v4249_v59 = vld [vmem:[#allocation9 + $0x40] sm:$0xf] }
  0x35   :  { %7932 = vst [vmem:[#allocation33_spill] sm:$0xff] %v5682_v56  ;;  %497 = vmatpush.bf16.msra.mxu2 %v5676_v46  ;;  %v4881_v60 = vld [vmem:[#allocation9 + $0x4c] sm:$0xf0]  ;;  %v4879_v61 = vld [vmem:[#allocation9 + $0x44] sm:$0xf]  ;;  %510 = vmatpush.bf16.msra.mxu3 %v5679_v50  ;;  %v5691_v62 = vor.u32 %v4884_v54, %v4275_v55 }
  0x36   :  { %7933 = vst [vmem:[#allocation34_spill] sm:$0xff] %v5686_v57  ;;  %v4251_v63 = vld [vmem:[#allocation9 + $0x50] sm:$0xf0]  ;;  %v4257_v0 = vld [vmem:[#allocation9 + $0x48] sm:$0xf]  ;;  %v5694_v5 = vor.u32 %v4881_v60, %v4249_v59 }
  0x37   :  { %7934 = vst [vmem:[#allocation35_spill] sm:$0xff] %v5688_v58  ;;  %v4882_v1 = vld [vmem:[#allocation9 + $0x54] sm:$0xf0]  ;;  %v4880_v2 = vld [vmem:[#allocation9 + $0x4c] sm:$0xf]  ;;  %472 = vmatpush.bf16.msra.mxu0 %v5682_v56  ;;  %v5698_v6 = vor.u32 %v4879_v61, %v4251_v63 }
  0x38   :  { %7935 = vst [vmem:[#allocation36_spill] sm:$0xff] %v5691_v62  ;;  %v4259_v4 = vld [vmem:[#allocation9 + $0x58] sm:$0xf0]  ;;  %485 = vmatpush.bf16.msra.mxu1 %v5686_v57  ;;  %v5700_v9 = vor.u32 %v4882_v1, %v4257_v0  ;;  %v4233_v10 = vld [vmem:[#allocation9 + $0x20] sm:$0xf] }
  0x39   :  { %7936 = vst [vmem:[#allocation37_spill] sm:$0xff] %v5694_v5  ;;  %498 = vmatpush.bf16.msra.mxu2 %v5688_v58  ;;  %v4877_v11 = vld [vmem:[#allocation9 + $0x2c] sm:$0xf0]  ;;  %v4875_v13 = vld [vmem:[#allocation9 + $0x24] sm:$0xf]  ;;  %511 = vmatpush.bf16.msra.mxu3 %v5691_v62  ;;  %v5703_v14 = vor.u32 %v4880_v2, %v4259_v4 }
  0x3a   :  { %7937 = vst [vmem:[#allocation38_spill] sm:$0xff] %v5698_v6  ;;  %v4235_v15 = vld [vmem:[#allocation9 + $0x30] sm:$0xf0]  ;;  %v4241_v18 = vld [vmem:[#allocation9 + $0x28] sm:$0xf]  ;;  %v5706_v23 = vor.u32 %v4877_v11, %v4233_v10 }
  0x3b   :  { %7938 = vst [vmem:[#allocation39_spill] sm:$0xff] %v5700_v9  ;;  %v4878_v19 = vld [vmem:[#allocation9 + $0x34] sm:$0xf0]  ;;  %v4876_v20 = vld [vmem:[#allocation9 + $0x2c] sm:$0xf]  ;;  %473 = vmatpush.bf16.msra.mxu0 %v5694_v5  ;;  %v5710_v27 = vor.u32 %v4875_v13, %v4235_v15 }
  0x3c   :  { %7939 = vst [vmem:[#allocation40_spill] sm:$0xff] %v5703_v14  ;;  %v4243_v22 = vld [vmem:[#allocation9 + $0x38] sm:$0xf0]  ;;  %v4217_v24 = vld [vmem:[#allocation9] sm:$0xf]  ;;  %486 = vmatpush.bf16.msra.mxu1 %v5698_v6  ;;  %v5712_v28 = vor.u32 %v4878_v19, %v4241_v18 }
  0x3d   :  { %7940 = vst [vmem:[#allocation41_spill] sm:$0xff] %v5706_v23  ;;  %v4873_v26 = vld [vmem:[#allocation9 + $0xc] sm:$0xf0]  ;;  %499 = vmatpush.bf16.msra.mxu2 %v5700_v9  ;;  %v4871_v30 = vld [vmem:[#allocation9 + $0x4] sm:$0xf]  ;;  %512 = vmatpush.bf16.msra.mxu3 %v5703_v14  ;;  %v5715_v35 = vor.u32 %v4876_v20, %v4243_v22 }
  0x3e   :  { %7941 = vst [vmem:[#allocation42_spill] sm:$0xff] %v5710_v27  ;;  %v4219_v31 = vld [vmem:[#allocation9 + $0x10] sm:$0xf0]  ;;  %v4225_v32 = vld [vmem:[#allocation9 + $0x8] sm:$0xf]  ;;  %v5718_v43 = vor.u32 %v4873_v26, %v4217_v24 }
  0x3f   :  { %7942 = vst [vmem:[#allocation43_spill] sm:$0xff] %v5712_v28  ;;  %v4874_v36 = vld [vmem:[#allocation9 + $0x14] sm:$0xf0]  ;;  %v4872_v37 = vld [vmem:[#allocation9 + $0xc] sm:$0xf]  ;;  %474 = vmatpush.bf16.msra.mxu0 %v5706_v23  ;;  %v5722_v51 = vor.u32 %v4871_v30, %v4219_v31 }
  0x40   :  { %7943 = vst [vmem:[#allocation44_spill] sm:$0xff] %v5715_v35  ;;  %v4227_v39 = vld [vmem:[#allocation9 + $0x18] sm:$0xf0]  ;;  %v4457_v40 = vld [vmem:[#allocation14 + $0xe0] sm:$0xf]  ;;  %487 = vmatpush.bf16.msra.mxu1 %v5710_v27  ;;  %v5724_v52 = vor.u32 %v4874_v36, %v4225_v32 }
  0x41   :  { %v4965_v41 = vld [vmem:[#allocation14 + $0xec] sm:$0xf0]  ;;  %v4963_v42 = vld [vmem:[#allocation14 + $0xe4] sm:$0xf]  ;;  %7944 = vst [vmem:[#allocation45_spill] sm:$0xff] %v5718_v43  ;;  %500 = vmatpush.bf16.msra.mxu2 %v5712_v28  ;;  %513 = vmatpush.bf16.msra.mxu3 %v5715_v35  ;;  %v5727_v55 = vor.u32 %v4872_v37, %v4227_v39 }
  0x42   :  { %v4459_v47 = vld [vmem:[#allocation14 + $0xf0] sm:$0xf0]  ;;  %v4465_v48 = vld [vmem:[#allocation14 + $0xe8] sm:$0xf]  ;;  %v4966_v49 = vld [vmem:[#allocation14 + $0xf4] sm:$0xf0]  ;;  %v5729_v59 = vor.u32 %v4965_v41, %v4457_v40 }
  0x43   :  { %7945 = vst [vmem:[#allocation46_spill] sm:$0xff] %v5722_v51  ;;  %v4964_v53 = vld [vmem:[#allocation14 + $0xec] sm:$0xf]  ;;  %v4467_v54 = vld [vmem:[#allocation14 + $0xf8] sm:$0xf0]  ;;  %v5731_v60 = vor.u32 %v4963_v42, %v4459_v47  ;;  %v5733_v61 = vor.u32 %v4966_v49, %v4465_v48  ;;  %475 = vmatpush.bf16.msra.mxu0 %v5718_v43 }
  0x44   :  { %7946 = vst [vmem:[#allocation47_spill] sm:$0xff] %v5724_v52  ;;  %v4441_v63 = vld [vmem:[#allocation14 + $0xc0] sm:$0xf]  ;;  %v4961_v0 = vld [vmem:[#allocation14 + $0xcc] sm:$0xf0]  ;;  %v5736_v2 = vor.u32 %v4964_v53, %v4467_v54  ;;  %488 = vmatpush.bf16.msra.mxu1 %v5722_v51 }
  0x45   :  { %7947 = vst [vmem:[#allocation48_spill] sm:$0xff] %v5727_v55  ;;  %v4959_v1 = vld [vmem:[#allocation14 + $0xc4] sm:$0xf]  ;;  %v4443_v4 = vld [vmem:[#allocation14 + $0xd0] sm:$0xf0]  ;;  %501 = vmatpush.bf16.msra.mxu2 %v5724_v52  ;;  %514 = vmatpush.bf16.msra.mxu3 %v5727_v55  ;;  %v5742_v18 = vor.u32 %v4961_v0, %v4441_v63 }
  0x46   :  { %v4449_v10 = vld [vmem:[#allocation14 + $0xc8] sm:$0xf]  ;;  %v4962_v11 = vld [vmem:[#allocation14 + $0xd4] sm:$0xf0]  ;;  %v4960_v13 = vld [vmem:[#allocation14 + $0xcc] sm:$0xf]  ;;  %v5746_v20 = vor.u32 %v4959_v1, %v4443_v4 }
  0x47   :  { %v4451_v15 = vld [vmem:[#allocation14 + $0xd8] sm:$0xf0]  ;;  %681 = vmatpush.bf16.msrb.mxu0 %v5729_v59  ;;  %v4425_v19 = vld [vmem:[#allocation14 + $0xa0] sm:$0xf]  ;;  %v5748_v22 = vor.u32 %v4962_v11, %v4449_v10  ;;  %v4957_v24 = vld [vmem:[#allocation14 + $0xac] sm:$0xf0] }
  0x48   :  { %694 = vmatpush.bf16.msrb.mxu1 %v5731_v60  ;;  %7948 = vst [vmem:[#allocation49_spill] sm:$0xff] %v5746_v20  ;;  %v4955_v26 = vld [vmem:[#allocation14 + $0xa4] sm:$0xf]  ;;  %v303_v30 = vld [vmem:[#allocation3] sm:$0x1]  ;;  %v5751_v31 = vor.u32 %v4960_v13, %v4451_v15  ;;  %v5754_v42 = vor.u32 %v4957_v24, %v4425_v19 }
  0x49   :  { %707 = vmatpush.bf16.msrb.mxu2 %v5733_v61  ;;  %7949 = vst [vmem:[#allocation50_spill] sm:$0xff] %v5748_v22  ;;  %720 = vmatpush.bf16.msrb.mxu3 %v5736_v2  ;;  %v4427_v32 = vld [vmem:[#allocation14 + $0xb0] sm:$0xf0]  ;;  %v4433_v36 = vld [vmem:[#allocation14 + $0xa8] sm:$0xf]  ;;  %v307_v39 = vpack.c.bf16 %v303_v30, %v303_v30 }
  0x4a   :  { %7950 = vst [vmem:[#allocation51_spill] sm:$0xff] %v5751_v31  ;;  %v4958_v37 = vld [vmem:[#allocation14 + $0xb4] sm:$0xf0]  ;;  %v4956_v40 = vld [vmem:[#allocation14 + $0xac] sm:$0xf]  ;;  %v5758_v47 = vor.u32 %v4955_v26, %v4427_v32 }
  0x4b   :  { %v4435_v41 = vld [vmem:[#allocation14 + $0xb8] sm:$0xf0]  ;;  %682 = vmatpush.bf16.msrb.mxu0 %v5742_v18  ;;  %7951 = vst [vmem:[#allocation52_spill] sm:$0xff] %v5754_v42  ;;  %502 = vmatmul.bf16.vlgmr.msra.gmra.mxu2 %v307_v39  ;;  %v5760_v48 = vor.u32 %v4958_v37, %v4433_v36  ;;  %v4409_v49 = vld [vmem:[#allocation14 + $0x80] sm:$0xf] }
  0x4c   :  { %695 = vmatpush.bf16.msrb.mxu1 %v5746_v20  ;;  %7952 = vst [vmem:[#allocation53_spill] sm:$0xff] %v5758_v47  ;;  %v4953_v53 = vld [vmem:[#allocation14 + $0x8c] sm:$0xf0]  ;;  %v4951_v54 = vld [vmem:[#allocation14 + $0x84] sm:$0xf]  ;;  %v5763_v63 = vor.u32 %v4956_v40, %v4435_v41  ;;  %476 = vmatmul.bf16.vlgmr.msra.gmra.mxu0 %v307_v39 }
  0x4d   :  { %708 = vmatpush.bf16.msrb.mxu2 %v5748_v22  ;;  %7953 = vst [vmem:[#allocation54_spill] sm:$0xff] %v5760_v48  ;;  %721 = vmatpush.bf16.msrb.mxu3 %v5751_v31  ;;  %v4411_v0 = vld [vmem:[#allocation14 + $0x90] sm:$0xf0]  ;;  %v4417_v1 = vld [vmem:[#allocation14 + $0x88] sm:$0xf]  ;;  %v5766_v13 = vor.u32 %v4953_v53, %v4409_v49 }
  0x4e   :  { %7954 = vst [vmem:[#allocation55_spill] sm:$0xff] %v5763_v63  ;;  %v4954_v4 = vld [vmem:[#allocation14 + $0x94] sm:$0xf0]  ;;  %v4952_v10 = vld [vmem:[#allocation14 + $0x8c] sm:$0xf]  ;;  %489 = vmatmul.bf16.vlgmr.msra.gmra.mxu1 %v307_v39  ;;  %515 = vmatmul.bf16.vlgmr.msra.gmra.mxu3 %v307_v39  ;;  %v5770_v15 = vor.u32 %v4951_v54, %v4411_v0 }
  0x4f   :  { %v4419_v11 = vld [vmem:[#allocation14 + $0x98] sm:$0xf0]  ;;  %683 = vmatpush.bf16.msrb.mxu0 %v5754_v42  ;;  %7955 = vst [vmem:[#allocation56_spill] sm:$0xff] %v5766_v13  ;;  %v5772_v19 = vor.u32 %v4954_v4, %v4417_v1  ;;  %v4393_v24 = vld [vmem:[#allocation14 + $0x60] sm:$0xf] }
  0x50   :  { %696 = vmatpush.bf16.msrb.mxu1 %v5758_v47  ;;  %7956 = vst [vmem:[#allocation57_spill] sm:$0xff] %v5770_v15  ;;  %v4949_v26 = vld [vmem:[#allocation14 + $0x6c] sm:$0xf0]  ;;  %v4947_v30 = vld [vmem:[#allocation14 + $0x64] sm:$0xf]  ;;  %v5775_v32 = vor.u32 %v4952_v10, %v4419_v11 }
  0x51   :  { %709 = vmatpush.bf16.msrb.mxu2 %v5760_v48  ;;  %7957 = vst [vmem:[#allocation58_spill] sm:$0xff] %v5772_v19  ;;  %722 = vmatpush.bf16.msrb.mxu3 %v5763_v63  ;;  %v4395_v36 = vld [vmem:[#allocation14 + $0x70] sm:$0xf0]  ;;  %v4401_v37 = vld [vmem:[#allocation14 + $0x68] sm:$0xf]  ;;  %v5778_v49 = vor.u32 %v4949_v26, %v4393_v24 }
  0x52   :  { %7958 = vst [vmem:[#allocation59_spill] sm:$0xff] %v5775_v32  ;;  %v4950_v39 = vld [vmem:[#allocation14 + $0x74] sm:$0xf0]  ;;  %v4948_v40 = vld [vmem:[#allocation14 + $0x6c] sm:$0xf]  ;;  %v5782_v53 = vor.u32 %v4947_v30, %v4395_v36 }
  0x53   :  { %v4403_v41 = vld [vmem:[#allocation14 + $0x78] sm:$0xf0]  ;;  %684 = vmatpush.bf16.msrb.mxu0 %v5766_v13  ;;  %7959 = vst [vmem:[#allocation60_spill] sm:$0xff] %v5778_v49  ;;  %v5784_v54 = vor.u32 %v4950_v39, %v4401_v37  ;;  %v4377_v0 = vld [vmem:[#allocation14 + $0x40] sm:$0xf] }
  0x54   :  { %697 = vmatpush.bf16.msrb.mxu1 %v5770_v15  ;;  %7960 = vst [vmem:[#allocation61_spill] sm:$0xff] %v5782_v53  ;;  %v4945_v1 = vld [vmem:[#allocation14 + $0x4c] sm:$0xf0]  ;;  %v4943_v4 = vld [vmem:[#allocation14 + $0x44] sm:$0xf]  ;;  %v5787_v10 = vor.u32 %v4948_v40, %v4403_v41 }
  0x55   :  { %710 = vmatpush.bf16.msrb.mxu2 %v5772_v19  ;;  %7961 = vst [vmem:[#allocation62_spill] sm:$0xff] %v5784_v54  ;;  %723 = vmatpush.bf16.msrb.mxu3 %v5775_v32  ;;  %v4379_v11 = vld [vmem:[#allocation14 + $0x50] sm:$0xf0]  ;;  %v4385_v63 = vld [vmem:[#allocation14 + $0x48] sm:$0xf]  ;;  %v5790_v15 = vor.u32 %v4945_v1, %v4377_v0 }
  0x56   :  { %7962 = vst [vmem:[#allocation63_spill] sm:$0xff] %v5787_v10  ;;  %v4946_v13 = vld [vmem:[#allocation14 + $0x54] sm:$0xf0]  ;;  %v4944_v24 = vld [vmem:[#allocation14 + $0x4c] sm:$0xf]  ;;  %v5794_v30 = vor.u32 %v4943_v4, %v4379_v11 }
  0x57   :  { %v4387_v26 = vld [vmem:[#allocation14 + $0x58] sm:$0xf0]  ;;  %685 = vmatpush.bf16.msrb.mxu0 %v5778_v49  ;;  %7963 = vst [vmem:[#allocation64_spill] sm:$0xff] %v5790_v15  ;;  %v5796_v36 = vor.u32 %v4946_v13, %v4385_v63  ;;  %v4361_v37 = vld [vmem:[#allocation14 + $0x20] sm:$0xf] }
  0x58   :  { %698 = vmatpush.bf16.msrb.mxu1 %v5782_v53  ;;  %7964 = vst [vmem:[#allocation65_spill] sm:$0xff] %v5794_v30  ;;  %v4941_v39 = vld [vmem:[#allocation14 + $0x2c] sm:$0xf0]  ;;  %v4939_v40 = vld [vmem:[#allocation14 + $0x24] sm:$0xf]  ;;  %v5799_v41 = vor.u32 %v4944_v24, %v4387_v26 }
  0x59   :  { %711 = vmatpush.bf16.msrb.mxu2 %v5784_v54  ;;  %7965 = vst [vmem:[#allocation66_spill] sm:$0xff] %v5796_v36  ;;  %724 = vmatpush.bf16.msrb.mxu3 %v5787_v10  ;;  %v4363_v32 = vld [vmem:[#allocation14 + $0x30] sm:$0xf0]  ;;  %v4369_v19 = vld [vmem:[#allocation14 + $0x28] sm:$0xf]  ;;  %v5802_v53 = vor.u32 %v4941_v39, %v4361_v37 }
  0x5a   :  { %7966 = vst [vmem:[#allocation67_spill] sm:$0xff] %v5799_v41  ;;  %v4942_v49 = vld [vmem:[#allocation14 + $0x34] sm:$0xf0]  ;;  %v4940_v0 = vld [vmem:[#allocation14 + $0x2c] sm:$0xf]  ;;  %v5806_v63 = vor.u32 %v4939_v40, %v4363_v32 }
  0x5b   :  { %v4371_v1 = vld [vmem:[#allocation14 + $0x38] sm:$0xf0]  ;;  %686 = vmatpush.bf16.msrb.mxu0 %v5790_v15  ;;  %7967 = vst [vmem:[#allocation68_spill] sm:$0xff] %v5802_v53  ;;  %v4345_v4 = vld [vmem:[#allocation14] sm:$0xf]  ;;  %v5808_v13 = vor.u32 %v4942_v49, %v4369_v19 }
  0x5c   :  { %v4937_v11 = vld [vmem:[#allocation14 + $0xc] sm:$0xf0]  ;;  %699 = vmatpush.bf16.msrb.mxu1 %v5794_v30  ;;  %7968 = vst [vmem:[#allocation69_spill] sm:$0xff] %v5806_v63  ;;  %v4935_v24 = vld [vmem:[#allocation14 + $0x4] sm:$0xf]  ;;  %v5811_v54 = vor.u32 %v4940_v0, %v4371_v1 }
  0x5d   :  { %712 = vmatpush.bf16.msrb.mxu2 %v5796_v36  ;;  %7969 = vst [vmem:[#allocation70_spill] sm:$0xff] %v5808_v13  ;;  %v4347_v26 = vld [vmem:[#allocation14 + $0x10] sm:$0xf0]  ;;  %v4353_v10 = vld [vmem:[#allocation14 + $0x8] sm:$0xf]  ;;  %725 = vmatpush.bf16.msrb.mxu3 %v5799_v41  ;;  %v5814_v36 = vor.u32 %v4937_v11, %v4345_v4 }
  0x5e   :  { %7970 = vst [vmem:[#allocation71_spill] sm:$0xff] %v5811_v54  ;;  %v4938_v15 = vld [vmem:[#allocation14 + $0x14] sm:$0xf0]  ;;  %v4936_v37 = vld [vmem:[#allocation14 + $0xc] sm:$0xf]  ;;  %v5818_v40 = vor.u32 %v4935_v24, %v4347_v26 }
  0x5f   :  { %v4355_v39 = vld [vmem:[#allocation14 + $0x18] sm:$0xf0]  ;;  %v4869_v47 = vld [vmem:[#allocation8 + $0xec] sm:$0xf0]  ;;  %v4867_v42 = vld [vmem:[#allocation8 + $0xe4] sm:$0xf]  ;;  %687 = vmatpush.bf16.msrb.mxu0 %v5802_v53  ;;  %v5820_v0 = vor.u32 %v4938_v15, %v4353_v10 }
  0x60   :  { %v4585_v48 = vld [vmem:[#allocation8 + $0xe0] sm:$0xf]  ;;  %7971 = vst [vmem:[#allocation72_spill] sm:$0xff] %v5814_v36  ;;  %v4587_v32 = vld [vmem:[#allocation8 + $0xf0] sm:$0xf0]  ;;  %700 = vmatpush.bf16.msrb.mxu1 %v5806_v63  ;;  %v5823_v31 = vor.u32 %v4936_v37, %v4355_v39 }
  0x61   :  { %v4593_v19 = vld [vmem:[#allocation8 + $0xe8] sm:$0xf]  ;;  %v4870_v49 = vld [vmem:[#allocation8 + $0xf4] sm:$0xf0]  ;;  %713 = vmatpush.bf16.msrb.mxu2 %v5808_v13  ;;  %7972 = vst [vmem:[#allocation73_spill] sm:$0xff] %v5818_v40  ;;  %726 = vmatpush.bf16.msrb.mxu3 %v5811_v54  ;;  %v5825_v4 = vor.u32 %v4869_v47, %v4585_v48  ;;  %v5827_v11 = vor.u32 %v4867_v42, %v4587_v32 }
  0x62   :  { %7973 = vst [vmem:[#allocation74_spill] sm:$0xff] %v5820_v0  ;;  %v4868_v1 = vld [vmem:[#allocation8 + $0xec] sm:$0xf]  ;;  %v4595_v41 = vld [vmem:[#allocation8 + $0xf8] sm:$0xf0]  ;;  %v5829_v53 = vor.u32 %v4870_v49, %v4593_v19 }
  0x63   :  { %v305_v30 = vld [vmem:[#allocation3 + $0x1] sm:$0x1]  ;;  %7974 = vst [vmem:[#allocation75_spill] sm:$0xff] %v5823_v31  ;;  %v4569_v63 = vld [vmem:[#allocation8 + $0xc0] sm:$0xf]  ;;  %688 = vmatpush.bf16.msrb.mxu0 %v5814_v36  ;;  %v5832_v15 = vor.u32 %v4868_v1, %v4595_v41 }
  0x64   :  { %7975 = vst [vmem:[#allocation76_spill] sm:$0xff] %v5825_v4  ;;  %v4865_v22 = vld [vmem:[#allocation8 + $0xcc] sm:$0xf0]  ;;  %v4863_v13 = vld [vmem:[#allocation8 + $0xc4] sm:$0xf]  ;;  %v520_v20 = vpack.c.bf16 %v305_v30, %v305_v30  ;;  %701 = vmatpush.bf16.msrb.mxu1 %v5818_v40 }
  0x65   :  { %7976 = vst [vmem:[#allocation77_spill] sm:$0xff] %v5827_v11  ;;  %v4571_v10 = vld [vmem:[#allocation8 + $0xd0] sm:$0xf0]  ;;  %v4577_v24 = vld [vmem:[#allocation8 + $0xc8] sm:$0xf]  ;;  %714 = vmatpush.bf16.msrb.mxu2 %v5820_v0  ;;  %727 = vmatpush.bf16.msrb.mxu3 %v5823_v31  ;;  %v5838_v48 = vor.u32 %v4865_v22, %v4569_v63 }
  0x66   :  { %7977 = vst [vmem:[#allocation78_spill] sm:$0xff] %v5829_v53  ;;  %v4866_v26 = vld [vmem:[#allocation8 + $0xd4] sm:$0xf0]  ;;  %v4864_v47 = vld [vmem:[#allocation8 + $0xcc] sm:$0xf]  ;;  %v5842_v41 = vor.u32 %v4863_v13, %v4571_v10  ;;  %689 = vmatmul.bf16.vlgmr.msrb.gmra.mxu0 %v520_v20 }
  0x67   :  { %7978 = vst [vmem:[#allocation79_spill] sm:$0xff] %v5832_v15  ;;  %v4579_v42 = vld [vmem:[#allocation8 + $0xd8] sm:$0xf0]  ;;  %893 = vmatpush.bf16.msra.mxu0 %v5825_v4  ;;  %v5844_v37 = vor.u32 %v4866_v26, %v4577_v24  ;;  %v4553_v30 = vld [vmem:[#allocation8 + $0xa0] sm:$0xf]  ;;  %702 = vmatmul.bf16.vlgmr.msrb.gmra.mxu1 %v520_v20 }
  0x68   :  { %7979 = vst [vmem:[#allocation80_spill] sm:$0xff] %v5838_v48  ;;  %906 = vmatpush.bf16.msra.mxu1 %v5827_v11  ;;  %v4861_v39 = vld [vmem:[#allocation8 + $0xac] sm:$0xf0]  ;;  %v4859_v32 = vld [vmem:[#allocation8 + $0xa4] sm:$0xf]  ;;  %v5847_v19 = vor.u32 %v4864_v47, %v4579_v42  ;;  %715 = vmatmul.bf16.vlgmr.msrb.gmra.mxu2 %v520_v20 }
  0x69   :  { %919 = vmatpush.bf16.msra.mxu2 %v5829_v53  ;;  %7980 = vst [vmem:[#allocation81_spill] sm:$0xff] %v5842_v41  ;;  %932 = vmatpush.bf16.msra.mxu3 %v5832_v15  ;;  %v4555_v49 = vld [vmem:[#allocation8 + $0xb0] sm:$0xf0]  ;;  %v4561_v1 = vld [vmem:[#allocation8 + $0xa8] sm:$0xf]  ;;  %v5850_v13 = vor.u32 %v4861_v39, %v4553_v30 }
  0x6a   :  { %7981 = vst [vmem:[#allocation82_spill] sm:$0xff] %v5844_v37  ;;  %v4862_v22 = vld [vmem:[#allocation8 + $0xb4] sm:$0xf0]  ;;  %v4860_v63 = vld [vmem:[#allocation8 + $0xac] sm:$0xf]  ;;  %728 = vmatmul.bf16.vlgmr.msrb.gmra.mxu3 %v520_v20  ;;  %v5854_v10 = vor.u32 %v4859_v32, %v4555_v49 }
  0x6b   :  { %7982 = vst [vmem:[#allocation83_spill] sm:$0xff] %v5847_v19  ;;  %v4563_v4 = vld [vmem:[#allocation8 + $0xb8] sm:$0xf0]  ;;  %894 = vmatpush.bf16.msra.mxu0 %v5838_v48  ;;  %v5856_v24 = vor.u32 %v4862_v22, %v4561_v1  ;;  %v4537_v26 = vld [vmem:[#allocation8 + $0x80] sm:$0xf] }
  0x6c   :  { %7983 = vst [vmem:[#allocation84_spill] sm:$0xff] %v5850_v13  ;;  %907 = vmatpush.bf16.msra.mxu1 %v5842_v41  ;;  %v4857_v47 = vld [vmem:[#allocation8 + $0x8c] sm:$0xf0]  ;;  %v4855_v42 = vld [vmem:[#allocation8 + $0x84] sm:$0xf]  ;;  %v5859_v15 = vor.u32 %v4860_v63, %v4563_v4 }
  0x6d   :  { %920 = vmatpush.bf16.msra.mxu2 %v5844_v37  ;;  %7984 = vst [vmem:[#allocation85_spill] sm:$0xff] %v5854_v10  ;;  %933 = vmatpush.bf16.msra.mxu3 %v5847_v19  ;;  %v4539_v53 = vld [vmem:[#allocation8 + $0x90] sm:$0xf0]  ;;  %v4545_v48 = vld [vmem:[#allocation8 + $0x88] sm:$0xf]  ;;  %v5862_v41 = vor.u32 %v4857_v47, %v4537_v26 }
  0x6e   :  { %7985 = vst [vmem:[#allocation86_spill] sm:$0xff] %v5856_v24  ;;  %v4858_v30 = vld [vmem:[#allocation8 + $0x94] sm:$0xf0]  ;;  %v4856_v39 = vld [vmem:[#allocation8 + $0x8c] sm:$0xf]  ;;  %v5866_v32 = vor.u32 %v4855_v42, %v4539_v53 }
  0x6f   :  { %7986 = vst [vmem:[#allocation87_spill] sm:$0xff] %v5859_v15  ;;  %v4547_v20 = vld [vmem:[#allocation8 + $0x98] sm:$0xf0]  ;;  %895 = vmatpush.bf16.msra.mxu0 %v5850_v13  ;;  %v5868_v49 = vor.u32 %v4858_v30, %v4545_v48  ;;  %v4521_v1 = vld [vmem:[#allocation8 + $0x60] sm:$0xf] }
  0x70   :  { %7987 = vst [vmem:[#allocation88_spill] sm:$0xff] %v5862_v41  ;;  %908 = vmatpush.bf16.msra.mxu1 %v5854_v10  ;;  %v4853_v4 = vld [vmem:[#allocation8 + $0x6c] sm:$0xf0]  ;;  %v4851_v22 = vld [vmem:[#allocation8 + $0x64] sm:$0xf]  ;;  %v5871_v63 = vor.u32 %v4856_v39, %v4547_v20 }
  0x71   :  { %921 = vmatpush.bf16.msra.mxu2 %v5856_v24  ;;  %7988 = vst [vmem:[#allocation89_spill] sm:$0xff] %v5866_v32  ;;  %934 = vmatpush.bf16.msra.mxu3 %v5859_v15  ;;  %v4523_v19 = vld [vmem:[#allocation8 + $0x70] sm:$0xf0]  ;;  %v4529_v37 = vld [vmem:[#allocation8 + $0x68] sm:$0xf]  ;;  %v5874_v10 = vor.u32 %v4853_v4, %v4521_v1 }
  0x72   :  { %7989 = vst [vmem:[#allocation90_spill] sm:$0xff] %v5868_v49  ;;  %v4854_v13 = vld [vmem:[#allocation8 + $0x74] sm:$0xf0]  ;;  %v4852_v26 = vld [vmem:[#allocation8 + $0x6c] sm:$0xf]  ;;  %v5878_v53 = vor.u32 %v4851_v22, %v4523_v19 }
  0x73   :  { %7990 = vst [vmem:[#allocation91_spill] sm:$0xff] %v5871_v63  ;;  %v4531_v47 = vld [vmem:[#allocation8 + $0x78] sm:$0xf0]  ;;  %896 = vmatpush.bf16.msra.mxu0 %v5862_v41  ;;  %v5880_v48 = vor.u32 %v4854_v13, %v4529_v37  ;;  %v4505_v42 = vld [vmem:[#allocation8 + $0x40] sm:$0xf] }
  0x74   :  { %7991 = vst [vmem:[#allocation92_spill] sm:$0xff] %v5874_v10  ;;  %909 = vmatpush.bf16.msra.mxu1 %v5866_v32  ;;  %v4849_v30 = vld [vmem:[#allocation8 + $0x4c] sm:$0xf0]  ;;  %v4847_v39 = vld [vmem:[#allocation8 + $0x44] sm:$0xf]  ;;  %v5883_v20 = vor.u32 %v4852_v26, %v4531_v47 }
  0x75   :  { %922 = vmatpush.bf16.msra.mxu2 %v5868_v49  ;;  %7992 = vst [vmem:[#allocation93_spill] sm:$0xff] %v5878_v53  ;;  %935 = vmatpush.bf16.msra.mxu3 %v5871_v63  ;;  %v4507_v15 = vld [vmem:[#allocation8 + $0x50] sm:$0xf0]  ;;  %v4513_v24 = vld [vmem:[#allocation8 + $0x48] sm:$0xf]  ;;  %v5886_v32 = vor.u32 %v4849_v30, %v4505_v42 }
  0x76   :  { %7993 = vst [vmem:[#allocation94_spill] sm:$0xff] %v5880_v48  ;;  %v4850_v41 = vld [vmem:[#allocation8 + $0x54] sm:$0xf0]  ;;  %v4848_v1 = vld [vmem:[#allocation8 + $0x4c] sm:$0xf]  ;;  %v5890_v37 = vor.u32 %v4847_v39, %v4507_v15 }
  0x77   :  { %7994 = vst [vmem:[#allocation95_spill] sm:$0xff] %v5883_v20  ;;  %v4515_v4 = vld [vmem:[#allocation8 + $0x58] sm:$0xf0]  ;;  %897 = vmatpush.bf16.msra.mxu0 %v5874_v10  ;;  %v5892_v19 = vor.u32 %v4850_v41, %v4513_v24  ;;  %v4489_v13 = vld [vmem:[#allocation8 + $0x20] sm:$0xf] }
  0x78   :  { %7995 = vst [vmem:[#allocation96_spill] sm:$0xff] %v5886_v32  ;;  %910 = vmatpush.bf16.msra.mxu1 %v5878_v53  ;;  %v4845_v22 = vld [vmem:[#allocation8 + $0x2c] sm:$0xf0]  ;;  %v4843_v26 = vld [vmem:[#allocation8 + $0x24] sm:$0xf]  ;;  %v5895_v47 = vor.u32 %v4848_v1, %v4515_v4 }
  0x79   :  { %923 = vmatpush.bf16.msra.mxu2 %v5880_v48  ;;  %7996 = vst [vmem:[#allocation97_spill] sm:$0xff] %v5890_v37  ;;  %936 = vmatpush.bf16.msra.mxu3 %v5883_v20  ;;  %v4491_v63 = vld [vmem:[#allocation8 + $0x30] sm:$0xf0]  ;;  %v4497_v49 = vld [vmem:[#allocation8 + $0x28] sm:$0xf]  ;;  %v5898_v53 = vor.u32 %v4845_v22, %v4489_v13 }
  0x7a   :  { %7997 = vst [vmem:[#allocation98_spill] sm:$0xff] %v5892_v19  ;;  %v4846_v10 = vld [vmem:[#allocation8 + $0x34] sm:$0xf0]  ;;  %v4844_v42 = vld [vmem:[#allocation8 + $0x2c] sm:$0xf]  ;;  %v5902_v15 = vor.u32 %v4843_v26, %v4491_v63  ;;  %v5544_v26 = vmov 0  }
  0x7b   :  { %7998 = vst [vmem:[#allocation99_spill] sm:$0xff] %v5895_v47  ;;  %v4499_v30 = vld [vmem:[#allocation8 + $0x38] sm:$0xf0]  ;;  %898 = vmatpush.bf16.msra.mxu0 %v5886_v32  ;;  %v5904_v41 = vor.u32 %v4846_v10, %v4497_v49  ;;  %v4473_v24 = vld [vmem:[#allocation8] sm:$0xf] }
  0x7c   :  { %7999 = vst [vmem:[#allocation100_spill] sm:$0xff] %v5898_v53  ;;  %911 = vmatpush.bf16.msra.mxu1 %v5890_v37  ;;  %v4841_v39 = vld [vmem:[#allocation8 + $0xc] sm:$0xf0]  ;;  %v4839_v1 = vld [vmem:[#allocation8 + $0x4] sm:$0xf]  ;;  %v5907_v4 = vor.u32 %v4844_v42, %v4499_v30 }
  0x7d   :  { %924 = vmatpush.bf16.msra.mxu2 %v5892_v19  ;;  %8000 = vst [vmem:[#allocation101_spill] sm:$0xff] %v5902_v15  ;;  %937 = vmatpush.bf16.msra.mxu3 %v5895_v47  ;;  %v4475_v20 = vld [vmem:[#allocation8 + $0x10] sm:$0xf0]  ;;  %v4481_v48 = vld [vmem:[#allocation8 + $0x8] sm:$0xf]  ;;  %v5910_v37 = vor.u32 %v4841_v39, %v4473_v24 }
  0x7e   :  { %8001 = vst [vmem:[#allocation102_spill] sm:$0xff] %v5904_v41  ;;  %v4842_v32 = vld [vmem:[#allocation8 + $0x14] sm:$0xf0]  ;;  %v4840_v13 = vld [vmem:[#allocation8 + $0xc] sm:$0xf]  ;;  %v5914_v10 = vor.u32 %v4839_v1, %v4475_v20 }
  0x7f   :  { %8002 = vst [vmem:[#allocation103_spill] sm:$0xff] %v5907_v4  ;;  %v4483_v22 = vld [vmem:[#allocation8 + $0x18] sm:$0xf0]  ;;  %899 = vmatpush.bf16.msra.mxu0 %v5898_v53  ;;  %v5916_v49 = vor.u32 %v4842_v32, %v4481_v48 }
  0x80   :  { %8003 = vst [vmem:[#allocation104_spill] sm:$0xff] %v5910_v37  ;;  %912 = vmatpush.bf16.msra.mxu1 %v5902_v15  ;;  %v5919_v63 = vor.u32 %v4840_v13, %v4483_v22 }
  0x81   :  { %925 = vmatpush.bf16.msra.mxu2 %v5904_v41  ;;  %8004 = vst [vmem:[#allocation105_spill] sm:$0xff] %v5914_v10  ;;  %938 = vmatpush.bf16.msra.mxu3 %v5907_v4 }
  0x82   :  { %8005 = vst [vmem:[#allocation106_spill] sm:$0xff] %v5916_v49 }
  0x83   :  { %8006 = vst [vmem:[#allocation107_spill] sm:$0xff] %v5919_v63  ;;  %900 = vmatpush.bf16.msra.mxu0 %v5910_v37 }
  0x84   :  { %913 = vmatpush.bf16.msra.mxu1 %v5914_v10 }
  0x85   :  { %926 = vmatpush.bf16.msra.mxu2 %v5916_v49  ;;  %939 = vmatpush.bf16.msra.mxu3 %v5919_v63 }
  0x86   :  { %901 = vmatmul.bf16.vlgmr.msra.gmra.mxu0 %v5544_v26 }
  0x87   :  { %1042 = vmatpush.bf16.msrb.mxu0 %v5637_v3  ;;  %914 = vmatmul.bf16.vlgmr.msra.gmra.mxu1 %v5544_v26 }
  0x88   :  { %1055 = vmatpush.bf16.msrb.mxu1 %v5639_v7  ;;  %927 = vmatmul.bf16.vlgmr.msra.gmra.mxu2 %v5544_v26 }
  0x89   :  { %940 = vmatmul.bf16.vlgmr.msra.gmra.mxu3 %v5544_v26  ;;  %1068 = vmatpush.bf16.msrb.mxu2 %v5641_v8 }
  0x8a   :  { %1081 = vmatpush.bf16.msrb.mxu3 %v5644_v12 }
  0x8b   :  { %1043 = vmatpush.bf16.msrb.mxu0 %v5648_v16 }
  0x8c   :  { %1056 = vmatpush.bf16.msrb.mxu1 %v5650_v17 }
  0x8d   :  { %1069 = vmatpush.bf16.msrb.mxu2 %v5653_v21 }
  0x8e   :  { %1082 = vmatpush.bf16.msrb.mxu3 %v5655_v25 }
  0x8f   :  { %1044 = vmatpush.bf16.msrb.mxu0 %v5658_v29 }
  0x90   :  { %1057 = vmatpush.bf16.msrb.mxu1 %v5662_v33  ;;  %v4624_v33 = vld [vmem:[#allocation12 + $0x30] sm:$0xf0] }
  0x91   :  { %1070 = vmatpush.bf16.msrb.mxu2 %v5664_v34 }
  0x92   :  { %1083 = vmatpush.bf16.msrb.mxu3 %v5667_v38  ;;  %v284_v38 = vld [vmem:[#allocation11] sm:$0xf] }
  0x93   :  { %1045 = vmatpush.bf16.msrb.mxu0 %v5670_v44  ;;  %v5965_v25 = vperm.slane %v284_v38, 0 }
  0x94   :  { %1058 = vmatpush.bf16.msrb.mxu1 %v5674_v45 }
  0x95   :  { %1071 = vmatpush.bf16.msrb.mxu2 %v5676_v46  ;;  %8007 = vst [vmem:[#allocation108_spill] sm:$0xff] %v5965_v25 }
  0x96   :  { %1084 = vmatpush.bf16.msrb.mxu3 %v5679_v50 }
  0x97   :  { %1046 = vmatpush.bf16.msrb.mxu0 %v5682_v56 }
  0x98   :  { %1059 = vmatpush.bf16.msrb.mxu1 %v5686_v57 }
  0x99   :  { %1072 = vmatpush.bf16.msrb.mxu2 %v5688_v58 }
  0x9a   :  { %1085 = vmatpush.bf16.msrb.mxu3 %v5691_v62 }
  0x9b   :  { %1047 = vmatpush.bf16.msrb.mxu0 %v5694_v5  ;;  %v4678_v5 = vld [vmem:[#allocation12 + $0x88] sm:$0xf] }
  0x9c   :  { %1060 = vmatpush.bf16.msrb.mxu1 %v5698_v6 }
  0x9d   :  { %1073 = vmatpush.bf16.msrb.mxu2 %v5700_v9 }
  0x9e   :  { %1086 = vmatpush.bf16.msrb.mxu3 %v5703_v14 }
  0x9f   :  { %1048 = vmatpush.bf16.msrb.mxu0 %v5706_v23 }
  0xa0   :  { %1061 = vmatpush.bf16.msrb.mxu1 %v5710_v27 }
  0xa1   :  { %1074 = vmatpush.bf16.msrb.mxu2 %v5712_v28  ;;  %v5971_v28 = vperm.slane %v284_v38, 2 }
  0xa2   :  { %1087 = vmatpush.bf16.msrb.mxu3 %v5715_v35 }
  0xa3   :  { %1049 = vmatpush.bf16.msrb.mxu0 %v5718_v43  ;;  %8009 = vst [vmem:[#allocation110_spill] sm:$0xff] %v5971_v28 }
  0xa4   :  { %1062 = vmatpush.bf16.msrb.mxu1 %v5722_v51 }
  0xa5   :  { %1075 = vmatpush.bf16.msrb.mxu2 %v5724_v52 }
  0xa6   :  { %1088 = vmatpush.bf16.msrb.mxu3 %v5727_v55 }
  0xc9   :  { %v477_v32 = vpop.f32.mrf.mxu0 }
  0xcb   :  { %v490_v48 = vpop.f32.mrf.mxu1 }
  0xce   :  { %v503_v20 = vpop.f32.mrf.mxu2 }
  0xd1   :  { %v516_v42 = vpop.f32.mrf.mxu3  ;;  %v479_v30 = vpop.f32.mrf.mxu0 }
  0xd2   :  { %v5967_v30 = vperm.slane %v284_v38, 1 }
  0xd3   :  { %v492_v24 = vpop.f32.mrf.mxu1 }
  0xd4   :  { %8008 = vst [vmem:[#allocation109_spill] sm:$0xff] %v5967_v30 }
  0xd6   :  { %v505_v39 = vpop.f32.mrf.mxu2 }
  0xd9   :  { %v518_v1 = vpop.f32.mrf.mxu3 }
  0xe3   :  { %v5957_v13 = vpop.f32.mrf.mxu0 }
  0xe4   :  { %v5959_v22 = vpop.f32.mrf.mxu1 }
  0xeb   :  { %v5961_v26 = vpop.f32.mrf.mxu2  ;;  %v692_v14 = vpop.f32.mrf.mxu0 }
  0xec   :  { %v705_v62 = vpop.f32.mrf.mxu1 }
  0xed   :  { %v5963_v35 = vpop.f32.mrf.mxu3  ;;  %v5973_v62 = vperm.slane %v284_v38, 3  ;;  %v4720_v38 = vld [vmem:[#allocation12 + $0xf0] sm:$0xf0] }
  0xef   :  { %8010 = vst [vmem:[#allocation111_spill] sm:$0xff] %v5973_v62 }
  0xf3   :  { %v718_v50 = vpop.f32.mrf.mxu2 }
  0xf5   :  { %v731_v55 = vpop.f32.mrf.mxu3 }
 0x103   :  { %v902_v52 = vpop.f32.mrf.mxu0 }
 0x104   :  { %v903_v24 = vadd.f32 %v902_v52, %v477_v32  ;;  %v915_v39 = vpop.f32.mrf.mxu1 }
 0x105   :  { %v916_v1 = vadd.f32 %v915_v39, %v490_v48  ;;  %v4718_v39 = vld [vmem:[#allocation12 + $0xe0] sm:$0xf] }
 0x106   :  { %v954_v51 = vadd.f32 %v5965_v25, %v903_v24 }
 0x107   :  { %v955_v12 = vadd.f32 %v5967_v30, %v916_v1 }
 0x108   :  { %v4599_v43 = vmul.f32 -1.442695, %v954_v51  ;;  %v4933_v51 = vld [vmem:[#allocation12 + $0xec] sm:$0xf0] }
 0x109   :  { %v4600_v63 = vmul.f32 -1.442695, %v955_v12  ;;  %v5977_v30 = vor.u32 %v4933_v51, %v4718_v39  ;;  %v4927_v51 = vld [vmem:[#allocation12 + $0xc4] sm:$0xf] }
 0x10a   :  { %4989 = vpow2.f32 %v4599_v43  ;;  %v4931_v43 = vld [vmem:[#allocation12 + $0xe4] sm:$0xf] }
 0x10b   :  { %v928_v50 = vpop.f32.mrf.mxu2  ;;  %4991 = vpow2.f32 %v4600_v63  ;;  %v904_v27 = vpop.f32.mrf.mxu0  ;;  %8011 = vst [vmem:[#allocation112_spill] sm:$0xff] %v5977_v30  ;;  %1254 = vmatpush.bf16.msra.mxu0 %v5977_v30  ;;  %v4919_v30 = vld [vmem:[#allocation12 + $0x84] sm:$0xf] }
 0x10c   :  { %v929_v14 = vadd.f32 %v928_v50, %v503_v20  ;;  %v941_v55 = vpop.f32.mrf.mxu3  ;;  %v917_v52 = vpop.f32.mrf.mxu1  ;;  %v5981_v27 = vor.u32 %v4931_v43, %v4720_v38  ;;  %v4726_v20 = vld [vmem:[#allocation12 + $0xe8] sm:$0xf]  ;;  %v4930_v38 = vld [vmem:[#allocation12 + $0xd4] sm:$0xf0] }
 0x10d   :  { %v942_v23 = vadd.f32 %v941_v55, %v516_v42  ;;  %v4934_v42 = vld [vmem:[#allocation12 + $0xf4] sm:$0xf0]  ;;  %v4932_v55 = vld [vmem:[#allocation12 + $0xec] sm:$0xf]  ;;  %v4728_v52 = vld [vmem:[#allocation12 + $0xf8] sm:$0xf0] }
 0x10e   :  { %v956_v32 = vadd.f32 %v5971_v28, %v929_v14  ;;  %8012 = vst [vmem:[#allocation113_spill] sm:$0xff] %v5981_v27  ;;  %v5986_v14 = vor.u32 %v4934_v42, %v4726_v20  ;;  %1267 = vmatpush.bf16.msra.mxu1 %v5981_v27  ;;  %v4710_v43 = vld [vmem:[#allocation12 + $0xc8] sm:$0xf]  ;;  %v4686_v28 = vld [vmem:[#allocation12 + $0xa0] sm:$0xf] }
 0x10f   :  { %v957_v48 = vadd.f32 %v5973_v62, %v942_v23  ;;  %v6000_v42 = vor.u32 %v4930_v38, %v4710_v43  ;;  %v4920_v27 = vld [vmem:[#allocation12 + $0x8c] sm:$0xf] }
 0x110   :  { %v4601_v24 = vmul.f32 -1.442695, %v956_v32  ;;  %v4990_v12 = vpop.eup %4989  ;;  %8013 = vst [vmem:[#allocation114_spill] sm:$0xff] %v5986_v14  ;;  %1280 = vmatpush.bf16.msra.mxu2 %v5986_v14 }
 0x111   :  { %v4602_v1 = vmul.f32 -1.442695, %v957_v48  ;;  %v4992_v25 = vpop.eup %4991  ;;  %v5979_v63 = vadd.f32 1.0, %v4990_v12  ;;  %v4702_v48 = vld [vmem:[#allocation12 + $0xc0] sm:$0xf]  ;;  %8017 = vst [vmem:[#allocation118_spill] sm:$0xff] %v6000_v42 }
 0x112   :  { %4993 = vpow2.f32 %v4601_v24  ;;  %v5983_v50 = vadd.f32 1.0, %v4992_v25  ;;  %v4929_v25 = vld [vmem:[#allocation12 + $0xcc] sm:$0xf0]  ;;  %v5992_v24 = vor.u32 %v4932_v55, %v4728_v52  ;;  %v4704_v12 = vld [vmem:[#allocation12 + $0xd0] sm:$0xf0] }
 0x113   :  { %4995 = vpow2.f32 %v4602_v1  ;;  %v930_v23 = vpop.f32.mrf.mxu2  ;;  %v5994_v39 = vor.u32 %v4929_v25, %v4702_v48  ;;  %v5996_v1 = vor.u32 %v4927_v51, %v4704_v12  ;;  %v4925_v25 = vld [vmem:[#allocation12 + $0xac] sm:$0xf0]  ;;  %vm979_vm1 = vweird.f32 %v5979_v63 }
 0x114   :  { %4997 = vrcp.f32 %v5979_v63  ;;  %v943_v32 = vpop.f32.mrf.mxu3  ;;  %8014 = vst [vmem:[#allocation115_spill] sm:$0xff] %v5992_v24  ;;  %1293 = vmatpush.bf16.msra.mxu3 %v5992_v24  ;;  %v4928_v23 = vld [vmem:[#allocation12 + $0xcc] sm:$0xf]  ;;  %1281 = vmatpush.bf16.msra.mxu2 %v6000_v42  ;;  %v6013_v43 = vor.u32 %v4925_v25, %v4686_v28  ;;  %v4694_v28 = vld [vmem:[#allocation12 + $0xa8] sm:$0xf]  ;;  %vm994_vm5 = vweird.f32 %v5983_v50 }
 0x115   :  { %4999 = vrcp.f32 %v5983_v50  ;;  %8015 = vst [vmem:[#allocation116_spill] sm:$0xff] %v5994_v39  ;;  %1255 = vmatpush.bf16.msra.mxu0 %v5994_v39  ;;  %v4712_v32 = vld [vmem:[#allocation12 + $0xd8] sm:$0xf0]  ;;  %1268 = vmatpush.bf16.msra.mxu1 %v5996_v1  ;;  %v4924_v25 = vld [vmem:[#allocation12 + $0xac] sm:$0xf] }
 0x116   :  { %8016 = vst [vmem:[#allocation117_spill] sm:$0xff] %v5996_v1  ;;  %v6005_v48 = vor.u32 %v4928_v23, %v4712_v32  ;;  %v4923_v1 = vld [vmem:[#allocation12 + $0xa4] sm:$0xf]  ;;  %v4688_v23 = vld [vmem:[#allocation12 + $0xb0] sm:$0xf0] }
 0x117   :  { %8019 = vst [vmem:[#allocation120_spill] sm:$0xff] %v6013_v43  ;;  %v4696_v42 = vld [vmem:[#allocation12 + $0xb8] sm:$0xf0]  ;;  %v4670_v39 = vld [vmem:[#allocation12 + $0x80] sm:$0xf]  ;;  %v6030_v6 = vor.u32 %v4923_v1, %v4688_v23 }
 0x118   :  { %v4994_v20 = vpop.eup %4993  ;;  %8018 = vst [vmem:[#allocation119_spill] sm:$0xff] %v6005_v48  ;;  %1294 = vmatpush.bf16.msra.mxu3 %v6005_v48  ;;  %v4921_v24 = vld [vmem:[#allocation12 + $0x8c] sm:$0xf0]  ;;  %v6035_v57 = vor.u32 %v4924_v25, %v4696_v42  ;;  %v4680_v23 = vld [vmem:[#allocation12 + $0x98] sm:$0xf0] }
 0x119   :  { %v4996_v55 = vpop.eup %4995  ;;  %v6002_v52 = vadd.f32 1.0, %v4994_v20  ;;  %v1000_v20 = vand.u32 2147483648, %v5983_v50  ;;  %1256 = vmatpush.bf16.msra.mxu0 %v6013_v43  ;;  %8020 = vst [vmem:[#allocation121_spill] sm:$0xff] %v6030_v6  ;;  %v4672_v43 = vld [vmem:[#allocation12 + $0x90] sm:$0xf0]  ;;  %v6037_v56 = vor.u32 %v4921_v24, %v4670_v39  ;;  %1269 = vmatpush.bf16.msra.mxu1 %v6030_v6  ;;  %v6052_v24 = vor.u32 %v4920_v27, %v4680_v23 }
 0x11a   :  { %v6007_v51 = vpop.eup %4997  ;;  %v6010_v62 = vadd.f32 1.0, %v4996_v55  ;;  %v4926_v55 = vld [vmem:[#allocation12 + $0xb4] sm:$0xf0]  ;;  %8022 = vst [vmem:[#allocation123_spill] sm:$0xff] %v6035_v57  ;;  %v6043_v1 = vor.u32 %v4919_v30, %v4672_v43  ;;  %v4915_v39 = vld [vmem:[#allocation12 + $0x64] sm:$0xf] }
 0x11b   :  { %v6015_v38 = vpop.eup %4999  ;;  %5001 = vrcp.f32 %v6002_v52  ;;  %v975_v32 = vmul.f32 %v6007_v51, %v5979_v63  ;;  %v6028_v9 = vor.u32 1.1754944e-38, %v1000_v20  ;;  %v6032_v48 = vor.u32 %v4926_v55, %v4694_v28  ;;  %8023 = vst [vmem:[#allocation124_spill] sm:$0xff] %v6037_v56  ;;  %v4917_v28 = vld [vmem:[#allocation12 + $0x6c] sm:$0xf0]  ;;  %v4656_v42 = vld [vmem:[#allocation12 + $0x70] sm:$0xf0] }
 0x11c   :  { %v990_v12 = vmul.f32 %v6015_v38, %v5983_v50  ;;  %5003 = vrcp.f32 %v6010_v62  ;;  %8024 = vst [vmem:[#allocation125_spill] sm:$0xff] %v6043_v1  ;;  %vm980_vm0 = vweird.f32 %v6007_v51  ;;  %1295 = vmatpush.bf16.msra.mxu3 %v6035_v57  ;;  %v4662_v30 = vld [vmem:[#allocation12 + $0x68] sm:$0xf]  ;;  %v4918_v25 = vld [vmem:[#allocation12 + $0x74] sm:$0xf0]  ;;  %v1015_v27 = vand.u32 2147483648, %v6002_v52 }
 0x11d   :  { %8021 = vst [vmem:[#allocation122_spill] sm:$0xff] %v6032_v48  ;;  %v976_v47 = vsub.f32 1.0, %v975_v32  ;;  %1282 = vmatpush.bf16.msra.mxu2 %v6032_v48  ;;  %v4654_v32 = vld [vmem:[#allocation12 + $0x60] sm:$0xf]  ;;  %1257 = vmatpush.bf16.msra.mxu0 %v6037_v56  ;;  %v4664_v23 = vld [vmem:[#allocation12 + $0x78] sm:$0xf0]  ;;  %vm6065_vm2 = vmor %vm979_vm1, %vm980_vm0  ;;  %vm995_vm3 = vweird.f32 %v6015_v38  ;;  %vm1009_vm6 = vweird.f32 %v6002_v52  ;;  %vm1024_vm13 = vweird.f32 %v6010_v62 }
 0x11e   :  { %v991_v14 = vsub.f32 1.0, %v990_v12  ;;  %v4922_v12 = vld [vmem:[#allocation12 + $0x94] sm:$0xf0]  ;;  %8026 = vst [vmem:[#allocation127_spill] sm:$0xff] %v6052_v24  ;;  %v6058_v55 = vor.u32 %v4917_v28, %v4654_v32  ;;  %v4638_v48 = vld [vmem:[#allocation12 + $0x40] sm:$0xf]  ;;  %1270 = vmatpush.bf16.msra.mxu1 %v6043_v1  ;;  %vm6093_vm7 = vmor %vm994_vm5, %vm995_vm3 }
 0x11f   :  { %v6045_v20 = vor.u32 %v4922_v12, %v4678_v5  ;;  %v1013_v5 = vand.u32 2147483647, %v6002_v52  ;;  %v4916_v12 = vld [vmem:[#allocation12 + $0x6c] sm:$0xf]  ;;  %v977_v4 = vmul.f32 %v6007_v51, %v976_v47  ;;  %v6078_v47 = vor.u32 %v4918_v25, %v4662_v30  ;;  %v4913_v28 = vld [vmem:[#allocation12 + $0x4c] sm:$0xf0] }
 0x120   :  { %v992_v58 = vmul.f32 %v6015_v38, %v991_v14  ;;  %8027 = vst [vmem:[#allocation128_spill] sm:$0xff] %v6058_v55  ;;  %1296 = vmatpush.bf16.msra.mxu3 %v6052_v24  ;;  %v6084_v44 = vor.u32 %v4916_v12, %v4664_v23  ;;  %v6086_v34 = vor.u32 %v4913_v28, %v4638_v48  ;;  %v4640_v1 = vld [vmem:[#allocation12 + $0x50] sm:$0xf0]  ;;  %v4648_v30 = vld [vmem:[#allocation12 + $0x58] sm:$0xf0]  ;;  %v1016_v23 = vor.u32 1.1754944e-38, %v1015_v27 }
 0x121   :  { %v6039_v46 = vpop.eup %5001  ;;  %8025 = vst [vmem:[#allocation126_spill] sm:$0xff] %v6045_v20  ;;  %1283 = vmatpush.bf16.msra.mxu2 %v6045_v20  ;;  %1258 = vmatpush.bf16.msra.mxu0 %v6058_v55  ;;  %v4646_v20 = vld [vmem:[#allocation12 + $0x48] sm:$0xf]  ;;  %v978_v25 = vadd.f32 %v6007_v51, %v977_v4  ;;  %vm6098_vm8 = vcmp.eq.f32.partialorder %v1013_v5, 8.507059e+37  ;;  %v4909_v28 = vld [vmem:[#allocation12 + $0x2c] sm:$0xf0] }
 0x122   :  { %v1005_v14 = vmul.f32 %v6039_v46, %v6002_v52  ;;  %v6054_v43 = vpop.eup %5003  ;;  %v993_v57 = vadd.f32 %v6015_v38, %v992_v58  ;;  %v6076_v58 = vor.u32 %v4915_v39, %v4656_v42  ;;  %8031 = vst [vmem:[#allocation130_spill] sm:$0xff] %v6078_v47  ;;  %vm1010_vm4 = vweird.f32 %v6039_v46  ;;  %v4914_v39 = vld [vmem:[#allocation12 + $0x54] sm:$0xf0]  ;;  %v4912_v42 = vld [vmem:[#allocation12 + $0x4c] sm:$0xf] }
 0x123   :  { %v6072_v32 = vmul.f32 %v6054_v43, %v6010_v62  ;;  %8032 = vst [vmem:[#allocation131_spill] sm:$0xff] %v6084_v44  ;;  %vm6107_vm9 = vmor %vm1009_vm6, %vm1010_vm4  ;;  %v6116_v5 = vor.u32 %v4914_v39, %v4646_v20  ;;  %v4907_v27 = vld [vmem:[#allocation12 + $0x24] sm:$0xf]  ;;  %v4606_v39 = vld [vmem:[#allocation12] sm:$0xf]  ;;  %vm1025_vm12 = vweird.f32 %v6054_v43 }
 0x124   :  { %v1006_v56 = vsub.f32 1.0, %v1005_v14  ;;  %8030 = vst [vmem:[#allocation129_spill] sm:$0xff] %v6076_v58  ;;  %v4911_v14 = vld [vmem:[#allocation12 + $0x44] sm:$0xf]  ;;  %v997_v52 = vsel %vm6093_vm7, %v6015_v38, %v993_v57  ;;  %1271 = vmatpush.bf16.msra.mxu1 %v6076_v58  ;;  %1297 = vmatpush.bf16.msra.mxu3 %v6084_v44  ;;  %v6123_v38 = vor.u32 %v4912_v42, %v4648_v30  ;;  %v4905_v58 = vld [vmem:[#allocation12 + $0xc] sm:$0xf0]  ;;  %vm1026_vm14 = vmor %vm1024_vm13, %vm1025_vm12 }
 0x125   :  { %8033 = vst [vmem:[#allocation132_spill] sm:$0xff] %v6086_v34  ;;  %v1021_v24 = vsub.f32 1.0, %v6072_v32  ;;  %1284 = vmatpush.bf16.msra.mxu2 %v6078_v47  ;;  %1259 = vmatpush.bf16.msra.mxu0 %v6086_v34  ;;  %v4630_v32 = vld [vmem:[#allocation12 + $0x28] sm:$0xf]  ;;  %v4910_v47 = vld [vmem:[#allocation12 + $0x34] sm:$0xf0]  ;;  %v6139_v12 = vor.u32 %v4907_v27, %v4624_v33 }
 0x126   :  { %v1007_v45 = vmul.f32 %v6039_v46, %v1006_v56  ;;  %v4622_v56 = vld [vmem:[#allocation12 + $0x20] sm:$0xf]  ;;  %8041 = vst [vmem:[#allocation134_spill] sm:$0xff] %v6116_v5  ;;  %v8044_v4 = vand.u32 2147483647, %v5983_v50  ;;  %v8045_v30 = vand.u32 2147483648, %v5979_v63 }
 0x127   :  { %8042 = vst [vmem:[#allocation135_spill] sm:$0xff] %v6123_v38  ;;  %v6125_v55 = vor.u32 %v4909_v28, %v4622_v56  ;;  %v4903_v6 = vld [vmem:[#allocation12 + $0x4] sm:$0xf]  ;;  %v4904_v27 = vld [vmem:[#allocation12 + $0xc] sm:$0xf] }
 0x128   :  { %v1008_v48 = vadd.f32 %v6039_v46, %v1007_v45  ;;  %v6114_v45 = vor.u32 %v4911_v14, %v4640_v1  ;;  %v4908_v1 = vld [vmem:[#allocation12 + $0x2c] sm:$0xf]  ;;  %v4632_v14 = vld [vmem:[#allocation12 + $0x38] sm:$0xf0]  ;;  %vm999_vm10 = vcmp.eq.f32.partialorder %v8044_v4, 8.507059e+37  ;;  %v986_v56 = vor.u32 1.1754944e-38, %v8045_v30  ;;  %1298 = vmatpush.bf16.msra.mxu3 %v6123_v38 }
 0x129   :  { %8043 = vst [vmem:[#allocation136_spill] sm:$0xff] %v6125_v55  ;;  %v1002_v28 = vsel %vm999_vm10, %v6028_v9, %v997_v52  ;;  %1285 = vmatpush.bf16.msra.mxu2 %v6116_v5  ;;  %1260 = vmatpush.bf16.msra.mxu0 %v6125_v55  ;;  %v6149_v9 = vor.u32 %v4905_v58, %v4606_v39  ;;  %v4614_v52 = vld [vmem:[#allocation12 + $0x8] sm:$0xf]  ;;  %v1028_v39 = vand.u32 2147483647, %v6010_v62 }
 0x12a   :  { %8040 = vst [vmem:[#allocation133_spill] sm:$0xff] %v6114_v45  ;;  %v1012_v57 = vsel %vm6107_vm9, %v6039_v46, %v1008_v48  ;;  %v982_v46 = vsel %vm6065_vm2, %v6007_v51, %v978_v25  ;;  %v304_v48 = vld [vmem:[#allocation6] sm:$0x1]  ;;  %1272 = vmatpush.bf16.msra.mxu1 %v6114_v45  ;;  %v4608_v51 = vld [vmem:[#allocation12 + $0x10] sm:$0xf0] }
 0x12b   :  { %v1017_v20 = vsel %vm6098_vm8, %v1016_v23, %v1012_v57  ;;  %8046 = vst [vmem:[#allocation137_spill] sm:$0xff] %v6139_v12  ;;  %v6141_v23 = vor.u32 %v4910_v47, %v4630_v32  ;;  %v8048_v25 = vand.u32 2147483647, %v5979_v63  ;;  %v6147_v57 = vor.u32 %v4908_v1, %v4632_v14  ;;  %v4616_v32 = vld [vmem:[#allocation12 + $0x18] sm:$0xf0] }
 0x12c   :  { %v1034_v42 = vmul.f32 2.0, %v1017_v20  ;;  %8050 = vst [vmem:[#allocation140_spill] sm:$0xff] %v6149_v9  ;;  %v4906_v20 = vld [vmem:[#allocation12 + $0x14] sm:$0xf0]  ;;  %v1022_v47 = vmul.f32 %v6054_v43, %v1021_v24  ;;  %v1036_v4 = vmul.f32 %v1002_v28, %v304_v48  ;;  %v6154_v63 = vor.u32 %v4903_v6, %v4608_v51 }
 0x12d   :  { %8047 = vst [vmem:[#allocation138_spill] sm:$0xff] %v6141_v23  ;;  %vm984_vm11 = vcmp.eq.f32.partialorder %v8048_v25, 8.507059e+37  ;;  %1286 = vmatpush.bf16.msra.mxu2 %v6141_v23  ;;  %1299 = vmatpush.bf16.msra.mxu3 %v6147_v57  ;;  %v6162_v58 = vor.u32 %v4904_v27, %v4616_v32  ;;  %v1030_v14 = vand.u32 2147483648, %v6010_v62  ;;  %vm1029_vm15 = vcmp.eq.f32.partialorder %v1028_v39, 8.507059e+37  ;;  %v8054_v62 = vld [vmem:[#allocation49_spill] sm:$0xff]  ;;  %v8056_v25 = vld [vmem:[#allocation51_spill] sm:$0xff] }
 0x12e   :  { %v4603_v50 = vadd.f32 -1.0, %v1034_v42  ;;  %8049 = vst [vmem:[#allocation139_spill] sm:$0xff] %v6147_v57  ;;  %v987_v33 = vsel %vm984_vm11, %v986_v56, %v982_v46  ;;  %1273 = vmatpush.bf16.msra.mxu1 %v6139_v12  ;;  %v6156_v42 = vor.u32 %v4906_v20, %v4614_v52  ;;  %1261 = vmatpush.bf16.msra.mxu0 %v6149_v9  ;;  %v8058_v52 = vld [vmem:[#allocation53_spill] sm:$0xff]  ;;  %v8059_v20 = vld [vmem:[#allocation54_spill] sm:$0xff]  ;;  %v8068_v39 = vld [vmem:[#allocation63_spill] sm:$0xff] }
 0x12f   :  { %8051 = vst [vmem:[#allocation141_spill] sm:$0xff] %v6154_v63  ;;  %v1023_v24 = vadd.f32 %v6054_v43, %v1022_v47  ;;  %v1031_v48 = vor.u32 1.1754944e-38, %v1030_v14  ;;  %v8061_v47 = vld [vmem:[#allocation56_spill] sm:$0xff]  ;;  %v8062_v27 = vld [vmem:[#allocation57_spill] sm:$0xff]  ;;  %v8063_v32 = vld [vmem:[#allocation58_spill] sm:$0xff] }
 0x130   :  { %v1037_v30 = vmul.f32 %v4603_v50, %v987_v33  ;;  %8052 = vst [vmem:[#allocation142_spill] sm:$0xff] %v6156_v42  ;;  %v8057_v50 = vld [vmem:[#allocation52_spill] sm:$0xff]  ;;  %v8060_v33 = vld [vmem:[#allocation55_spill] sm:$0xff]  ;;  %v8067_v14 = vld [vmem:[#allocation62_spill] sm:$0xff] }
 0x131   :  { %8053 = vst [vmem:[#allocation143_spill] sm:$0xff] %v6162_v58  ;;  %1287 = vmatpush.bf16.msra.mxu2 %v6156_v42  ;;  %1300 = vmatpush.bf16.msra.mxu3 %v6162_v58  ;;  %v1027_v46 = vsel %vm1026_vm14, %v6054_v43, %v1023_v24  ;;  %v8055_v43 = vld [vmem:[#allocation50_spill] sm:$0xff]  ;;  %v8066_v24 = vld [vmem:[#allocation61_spill] sm:$0xff] }
 0x132   :  { %v6158_v1 = vadd.f32 %v1037_v30, %v1036_v4  ;;  %1274 = vmatpush.bf16.msra.mxu1 %v6154_v63  ;;  %v1032_v28 = vsel %vm1029_vm15, %v1031_v48, %v1027_v46  ;;  %v8064_v4 = vld [vmem:[#allocation59_spill] sm:$0xff]  ;;  %v8065_v30 = vld [vmem:[#allocation60_spill] sm:$0xff]  ;;  %v8070_v48 = vld [vmem:[#allocation65_spill] sm:$0xff] }
 0x133   :  { %v8069_v46 = vld [vmem:[#allocation64_spill] sm:$0xff] }
 0x134   :  { %5005 = vtanh.f32 %v6158_v1 }
 0x13a   :  { %v5006_v56 = vpop.eup %5005 }
 0x13b   :  { %v1040_v6 = vmul.f32 %v5006_v56, %v1032_v28  ;;  %v8071_v56 = vld [vmem:[#allocation66_spill] sm:$0xff]  ;;  %v8072_v28 = vld [vmem:[#allocation67_spill] sm:$0xff] }
 0x13d   :  { %v1041_v51 = vpack.c.bf16 %v1040_v6, %v1040_v6  ;;  %v8073_v6 = vld [vmem:[#allocation68_spill] sm:$0xff] }
 0x13f   :  { %1050 = vmatmul.bf16.vlgmr.msrb.gmra.mxu0 %v1041_v51  ;;  %1063 = vmatmul.bf16.vlgmr.msrb.gmra.mxu1 %v1041_v51 }
 0x140   :  { %1076 = vmatmul.bf16.vlgmr.msrb.gmra.mxu2 %v1041_v51  ;;  %1089 = vmatmul.bf16.vlgmr.msrb.gmra.mxu3 %v1041_v51 }
 0x141   :  { %1403 = vmatpush.bf16.msrb.mxu0 %v5729_v59  ;;  %1416 = vmatpush.bf16.msrb.mxu1 %v5731_v60 }
 0x142   :  { %1429 = vmatpush.bf16.msrb.mxu2 %v5733_v61  ;;  %1442 = vmatpush.bf16.msrb.mxu3 %v5736_v2 }
 0x145   :  { %1404 = vmatpush.bf16.msrb.mxu0 %v5742_v18  ;;  %1417 = vmatpush.bf16.msrb.mxu1 %v8054_v62 }
 0x146   :  { %1430 = vmatpush.bf16.msrb.mxu2 %v8055_v43  ;;  %1443 = vmatpush.bf16.msrb.mxu3 %v8056_v25 }
 0x149   :  { %1405 = vmatpush.bf16.msrb.mxu0 %v8057_v50  ;;  %1418 = vmatpush.bf16.msrb.mxu1 %v8058_v52 }
 0x14a   :  { %1431 = vmatpush.bf16.msrb.mxu2 %v8059_v20  ;;  %1444 = vmatpush.bf16.msrb.mxu3 %v8060_v33  ;;  %v306_v33 = vld [vmem:[#allocation6 + $0x1] sm:$0x1] }
 0x14d   :  { %1406 = vmatpush.bf16.msrb.mxu0 %v8061_v47  ;;  %1419 = vmatpush.bf16.msrb.mxu1 %v8062_v27 }
 0x14e   :  { %1432 = vmatpush.bf16.msrb.mxu2 %v8063_v32  ;;  %1445 = vmatpush.bf16.msrb.mxu3 %v8064_v4  ;;  %v8074_v4 = vld [vmem:[#allocation69_spill] sm:$0xff] }
 0x14f   :  { %1262 = vmatmul.bf16.vlgmr.msra.gmra.mxu0 %v1041_v51  ;;  %1275 = vmatmul.bf16.vlgmr.msra.gmra.mxu1 %v1041_v51 }
 0x150   :  { %1288 = vmatmul.bf16.vlgmr.msra.gmra.mxu2 %v1041_v51  ;;  %1301 = vmatmul.bf16.vlgmr.msra.gmra.mxu3 %v1041_v51  ;;  %v8075_v51 = vld [vmem:[#allocation70_spill] sm:$0xff] }
 0x151   :  { %1407 = vmatpush.bf16.msrb.mxu0 %v8065_v30  ;;  %1420 = vmatpush.bf16.msrb.mxu1 %v8066_v24  ;;  %v6309_v30 = vld [vmem:[#allocation15] sm:$0xff] }
 0x152   :  { %1433 = vmatpush.bf16.msrb.mxu2 %v8067_v14  ;;  %1446 = vmatpush.bf16.msrb.mxu3 %v8068_v39 }
 0x155   :  { %1408 = vmatpush.bf16.msrb.mxu0 %v8069_v46  ;;  %1421 = vmatpush.bf16.msrb.mxu1 %v8070_v48  ;;  %v8076_v48 = vld [vmem:[#allocation76_spill] sm:$0xff] }
 0x156   :  { %1434 = vmatpush.bf16.msrb.mxu2 %v8071_v56  ;;  %1447 = vmatpush.bf16.msrb.mxu3 %v8072_v28  ;;  %v8077_v28 = vld [vmem:[#allocation78_spill] sm:$0xff] }
 0x159   :  { %1409 = vmatpush.bf16.msrb.mxu0 %v8073_v6  ;;  %1422 = vmatpush.bf16.msrb.mxu1 %v8074_v4  ;;  %v8078_v6 = vld [vmem:[#allocation80_spill] sm:$0xff]  ;;  %v8079_v4 = vld [vmem:[#allocation81_spill] sm:$0xff] }
 0x15a   :  { %1435 = vmatpush.bf16.msrb.mxu2 %v8075_v51  ;;  %1448 = vmatpush.bf16.msrb.mxu3 %v5811_v54  ;;  %v8080_v51 = vld [vmem:[#allocation82_spill] sm:$0xff]  ;;  %v8081_v54 = vld [vmem:[#allocation84_spill] sm:$0xff] }
 0x15d   :  { %1410 = vmatpush.bf16.msrb.mxu0 %v5814_v36  ;;  %1423 = vmatpush.bf16.msrb.mxu1 %v5818_v40  ;;  %v8082_v36 = vld [vmem:[#allocation85_spill] sm:$0xff]  ;;  %v8083_v40 = vld [vmem:[#allocation86_spill] sm:$0xff] }
 0x15e   :  { %1436 = vmatpush.bf16.msrb.mxu2 %v5820_v0  ;;  %1449 = vmatpush.bf16.msrb.mxu3 %v5823_v31  ;;  %v8084_v0 = vld [vmem:[#allocation88_spill] sm:$0xff]  ;;  %v8085_v31 = vld [vmem:[#allocation89_spill] sm:$0xff] }
 0x161   :  { %1518 = vmatpush.bf16.msra.mxu1 %v8076_v48  ;;  %v8086_v48 = vld [vmem:[#allocation90_spill] sm:$0xff] }
 0x162   :  { %1531 = vmatpush.bf16.msra.mxu2 %v5827_v11  ;;  %1544 = vmatpush.bf16.msra.mxu3 %v8077_v28  ;;  %v8087_v11 = vld [vmem:[#allocation92_spill] sm:$0xff]  ;;  %v8088_v28 = vld [vmem:[#allocation93_spill] sm:$0xff] }
 0x165   :  { %1519 = vmatpush.bf16.msra.mxu1 %v8078_v6  ;;  %v8089_v6 = vld [vmem:[#allocation94_spill] sm:$0xff] }
 0x166   :  { %1532 = vmatpush.bf16.msra.mxu2 %v8079_v4  ;;  %1545 = vmatpush.bf16.msra.mxu3 %v8080_v51  ;;  %v8090_v4 = vld [vmem:[#allocation96_spill] sm:$0xff]  ;;  %v8091_v51 = vld [vmem:[#allocation97_spill] sm:$0xff] }
 0x169   :  { %1520 = vmatpush.bf16.msra.mxu1 %v8081_v54 }
 0x16a   :  { %1533 = vmatpush.bf16.msra.mxu2 %v8082_v36  ;;  %1546 = vmatpush.bf16.msra.mxu3 %v8083_v40 }
 0x16d   :  { %1521 = vmatpush.bf16.msra.mxu1 %v8084_v0 }
 0x16e   :  { %1534 = vmatpush.bf16.msra.mxu2 %v8085_v31  ;;  %1547 = vmatpush.bf16.msra.mxu3 %v8086_v48 }
 0x171   :  { %1522 = vmatpush.bf16.msra.mxu1 %v8087_v11 }
 0x172   :  { %1535 = vmatpush.bf16.msra.mxu2 %v8088_v28  ;;  %1548 = vmatpush.bf16.msra.mxu3 %v8089_v6 }
 0x175   :  { %1523 = vmatpush.bf16.msra.mxu1 %v8090_v4 }
 0x176   :  { %1536 = vmatpush.bf16.msra.mxu2 %v8091_v51  ;;  %1549 = vmatpush.bf16.msra.mxu3 %v5892_v19 }
 0x179   :  { %1524 = vmatpush.bf16.msra.mxu1 %v5898_v53 }
 0x17a   :  { %1537 = vmatpush.bf16.msra.mxu2 %v5902_v15  ;;  %1550 = vmatpush.bf16.msra.mxu3 %v5904_v41  ;;  %v285_v41 = vld [vmem:[%s7643_s7] sm:$0xf] }
 0x17b   :  { %v6241_v11 = vperm.slane %v285_v41, 0  ;;  %v6249_v54 = vperm.slane %v285_v41, 2 }
 0x17d   :  { %1525 = vmatpush.bf16.msra.mxu1 %v5910_v37  ;;  %8092 = vst [vmem:[#allocation49_spill] sm:$0xff] %v6241_v11 }
 0x17e   :  { %1538 = vmatpush.bf16.msra.mxu2 %v5914_v10  ;;  %1551 = vmatpush.bf16.msra.mxu3 %v5916_v49  ;;  %v6243_v10 = vperm.slane %v285_v41, 1  ;;  %8094 = vst [vmem:[#allocation51_spill] sm:$0xff] %v6249_v54 }
 0x180   :  { %8093 = vst [vmem:[#allocation50_spill] sm:$0xff] %v6243_v10 }
 0x1bc   :  { %v6230_v28 = vpop.f32.mrf.mxu0  ;;  %v6232_v6 = vpop.f32.mrf.mxu1 }
 0x1c3   :  { %v6234_v4 = vpop.f32.mrf.mxu2  ;;  %v6236_v51 = vpop.f32.mrf.mxu3 }
 0x1c4   :  { %v1053_v19 = vpop.f32.mrf.mxu0  ;;  %v1066_v53 = vpop.f32.mrf.mxu1 }
 0x1cb   :  { %v1079_v15 = vpop.f32.mrf.mxu2  ;;  %v1092_v37 = vpop.f32.mrf.mxu3 }
 0x1cc   :  { %v1263_v49 = vpop.f32.mrf.mxu0  ;;  %v1276_v48 = vpop.f32.mrf.mxu1  ;;  %v6251_v15 = vperm.slane %v285_v41, 3 }
 0x1cd   :  { %v1264_v31 = vadd.f32 %v1263_v49, %v5957_v13  ;;  %v1277_v0 = vadd.f32 %v1276_v48, %v5959_v22 }
 0x1ce   :  { %8095 = vst [vmem:[#allocation52_spill] sm:$0xff] %v6251_v15 }
 0x1cf   :  { %v1315_v40 = vadd.f32 %v6241_v11, %v1264_v31  ;;  %v1316_v53 = vadd.f32 %v6243_v10, %v1277_v0 }
 0x1d1   :  { %v4732_v19 = vmul.f32 -1.442695, %v1315_v40  ;;  %v4733_v36 = vmul.f32 -1.442695, %v1316_v53  ;;  %v6257_v53 = vld [vmem:[#allocation15 + $0x38] sm:$0xff] }
 0x1d2   :  { %8096 = vst [vmem:[#allocation53_spill] sm:$0xff] %v6257_v53  ;;  %1504 = vmatpush.bf16.msra.mxu0 %v6257_v53 }
 0x1d3   :  { %5007 = vpow2.f32 %v4732_v19  ;;  %v1289_v37 = vpop.f32.mrf.mxu2  ;;  %v1302_v56 = vpop.f32.mrf.mxu3 }
 0x1d4   :  { %5009 = vpow2.f32 %v4733_v36  ;;  %v1290_v46 = vadd.f32 %v1289_v37, %v5961_v26  ;;  %v1303_v49 = vadd.f32 %v1302_v56, %v5963_v35  ;;  %v1265_v13 = vpop.f32.mrf.mxu0  ;;  %v1278_v22 = vpop.f32.mrf.mxu1  ;;  %v6262_v36 = vld [vmem:[#allocation15 + $0x30] sm:$0xff]  ;;  %v6269_v56 = vld [vmem:[#allocation15 + $0x28] sm:$0xff] }
 0x1d5   :  { %8097 = vst [vmem:[#allocation54_spill] sm:$0xff] %v6262_v36 }
 0x1d6   :  { %v1317_v31 = vadd.f32 %v6249_v54, %v1290_v46  ;;  %v1318_v0 = vadd.f32 %v6251_v15, %v1303_v49  ;;  %1505 = vmatpush.bf16.msra.mxu0 %v6262_v36  ;;  %8098 = vst [vmem:[#allocation144_spill] sm:$0xff] %v6269_v56  ;;  %v6286_v15 = vld [vmem:[#allocation15 + $0x10] sm:$0xff] }
 0x1d7   :  { %8101 = vst [vmem:[#allocation147_spill] sm:$0xff] %v6286_v15 }
 0x1d8   :  { %v4734_v40 = vmul.f32 -1.442695, %v1317_v31  ;;  %v4735_v48 = vmul.f32 -1.442695, %v1318_v0 }
 0x1d9   :  { %v5008_v41 = vpop.eup %5007 }
 0x1da   :  { %v5010_v10 = vpop.eup %5009  ;;  %v6259_v19 = vadd.f32 1.0, %v5008_v41  ;;  %5011 = vpow2.f32 %v4734_v40  ;;  %1506 = vmatpush.bf16.msra.mxu0 %v6269_v56 }
 0x1db   :  { %v6264_v35 = vadd.f32 1.0, %v5010_v10  ;;  %5013 = vpow2.f32 %v4735_v48  ;;  %v1291_v26 = vpop.f32.mrf.mxu2  ;;  %v1304_v46 = vpop.f32.mrf.mxu3  ;;  %v6276_v10 = vld [vmem:[#allocation15 + $0x20] sm:$0xff] }
 0x1dc   :  { %5015 = vrcp.f32 %v6259_v19  ;;  %8099 = vst [vmem:[#allocation145_spill] sm:$0xff] %v6276_v10  ;;  %v6283_v46 = vld [vmem:[#allocation15 + $0x18] sm:$0xff]  ;;  %vm1340_vm6 = vweird.f32 %v6259_v19 }
 0x1dd   :  { %5017 = vrcp.f32 %v6264_v35  ;;  %8100 = vst [vmem:[#allocation146_spill] sm:$0xff] %v6283_v46  ;;  %vm1355_vm2 = vweird.f32 %v6264_v35 }
 0x1de   :  { %1507 = vmatpush.bf16.msra.mxu0 %v6276_v10 }
 0x1e0   :  { %v5012_v37 = vpop.eup %5011 }
 0x1e1   :  { %v5014_v49 = vpop.eup %5013  ;;  %v1333_v13 = vadd.f32 1.0, %v5012_v37 }
 0x1e2   :  { %v6271_v22 = vpop.eup %5015  ;;  %v6273_v31 = vadd.f32 1.0, %v5014_v49  ;;  %1508 = vmatpush.bf16.msra.mxu0 %v6283_v46  ;;  %v1361_v46 = vand.u32 2147483648, %v6264_v35 }
 0x1e3   :  { %v5018_v0 = vpop.eup %5017  ;;  %5019 = vrcp.f32 %v1333_v13  ;;  %v1336_v40 = vmul.f32 %v6271_v22, %v6259_v19  ;;  %v1374_v10 = vand.u32 2147483647, %v1333_v13  ;;  %vm1341_vm3 = vweird.f32 %v6271_v22 }
 0x1e4   :  { %v1351_v48 = vmul.f32 %v5018_v0, %v6264_v35  ;;  %5021 = vrcp.f32 %v6273_v31  ;;  %vm1356_vm0 = vweird.f32 %v5018_v0  ;;  %vm1370_vm5 = vweird.f32 %v1333_v13  ;;  %vm1342_vm9 = vmor %vm1340_vm6, %vm1341_vm3 }
 0x1e5   :  { %v1337_v26 = vsub.f32 1.0, %v1336_v40  ;;  %v6290_v40 = vld [vmem:[#allocation15 + $0x8] sm:$0xff]  ;;  %vm6298_vm4 = vmor %vm1355_vm2, %vm1356_vm0  ;;  %vm1375_vm8 = vcmp.eq.f32.partialorder %v1374_v10, 8.507059e+37  ;;  %vm1385_vm13 = vweird.f32 %v6273_v31 }
 0x1e6   :  { %v1352_v41 = vsub.f32 1.0, %v1351_v48  ;;  %v1376_v48 = vand.u32 2147483648, %v1333_v13  ;;  %1509 = vmatpush.bf16.msra.mxu0 %v6286_v15 }
 0x1e7   :  { %v1338_v56 = vmul.f32 %v6271_v22, %v1337_v26 }
 0x1e8   :  { %v1353_v49 = vmul.f32 %v5018_v0, %v1352_v41  ;;  %v1359_v41 = vand.u32 2147483647, %v6264_v35  ;;  %v1377_v15 = vor.u32 1.1754944e-38, %v1376_v48  ;;  %v1344_v35 = vand.u32 2147483647, %v6259_v19 }
 0x1e9   :  { %v5020_v37 = vpop.eup %5019 }
 0x1ea   :  { %v1366_v54 = vmul.f32 %v5020_v37, %v1333_v13  ;;  %v5022_v11 = vpop.eup %5021  ;;  %v1354_v53 = vadd.f32 %v5018_v0, %v1353_v49  ;;  %vm1371_vm1 = vweird.f32 %v5020_v37  ;;  %v1346_v49 = vand.u32 2147483648, %v6259_v19  ;;  %1510 = vmatpush.bf16.msra.mxu0 %v6290_v40 }
 0x1eb   :  { %v1381_v14 = vmul.f32 %v5022_v11, %v6273_v31  ;;  %vm1372_vm7 = vmor %vm1370_vm5, %vm1371_vm1  ;;  %vm1360_vm10 = vcmp.eq.f32.partialorder %v1359_v41, 8.507059e+37  ;;  %vm1345_vm11 = vcmp.eq.f32.partialorder %v1344_v35, 8.507059e+37  ;;  %vm1386_vm12 = vweird.f32 %v5022_v11  ;;  %v8104_v41 = vld [vmem:[#allocation79_spill] sm:$0xff] }
 0x1ec   :  { %v1367_v36 = vsub.f32 1.0, %v1366_v54  ;;  %v1339_v54 = vadd.f32 %v6271_v22, %v1338_v56  ;;  %v1358_v56 = vsel %vm6298_vm4, %v5018_v0, %v1354_v53  ;;  %v1347_v48 = vor.u32 1.1754944e-38, %v1346_v49  ;;  %vm1387_vm14 = vmor %vm1385_vm13, %vm1386_vm12  ;;  %v8108_v49 = vld [vmem:[#allocation27_spill] sm:$0xff] }
 0x1ed   :  { %v1382_v32 = vsub.f32 1.0, %v1381_v14  ;;  %v1391_v14 = vand.u32 2147483648, %v6273_v31  ;;  %v8109_v35 = vld [vmem:[#allocation91_spill] sm:$0xff] }
 0x1ee   :  { %v1368_v39 = vmul.f32 %v5020_v37, %v1367_v36  ;;  %v1343_v27 = vsel %vm1342_vm9, %v6271_v22, %v1339_v54  ;;  %1511 = vmatpush.bf16.msra.mxu0 %v6309_v30  ;;  %v8107_v54 = vld [vmem:[#allocation26_spill] sm:$0xff] }
 0x1ef   :  { %v1348_v53 = vsel %vm1345_vm11, %v1347_v48, %v1343_v27  ;;  %v1383_v10 = vmul.f32 %v5022_v11, %v1382_v32  ;;  %v1392_v22 = vor.u32 1.1754944e-38, %v1391_v14  ;;  %v8113_v48 = vld [vmem:[#allocation95_spill] sm:$0xff] }
 0x1f0   :  { %v1369_v26 = vadd.f32 %v5020_v37, %v1368_v39  ;;  %v1362_v39 = vor.u32 1.1754944e-38, %v1361_v46  ;;  %v8121_v14 = vld [vmem:[#allocation103_spill] sm:$0xff] }
 0x1f2   :  { %v1373_v24 = vsel %vm1372_vm7, %v5020_v37, %v1369_v26  ;;  %v1363_v19 = vsel %vm1360_vm10, %v1362_v39, %v1358_v56  ;;  %v8110_v56 = vld [vmem:[#allocation29_spill] sm:$0xff]  ;;  %v8111_v39 = vld [vmem:[#allocation30_spill] sm:$0xff] }
 0x1f3   :  { %v1378_v13 = vsel %vm1375_vm8, %v1377_v15, %v1373_v24  ;;  %v1397_v0 = vmul.f32 %v1363_v19, %v306_v33  ;;  %v1384_v24 = vadd.f32 %v5022_v11, %v1383_v10  ;;  %v1389_v15 = vand.u32 2147483647, %v6273_v31  ;;  %v8106_v31 = vld [vmem:[#allocation87_spill] sm:$0xff]  ;;  %v8114_v19 = vld [vmem:[#allocation33_spill] sm:$0xff] }
 0x1f4   :  { %v1395_v47 = vmul.f32 2.0, %v1378_v13  ;;  %v8112_v13 = vld [vmem:[#allocation31_spill] sm:$0xff] }
 0x1f5   :  { %vm1390_vm15 = vcmp.eq.f32.partialorder %v1389_v15, 8.507059e+37  ;;  %v8117_v10 = vld [vmem:[#allocation99_spill] sm:$0xff]  ;;  %v8122_v15 = vld [vmem:[#allocation41_spill] sm:$0xff] }
 0x1f6   :  { %v4736_v36 = vadd.f32 -1.0, %v1395_v47  ;;  %v1388_v47 = vsel %vm1387_vm14, %v5022_v11, %v1384_v24  ;;  %v8105_v11 = vld [vmem:[#allocation83_spill] sm:$0xff] }
 0x1f7   :  { %v1393_v32 = vsel %vm1390_vm15, %v1392_v22, %v1388_v47  ;;  %v8120_v24 = vld [vmem:[#allocation39_spill] sm:$0xff]  ;;  %v8123_v47 = vld [vmem:[#allocation42_spill] sm:$0xff] }
 0x1f8   :  { %v1398_v37 = vmul.f32 %v4736_v36, %v1348_v53  ;;  %v8115_v36 = vld [vmem:[#allocation34_spill] sm:$0xff]  ;;  %v8116_v53 = vld [vmem:[#allocation35_spill] sm:$0xff] }
 0x1f9   :  { %v8124_v22 = vld [vmem:[#allocation43_spill] sm:$0xff] }
 0x1fa   :  { %v6313_v26 = vadd.f32 %v1398_v37, %v1397_v0  ;;  %v8118_v0 = vld [vmem:[#allocation37_spill] sm:$0xff]  ;;  %v8119_v37 = vld [vmem:[#allocation38_spill] sm:$0xff] }
 0x1fc   :  { %5023 = vtanh.f32 %v6313_v26 }
 0x202   :  { %v5024_v27 = vpop.eup %5023 }
 0x203   :  { %v1401_v33 = vmul.f32 %v5024_v27, %v1393_v32  ;;  %v8125_v27 = vld [vmem:[#allocation107_spill] sm:$0xff]  ;;  %v8126_v32 = vld [vmem:[#allocation45_spill] sm:$0xff] }
 0x205   :  { %v1402_v46 = vpack.c.bf16 %v1401_v33, %v1401_v33  ;;  %1455 = vst [vmem:[#allocation2] sm:$0x1] %v1401_v33  ;;  %v8127_v33 = vld [vmem:[#allocation24_spill] sm:$0xff] }
 0x207   :  { %1411 = vmatmul.bf16.vlgmr.msrb.gmra.mxu0 %v1402_v46  ;;  %1424 = vmatmul.bf16.vlgmr.msrb.gmra.mxu1 %v1402_v46 }
 0x208   :  { %1437 = vmatmul.bf16.vlgmr.msrb.gmra.mxu2 %v1402_v46  ;;  %1450 = vmatmul.bf16.vlgmr.msrb.gmra.mxu3 %v1402_v46 }
 0x209   :  { %1557 = vmatpush.bf16.msrb.mxu0 %v8104_v41  ;;  %1658 = vmatpush.bf16.msrb.mxu1 %v5637_v3 }
 0x20a   :  { %1671 = vmatpush.bf16.msrb.mxu2 %v5639_v7  ;;  %1684 = vmatpush.bf16.msrb.mxu3 %v5641_v8 }
 0x20d   :  { %1558 = vmatpush.bf16.msrb.mxu0 %v8105_v11  ;;  %1659 = vmatpush.bf16.msrb.mxu1 %v5648_v16 }
 0x20e   :  { %1672 = vmatpush.bf16.msrb.mxu2 %v5650_v17  ;;  %1685 = vmatpush.bf16.msrb.mxu3 %v5653_v21 }
 0x211   :  { %1559 = vmatpush.bf16.msrb.mxu0 %v8106_v31  ;;  %1660 = vmatpush.bf16.msrb.mxu1 %v5658_v29 }
 0x212   :  { %1673 = vmatpush.bf16.msrb.mxu2 %v8107_v54  ;;  %1686 = vmatpush.bf16.msrb.mxu3 %v8108_v49 }
 0x215   :  { %1560 = vmatpush.bf16.msrb.mxu0 %v8109_v35  ;;  %1661 = vmatpush.bf16.msrb.mxu1 %v8110_v56 }
 0x216   :  { %1674 = vmatpush.bf16.msrb.mxu2 %v8111_v39  ;;  %1687 = vmatpush.bf16.msrb.mxu3 %v8112_v13 }
 0x217   :  { %1512 = vmatmul.bf16.vlgmr.msra.gmra.mxu0 %v1402_v46  ;;  %v8128_v46 = vld [vmem:[#allocation46_spill] sm:$0xff] }
 0x219   :  { %1561 = vmatpush.bf16.msrb.mxu0 %v8113_v48  ;;  %1662 = vmatpush.bf16.msrb.mxu1 %v8114_v19  ;;  %v8141_v19 = vld [vmem:[#allocation115_spill] sm:$0xff]  ;;  %v8142_v48 = vld [vmem:[#allocation116_spill] sm:$0xff] }
 0x21a   :  { %1675 = vmatpush.bf16.msrb.mxu2 %v8115_v36  ;;  %1688 = vmatpush.bf16.msrb.mxu3 %v8116_v53  ;;  %v8138_v53 = vld [vmem:[#allocation112_spill] sm:$0xff]  ;;  %v8139_v36 = vld [vmem:[#allocation113_spill] sm:$0xff] }
 0x21d   :  { %1562 = vmatpush.bf16.msrb.mxu0 %v8117_v10  ;;  %1663 = vmatpush.bf16.msrb.mxu1 %v8118_v0  ;;  %v8129_v0 = vld [vmem:[#allocation47_spill] sm:$0xff] }
 0x21e   :  { %1676 = vmatpush.bf16.msrb.mxu2 %v8119_v37  ;;  %1689 = vmatpush.bf16.msrb.mxu3 %v8120_v24  ;;  %v8130_v37 = vld [vmem:[#allocation25_spill] sm:$0xff]  ;;  %v8131_v24 = vld [vmem:[#allocation28_spill] sm:$0xff] }
 0x221   :  { %1563 = vmatpush.bf16.msrb.mxu0 %v8121_v14  ;;  %1664 = vmatpush.bf16.msrb.mxu1 %v8122_v15  ;;  %v8132_v14 = vld [vmem:[#allocation32_spill] sm:$0xff] }
 0x222   :  { %1677 = vmatpush.bf16.msrb.mxu2 %v8123_v47  ;;  %1690 = vmatpush.bf16.msrb.mxu3 %v8124_v22  ;;  %v8133_v15 = vld [vmem:[#allocation36_spill] sm:$0xff] }
 0x223   :  { %v8134_v47 = vld [vmem:[#allocation40_spill] sm:$0xff] }
 0x224   :  { %v8135_v22 = vld [vmem:[#allocation44_spill] sm:$0xff] }
 0x225   :  { %1564 = vmatpush.bf16.msrb.mxu0 %v8125_v27  ;;  %1665 = vmatpush.bf16.msrb.mxu1 %v8126_v32  ;;  %v8136_v27 = vld [vmem:[#allocation48_spill] sm:$0xff] }
 0x226   :  { %1678 = vmatpush.bf16.msrb.mxu2 %v8128_v46  ;;  %1691 = vmatpush.bf16.msrb.mxu3 %v8129_v0 }
 0x229   :  { %1697 = vmatpush.bf16.msra.mxu0 %v8127_v33 }
 0x22d   :  { %1698 = vmatpush.bf16.msra.mxu0 %v8130_v37 }
 0x231   :  { %1699 = vmatpush.bf16.msra.mxu0 %v8131_v24 }
 0x235   :  { %1700 = vmatpush.bf16.msra.mxu0 %v8132_v14 }
 0x239   :  { %1701 = vmatpush.bf16.msra.mxu0 %v8133_v15  ;;  %v6370_v15 = vld [vmem:[%s7645_s9] sm:$0x1] }
 0x23a   :  { %8137 = vst [vmem:[#allocation79_spill] sm:$0xff] %v6370_v15 }
 0x23d   :  { %1702 = vmatpush.bf16.msra.mxu0 %v8134_v47 }
 0x241   :  { %1703 = vmatpush.bf16.msra.mxu0 %v8135_v22 }
 0x245   :  { %1704 = vmatpush.bf16.msra.mxu0 %v8136_v27 }
 0x284   :  { %v6359_v32 = vpop.f32.mrf.mxu0  ;;  %v6361_v33 = vpop.f32.mrf.mxu1 }
 0x28b   :  { %v6363_v46 = vpop.f32.mrf.mxu2  ;;  %v6365_v0 = vpop.f32.mrf.mxu3 }
 0x28c   :  { %v1414_v37 = vpop.f32.mrf.mxu0  ;;  %v1427_v24 = vpop.f32.mrf.mxu1 }
 0x28d   :  { %v8140_v24 = vld [vmem:[#allocation114_spill] sm:$0xff] }
 0x293   :  { %v1440_v47 = vpop.f32.mrf.mxu2  ;;  %v1453_v14 = vpop.f32.mrf.mxu3 }
 0x294   :  { %v1513_v22 = vpop.f32.mrf.mxu0  ;;  %v8143_v14 = vld [vmem:[#allocation117_spill] sm:$0xff]  ;;  %v8144_v47 = vld [vmem:[#allocation118_spill] sm:$0xff] }
 0x295   :  { %v1514_v27 = vadd.f32 %v1513_v22, %v6370_v15  ;;  %v8145_v22 = vld [vmem:[#allocation119_spill] sm:$0xff] }
 0x297   :  { %v1517_v10 = vpack.c.bf16 %v1514_v27, %v1514_v27  ;;  %v8146_v27 = vld [vmem:[#allocation120_spill] sm:$0xff] }
 0x299   :  { %1526 = vmatmul.bf16.vlgmr.msra.gmra.mxu1 %v1517_v10  ;;  %1539 = vmatmul.bf16.vlgmr.msra.gmra.mxu2 %v1517_v10 }
 0x29a   :  { %1552 = vmatmul.bf16.vlgmr.msra.gmra.mxu3 %v1517_v10  ;;  %1565 = vmatmul.bf16.vlgmr.msrb.gmra.mxu0 %v1517_v10  ;;  %v8147_v10 = vld [vmem:[#allocation121_spill] sm:$0xff] }
 0x29b   :  { %1710 = vmatpush.bf16.msra.mxu1 %v8138_v53  ;;  %1723 = vmatpush.bf16.msra.mxu2 %v8139_v36  ;;  %v8148_v53 = vld [vmem:[#allocation122_spill] sm:$0xff]  ;;  %v8149_v36 = vld [vmem:[#allocation123_spill] sm:$0xff] }
 0x29c   :  { %v1515_v37 = vpop.f32.mrf.mxu0  ;;  %1736 = vmatpush.bf16.msra.mxu3 %v8140_v24  ;;  %1749 = vmatpush.bf16.msrb.mxu0 %v8141_v19  ;;  %v8151_v24 = vld [vmem:[#allocation125_spill] sm:$0xff]  ;;  %v8152_v19 = vld [vmem:[#allocation126_spill] sm:$0xff] }
 0x29d   :  { %v8150_v37 = vld [vmem:[#allocation124_spill] sm:$0xff] }
 0x29f   :  { %1711 = vmatpush.bf16.msra.mxu1 %v8142_v48  ;;  %1724 = vmatpush.bf16.msra.mxu2 %v8143_v14  ;;  %v8153_v48 = vld [vmem:[#allocation127_spill] sm:$0xff]  ;;  %v8154_v14 = vld [vmem:[#allocation128_spill] sm:$0xff] }
 0x2a0   :  { %1737 = vmatpush.bf16.msra.mxu3 %v8144_v47  ;;  %1750 = vmatpush.bf16.msrb.mxu0 %v8145_v22  ;;  %v8155_v47 = vld [vmem:[#allocation129_spill] sm:$0xff]  ;;  %v8156_v22 = vld [vmem:[#allocation130_spill] sm:$0xff] }
 0x2a3   :  { %1712 = vmatpush.bf16.msra.mxu1 %v8146_v27  ;;  %1725 = vmatpush.bf16.msra.mxu2 %v8147_v10 }
 0x2a4   :  { %1738 = vmatpush.bf16.msra.mxu3 %v8148_v53  ;;  %1751 = vmatpush.bf16.msrb.mxu0 %v8149_v36 }
 0x2a7   :  { %1713 = vmatpush.bf16.msra.mxu1 %v8150_v37  ;;  %1726 = vmatpush.bf16.msra.mxu2 %v8151_v24 }
 0x2a8   :  { %1739 = vmatpush.bf16.msra.mxu3 %v8152_v19  ;;  %1752 = vmatpush.bf16.msrb.mxu0 %v8153_v48 }
 0x2ab   :  { %1714 = vmatpush.bf16.msra.mxu1 %v8154_v14  ;;  %1727 = vmatpush.bf16.msra.mxu2 %v8155_v47  ;;  %v8159_v14 = vld [vmem:[#allocation109_spill] sm:$0xff] }
 0x2ac   :  { %1740 = vmatpush.bf16.msra.mxu3 %v8156_v22  ;;  %1753 = vmatpush.bf16.msrb.mxu0 %v6084_v44  ;;  %v8158_v44 = vld [vmem:[#allocation111_spill] sm:$0xff] }
 0x2af   :  { %1715 = vmatpush.bf16.msra.mxu1 %v6086_v34  ;;  %1728 = vmatpush.bf16.msra.mxu2 %v6114_v45  ;;  %v8157_v34 = vld [vmem:[#allocation108_spill] sm:$0xff] }
 0x2b0   :  { %1741 = vmatpush.bf16.msra.mxu3 %v6116_v5  ;;  %1754 = vmatpush.bf16.msrb.mxu0 %v6123_v38 }
 0x2b3   :  { %1716 = vmatpush.bf16.msra.mxu1 %v6125_v55  ;;  %1729 = vmatpush.bf16.msra.mxu2 %v6139_v12 }
 0x2b4   :  { %1742 = vmatpush.bf16.msra.mxu3 %v6141_v23  ;;  %1755 = vmatpush.bf16.msrb.mxu0 %v6147_v57 }
 0x2b7   :  { %1717 = vmatpush.bf16.msra.mxu1 %v6149_v9  ;;  %1730 = vmatpush.bf16.msra.mxu2 %v6154_v63 }
 0x2b8   :  { %1743 = vmatpush.bf16.msra.mxu3 %v6156_v42  ;;  %1756 = vmatpush.bf16.msrb.mxu0 %v6162_v58 }
 0x316   :  { %v1527_v45 = vpop.f32.mrf.mxu1 }
 0x317   :  { %v1528_v5 = vadd.f32 %v1527_v45, %v6230_v28  ;;  %v1566_v38 = vpop.f32.mrf.mxu0  ;;  %v8160_v28 = vld [vmem:[#allocation110_spill] sm:$0xff] }
 0x318   :  { %v1567_v55 = vadd.f32 %v1566_v38, %v6236_v51 }
 0x319   :  { %v1570_v12 = vadd.f32 %v1528_v5, %v8157_v34 }
 0x31a   :  { %v1573_v23 = vadd.f32 %v1567_v55, %v8158_v44 }
 0x31b   :  { %v4769_v22 = vmul.f32 -1.442695, %v1570_v12 }
 0x31c   :  { %v1540_v57 = vpop.f32.mrf.mxu2  ;;  %v4772_v47 = vmul.f32 -1.442695, %v1573_v23 }
 0x31d   :  { %5025 = vpow2.f32 %v4769_v22  ;;  %v1541_v9 = vadd.f32 %v1540_v57, %v6232_v6  ;;  %v1553_v63 = vpop.f32.mrf.mxu3 }
 0x31e   :  { %v1554_v42 = vadd.f32 %v1553_v63, %v6234_v4  ;;  %v1529_v58 = vpop.f32.mrf.mxu1  ;;  %5027 = vpow2.f32 %v4772_v47 }
 0x31f   :  { %v1571_v48 = vadd.f32 %v1541_v9, %v8159_v14  ;;  %v1568_v45 = vpop.f32.mrf.mxu0 }
 0x320   :  { %v1572_v19 = vadd.f32 %v1554_v42, %v8160_v28 }
 0x321   :  { %v4770_v38 = vmul.f32 -1.442695, %v1571_v48 }
 0x322   :  { %v4771_v5 = vmul.f32 -1.442695, %v1572_v19 }
 0x323   :  { %v5026_v51 = vpop.eup %5025  ;;  %5029 = vpow2.f32 %v4770_v38 }
 0x324   :  { %v1586_v55 = vadd.f32 1.0, %v5026_v51  ;;  %5031 = vpow2.f32 %v4771_v5  ;;  %v1542_v12 = vpop.f32.mrf.mxu2  ;;  %v5028_v57 = vpop.eup %5027 }
 0x325   :  { %v1555_v22 = vpop.f32.mrf.mxu3  ;;  %v6413_v9 = vadd.f32 1.0, %v5028_v57 }
 0x326   :  { %5033 = vrcp.f32 %v1586_v55  ;;  %vm1595_vm6 = vweird.f32 %v1586_v55 }
 0x327   :  { %vm1640_vm13 = vweird.f32 %v6413_v9 }
 0x329   :  { %v5030_v23 = vpop.eup %5029 }
 0x32a   :  { %v5032_v6 = vpop.eup %5031  ;;  %v1587_v63 = vadd.f32 1.0, %v5030_v23 }
 0x32b   :  { %v1588_v58 = vadd.f32 1.0, %v5032_v6 }
 0x32c   :  { %v5034_v4 = vpop.eup %5033  ;;  %5035 = vrcp.f32 %v1587_v63  ;;  %vm1610_vm1 = vweird.f32 %v1587_v63  ;;  %v1614_v28 = vand.u32 2147483647, %v1587_v63  ;;  %v1616_v24 = vand.u32 2147483648, %v1587_v63 }
 0x32d   :  { %5037 = vrcp.f32 %v1588_v58  ;;  %v1591_v42 = vmul.f32 %v5034_v4, %v1586_v55  ;;  %v1631_v23 = vand.u32 2147483648, %v1588_v58  ;;  %v1629_v6 = vand.u32 2147483647, %v1588_v58 }
 0x32e   :  { %5039 = vrcp.f32 %v6413_v9  ;;  %vm1596_vm3 = vweird.f32 %v5034_v4  ;;  %vm1625_vm5 = vweird.f32 %v1588_v58  ;;  %vm1615_vm10 = vcmp.eq.f32.partialorder %v1614_v28, 8.507059e+37  ;;  %v8164_v28 = vld [vmem:[#allocation56_spill] sm:$0xff] }
 0x32f   :  { %v1592_v19 = vsub.f32 1.0, %v1591_v42  ;;  %vm1630_vm8 = vcmp.eq.f32.partialorder %v1629_v6, 8.507059e+37  ;;  %vm1597_vm9 = vmor %vm1595_vm6, %vm1596_vm3  ;;  %v8170_v6 = vld [vmem:[#allocation62_spill] sm:$0xff] }
 0x331   :  { %v1593_v12 = vmul.f32 %v5034_v4, %v1592_v19 }
 0x332   :  { %v5036_v48 = vpop.eup %5035 }
 0x333   :  { %v5038_v47 = vpop.eup %5037  ;;  %v1606_v45 = vmul.f32 %v5036_v48, %v1587_v63  ;;  %vm1611_vm0 = vweird.f32 %v5036_v48  ;;  %v1594_v42 = vadd.f32 %v5034_v4, %v1593_v12  ;;  %v1617_v63 = vor.u32 1.1754944e-38, %v1616_v24 }
 0x334   :  { %v1621_v38 = vmul.f32 %v5038_v47, %v1588_v58  ;;  %v5040_v51 = vpop.eup %5039  ;;  %vm1626_vm2 = vweird.f32 %v5038_v47  ;;  %vm6417_vm4 = vmor %vm1610_vm1, %vm1611_vm0 }
 0x335   :  { %v1607_v5 = vsub.f32 1.0, %v1606_v45  ;;  %v1636_v34 = vmul.f32 %v5040_v51, %v6413_v9  ;;  %v1601_v45 = vand.u32 2147483648, %v1586_v55  ;;  %vm1627_vm7 = vmor %vm1625_vm5, %vm1626_vm2  ;;  %v1598_v53 = vsel %vm1597_vm9, %v5034_v4, %v1594_v42  ;;  %v8165_v4 = vld [vmem:[#allocation57_spill] sm:$0xff]  ;;  %v8171_v42 = vld [vmem:[#allocation63_spill] sm:$0xff] }
 0x336   :  { %v1622_v22 = vsub.f32 1.0, %v1621_v38  ;;  %v1632_v38 = vor.u32 1.1754944e-38, %v1631_v23  ;;  %vm1641_vm12 = vweird.f32 %v5040_v51 }
 0x337   :  { %v1608_v14 = vmul.f32 %v5036_v48, %v1607_v5  ;;  %v1599_v5 = vand.u32 2147483647, %v1586_v55  ;;  %v1602_v27 = vor.u32 1.1754944e-38, %v1601_v45  ;;  %vm1642_vm14 = vmor %vm1640_vm13, %vm1641_vm12  ;;  %v8173_v45 = vld [vmem:[#allocation65_spill] sm:$0xff] }
 0x338   :  { %v1623_v57 = vmul.f32 %v5038_v47, %v1622_v22 }
 0x339   :  { %v1609_v44 = vadd.f32 %v5036_v48, %v1608_v14  ;;  %v1637_v14 = vsub.f32 1.0, %v1636_v34  ;;  %vm1600_vm11 = vcmp.eq.f32.partialorder %v1599_v5, 8.507059e+37  ;;  %v1646_v34 = vand.u32 2147483648, %v6413_v9  ;;  %v8175_v5 = vld [vmem:[#allocation67_spill] sm:$0xff] }
 0x33a   :  { %v1624_v19 = vadd.f32 %v5038_v47, %v1623_v57  ;;  %v1603_v15 = vsel %vm1600_vm11, %v1602_v27, %v1598_v53 }
 0x33b   :  { %v1613_v22 = vsel %vm6417_vm4, %v5036_v48, %v1609_v44  ;;  %v1638_v13 = vmul.f32 %v5040_v51, %v1637_v14  ;;  %v8167_v48 = vld [vmem:[#allocation59_spill] sm:$0xff]  ;;  %v8177_v14 = vld [vmem:[#allocation69_spill] sm:$0xff] }
 0x33c   :  { %v1628_v36 = vsel %vm1627_vm7, %v5038_v47, %v1624_v19  ;;  %v1618_v57 = vsel %vm1615_vm10, %v1617_v63, %v1613_v22  ;;  %v8168_v47 = vld [vmem:[#allocation60_spill] sm:$0xff]  ;;  %v8178_v63 = vld [vmem:[#allocation70_spill] sm:$0xff] }
 0x33d   :  { %v1633_v12 = vsel %vm1630_vm8, %v1632_v38, %v1628_v36  ;;  %v1652_v55 = vmul.f32 %v1618_v57, %v6158_v1  ;;  %v1639_v44 = vadd.f32 %v5040_v51, %v1638_v13  ;;  %v1644_v36 = vand.u32 2147483647, %v6413_v9  ;;  %v8163_v13 = vld [vmem:[#allocation55_spill] sm:$0xff]  ;;  %v8166_v9 = vld [vmem:[#allocation58_spill] sm:$0xff]  ;;  %v8172_v19 = vld [vmem:[#allocation64_spill] sm:$0xff] }
 0x33e   :  { %v1650_v10 = vmul.f32 2.0, %v1633_v12  ;;  %v8174_v38 = vld [vmem:[#allocation66_spill] sm:$0xff]  ;;  %v8176_v22 = vld [vmem:[#allocation68_spill] sm:$0xff]  ;;  %v8179_v12 = vld [vmem:[#allocation71_spill] sm:$0xff] }
 0x33f   :  { %v1643_v24 = vsel %vm1642_vm14, %v5040_v51, %v1639_v44  ;;  %vm1645_vm15 = vcmp.eq.f32.partialorder %v1644_v36, 8.507059e+37  ;;  %v8169_v51 = vld [vmem:[#allocation61_spill] sm:$0xff]  ;;  %v8180_v57 = vld [vmem:[#allocation72_spill] sm:$0xff]  ;;  %v8184_v44 = vld [vmem:[#allocation75_spill] sm:$0xff] }
 0x340   :  { %v4773_v58 = vadd.f32 -1.0, %v1650_v10  ;;  %v1647_v10 = vor.u32 1.1754944e-38, %v1646_v34  ;;  %v8185_v34 = vld [vmem:[#allocation76_spill] sm:$0xff]  ;;  %v8186_v36 = vld [vmem:[#allocation77_spill] sm:$0xff] }
 0x342   :  { %v1653_v23 = vmul.f32 %v4773_v58, %v1603_v15  ;;  %v1648_v27 = vsel %vm1645_vm15, %v1647_v10, %v1643_v24  ;;  %v8181_v58 = vld [vmem:[#allocation73_spill] sm:$0xff]  ;;  %v8187_v24 = vld [vmem:[#allocation78_spill] sm:$0xff] }
 0x343   :  { %v8188_v10 = vld [vmem:[#allocation54_spill] sm:$0xff] }
 0x344   :  { %v6424_v37 = vadd.f32 %v1653_v23, %v1652_v55  ;;  %v8182_v55 = vld [vmem:[#allocation53_spill] sm:$0xff]  ;;  %v8183_v23 = vld [vmem:[#allocation74_spill] sm:$0xff] }
 0x346   :  { %5041 = vtanh.f32 %v6424_v37 }
 0x34c   :  { %v5042_v53 = vpop.eup %5041 }
 0x34d   :  { %v1656_v1 = vmul.f32 %v5042_v53, %v1648_v27  ;;  %v8189_v53 = vld [vmem:[#allocation80_spill] sm:$0xff]  ;;  %v8190_v27 = vld [vmem:[#allocation81_spill] sm:$0xff] }
 0x34f   :  { %v1657_v15 = vpack.c.bf16 %v1656_v1, %v1656_v1  ;;  %v8191_v1 = vld [vmem:[#allocation82_spill] sm:$0xff] }
 0x351   :  { %1666 = vmatmul.bf16.vlgmr.msrb.gmra.mxu1 %v1657_v15  ;;  %1679 = vmatmul.bf16.vlgmr.msrb.gmra.mxu2 %v1657_v15 }
 0x352   :  { %1692 = vmatmul.bf16.vlgmr.msrb.gmra.mxu3 %v1657_v15  ;;  %1705 = vmatmul.bf16.vlgmr.msra.gmra.mxu0 %v1657_v15 }
 0x353   :  { %1850 = vmatpush.bf16.msrb.mxu1 %v5729_v59  ;;  %1863 = vmatpush.bf16.msrb.mxu2 %v5731_v60 }
 0x354   :  { %1876 = vmatpush.bf16.msrb.mxu3 %v5733_v61  ;;  %1889 = vmatpush.bf16.msra.mxu0 %v5736_v2 }
 0x357   :  { %1851 = vmatpush.bf16.msrb.mxu1 %v5742_v18  ;;  %1864 = vmatpush.bf16.msrb.mxu2 %v8054_v62 }
 0x358   :  { %1877 = vmatpush.bf16.msrb.mxu3 %v8055_v43  ;;  %1890 = vmatpush.bf16.msra.mxu0 %v8056_v25 }
 0x35b   :  { %1852 = vmatpush.bf16.msrb.mxu1 %v8057_v50  ;;  %1865 = vmatpush.bf16.msrb.mxu2 %v8058_v52 }
 0x35c   :  { %1878 = vmatpush.bf16.msrb.mxu3 %v8059_v20  ;;  %1891 = vmatpush.bf16.msra.mxu0 %v8163_v13 }
 0x35f   :  { %1853 = vmatpush.bf16.msrb.mxu1 %v8164_v28  ;;  %1866 = vmatpush.bf16.msrb.mxu2 %v8165_v4 }
 0x360   :  { %1879 = vmatpush.bf16.msrb.mxu3 %v8166_v9  ;;  %1892 = vmatpush.bf16.msra.mxu0 %v8167_v48 }
 0x361   :  { %1718 = vmatmul.bf16.vlgmr.msra.gmra.mxu1 %v1657_v15  ;;  %1731 = vmatmul.bf16.vlgmr.msra.gmra.mxu2 %v1657_v15 }
 0x362   :  { %1744 = vmatmul.bf16.vlgmr.msra.gmra.mxu3 %v1657_v15  ;;  %1757 = vmatmul.bf16.vlgmr.msrb.gmra.mxu0 %v1657_v15  ;;  %v8192_v15 = vld [vmem:[#allocation144_spill] sm:$0xff] }
 0x363   :  { %1854 = vmatpush.bf16.msrb.mxu1 %v8168_v47  ;;  %1867 = vmatpush.bf16.msrb.mxu2 %v8169_v51 }
 0x364   :  { %1880 = vmatpush.bf16.msrb.mxu3 %v8170_v6  ;;  %1893 = vmatpush.bf16.msra.mxu0 %v8171_v42 }
 0x367   :  { %1855 = vmatpush.bf16.msrb.mxu1 %v8172_v19  ;;  %1868 = vmatpush.bf16.msrb.mxu2 %v8173_v45 }
 0x368   :  { %1881 = vmatpush.bf16.msrb.mxu3 %v8174_v38  ;;  %1894 = vmatpush.bf16.msra.mxu0 %v8175_v5 }
 0x36b   :  { %1856 = vmatpush.bf16.msrb.mxu1 %v8176_v22  ;;  %1869 = vmatpush.bf16.msrb.mxu2 %v8177_v14 }
 0x36c   :  { %1882 = vmatpush.bf16.msrb.mxu3 %v8178_v63  ;;  %1895 = vmatpush.bf16.msra.mxu0 %v8179_v12 }
 0x36f   :  { %1857 = vmatpush.bf16.msrb.mxu1 %v8180_v57  ;;  %1870 = vmatpush.bf16.msrb.mxu2 %v8181_v58  ;;  %v8214_v58 = vld [vmem:[#allocation49_spill] sm:$0xff]  ;;  %v8215_v57 = vld [vmem:[#allocation52_spill] sm:$0xff] }
 0x370   :  { %1883 = vmatpush.bf16.msrb.mxu3 %v8183_v23  ;;  %1896 = vmatpush.bf16.msra.mxu0 %v8184_v44  ;;  %v8194_v23 = vld [vmem:[#allocation85_spill] sm:$0xff]  ;;  %v8195_v44 = vld [vmem:[#allocation86_spill] sm:$0xff] }
 0x373   :  { %1903 = vmatpush.bf16.msra.mxu1 %v8182_v55  ;;  %1917 = vmatpush.bf16.msra.mxu2 %v8185_v34  ;;  %v8193_v55 = vld [vmem:[#allocation84_spill] sm:$0xff]  ;;  %v8196_v34 = vld [vmem:[#allocation145_spill] sm:$0xff] }
 0x374   :  { %1930 = vmatpush.bf16.msra.mxu3 %v8186_v36  ;;  %1943 = vmatpush.bf16.msrb.mxu0 %v8187_v24  ;;  %v8197_v36 = vld [vmem:[#allocation88_spill] sm:$0xff]  ;;  %v8198_v24 = vld [vmem:[#allocation89_spill] sm:$0xff] }
 0x377   :  { %1904 = vmatpush.bf16.msra.mxu1 %v8188_v10  ;;  %1918 = vmatpush.bf16.msra.mxu2 %v8189_v53  ;;  %v8199_v10 = vld [vmem:[#allocation90_spill] sm:$0xff] }
 0x378   :  { %1931 = vmatpush.bf16.msra.mxu3 %v8190_v27  ;;  %1944 = vmatpush.bf16.msrb.mxu0 %v8191_v1  ;;  %v8200_v53 = vld [vmem:[#allocation146_spill] sm:$0xff]  ;;  %v8201_v27 = vld [vmem:[#allocation92_spill] sm:$0xff]  ;;  %v8202_v1 = vld [vmem:[#allocation93_spill] sm:$0xff] }
 0x37b   :  { %1905 = vmatpush.bf16.msra.mxu1 %v8192_v15  ;;  %1919 = vmatpush.bf16.msra.mxu2 %v8193_v55  ;;  %v8203_v15 = vld [vmem:[#allocation94_spill] sm:$0xff]  ;;  %v8204_v55 = vld [vmem:[#allocation147_spill] sm:$0xff] }
 0x37c   :  { %1932 = vmatpush.bf16.msra.mxu3 %v8194_v23  ;;  %1945 = vmatpush.bf16.msrb.mxu0 %v8195_v44  ;;  %v8205_v23 = vld [vmem:[#allocation96_spill] sm:$0xff]  ;;  %v8206_v44 = vld [vmem:[#allocation97_spill] sm:$0xff] }
 0x37f   :  { %1906 = vmatpush.bf16.msra.mxu1 %v8196_v34  ;;  %1920 = vmatpush.bf16.msra.mxu2 %v8197_v36  ;;  %v8207_v34 = vld [vmem:[#allocation98_spill] sm:$0xff] }
 0x380   :  { %1933 = vmatpush.bf16.msra.mxu3 %v8198_v24  ;;  %1946 = vmatpush.bf16.msrb.mxu0 %v8199_v10  ;;  %v8208_v24 = vld [vmem:[#allocation100_spill] sm:$0xff]  ;;  %v8209_v10 = vld [vmem:[#allocation101_spill] sm:$0xff] }
 0x383   :  { %1907 = vmatpush.bf16.msra.mxu1 %v8200_v53  ;;  %1921 = vmatpush.bf16.msra.mxu2 %v8201_v27  ;;  %v8210_v53 = vld [vmem:[#allocation102_spill] sm:$0xff] }
 0x384   :  { %1934 = vmatpush.bf16.msra.mxu3 %v8202_v1  ;;  %1947 = vmatpush.bf16.msrb.mxu0 %v8203_v15  ;;  %v8211_v1 = vld [vmem:[#allocation104_spill] sm:$0xff]  ;;  %v8212_v15 = vld [vmem:[#allocation105_spill] sm:$0xff] }
 0x387   :  { %1908 = vmatpush.bf16.msra.mxu1 %v8204_v55  ;;  %1922 = vmatpush.bf16.msra.mxu2 %v8205_v23  ;;  %v8213_v55 = vld [vmem:[#allocation106_spill] sm:$0xff] }
 0x388   :  { %1935 = vmatpush.bf16.msra.mxu3 %v8206_v44  ;;  %1948 = vmatpush.bf16.msrb.mxu0 %v8207_v34 }
 0x38b   :  { %1909 = vmatpush.bf16.msra.mxu1 %v6290_v40  ;;  %1923 = vmatpush.bf16.msra.mxu2 %v8208_v24 }
 0x38c   :  { %1936 = vmatpush.bf16.msra.mxu3 %v8209_v10  ;;  %1949 = vmatpush.bf16.msrb.mxu0 %v8210_v53 }
 0x38f   :  { %1910 = vmatpush.bf16.msra.mxu1 %v6309_v30  ;;  %1924 = vmatpush.bf16.msra.mxu2 %v8211_v1 }
 0x390   :  { %1937 = vmatpush.bf16.msra.mxu3 %v8212_v15  ;;  %1950 = vmatpush.bf16.msrb.mxu0 %v8213_v55 }
 0x3ce   :  { %v6494_v23 = vpop.f32.mrf.mxu1 }
 0x3cf   :  { %v6496_v44 = vpop.f32.mrf.mxu0 }
 0x3d4   :  { %v6498_v34 = vpop.f32.mrf.mxu2 }
 0x3d5   :  { %v6500_v40 = vpop.f32.mrf.mxu3 }
 0x3d6   :  { %v1669_v24 = vpop.f32.mrf.mxu1 }
 0x3d7   :  { %v1708_v10 = vpop.f32.mrf.mxu0 }
 0x3dc   :  { %v1682_v27 = vpop.f32.mrf.mxu2 }
 0x3dd   :  { %v1695_v53 = vpop.f32.mrf.mxu3 }
 0x3de   :  { %v1719_v36 = vpop.f32.mrf.mxu1  ;;  %v8216_v53 = vld [vmem:[#allocation50_spill] sm:$0xff] }
 0x3df   :  { %v1720_v30 = vadd.f32 %v1719_v36, %v6359_v32  ;;  %v1758_v1 = vpop.f32.mrf.mxu0  ;;  %v8217_v36 = vld [vmem:[#allocation51_spill] sm:$0xff] }
 0x3e0   :  { %v1759_v15 = vadd.f32 %v1758_v1, %v6365_v0 }
 0x3e1   :  { %v1762_v55 = vadd.f32 %v1720_v30, %v8214_v58 }
 0x3e2   :  { %v1765_v12 = vadd.f32 %v1759_v15, %v8215_v57 }
 0x3e3   :  { %v4774_v63 = vmul.f32 -1.442695, %v1762_v55 }
 0x3e4   :  { %v1732_v14 = vpop.f32.mrf.mxu2  ;;  %v4777_v24 = vmul.f32 -1.442695, %v1765_v12 }
 0x3e5   :  { %5043 = vpow2.f32 %v4774_v63  ;;  %v1733_v22 = vadd.f32 %v1732_v14, %v6361_v33  ;;  %v1745_v5 = vpop.f32.mrf.mxu3 }
 0x3e6   :  { %v1746_v27 = vadd.f32 %v1745_v5, %v6363_v46  ;;  %v1721_v10 = vpop.f32.mrf.mxu1  ;;  %5045 = vpow2.f32 %v4777_v24 }
 0x3e7   :  { %v1763_v38 = vadd.f32 %v1733_v22, %v8216_v53  ;;  %v1760_v32 = vpop.f32.mrf.mxu0 }
 0x3e8   :  { %v1764_v45 = vadd.f32 %v1746_v27, %v8217_v36 }
 0x3e9   :  { %v4775_v0 = vmul.f32 -1.442695, %v1763_v38 }
 0x3ea   :  { %v4776_v1 = vmul.f32 -1.442695, %v1764_v45 }
 0x3eb   :  { %v5044_v30 = vpop.eup %5043  ;;  %5047 = vpow2.f32 %v4775_v0 }
 0x3ec   :  { %v1778_v15 = vadd.f32 1.0, %v5044_v30  ;;  %5049 = vpow2.f32 %v4776_v1  ;;  %v1734_v63 = vpop.f32.mrf.mxu2  ;;  %v5046_v33 = vpop.eup %5045 }
 0x3ed   :  { %v1747_v55 = vpop.f32.mrf.mxu3  ;;  %v6510_v22 = vadd.f32 1.0, %v5046_v33 }
 0x3ee   :  { %5051 = vrcp.f32 %v1778_v15  ;;  %vm1787_vm6 = vweird.f32 %v1778_v15 }
 0x3ef   :  { %vm1832_vm13 = vweird.f32 %v6510_v22 }
 0x3f1   :  { %v5048_v14 = vpop.eup %5047 }
 0x3f2   :  { %v5050_v12 = vpop.eup %5049  ;;  %v1779_v46 = vadd.f32 1.0, %v5048_v14 }
 0x3f3   :  { %v1780_v5 = vadd.f32 1.0, %v5050_v12 }
 0x3f4   :  { %v5052_v10 = vpop.eup %5051  ;;  %5053 = vrcp.f32 %v1779_v46  ;;  %vm1802_vm1 = vweird.f32 %v1779_v46  ;;  %v1806_v36 = vand.u32 2147483647, %v1779_v46  ;;  %v1808_v19 = vand.u32 2147483648, %v1779_v46 }
 0x3f5   :  { %5055 = vrcp.f32 %v1780_v5  ;;  %v1783_v38 = vmul.f32 %v5052_v10, %v1778_v15  ;;  %v1823_v14 = vand.u32 2147483648, %v1780_v5  ;;  %v1821_v12 = vand.u32 2147483647, %v1780_v5 }
 0x3f6   :  { %5057 = vrcp.f32 %v6510_v22  ;;  %vm1788_vm3 = vweird.f32 %v5052_v10  ;;  %vm1817_vm5 = vweird.f32 %v1780_v5  ;;  %vm1807_vm10 = vcmp.eq.f32.partialorder %v1806_v36, 8.507059e+37  ;;  %v8221_v36 = vld [vmem:[#allocation95_spill] sm:$0xff] }
 0x3f7   :  { %v1784_v24 = vsub.f32 1.0, %v1783_v38  ;;  %vm1822_vm8 = vcmp.eq.f32.partialorder %v1821_v12, 8.507059e+37  ;;  %vm1789_vm9 = vmor %vm1787_vm6, %vm1788_vm3  ;;  %v8227_v12 = vld [vmem:[#allocation38_spill] sm:$0xff] }
 0x3f9   :  { %v1785_v63 = vmul.f32 %v5052_v10, %v1784_v24 }
 0x3fa   :  { %v5054_v45 = vpop.eup %5053 }
 0x3fb   :  { %v5056_v27 = vpop.eup %5055  ;;  %v1798_v32 = vmul.f32 %v5054_v45, %v1779_v46  ;;  %vm1803_vm0 = vweird.f32 %v5054_v45  ;;  %v1786_v38 = vadd.f32 %v5052_v10, %v1785_v63  ;;  %v1809_v46 = vor.u32 1.1754944e-38, %v1808_v19 }
 0x3fc   :  { %v1813_v0 = vmul.f32 %v5056_v27, %v1780_v5  ;;  %v5058_v30 = vpop.eup %5057  ;;  %vm1818_vm2 = vweird.f32 %v5056_v27  ;;  %vm6514_vm4 = vmor %vm1802_vm1, %vm1803_vm0 }
 0x3fd   :  { %v1799_v1 = vsub.f32 1.0, %v1798_v32  ;;  %v1828_v58 = vmul.f32 %v5058_v30, %v6510_v22  ;;  %v1793_v32 = vand.u32 2147483648, %v1778_v15  ;;  %vm1819_vm7 = vmor %vm1817_vm5, %vm1818_vm2  ;;  %v1790_v51 = vsel %vm1789_vm9, %v5052_v10, %v1786_v38  ;;  %v8222_v10 = vld [vmem:[#allocation33_spill] sm:$0xff]  ;;  %v8228_v38 = vld [vmem:[#allocation39_spill] sm:$0xff] }
 0x3fe   :  { %v1814_v55 = vsub.f32 1.0, %v1813_v0  ;;  %v1824_v0 = vor.u32 1.1754944e-38, %v1823_v14  ;;  %vm1833_vm12 = vweird.f32 %v5058_v30 }
 0x3ff   :  { %v1800_v53 = vmul.f32 %v5054_v45, %v1799_v1  ;;  %v1791_v1 = vand.u32 2147483647, %v1778_v15  ;;  %v1794_v48 = vor.u32 1.1754944e-38, %v1793_v32  ;;  %vm1834_vm14 = vmor %vm1832_vm13, %vm1833_vm12  ;;  %v8230_v32 = vld [vmem:[#allocation41_spill] sm:$0xff] }
 0x400   :  { %v1815_v33 = vmul.f32 %v5056_v27, %v1814_v55 }
 0x401   :  { %v1801_v57 = vadd.f32 %v5054_v45, %v1800_v53  ;;  %v1829_v53 = vsub.f32 1.0, %v1828_v58  ;;  %vm1792_vm11 = vcmp.eq.f32.partialorder %v1791_v1, 8.507059e+37  ;;  %v1838_v58 = vand.u32 2147483648, %v6510_v22  ;;  %v8232_v1 = vld [vmem:[#allocation43_spill] sm:$0xff] }
 0x402   :  { %v1816_v24 = vadd.f32 %v5056_v27, %v1815_v33  ;;  %v1795_v9 = vsel %vm1792_vm11, %v1794_v48, %v1790_v51 }
 0x403   :  { %v1805_v55 = vsel %vm6514_vm4, %v5054_v45, %v1801_v57  ;;  %v1830_v4 = vmul.f32 %v5058_v30, %v1829_v53  ;;  %v8224_v45 = vld [vmem:[#allocation35_spill] sm:$0xff]  ;;  %v8234_v53 = vld [vmem:[#allocation45_spill] sm:$0xff] }
 0x404   :  { %v1820_v6 = vsel %vm1819_vm7, %v5056_v27, %v1816_v24  ;;  %v1810_v33 = vsel %vm1807_vm10, %v1809_v46, %v1805_v55  ;;  %v8225_v27 = vld [vmem:[#allocation99_spill] sm:$0xff]  ;;  %v8235_v46 = vld [vmem:[#allocation24_spill] sm:$0xff] }
 0x405   :  { %v1825_v63 = vsel %vm1822_vm8, %v1824_v0, %v1820_v6  ;;  %v1844_v15 = vmul.f32 %v1810_v33, %v6313_v26  ;;  %v1831_v57 = vadd.f32 %v5058_v30, %v1830_v4  ;;  %v1836_v6 = vand.u32 2147483647, %v6510_v22  ;;  %v8220_v4 = vld [vmem:[#allocation31_spill] sm:$0xff]  ;;  %v8223_v22 = vld [vmem:[#allocation34_spill] sm:$0xff] }
 0x406   :  { %v1842_v47 = vmul.f32 2.0, %v1825_v63  ;;  %v8229_v24 = vld [vmem:[#allocation103_spill] sm:$0xff]  ;;  %v8231_v0 = vld [vmem:[#allocation42_spill] sm:$0xff] }
 0x407   :  { %v1835_v19 = vsel %vm1834_vm14, %v5058_v30, %v1831_v57  ;;  %vm1837_vm15 = vcmp.eq.f32.partialorder %v1836_v6, 8.507059e+37  ;;  %v8226_v30 = vld [vmem:[#allocation37_spill] sm:$0xff]  ;;  %v8233_v55 = vld [vmem:[#allocation107_spill] sm:$0xff]  ;;  %v8236_v63 = vld [vmem:[#allocation46_spill] sm:$0xff] }
 0x408   :  { %v4778_v5 = vadd.f32 -1.0, %v1842_v47  ;;  %v1839_v47 = vor.u32 1.1754944e-38, %v1838_v58  ;;  %v8237_v33 = vld [vmem:[#allocation47_spill] sm:$0xff]  ;;  %v8241_v57 = vld [vmem:[#allocation36_spill] sm:$0xff] }
 0x409   :  { %v8242_v58 = vld [vmem:[#allocation40_spill] sm:$0xff] }
 0x40a   :  { %v1845_v14 = vmul.f32 %v4778_v5, %v1795_v9  ;;  %v1840_v51 = vsel %vm1837_vm15, %v1839_v47, %v1835_v19  ;;  %v8238_v5 = vld [vmem:[#allocation25_spill] sm:$0xff]  ;;  %v8243_v6 = vld [vmem:[#allocation44_spill] sm:$0xff] }
 0x40b   :  { %v8244_v19 = vld [vmem:[#allocation48_spill] sm:$0xff] }
 0x40c   :  { %v6521_v42 = vadd.f32 %v1845_v14, %v1844_v15  ;;  %v8239_v15 = vld [vmem:[#allocation28_spill] sm:$0xff] }
 0x40d   :  { %v8240_v14 = vld [vmem:[#allocation32_spill] sm:$0xff] }
 0x40e   :  { %5059 = vtanh.f32 %v6521_v42 }
 0x414   :  { %v5060_v48 = vpop.eup %5059 }
 0x415   :  { %v1848_v26 = vmul.f32 %v5060_v48, %v1840_v51 }
 0x417   :  { %v1849_v9 = vpack.c.bf16 %v1848_v26, %v1848_v26  ;;  %1902 = vst [vmem:[#allocation2 + $0x1] sm:$0x1] %v1848_v26 }
 0x419   :  { %1858 = vmatmul.bf16.vlgmr.msrb.gmra.mxu1 %v1849_v9  ;;  %1871 = vmatmul.bf16.vlgmr.msrb.gmra.mxu2 %v1849_v9 }
 0x41a   :  { %1884 = vmatmul.bf16.vlgmr.msrb.gmra.mxu3 %v1849_v9  ;;  %1897 = vmatmul.bf16.vlgmr.msra.gmra.mxu0 %v1849_v9 }
 0x41b   :  { %1956 = vmatpush.bf16.msrb.mxu1 %v8104_v41  ;;  %2057 = vmatpush.bf16.msrb.mxu2 %v5637_v3 }
 0x41c   :  { %2070 = vmatpush.bf16.msrb.mxu3 %v5639_v7  ;;  %2083 = vmatpush.bf16.msra.mxu0 %v5641_v8 }
 0x41f   :  { %1957 = vmatpush.bf16.msrb.mxu1 %v8105_v11  ;;  %2058 = vmatpush.bf16.msrb.mxu2 %v5648_v16 }
 0x420   :  { %2071 = vmatpush.bf16.msrb.mxu3 %v5650_v17  ;;  %2084 = vmatpush.bf16.msra.mxu0 %v5653_v21 }
 0x423   :  { %1958 = vmatpush.bf16.msrb.mxu1 %v8106_v31  ;;  %2059 = vmatpush.bf16.msrb.mxu2 %v5658_v29 }
 0x424   :  { %2072 = vmatpush.bf16.msrb.mxu3 %v8107_v54  ;;  %2085 = vmatpush.bf16.msra.mxu0 %v8108_v49 }
 0x427   :  { %1959 = vmatpush.bf16.msrb.mxu1 %v8109_v35  ;;  %2060 = vmatpush.bf16.msrb.mxu2 %v8110_v56 }
 0x428   :  { %2073 = vmatpush.bf16.msrb.mxu3 %v8111_v39  ;;  %2086 = vmatpush.bf16.msra.mxu0 %v8220_v4 }
 0x429   :  { %1911 = vmatmul.bf16.vlgmr.msra.gmra.mxu1 %v1849_v9 }
 0x42b   :  { %1960 = vmatpush.bf16.msrb.mxu1 %v8221_v36  ;;  %2061 = vmatpush.bf16.msrb.mxu2 %v8222_v10 }
 0x42c   :  { %2074 = vmatpush.bf16.msrb.mxu3 %v8223_v22  ;;  %2087 = vmatpush.bf16.msra.mxu0 %v8224_v45 }
 0x42f   :  { %1961 = vmatpush.bf16.msrb.mxu1 %v8225_v27  ;;  %2062 = vmatpush.bf16.msrb.mxu2 %v8226_v30 }
 0x430   :  { %2075 = vmatpush.bf16.msrb.mxu3 %v8227_v12  ;;  %2088 = vmatpush.bf16.msra.mxu0 %v8228_v38 }
 0x433   :  { %1962 = vmatpush.bf16.msrb.mxu1 %v8229_v24  ;;  %2063 = vmatpush.bf16.msrb.mxu2 %v8230_v32  ;;  %v8281_v24 = vld [vmem:[#allocation109_spill] sm:$0xff] }
 0x434   :  { %2076 = vmatpush.bf16.msrb.mxu3 %v8231_v0  ;;  %2089 = vmatpush.bf16.msra.mxu0 %v8232_v1 }
 0x437   :  { %1963 = vmatpush.bf16.msrb.mxu1 %v8233_v55  ;;  %2064 = vmatpush.bf16.msrb.mxu2 %v8234_v53  ;;  %v8248_v53 = vld [vmem:[#allocation114_spill] sm:$0xff]  ;;  %v8249_v55 = vld [vmem:[#allocation115_spill] sm:$0xff] }
 0x438   :  { %2077 = vmatpush.bf16.msrb.mxu3 %v8236_v63  ;;  %2090 = vmatpush.bf16.msra.mxu0 %v8237_v33 }
 0x43b   :  { %2096 = vmatpush.bf16.msra.mxu1 %v8235_v46 }
 0x43f   :  { %2097 = vmatpush.bf16.msra.mxu1 %v8238_v5 }
 0x443   :  { %2098 = vmatpush.bf16.msra.mxu1 %v8239_v15 }
 0x447   :  { %2099 = vmatpush.bf16.msra.mxu1 %v8240_v14 }
 0x44b   :  { %2100 = vmatpush.bf16.msra.mxu1 %v8241_v57  ;;  %v8245_v57 = vld [vmem:[#allocation79_spill] sm:$0xff] }
 0x44f   :  { %2101 = vmatpush.bf16.msra.mxu1 %v8242_v58 }
 0x453   :  { %2102 = vmatpush.bf16.msra.mxu1 %v8243_v6  ;;  %v8247_v6 = vld [vmem:[#allocation113_spill] sm:$0xff] }
 0x457   :  { %2103 = vmatpush.bf16.msra.mxu1 %v8244_v19  ;;  %v8246_v19 = vld [vmem:[#allocation112_spill] sm:$0xff] }
 0x496   :  { %v6567_v47 = vpop.f32.mrf.mxu1 }
 0x497   :  { %v6569_v48 = vpop.f32.mrf.mxu0 }
 0x49c   :  { %v6571_v51 = vpop.f32.mrf.mxu2 }
 0x49d   :  { %v6573_v26 = vpop.f32.mrf.mxu3 }
 0x49e   :  { %v1861_v9 = vpop.f32.mrf.mxu1 }
 0x49f   :  { %v1900_v15 = vpop.f32.mrf.mxu0  ;;  %v8257_v9 = vld [vmem:[#allocation123_spill] sm:$0xff] }
 0x4a0   :  { %v8250_v15 = vld [vmem:[#allocation116_spill] sm:$0xff] }
 0x4a4   :  { %v1874_v5 = vpop.f32.mrf.mxu2 }
 0x4a5   :  { %v1887_v14 = vpop.f32.mrf.mxu3  ;;  %v8251_v5 = vld [vmem:[#allocation117_spill] sm:$0xff] }
 0x4a6   :  { %v1912_v33 = vpop.f32.mrf.mxu1  ;;  %v8252_v14 = vld [vmem:[#allocation118_spill] sm:$0xff] }
 0x4a7   :  { %v1913_v63 = vadd.f32 %v1912_v33, %v8245_v57  ;;  %v8254_v33 = vld [vmem:[#allocation120_spill] sm:$0xff]  ;;  %v8255_v57 = vld [vmem:[#allocation121_spill] sm:$0xff] }
 0x4a9   :  { %v1916_v58 = vpack.c.bf16 %v1913_v63, %v1913_v63  ;;  %v8253_v63 = vld [vmem:[#allocation119_spill] sm:$0xff] }
 0x4ab   :  { %1925 = vmatmul.bf16.vlgmr.msra.gmra.mxu2 %v1916_v58  ;;  %1938 = vmatmul.bf16.vlgmr.msra.gmra.mxu3 %v1916_v58 }
 0x4ac   :  { %1951 = vmatmul.bf16.vlgmr.msrb.gmra.mxu0 %v1916_v58  ;;  %1964 = vmatmul.bf16.vlgmr.msrb.gmra.mxu1 %v1916_v58  ;;  %v8256_v58 = vld [vmem:[#allocation122_spill] sm:$0xff] }
 0x4ad   :  { %2109 = vmatpush.bf16.msra.mxu2 %v8246_v19  ;;  %2122 = vmatpush.bf16.msra.mxu3 %v8247_v6  ;;  %v8278_v6 = vld [vmem:[#allocation110_spill] sm:$0xff]  ;;  %v8279_v19 = vld [vmem:[#allocation111_spill] sm:$0xff] }
 0x4ae   :  { %v1914_v46 = vpop.f32.mrf.mxu1  ;;  %2135 = vmatpush.bf16.msrb.mxu0 %v8248_v53  ;;  %2148 = vmatpush.bf16.msrb.mxu1 %v8249_v55  ;;  %v8259_v53 = vld [vmem:[#allocation125_spill] sm:$0xff]  ;;  %v8260_v55 = vld [vmem:[#allocation126_spill] sm:$0xff] }
 0x4af   :  { %v8258_v46 = vld [vmem:[#allocation124_spill] sm:$0xff] }
 0x4b1   :  { %2110 = vmatpush.bf16.msra.mxu2 %v8250_v15  ;;  %2123 = vmatpush.bf16.msra.mxu3 %v8251_v5  ;;  %v8261_v15 = vld [vmem:[#allocation127_spill] sm:$0xff]  ;;  %v8262_v5 = vld [vmem:[#allocation128_spill] sm:$0xff] }
 0x4b2   :  { %2136 = vmatpush.bf16.msrb.mxu0 %v8252_v14  ;;  %2149 = vmatpush.bf16.msrb.mxu1 %v8253_v63  ;;  %v8263_v14 = vld [vmem:[#allocation129_spill] sm:$0xff]  ;;  %v8264_v63 = vld [vmem:[#allocation130_spill] sm:$0xff] }
 0x4b5   :  { %2111 = vmatpush.bf16.msra.mxu2 %v8254_v33  ;;  %2124 = vmatpush.bf16.msra.mxu3 %v8255_v57  ;;  %v8265_v33 = vld [vmem:[#allocation131_spill] sm:$0xff]  ;;  %v8266_v57 = vld [vmem:[#allocation132_spill] sm:$0xff] }
 0x4b6   :  { %2137 = vmatpush.bf16.msrb.mxu0 %v8256_v58  ;;  %2150 = vmatpush.bf16.msrb.mxu1 %v8257_v9  ;;  %v8267_v58 = vld [vmem:[#allocation133_spill] sm:$0xff]  ;;  %v8268_v9 = vld [vmem:[#allocation134_spill] sm:$0xff] }
 0x4b9   :  { %2112 = vmatpush.bf16.msra.mxu2 %v8258_v46  ;;  %2125 = vmatpush.bf16.msra.mxu3 %v8259_v53  ;;  %v8269_v46 = vld [vmem:[#allocation135_spill] sm:$0xff]  ;;  %v8270_v53 = vld [vmem:[#allocation136_spill] sm:$0xff] }
 0x4ba   :  { %2138 = vmatpush.bf16.msrb.mxu0 %v8260_v55  ;;  %2151 = vmatpush.bf16.msrb.mxu1 %v8261_v15  ;;  %v8271_v55 = vld [vmem:[#allocation137_spill] sm:$0xff]  ;;  %v8272_v15 = vld [vmem:[#allocation138_spill] sm:$0xff] }
 0x4bd   :  { %2113 = vmatpush.bf16.msra.mxu2 %v8262_v5  ;;  %2126 = vmatpush.bf16.msra.mxu3 %v8263_v14  ;;  %v8273_v5 = vld [vmem:[#allocation139_spill] sm:$0xff]  ;;  %v8274_v14 = vld [vmem:[#allocation140_spill] sm:$0xff] }
 0x4be   :  { %2139 = vmatpush.bf16.msrb.mxu0 %v8264_v63  ;;  %2152 = vmatpush.bf16.msrb.mxu1 %v8265_v33  ;;  %v8275_v63 = vld [vmem:[#allocation141_spill] sm:$0xff]  ;;  %v8276_v33 = vld [vmem:[#allocation142_spill] sm:$0xff] }
 0x4c1   :  { %2114 = vmatpush.bf16.msra.mxu2 %v8266_v57  ;;  %2127 = vmatpush.bf16.msra.mxu3 %v8267_v58  ;;  %v8277_v57 = vld [vmem:[#allocation143_spill] sm:$0xff] }
 0x4c2   :  { %2140 = vmatpush.bf16.msrb.mxu0 %v8268_v9  ;;  %2153 = vmatpush.bf16.msrb.mxu1 %v8269_v46 }
 0x4c5   :  { %2115 = vmatpush.bf16.msra.mxu2 %v8270_v53  ;;  %2128 = vmatpush.bf16.msra.mxu3 %v8271_v55 }
 0x4c6   :  { %2141 = vmatpush.bf16.msrb.mxu0 %v8272_v15  ;;  %2154 = vmatpush.bf16.msrb.mxu1 %v8273_v5 }
 0x4c9   :  { %2116 = vmatpush.bf16.msra.mxu2 %v8274_v14  ;;  %2129 = vmatpush.bf16.msra.mxu3 %v8275_v63 }
 0x4ca   :  { %2142 = vmatpush.bf16.msrb.mxu0 %v8276_v33  ;;  %2155 = vmatpush.bf16.msrb.mxu1 %v8277_v57  ;;  %v8280_v57 = vld [vmem:[#allocation108_spill] sm:$0xff] }
 0x529   :  { %v1952_v58 = vpop.f32.mrf.mxu0  ;;  %v1965_v9 = vpop.f32.mrf.mxu1 }
 0x52a   :  { %v1953_v46 = vadd.f32 %v1952_v58, %v6500_v40  ;;  %v1966_v53 = vadd.f32 %v1965_v9, %v6496_v44 }
 0x52c   :  { %v1971_v55 = vadd.f32 %v1953_v46, %v8278_v6  ;;  %v1972_v15 = vadd.f32 %v1966_v53, %v8279_v19 }
 0x52e   :  { %v4781_v1 = vmul.f32 -1.442695, %v1971_v55  ;;  %v4782_v5 = vmul.f32 -1.442695, %v1972_v15  ;;  %v1926_v0 = vpop.f32.mrf.mxu2  ;;  %v1939_v14 = vpop.f32.mrf.mxu3 }
 0x52f   :  { %v1927_v63 = vadd.f32 %v1926_v0, %v6494_v23  ;;  %v1940_v33 = vadd.f32 %v1939_v14, %v6498_v34 }
 0x530   :  { %5061 = vpow2.f32 %v4781_v1 }
 0x531   :  { %5063 = vpow2.f32 %v4782_v5  ;;  %v1969_v32 = vadd.f32 %v1927_v63, %v8280_v57  ;;  %v1970_v40 = vadd.f32 %v1940_v33, %v8281_v24  ;;  %v1954_v58 = vpop.f32.mrf.mxu0  ;;  %v1967_v44 = vpop.f32.mrf.mxu1 }
 0x533   :  { %v4779_v9 = vmul.f32 -1.442695, %v1969_v32  ;;  %v4780_v46 = vmul.f32 -1.442695, %v1970_v40 }
 0x535   :  { %5065 = vpow2.f32 %v4779_v9 }
 0x536   :  { %v5062_v53 = vpop.eup %5061  ;;  %5067 = vpow2.f32 %v4780_v46  ;;  %v1928_v55 = vpop.f32.mrf.mxu2 }
 0x537   :  { %v1941_v15 = vpop.f32.mrf.mxu3  ;;  %v5064_v19 = vpop.eup %5063  ;;  %v1987_v6 = vadd.f32 1.0, %v5062_v53 }
 0x538   :  { %v6616_v23 = vadd.f32 1.0, %v5064_v19 }
 0x539   :  { %5069 = vrcp.f32 %v1987_v6  ;;  %v2028_v40 = vand.u32 2147483647, %v1987_v6  ;;  %v2030_v58 = vand.u32 2147483648, %v1987_v6  ;;  %vm2024_vm1 = vweird.f32 %v1987_v6 }
 0x53a   :  { %5071 = vrcp.f32 %v6616_v23  ;;  %vm2039_vm13 = vweird.f32 %v6616_v23 }
 0x53b   :  { %v5066_v34 = vpop.eup %5065  ;;  %vm2029_vm3 = vcmp.eq.f32.partialorder %v2028_v40, 8.507059e+37  ;;  %v2031_v15 = vor.u32 1.1754944e-38, %v2030_v58 }
 0x53c   :  { %v5068_v0 = vpop.eup %5067  ;;  %v1985_v1 = vadd.f32 1.0, %v5066_v34 }
 0x53d   :  { %v1986_v5 = vadd.f32 1.0, %v5068_v0 }
 0x53e   :  { %5073 = vrcp.f32 %v1985_v1  ;;  %v1998_v24 = vand.u32 2147483647, %v1985_v1  ;;  %vm1994_vm6 = vweird.f32 %v1985_v1 }
 0x53f   :  { %v5070_v14 = vpop.eup %5069  ;;  %5075 = vrcp.f32 %v1986_v5  ;;  %vm2009_vm8 = vweird.f32 %v1986_v5 }
 0x540   :  { %v2020_v32 = vmul.f32 %v5070_v14, %v1987_v6  ;;  %v5072_v33 = vpop.eup %5071  ;;  %vm2025_vm0 = vweird.f32 %v5070_v14  ;;  %vm1999_vm9 = vcmp.eq.f32.partialorder %v1998_v24, 8.507059e+37 }
 0x541   :  { %vm2026_vm2 = vmor %vm2024_vm1, %vm2025_vm0  ;;  %v2035_v34 = vmul.f32 %v5072_v33, %v6616_v23  ;;  %vm2040_vm12 = vweird.f32 %v5072_v33 }
 0x542   :  { %v2021_v63 = vsub.f32 1.0, %v2020_v32  ;;  %v2000_v32 = vand.u32 2147483648, %v1985_v1  ;;  %vm2041_vm14 = vmor %vm2039_vm13, %vm2040_vm12 }
 0x543   :  { %v2036_v6 = vsub.f32 1.0, %v2035_v34 }
 0x544   :  { %v5074_v44 = vpop.eup %5073  ;;  %v2022_v9 = vmul.f32 %v5070_v14, %v2021_v63  ;;  %v2015_v63 = vand.u32 2147483648, %v1986_v5  ;;  %v2001_v40 = vor.u32 1.1754944e-38, %v2000_v32  ;;  %v8285_v32 = vld [vmem:[#allocation60_spill] sm:$0xff] }
 0x545   :  { %v5076_v46 = vpop.eup %5075  ;;  %v1990_v19 = vmul.f32 %v5074_v44, %v1985_v1  ;;  %vm1995_vm4 = vweird.f32 %v5074_v44 }
 0x546   :  { %v2023_v53 = vadd.f32 %v5070_v14, %v2022_v9  ;;  %v2005_v55 = vmul.f32 %v5076_v46, %v1986_v5  ;;  %vm2010_vm5 = vweird.f32 %v5076_v46  ;;  %v2013_v9 = vand.u32 2147483647, %v1986_v5  ;;  %vm1996_vm7 = vmor %vm1994_vm6, %vm1995_vm4 }
 0x547   :  { %v1991_v0 = vsub.f32 1.0, %v1990_v19  ;;  %vm2011_vm10 = vmor %vm2009_vm8, %vm2010_vm5 }
 0x548   :  { %v2027_v57 = vsel %vm2026_vm2, %v5070_v14, %v2023_v53  ;;  %v2006_v38 = vsub.f32 1.0, %v2005_v55  ;;  %v2016_v53 = vor.u32 1.1754944e-38, %v2015_v63  ;;  %vm2014_vm11 = vcmp.eq.f32.partialorder %v2013_v9, 8.507059e+37  ;;  %v8286_v63 = vld [vmem:[#allocation61_spill] sm:$0xff]  ;;  %v8287_v9 = vld [vmem:[#allocation62_spill] sm:$0xff] }
 0x549   :  { %v2032_v12 = vsel %vm2029_vm3, %v2031_v15, %v2027_v57  ;;  %v1992_v30 = vmul.f32 %v5074_v44, %v1991_v0  ;;  %v2037_v15 = vmul.f32 %v5072_v33, %v2036_v6  ;;  %v8288_v6 = vld [vmem:[#allocation63_spill] sm:$0xff] }
 0x54a   :  { %v2049_v27 = vmul.f32 2.0, %v2032_v12  ;;  %v2007_v45 = vmul.f32 %v5076_v46, %v2006_v38 }
 0x54b   :  { %v1993_v22 = vadd.f32 %v5074_v44, %v1992_v30  ;;  %v2038_v30 = vadd.f32 %v5072_v33, %v2037_v15  ;;  %v8296_v15 = vld [vmem:[#allocation71_spill] sm:$0xff] }
 0x54c   :  { %v2008_v58 = vadd.f32 %v5076_v46, %v2007_v45  ;;  %v4783_v19 = vadd.f32 -1.0, %v2049_v27  ;;  %v2045_v45 = vand.u32 2147483648, %v6616_v23 }
 0x54d   :  { %v1997_v14 = vsel %vm1996_vm7, %v5074_v44, %v1993_v22  ;;  %v2043_v22 = vand.u32 2147483647, %v6616_v23  ;;  %v2042_v27 = vsel %vm2041_vm14, %v5072_v33, %v2038_v30  ;;  %v8282_v23 = vld [vmem:[#allocation57_spill] sm:$0xff]  ;;  %v8283_v33 = vld [vmem:[#allocation58_spill] sm:$0xff] }
 0x54e   :  { %v2002_v57 = vsel %vm1999_vm9, %v2001_v40, %v1997_v14  ;;  %v2012_v55 = vsel %vm2011_vm10, %v5076_v46, %v2008_v58  ;;  %v2046_v24 = vor.u32 1.1754944e-38, %v2045_v45  ;;  %v8284_v46 = vld [vmem:[#allocation59_spill] sm:$0xff]  ;;  %v8289_v40 = vld [vmem:[#allocation64_spill] sm:$0xff]  ;;  %v8290_v58 = vld [vmem:[#allocation65_spill] sm:$0xff] }
 0x54f   :  { %v2052_v12 = vmul.f32 %v4783_v19, %v2002_v57  ;;  %v2017_v38 = vsel %vm2014_vm11, %v2016_v53, %v2012_v55  ;;  %vm2044_vm15 = vcmp.eq.f32.partialorder %v2043_v22, 8.507059e+37  ;;  %v8291_v19 = vld [vmem:[#allocation66_spill] sm:$0xff]  ;;  %v8292_v14 = vld [vmem:[#allocation67_spill] sm:$0xff]  ;;  %v8293_v53 = vld [vmem:[#allocation68_spill] sm:$0xff] }
 0x550   :  { %v2051_v0 = vmul.f32 %v2017_v38, %v6424_v37  ;;  %v2047_v5 = vsel %vm2044_vm15, %v2046_v24, %v2042_v27  ;;  %v8294_v57 = vld [vmem:[#allocation69_spill] sm:$0xff]  ;;  %v8295_v55 = vld [vmem:[#allocation70_spill] sm:$0xff]  ;;  %v8301_v45 = vld [vmem:[#allocation75_spill] sm:$0xff] }
 0x551   :  { %v8298_v38 = vld [vmem:[#allocation73_spill] sm:$0xff]  ;;  %v8300_v30 = vld [vmem:[#allocation74_spill] sm:$0xff]  ;;  %v8302_v22 = vld [vmem:[#allocation76_spill] sm:$0xff] }
 0x552   :  { %v6621_v34 = vadd.f32 %v2052_v12, %v2051_v0  ;;  %v8297_v12 = vld [vmem:[#allocation72_spill] sm:$0xff]  ;;  %v6657_v0 = vld [vmem:[#allocation15 + $0x38] sm:$0xff]  ;;  %v8303_v27 = vld [vmem:[#allocation77_spill] sm:$0xff] }
 0x553   :  { %8299 = vst [vmem:[#allocation83_spill] sm:$0xff] %v6657_v0  ;;  %v8304_v24 = vld [vmem:[#allocation78_spill] sm:$0xff] }
 0x554   :  { %5077 = vtanh.f32 %v6621_v34 }
 0x55a   :  { %v5078_v1 = vpop.eup %5077 }
 0x55b   :  { %v2055_v44 = vmul.f32 %v5078_v1, %v2047_v5  ;;  %v6665_v1 = vld [vmem:[#allocation15 + $0x30] sm:$0xff]  ;;  %v8306_v5 = vld [vmem:[#allocation80_spill] sm:$0xff] }
 0x55c   :  { %8305 = vst [vmem:[#allocation87_spill] sm:$0xff] %v6665_v1 }
 0x55d   :  { %v2056_v37 = vpack.c.bf16 %v2055_v44, %v2055_v44  ;;  %v8307_v44 = vld [vmem:[#allocation81_spill] sm:$0xff] }
 0x55f   :  { %2065 = vmatmul.bf16.vlgmr.msrb.gmra.mxu2 %v2056_v37  ;;  %2078 = vmatmul.bf16.vlgmr.msrb.gmra.mxu3 %v2056_v37 }
 0x560   :  { %2091 = vmatmul.bf16.vlgmr.msra.gmra.mxu0 %v2056_v37  ;;  %2104 = vmatmul.bf16.vlgmr.msra.gmra.mxu1 %v2056_v37 }
 0x561   :  { %2249 = vmatpush.bf16.msrb.mxu2 %v5729_v59  ;;  %2262 = vmatpush.bf16.msrb.mxu3 %v5731_v60 }
 0x562   :  { %2275 = vmatpush.bf16.msra.mxu0 %v5733_v61  ;;  %2288 = vmatpush.bf16.msra.mxu1 %v5736_v2 }
 0x565   :  { %2250 = vmatpush.bf16.msrb.mxu2 %v5742_v18  ;;  %2263 = vmatpush.bf16.msrb.mxu3 %v8054_v62 }
 0x566   :  { %2276 = vmatpush.bf16.msra.mxu0 %v8055_v43  ;;  %2289 = vmatpush.bf16.msra.mxu1 %v8056_v25 }
 0x569   :  { %2251 = vmatpush.bf16.msrb.mxu2 %v8057_v50  ;;  %2264 = vmatpush.bf16.msrb.mxu3 %v8058_v52 }
 0x56a   :  { %2277 = vmatpush.bf16.msra.mxu0 %v8059_v20  ;;  %2290 = vmatpush.bf16.msra.mxu1 %v8163_v13 }
 0x56d   :  { %2252 = vmatpush.bf16.msrb.mxu2 %v8164_v28  ;;  %2265 = vmatpush.bf16.msrb.mxu3 %v8282_v23 }
 0x56e   :  { %2278 = vmatpush.bf16.msra.mxu0 %v8283_v33  ;;  %2291 = vmatpush.bf16.msra.mxu1 %v8284_v46 }
 0x56f   :  { %2117 = vmatmul.bf16.vlgmr.msra.gmra.mxu2 %v2056_v37  ;;  %2130 = vmatmul.bf16.vlgmr.msra.gmra.mxu3 %v2056_v37 }
 0x570   :  { %2143 = vmatmul.bf16.vlgmr.msrb.gmra.mxu0 %v2056_v37  ;;  %2156 = vmatmul.bf16.vlgmr.msrb.gmra.mxu1 %v2056_v37  ;;  %v8308_v37 = vld [vmem:[#allocation82_spill] sm:$0xff] }
 0x571   :  { %2253 = vmatpush.bf16.msrb.mxu2 %v8285_v32  ;;  %2266 = vmatpush.bf16.msrb.mxu3 %v8286_v63 }
 0x572   :  { %2279 = vmatpush.bf16.msra.mxu0 %v8287_v9  ;;  %2292 = vmatpush.bf16.msra.mxu1 %v8288_v6 }
 0x575   :  { %2254 = vmatpush.bf16.msrb.mxu2 %v8289_v40  ;;  %2267 = vmatpush.bf16.msrb.mxu3 %v8290_v58 }
 0x576   :  { %2280 = vmatpush.bf16.msra.mxu0 %v8291_v19  ;;  %2293 = vmatpush.bf16.msra.mxu1 %v8292_v14 }
 0x579   :  { %2255 = vmatpush.bf16.msrb.mxu2 %v8293_v53  ;;  %2268 = vmatpush.bf16.msrb.mxu3 %v8294_v57  ;;  %v8334_v57 = vld [vmem:[#allocation52_spill] sm:$0xff] }
 0x57a   :  { %2281 = vmatpush.bf16.msra.mxu0 %v8295_v55  ;;  %2294 = vmatpush.bf16.msra.mxu1 %v8296_v15  ;;  %v8333_v55 = vld [vmem:[#allocation51_spill] sm:$0xff] }
 0x57d   :  { %2256 = vmatpush.bf16.msrb.mxu2 %v8297_v12  ;;  %2269 = vmatpush.bf16.msrb.mxu3 %v8298_v38 }
 0x57e   :  { %2282 = vmatpush.bf16.msra.mxu0 %v8300_v30  ;;  %2295 = vmatpush.bf16.msra.mxu1 %v8301_v45  ;;  %v8310_v45 = vld [vmem:[#allocation84_spill] sm:$0xff] }
 0x581   :  { %2302 = vmatpush.bf16.msra.mxu2 %v6657_v0  ;;  %2316 = vmatpush.bf16.msra.mxu3 %v8302_v22  ;;  %v6671_v0 = vld [vmem:[#allocation15 + $0x28] sm:$0xff]  ;;  %v8311_v22 = vld [vmem:[#allocation85_spill] sm:$0xff] }
 0x582   :  { %2329 = vmatpush.bf16.msrb.mxu0 %v8303_v27  ;;  %2342 = vmatpush.bf16.msrb.mxu1 %v8304_v24  ;;  %8309 = vst [vmem:[#allocation26_spill] sm:$0xff] %v6671_v0  ;;  %v8312_v27 = vld [vmem:[#allocation86_spill] sm:$0xff]  ;;  %v6677_v24 = vld [vmem:[#allocation15 + $0x20] sm:$0xff] }
 0x583   :  { %8313 = vst [vmem:[#allocation27_spill] sm:$0xff] %v6677_v24 }
 0x585   :  { %2303 = vmatpush.bf16.msra.mxu2 %v6665_v1  ;;  %2317 = vmatpush.bf16.msra.mxu3 %v8306_v5  ;;  %v8314_v1 = vld [vmem:[#allocation88_spill] sm:$0xff]  ;;  %v8315_v5 = vld [vmem:[#allocation89_spill] sm:$0xff] }
 0x586   :  { %2330 = vmatpush.bf16.msrb.mxu0 %v8307_v44  ;;  %2343 = vmatpush.bf16.msrb.mxu1 %v8308_v37  ;;  %v8316_v44 = vld [vmem:[#allocation90_spill] sm:$0xff] }
 0x587   :  { %v6683_v37 = vld [vmem:[#allocation15 + $0x18] sm:$0xff] }
 0x588   :  { %8317 = vst [vmem:[#allocation91_spill] sm:$0xff] %v6683_v37 }
 0x589   :  { %2304 = vmatpush.bf16.msra.mxu2 %v6671_v0  ;;  %2318 = vmatpush.bf16.msra.mxu3 %v8310_v45  ;;  %v8318_v0 = vld [vmem:[#allocation92_spill] sm:$0xff]  ;;  %v8319_v45 = vld [vmem:[#allocation93_spill] sm:$0xff] }
 0x58a   :  { %2331 = vmatpush.bf16.msrb.mxu0 %v8311_v22  ;;  %2344 = vmatpush.bf16.msrb.mxu1 %v8312_v27  ;;  %v8320_v22 = vld [vmem:[#allocation94_spill] sm:$0xff]  ;;  %v6689_v27 = vld [vmem:[#allocation15 + $0x10] sm:$0xff] }
 0x58b   :  { %8321 = vst [vmem:[#allocation29_spill] sm:$0xff] %v6689_v27 }
 0x58d   :  { %2305 = vmatpush.bf16.msra.mxu2 %v6677_v24  ;;  %2319 = vmatpush.bf16.msra.mxu3 %v8314_v1  ;;  %v8322_v24 = vld [vmem:[#allocation96_spill] sm:$0xff]  ;;  %v8323_v1 = vld [vmem:[#allocation97_spill] sm:$0xff] }
 0x58e   :  { %2332 = vmatpush.bf16.msrb.mxu0 %v8315_v5  ;;  %2345 = vmatpush.bf16.msrb.mxu1 %v8316_v44  ;;  %v8324_v5 = vld [vmem:[#allocation98_spill] sm:$0xff]  ;;  %v6695_v44 = vld [vmem:[#allocation15 + $0x8] sm:$0xff] }
 0x58f   :  { %8325 = vst [vmem:[#allocation30_spill] sm:$0xff] %v6695_v44 }
 0x591   :  { %2306 = vmatpush.bf16.msra.mxu2 %v6683_v37  ;;  %2320 = vmatpush.bf16.msra.mxu3 %v8318_v0  ;;  %v8326_v37 = vld [vmem:[#allocation100_spill] sm:$0xff]  ;;  %v8327_v0 = vld [vmem:[#allocation101_spill] sm:$0xff] }
 0x592   :  { %2333 = vmatpush.bf16.msrb.mxu0 %v8319_v45  ;;  %2346 = vmatpush.bf16.msrb.mxu1 %v8320_v22  ;;  %v8328_v45 = vld [vmem:[#allocation102_spill] sm:$0xff]  ;;  %v6701_v22 = vld [vmem:[#allocation15] sm:$0xff] }
 0x593   :  { %8329 = vst [vmem:[#allocation55_spill] sm:$0xff] %v6701_v22 }
 0x595   :  { %2307 = vmatpush.bf16.msra.mxu2 %v6689_v27  ;;  %2321 = vmatpush.bf16.msra.mxu3 %v8322_v24  ;;  %v8330_v27 = vld [vmem:[#allocation104_spill] sm:$0xff]  ;;  %v8331_v24 = vld [vmem:[#allocation105_spill] sm:$0xff] }
 0x596   :  { %2334 = vmatpush.bf16.msrb.mxu0 %v8323_v1  ;;  %2347 = vmatpush.bf16.msrb.mxu1 %v8324_v5  ;;  %v8332_v1 = vld [vmem:[#allocation106_spill] sm:$0xff] }
 0x599   :  { %2308 = vmatpush.bf16.msra.mxu2 %v6695_v44  ;;  %2322 = vmatpush.bf16.msra.mxu3 %v8326_v37 }
 0x59a   :  { %2335 = vmatpush.bf16.msrb.mxu0 %v8327_v0  ;;  %2348 = vmatpush.bf16.msrb.mxu1 %v8328_v45 }
 0x59d   :  { %2309 = vmatpush.bf16.msra.mxu2 %v6701_v22  ;;  %2323 = vmatpush.bf16.msra.mxu3 %v8330_v27 }
 0x59e   :  { %2336 = vmatpush.bf16.msrb.mxu0 %v8331_v24  ;;  %2349 = vmatpush.bf16.msrb.mxu1 %v8332_v1 }
 0x5dd   :  { %v6707_v5 = vpop.f32.mrf.mxu0  ;;  %v6709_v30 = vpop.f32.mrf.mxu1 }
 0x5e2   :  { %v6711_v44 = vpop.f32.mrf.mxu2  ;;  %v6713_v37 = vpop.f32.mrf.mxu3 }
 0x5e5   :  { %v2094_v0 = vpop.f32.mrf.mxu0  ;;  %v2107_v45 = vpop.f32.mrf.mxu1 }
 0x5e6   :  { %v8336_v45 = vld [vmem:[#allocation50_spill] sm:$0xff] }
 0x5ea   :  { %v2068_v38 = vpop.f32.mrf.mxu2  ;;  %v2081_v12 = vpop.f32.mrf.mxu3 }
 0x5eb   :  { %v8335_v12 = vld [vmem:[#allocation49_spill] sm:$0xff] }
 0x5ed   :  { %v2144_v15 = vpop.f32.mrf.mxu0  ;;  %v2157_v22 = vpop.f32.mrf.mxu1 }
 0x5ee   :  { %v2145_v27 = vadd.f32 %v2144_v15, %v6573_v26  ;;  %v2158_v24 = vadd.f32 %v2157_v22, %v6569_v48 }
 0x5f0   :  { %v2163_v1 = vadd.f32 %v2145_v27, %v8333_v55  ;;  %v2164_v53 = vadd.f32 %v2158_v24, %v8334_v57 }
 0x5f2   :  { %v4786_v14 = vmul.f32 -1.442695, %v2163_v1  ;;  %v4787_v19 = vmul.f32 -1.442695, %v2164_v53  ;;  %v2118_v58 = vpop.f32.mrf.mxu2  ;;  %v2131_v40 = vpop.f32.mrf.mxu3 }
 0x5f3   :  { %v2119_v6 = vadd.f32 %v2118_v58, %v6567_v47  ;;  %v2132_v0 = vadd.f32 %v2131_v40, %v6571_v51 }
 0x5f4   :  { %5079 = vpow2.f32 %v4786_v14 }
 0x5f5   :  { %5081 = vpow2.f32 %v4787_v19  ;;  %v2161_v38 = vadd.f32 %v2119_v6, %v8335_v12  ;;  %v2162_v26 = vadd.f32 %v2132_v0, %v8336_v45  ;;  %v2146_v15 = vpop.f32.mrf.mxu0  ;;  %v2159_v48 = vpop.f32.mrf.mxu1 }
 0x5f7   :  { %v4784_v22 = vmul.f32 -1.442695, %v2161_v38  ;;  %v4785_v27 = vmul.f32 -1.442695, %v2162_v26 }
 0x5f9   :  { %5083 = vpow2.f32 %v4784_v22 }
 0x5fa   :  { %v5080_v24 = vpop.eup %5079  ;;  %5085 = vpow2.f32 %v4785_v27  ;;  %v2120_v53 = vpop.f32.mrf.mxu2 }
 0x5fb   :  { %v2133_v1 = vpop.f32.mrf.mxu3  ;;  %v5082_v57 = vpop.eup %5081  ;;  %v2179_v55 = vadd.f32 1.0, %v5080_v24 }
 0x5fc   :  { %v6723_v47 = vadd.f32 1.0, %v5082_v57 }
 0x5fd   :  { %5087 = vrcp.f32 %v2179_v55  ;;  %v2220_v26 = vand.u32 2147483647, %v2179_v55  ;;  %v2222_v15 = vand.u32 2147483648, %v2179_v55  ;;  %vm2216_vm1 = vweird.f32 %v2179_v55 }
 0x5fe   :  { %5089 = vrcp.f32 %v6723_v47  ;;  %vm2231_vm13 = vweird.f32 %v6723_v47 }
 0x5ff   :  { %v5084_v51 = vpop.eup %5083  ;;  %vm2221_vm3 = vcmp.eq.f32.partialorder %v2220_v26, 8.507059e+37  ;;  %v2223_v1 = vor.u32 1.1754944e-38, %v2222_v15 }
 0x600   :  { %v5086_v40 = vpop.eup %5085  ;;  %v2177_v58 = vadd.f32 1.0, %v5084_v51 }
 0x601   :  { %v2178_v6 = vadd.f32 1.0, %v5086_v40 }
 0x602   :  { %5091 = vrcp.f32 %v2177_v58  ;;  %v2190_v45 = vand.u32 2147483647, %v2177_v58  ;;  %vm2186_vm6 = vweird.f32 %v2177_v58 }
 0x603   :  { %v5088_v19 = vpop.eup %5087  ;;  %5093 = vrcp.f32 %v2178_v6  ;;  %vm2201_vm8 = vweird.f32 %v2178_v6 }
 0x604   :  { %v2212_v14 = vmul.f32 %v5088_v19, %v2179_v55  ;;  %v5090_v38 = vpop.eup %5089  ;;  %vm2217_vm0 = vweird.f32 %v5088_v19  ;;  %vm2191_vm9 = vcmp.eq.f32.partialorder %v2190_v45, 8.507059e+37 }
 0x605   :  { %vm2218_vm2 = vmor %vm2216_vm1, %vm2217_vm0  ;;  %v2227_v51 = vmul.f32 %v5090_v38, %v6723_v47  ;;  %vm2232_vm12 = vweird.f32 %v5090_v38 }
 0x606   :  { %v2213_v0 = vsub.f32 1.0, %v2212_v14  ;;  %v2192_v14 = vand.u32 2147483648, %v2177_v58  ;;  %vm2233_vm14 = vmor %vm2231_vm13, %vm2232_vm12 }
 0x607   :  { %v2228_v55 = vsub.f32 1.0, %v2227_v51 }
 0x608   :  { %v5092_v48 = vpop.eup %5091  ;;  %v2214_v22 = vmul.f32 %v5088_v19, %v2213_v0  ;;  %v2207_v0 = vand.u32 2147483648, %v2178_v6  ;;  %v2193_v26 = vor.u32 1.1754944e-38, %v2192_v14  ;;  %v8340_v14 = vld [vmem:[#allocation37_spill] sm:$0xff] }
 0x609   :  { %v5094_v27 = vpop.eup %5093  ;;  %v2182_v57 = vmul.f32 %v5092_v48, %v2177_v58  ;;  %vm2187_vm4 = vweird.f32 %v5092_v48 }
 0x60a   :  { %v2215_v24 = vadd.f32 %v5088_v19, %v2214_v22  ;;  %v2197_v53 = vmul.f32 %v5094_v27, %v2178_v6  ;;  %vm2202_vm5 = vweird.f32 %v5094_v27  ;;  %v2205_v22 = vand.u32 2147483647, %v2178_v6  ;;  %vm2188_vm7 = vmor %vm2186_vm6, %vm2187_vm4 }
 0x60b   :  { %v2183_v40 = vsub.f32 1.0, %v2182_v57  ;;  %vm2203_vm10 = vmor %vm2201_vm8, %vm2202_vm5 }
 0x60c   :  { %v2219_v12 = vsel %vm2218_vm2, %v5088_v19, %v2215_v24  ;;  %v2198_v9 = vsub.f32 1.0, %v2197_v53  ;;  %v2208_v24 = vor.u32 1.1754944e-38, %v2207_v0  ;;  %vm2206_vm11 = vcmp.eq.f32.partialorder %v2205_v22, 8.507059e+37  ;;  %v8341_v0 = vld [vmem:[#allocation38_spill] sm:$0xff]  ;;  %v8342_v22 = vld [vmem:[#allocation39_spill] sm:$0xff] }
 0x60d   :  { %v2224_v63 = vsel %vm2221_vm3, %v2223_v1, %v2219_v12  ;;  %v2184_v32 = vmul.f32 %v5092_v48, %v2183_v40  ;;  %v2229_v1 = vmul.f32 %v5090_v38, %v2228_v55  ;;  %v8343_v55 = vld [vmem:[#allocation103_spill] sm:$0xff] }
 0x60e   :  { %v2241_v46 = vmul.f32 2.0, %v2224_v63  ;;  %v2199_v33 = vmul.f32 %v5094_v27, %v2198_v9 }
 0x60f   :  { %v2185_v23 = vadd.f32 %v5092_v48, %v2184_v32  ;;  %v2230_v32 = vadd.f32 %v5090_v38, %v2229_v1  ;;  %v8351_v1 = vld [vmem:[#allocation47_spill] sm:$0xff] }
 0x610   :  { %v2200_v15 = vadd.f32 %v5094_v27, %v2199_v33  ;;  %v4788_v57 = vadd.f32 -1.0, %v2241_v46  ;;  %v2237_v33 = vand.u32 2147483648, %v6723_v47 }
 0x611   :  { %v2189_v19 = vsel %vm2188_vm7, %v5092_v48, %v2185_v23  ;;  %v2235_v23 = vand.u32 2147483647, %v6723_v47  ;;  %v2234_v46 = vsel %vm2233_vm14, %v5090_v38, %v2230_v32  ;;  %v8337_v47 = vld [vmem:[#allocation34_spill] sm:$0xff]  ;;  %v8338_v38 = vld [vmem:[#allocation35_spill] sm:$0xff]  ;;  %v8355_v32 = vld [vmem:[#allocation36_spill] sm:$0xff] }
 0x612   :  { %v2194_v12 = vsel %vm2191_vm9, %v2193_v26, %v2189_v19  ;;  %v2204_v53 = vsel %vm2203_vm10, %v5094_v27, %v2200_v15  ;;  %v2238_v45 = vor.u32 1.1754944e-38, %v2237_v33  ;;  %v8339_v27 = vld [vmem:[#allocation99_spill] sm:$0xff]  ;;  %v8344_v26 = vld [vmem:[#allocation41_spill] sm:$0xff]  ;;  %v8345_v15 = vld [vmem:[#allocation42_spill] sm:$0xff] }
 0x613   :  { %v2244_v63 = vmul.f32 %v4788_v57, %v2194_v12  ;;  %v2209_v9 = vsel %vm2206_vm11, %v2208_v24, %v2204_v53  ;;  %vm2236_vm15 = vcmp.eq.f32.partialorder %v2235_v23, 8.507059e+37  ;;  %v8346_v57 = vld [vmem:[#allocation43_spill] sm:$0xff]  ;;  %v8348_v24 = vld [vmem:[#allocation45_spill] sm:$0xff]  ;;  %v8349_v12 = vld [vmem:[#allocation24_spill] sm:$0xff] }
 0x614   :  { %v2243_v40 = vmul.f32 %v2209_v9, %v6521_v42  ;;  %v2239_v6 = vsel %vm2236_vm15, %v2238_v45, %v2234_v46  ;;  %v8347_v19 = vld [vmem:[#allocation107_spill] sm:$0xff]  ;;  %v8350_v53 = vld [vmem:[#allocation46_spill] sm:$0xff]  ;;  %v8353_v9 = vld [vmem:[#allocation28_spill] sm:$0xff] }
 0x615   :  { %v8356_v33 = vld [vmem:[#allocation40_spill] sm:$0xff] }
 0x616   :  { %v6728_v51 = vadd.f32 %v2244_v63, %v2243_v40  ;;  %v8352_v63 = vld [vmem:[#allocation25_spill] sm:$0xff]  ;;  %v8354_v40 = vld [vmem:[#allocation32_spill] sm:$0xff] }
 0x617   :  { %v8357_v23 = vld [vmem:[#allocation44_spill] sm:$0xff] }
 0x618   :  { %5095 = vtanh.f32 %v6728_v51  ;;  %v8358_v46 = vld [vmem:[#allocation48_spill] sm:$0xff] }
 0x61e   :  { %v5096_v58 = vpop.eup %5095 }
 0x61f   :  { %v2247_v48 = vmul.f32 %v5096_v58, %v2239_v6 }
 0x621   :  { %v2248_v42 = vpack.c.bf16 %v2247_v48, %v2247_v48  ;;  %2301 = vst [vmem:[#allocation2 + $0x2] sm:$0x1] %v2247_v48 }
 0x623   :  { %2257 = vmatmul.bf16.vlgmr.msrb.gmra.mxu2 %v2248_v42  ;;  %2270 = vmatmul.bf16.vlgmr.msrb.gmra.mxu3 %v2248_v42 }
 0x624   :  { %2283 = vmatmul.bf16.vlgmr.msra.gmra.mxu0 %v2248_v42  ;;  %2296 = vmatmul.bf16.vlgmr.msra.gmra.mxu1 %v2248_v42 }
 0x625   :  { %2355 = vmatpush.bf16.msrb.mxu2 %v8104_v41  ;;  %2456 = vmatpush.bf16.msrb.mxu3 %v5637_v3 }
 0x626   :  { %2469 = vmatpush.bf16.msra.mxu0 %v5639_v7  ;;  %2482 = vmatpush.bf16.msra.mxu1 %v5641_v8 }
 0x629   :  { %2356 = vmatpush.bf16.msrb.mxu2 %v8105_v11  ;;  %2457 = vmatpush.bf16.msrb.mxu3 %v5648_v16 }
 0x62a   :  { %2470 = vmatpush.bf16.msra.mxu0 %v5650_v17  ;;  %2483 = vmatpush.bf16.msra.mxu1 %v5653_v21 }
 0x62d   :  { %2357 = vmatpush.bf16.msrb.mxu2 %v8106_v31  ;;  %2458 = vmatpush.bf16.msrb.mxu3 %v5658_v29 }
 0x62e   :  { %2471 = vmatpush.bf16.msra.mxu0 %v8107_v54  ;;  %2484 = vmatpush.bf16.msra.mxu1 %v8108_v49 }
 0x631   :  { %2358 = vmatpush.bf16.msrb.mxu2 %v8109_v35  ;;  %2459 = vmatpush.bf16.msrb.mxu3 %v8110_v56 }
 0x632   :  { %2472 = vmatpush.bf16.msra.mxu0 %v8111_v39  ;;  %2485 = vmatpush.bf16.msra.mxu1 %v8220_v4 }
 0x633   :  { %2310 = vmatmul.bf16.vlgmr.msra.gmra.mxu2 %v2248_v42 }
 0x635   :  { %2359 = vmatpush.bf16.msrb.mxu2 %v8221_v36  ;;  %2460 = vmatpush.bf16.msrb.mxu3 %v8222_v10 }
 0x636   :  { %2473 = vmatpush.bf16.msra.mxu0 %v8337_v47  ;;  %2486 = vmatpush.bf16.msra.mxu1 %v8338_v38 }
 0x639   :  { %2360 = vmatpush.bf16.msrb.mxu2 %v8339_v27  ;;  %2461 = vmatpush.bf16.msrb.mxu3 %v8340_v14 }
 0x63a   :  { %2474 = vmatpush.bf16.msra.mxu0 %v8341_v0  ;;  %2487 = vmatpush.bf16.msra.mxu1 %v8342_v22 }
 0x63d   :  { %2361 = vmatpush.bf16.msrb.mxu2 %v8343_v55  ;;  %2462 = vmatpush.bf16.msrb.mxu3 %v8344_v26  ;;  %v8394_v26 = vld [vmem:[#allocation108_spill] sm:$0xff]  ;;  %v8395_v55 = vld [vmem:[#allocation111_spill] sm:$0xff] }
 0x63e   :  { %2475 = vmatpush.bf16.msra.mxu0 %v8345_v15  ;;  %2488 = vmatpush.bf16.msra.mxu1 %v8346_v57 }
 0x641   :  { %2362 = vmatpush.bf16.msrb.mxu2 %v8347_v19  ;;  %2463 = vmatpush.bf16.msrb.mxu3 %v8348_v24  ;;  %v8366_v24 = vld [vmem:[#allocation118_spill] sm:$0xff] }
 0x642   :  { %2476 = vmatpush.bf16.msra.mxu0 %v8350_v53  ;;  %2489 = vmatpush.bf16.msra.mxu1 %v8351_v1  ;;  %v8361_v53 = vld [vmem:[#allocation113_spill] sm:$0xff]  ;;  %v8393_v19 = vld [vmem:[#allocation110_spill] sm:$0xff] }
 0x645   :  { %2495 = vmatpush.bf16.msra.mxu2 %v8349_v12  ;;  %v8365_v12 = vld [vmem:[#allocation117_spill] sm:$0xff] }
 0x649   :  { %2496 = vmatpush.bf16.msra.mxu2 %v8352_v63 }
 0x64d   :  { %2497 = vmatpush.bf16.msra.mxu2 %v8353_v9 }
 0x651   :  { %2498 = vmatpush.bf16.msra.mxu2 %v8354_v40 }
 0x655   :  { %2499 = vmatpush.bf16.msra.mxu2 %v8355_v32  ;;  %v8360_v32 = vld [vmem:[#allocation112_spill] sm:$0xff] }
 0x659   :  { %2500 = vmatpush.bf16.msra.mxu2 %v8356_v33  ;;  %v6785_v33 = vld [vmem:[%s7645_s9] sm:$0x1] }
 0x65a   :  { %8359 = vst [vmem:[#allocation56_spill] sm:$0xff] %v6785_v33 }
 0x65d   :  { %2501 = vmatpush.bf16.msra.mxu2 %v8357_v23 }
 0x661   :  { %2502 = vmatpush.bf16.msra.mxu2 %v8358_v46 }
 0x6a1   :  { %v6774_v45 = vpop.f32.mrf.mxu0  ;;  %v6776_v58 = vpop.f32.mrf.mxu1 }
 0x6a6   :  { %v6778_v6 = vpop.f32.mrf.mxu2  ;;  %v6780_v48 = vpop.f32.mrf.mxu3 }
 0x6a9   :  { %v2286_v42 = vpop.f32.mrf.mxu0  ;;  %v2299_v9 = vpop.f32.mrf.mxu1 }
 0x6aa   :  { %v8364_v42 = vld [vmem:[#allocation116_spill] sm:$0xff] }
 0x6ae   :  { %v2260_v63 = vpop.f32.mrf.mxu2  ;;  %v2273_v40 = vpop.f32.mrf.mxu3 }
 0x6af   :  { %v8362_v63 = vld [vmem:[#allocation114_spill] sm:$0xff]  ;;  %v8363_v40 = vld [vmem:[#allocation115_spill] sm:$0xff] }
 0x6b6   :  { %v2311_v1 = vpop.f32.mrf.mxu2 }
 0x6b7   :  { %v2312_v46 = vadd.f32 %v6785_v33, %v2311_v1  ;;  %v8367_v1 = vld [vmem:[#allocation119_spill] sm:$0xff]  ;;  %v8392_v33 = vld [vmem:[#allocation109_spill] sm:$0xff] }
 0x6b9   :  { %v2315_v23 = vpack.c.bf16 %v2312_v46, %v2312_v46  ;;  %v8368_v46 = vld [vmem:[#allocation120_spill] sm:$0xff] }
 0x6bb   :  { %2324 = vmatmul.bf16.vlgmr.msra.gmra.mxu3 %v2315_v23  ;;  %2337 = vmatmul.bf16.vlgmr.msrb.gmra.mxu0 %v2315_v23 }
 0x6bc   :  { %2350 = vmatmul.bf16.vlgmr.msrb.gmra.mxu1 %v2315_v23  ;;  %2363 = vmatmul.bf16.vlgmr.msrb.gmra.mxu2 %v2315_v23  ;;  %v8369_v23 = vld [vmem:[#allocation121_spill] sm:$0xff] }
 0x6bd   :  { %2508 = vmatpush.bf16.msra.mxu3 %v8360_v32  ;;  %2521 = vmatpush.bf16.msrb.mxu0 %v8361_v53  ;;  %v8370_v32 = vld [vmem:[#allocation122_spill] sm:$0xff]  ;;  %v8371_v53 = vld [vmem:[#allocation123_spill] sm:$0xff] }
 0x6be   :  { %v2313_v9 = vpop.f32.mrf.mxu2  ;;  %2534 = vmatpush.bf16.msrb.mxu1 %v8362_v63  ;;  %2547 = vmatpush.bf16.msrb.mxu2 %v8363_v40  ;;  %v8373_v63 = vld [vmem:[#allocation125_spill] sm:$0xff]  ;;  %v8374_v40 = vld [vmem:[#allocation126_spill] sm:$0xff] }
 0x6bf   :  { %v8372_v9 = vld [vmem:[#allocation124_spill] sm:$0xff] }
 0x6c1   :  { %2509 = vmatpush.bf16.msra.mxu3 %v8364_v42  ;;  %2522 = vmatpush.bf16.msrb.mxu0 %v8365_v12  ;;  %v8375_v42 = vld [vmem:[#allocation127_spill] sm:$0xff]  ;;  %v8376_v12 = vld [vmem:[#allocation128_spill] sm:$0xff] }
 0x6c2   :  { %2535 = vmatpush.bf16.msrb.mxu1 %v8366_v24  ;;  %2548 = vmatpush.bf16.msrb.mxu2 %v8367_v1  ;;  %v8377_v24 = vld [vmem:[#allocation129_spill] sm:$0xff]  ;;  %v8378_v1 = vld [vmem:[#allocation130_spill] sm:$0xff] }
 0x6c5   :  { %2510 = vmatpush.bf16.msra.mxu3 %v8368_v46  ;;  %2523 = vmatpush.bf16.msrb.mxu0 %v8369_v23  ;;  %v8379_v46 = vld [vmem:[#allocation131_spill] sm:$0xff]  ;;  %v8380_v23 = vld [vmem:[#allocation132_spill] sm:$0xff] }
 0x6c6   :  { %2536 = vmatpush.bf16.msrb.mxu1 %v8370_v32  ;;  %2549 = vmatpush.bf16.msrb.mxu2 %v8371_v53  ;;  %v8381_v32 = vld [vmem:[#allocation133_spill] sm:$0xff]  ;;  %v8382_v53 = vld [vmem:[#allocation134_spill] sm:$0xff] }
 0x6c9   :  { %2511 = vmatpush.bf16.msra.mxu3 %v8372_v9  ;;  %2524 = vmatpush.bf16.msrb.mxu0 %v8373_v63  ;;  %v8383_v9 = vld [vmem:[#allocation135_spill] sm:$0xff]  ;;  %v8384_v63 = vld [vmem:[#allocation136_spill] sm:$0xff] }
 0x6ca   :  { %2537 = vmatpush.bf16.msrb.mxu1 %v8374_v40  ;;  %2550 = vmatpush.bf16.msrb.mxu2 %v8375_v42  ;;  %v8385_v40 = vld [vmem:[#allocation137_spill] sm:$0xff]  ;;  %v8386_v42 = vld [vmem:[#allocation138_spill] sm:$0xff] }
 0x6cd   :  { %2512 = vmatpush.bf16.msra.mxu3 %v8376_v12  ;;  %2525 = vmatpush.bf16.msrb.mxu0 %v8377_v24  ;;  %v8387_v12 = vld [vmem:[#allocation139_spill] sm:$0xff]  ;;  %v8388_v24 = vld [vmem:[#allocation140_spill] sm:$0xff] }
 0x6ce   :  { %2538 = vmatpush.bf16.msrb.mxu1 %v8378_v1  ;;  %2551 = vmatpush.bf16.msrb.mxu2 %v8379_v46  ;;  %v8389_v1 = vld [vmem:[#allocation141_spill] sm:$0xff]  ;;  %v8390_v46 = vld [vmem:[#allocation142_spill] sm:$0xff] }
 0x6d1   :  { %2513 = vmatpush.bf16.msra.mxu3 %v8380_v23  ;;  %2526 = vmatpush.bf16.msrb.mxu0 %v8381_v32  ;;  %v8391_v23 = vld [vmem:[#allocation143_spill] sm:$0xff] }
 0x6d2   :  { %2539 = vmatpush.bf16.msrb.mxu1 %v8382_v53  ;;  %2552 = vmatpush.bf16.msrb.mxu2 %v8383_v9 }
 0x6d5   :  { %2514 = vmatpush.bf16.msra.mxu3 %v8384_v63  ;;  %2527 = vmatpush.bf16.msrb.mxu0 %v8385_v40 }
 0x6d6   :  { %2540 = vmatpush.bf16.msrb.mxu1 %v8386_v42  ;;  %2553 = vmatpush.bf16.msrb.mxu2 %v8387_v12 }
 0x6d9   :  { %2515 = vmatpush.bf16.msra.mxu3 %v8388_v24  ;;  %2528 = vmatpush.bf16.msrb.mxu0 %v8389_v1 }
 0x6da   :  { %2541 = vmatpush.bf16.msrb.mxu1 %v8390_v46  ;;  %2554 = vmatpush.bf16.msrb.mxu2 %v8391_v23 }
 0x738   :  { %v2338_v32 = vpop.f32.mrf.mxu0 }
 0x739   :  { %v2339_v53 = vadd.f32 %v2338_v32, %v6713_v37  ;;  %v2351_v9 = vpop.f32.mrf.mxu1 }
 0x73a   :  { %v2352_v63 = vadd.f32 %v2351_v9, %v6707_v5 }
 0x73b   :  { %v2369_v40 = vadd.f32 %v2339_v53, %v8392_v33 }
 0x73c   :  { %v2370_v42 = vadd.f32 %v2352_v63, %v8393_v19 }
 0x73d   :  { %v4790_v57 = vmul.f32 -1.442695, %v2369_v40 }
 0x73e   :  { %v4791_v12 = vmul.f32 -1.442695, %v2370_v42  ;;  %v2325_v15 = vpop.f32.mrf.mxu3 }
 0x73f   :  { %5097 = vpow2.f32 %v4790_v57  ;;  %v2326_v1 = vadd.f32 %v2325_v15, %v6711_v44  ;;  %v2364_v24 = vpop.f32.mrf.mxu2 }
 0x740   :  { %5099 = vpow2.f32 %v4791_v12  ;;  %v2365_v23 = vadd.f32 %v2364_v24, %v6709_v30  ;;  %v2340_v46 = vpop.f32.mrf.mxu0 }
 0x741   :  { %v2368_v37 = vadd.f32 %v2326_v1, %v8394_v26  ;;  %v2353_v32 = vpop.f32.mrf.mxu1 }
 0x742   :  { %v2371_v5 = vadd.f32 %v2365_v23, %v8395_v55 }
 0x743   :  { %v4789_v9 = vmul.f32 -1.442695, %v2368_v37 }
 0x744   :  { %v4792_v53 = vmul.f32 -1.442695, %v2371_v5 }
 0x745   :  { %v5098_v33 = vpop.eup %5097  ;;  %5101 = vpow2.f32 %v4789_v9 }
 0x746   :  { %v5100_v63 = vpop.eup %5099  ;;  %v2385_v40 = vadd.f32 1.0, %v5098_v33  ;;  %5103 = vpow2.f32 %v4792_v53  ;;  %v2327_v57 = vpop.f32.mrf.mxu3 }
 0x747   :  { %v2386_v42 = vadd.f32 1.0, %v5100_v63  ;;  %v2366_v44 = vpop.f32.mrf.mxu2 }
 0x748   :  { %5105 = vrcp.f32 %v2385_v40  ;;  %vm2408_vm3 = vweird.f32 %v2385_v40  ;;  %v2412_v22 = vand.u32 2147483647, %v2385_v40 }
 0x749   :  { %5107 = vrcp.f32 %v2386_v42  ;;  %v2429_v9 = vand.u32 2147483648, %v2386_v42  ;;  %v2427_v57 = vand.u32 2147483647, %v2386_v42  ;;  %vm2423_vm2 = vweird.f32 %v2386_v42 }
 0x74a   :  { %vm2413_vm8 = vcmp.eq.f32.partialorder %v2412_v22, 8.507059e+37 }
 0x74b   :  { %v5102_v15 = vpop.eup %5101  ;;  %vm2428_vm6 = vcmp.eq.f32.partialorder %v2427_v57, 8.507059e+37 }
 0x74c   :  { %v5104_v30 = vpop.eup %5103  ;;  %v2384_v24 = vadd.f32 1.0, %v5102_v15 }
 0x74d   :  { %v6828_v12 = vadd.f32 1.0, %v5104_v30  ;;  %v2414_v30 = vand.u32 2147483648, %v2385_v40 }
 0x74e   :  { %v5106_v1 = vpop.eup %5105  ;;  %5109 = vrcp.f32 %v2384_v24  ;;  %v2397_v0 = vand.u32 2147483647, %v2384_v24  ;;  %vm2393_vm9 = vweird.f32 %v2384_v24 }
 0x74f   :  { %v5108_v46 = vpop.eup %5107  ;;  %v2404_v23 = vmul.f32 %v5106_v1, %v2385_v40  ;;  %5111 = vrcp.f32 %v6828_v12  ;;  %vm2409_vm1 = vweird.f32 %v5106_v1  ;;  %v2415_v27 = vor.u32 1.1754944e-38, %v2414_v30  ;;  %v8403_v30 = vld [vmem:[#allocation62_spill] sm:$0xff] }
 0x750   :  { %v2419_v37 = vmul.f32 %v5108_v46, %v2386_v42  ;;  %vm2424_vm0 = vweird.f32 %v5108_v46  ;;  %vm6832_vm5 = vmor %vm2408_vm3, %vm2409_vm1  ;;  %vm2398_vm11 = vcmp.eq.f32.partialorder %v2397_v0, 8.507059e+37  ;;  %v2444_v22 = vand.u32 2147483648, %v6828_v12 }
 0x751   :  { %v2405_v32 = vsub.f32 1.0, %v2404_v23  ;;  %vm2425_vm4 = vmor %vm2423_vm2, %vm2424_vm0  ;;  %v2430_v23 = vor.u32 1.1754944e-38, %v2429_v9  ;;  %vm2438_vm13 = vweird.f32 %v6828_v12 }
 0x752   :  { %v2420_v33 = vsub.f32 1.0, %v2419_v37 }
 0x753   :  { %v2406_v5 = vmul.f32 %v5106_v1, %v2405_v32 }
 0x754   :  { %v5110_v53 = vpop.eup %5109  ;;  %v2421_v63 = vmul.f32 %v5108_v46, %v2420_v33 }
 0x755   :  { %v5112_v44 = vpop.eup %5111  ;;  %v2407_v55 = vadd.f32 %v5106_v1, %v2406_v5  ;;  %v2389_v15 = vmul.f32 %v5110_v53, %v2384_v24  ;;  %v2399_v5 = vand.u32 2147483648, %v2384_v24  ;;  %vm2394_vm7 = vweird.f32 %v5110_v53  ;;  %v8399_v24 = vld [vmem:[#allocation58_spill] sm:$0xff] }
 0x756   :  { %v2422_v19 = vadd.f32 %v5108_v46, %v2421_v63  ;;  %v2434_v26 = vmul.f32 %v5112_v44, %v6828_v12  ;;  %vm2395_vm10 = vmor %vm2393_vm9, %vm2394_vm7  ;;  %vm2439_vm12 = vweird.f32 %v5112_v44 }
 0x757   :  { %v2390_v37 = vsub.f32 1.0, %v2389_v15  ;;  %v2411_v14 = vsel %vm6832_vm5, %v5106_v1, %v2407_v55  ;;  %v2400_v47 = vor.u32 1.1754944e-38, %v2399_v5  ;;  %vm2440_vm14 = vmor %vm2438_vm13, %vm2439_vm12  ;;  %v8406_v5 = vld [vmem:[#allocation65_spill] sm:$0xff] }
 0x758   :  { %v2426_v33 = vsel %vm2425_vm4, %v5108_v46, %v2422_v19  ;;  %v2435_v40 = vsub.f32 1.0, %v2434_v26  ;;  %v2416_v15 = vsel %vm2413_vm8, %v2415_v27, %v2411_v14  ;;  %v2442_v27 = vand.u32 2147483647, %v6828_v12  ;;  %v8398_v26 = vld [vmem:[#allocation57_spill] sm:$0xff]  ;;  %v8400_v12 = vld [vmem:[#allocation59_spill] sm:$0xff] }
 0x759   :  { %v2431_v63 = vsel %vm2428_vm6, %v2430_v23, %v2426_v33  ;;  %v2391_v42 = vmul.f32 %v5110_v53, %v2390_v37  ;;  %v2450_v32 = vmul.f32 %v2416_v15, %v6621_v34  ;;  %v2445_v14 = vor.u32 1.1754944e-38, %v2444_v22  ;;  %v8404_v37 = vld [vmem:[#allocation63_spill] sm:$0xff]  ;;  %v8405_v33 = vld [vmem:[#allocation64_spill] sm:$0xff]  ;;  %v8411_v15 = vld [vmem:[#allocation70_spill] sm:$0xff] }
 0x75a   :  { %v2448_v38 = vmul.f32 2.0, %v2431_v63  ;;  %v2436_v57 = vmul.f32 %v5112_v44, %v2435_v40  ;;  %vm2443_vm15 = vcmp.eq.f32.partialorder %v2442_v27, 8.507059e+37  ;;  %v8407_v63 = vld [vmem:[#allocation66_spill] sm:$0xff]  ;;  %v8409_v40 = vld [vmem:[#allocation68_spill] sm:$0xff]  ;;  %v8419_v27 = vld [vmem:[#allocation77_spill] sm:$0xff] }
 0x75b   :  { %v2392_v9 = vadd.f32 %v5110_v53, %v2391_v42  ;;  %v8408_v42 = vld [vmem:[#allocation67_spill] sm:$0xff]  ;;  %v8418_v22 = vld [vmem:[#allocation76_spill] sm:$0xff] }
 0x75c   :  { %v4793_v10 = vadd.f32 -1.0, %v2448_v38  ;;  %v2437_v23 = vadd.f32 %v5112_v44, %v2436_v57  ;;  %v8414_v57 = vld [vmem:[#allocation73_spill] sm:$0xff] }
 0x75d   :  { %v2396_v19 = vsel %vm2395_vm10, %v5110_v53, %v2392_v9  ;;  %v8401_v53 = vld [vmem:[#allocation60_spill] sm:$0xff]  ;;  %v8410_v9 = vld [vmem:[#allocation69_spill] sm:$0xff] }
 0x75e   :  { %v2401_v46 = vsel %vm2398_vm11, %v2400_v47, %v2396_v19  ;;  %v2441_v38 = vsel %vm2440_vm14, %v5112_v44, %v2437_v23  ;;  %v8402_v44 = vld [vmem:[#allocation61_spill] sm:$0xff]  ;;  %v8412_v19 = vld [vmem:[#allocation71_spill] sm:$0xff] }
 0x75f   :  { %v2451_v55 = vmul.f32 %v4793_v10, %v2401_v46  ;;  %v2446_v0 = vsel %vm2443_vm15, %v2445_v14, %v2441_v38  ;;  %v8413_v46 = vld [vmem:[#allocation72_spill] sm:$0xff]  ;;  %v8417_v23 = vld [vmem:[#allocation75_spill] sm:$0xff]  ;;  %v8420_v38 = vld [vmem:[#allocation78_spill] sm:$0xff] }
 0x760   :  { %v8421_v14 = vld [vmem:[#allocation87_spill] sm:$0xff] }
 0x761   :  { %v6839_v1 = vadd.f32 %v2451_v55, %v2450_v32  ;;  %v8415_v32 = vld [vmem:[#allocation83_spill] sm:$0xff]  ;;  %v8416_v55 = vld [vmem:[#allocation74_spill] sm:$0xff] }
 0x763   :  { %5113 = vtanh.f32 %v6839_v1 }
 0x769   :  { %v5114_v47 = vpop.eup %5113 }
 0x76a   :  { %v2454_v34 = vmul.f32 %v5114_v47, %v2446_v0  ;;  %v8422_v47 = vld [vmem:[#allocation80_spill] sm:$0xff]  ;;  %v8423_v0 = vld [vmem:[#allocation81_spill] sm:$0xff] }
 0x76c   :  { %v2455_v10 = vpack.c.bf16 %v2454_v34, %v2454_v34  ;;  %v8424_v34 = vld [vmem:[#allocation82_spill] sm:$0xff] }
 0x76e   :  { %2464 = vmatmul.bf16.vlgmr.msrb.gmra.mxu3 %v2455_v10  ;;  %2477 = vmatmul.bf16.vlgmr.msra.gmra.mxu0 %v2455_v10 }
 0x76f   :  { %2490 = vmatmul.bf16.vlgmr.msra.gmra.mxu1 %v2455_v10  ;;  %2503 = vmatmul.bf16.vlgmr.msra.gmra.mxu2 %v2455_v10 }
 0x770   :  { %2648 = vmatpush.bf16.msrb.mxu3 %v5729_v59  ;;  %2661 = vmatpush.bf16.msra.mxu0 %v5731_v60 }
 0x771   :  { %2674 = vmatpush.bf16.msra.mxu1 %v5733_v61  ;;  %2687 = vmatpush.bf16.msra.mxu2 %v5736_v2 }
 0x774   :  { %2649 = vmatpush.bf16.msrb.mxu3 %v5742_v18  ;;  %2662 = vmatpush.bf16.msra.mxu0 %v8054_v62 }
 0x775   :  { %2675 = vmatpush.bf16.msra.mxu1 %v8055_v43  ;;  %2688 = vmatpush.bf16.msra.mxu2 %v8056_v25 }
 0x778   :  { %2650 = vmatpush.bf16.msrb.mxu3 %v8057_v50  ;;  %2663 = vmatpush.bf16.msra.mxu0 %v8058_v52 }
 0x779   :  { %2676 = vmatpush.bf16.msra.mxu1 %v8059_v20  ;;  %2689 = vmatpush.bf16.msra.mxu2 %v8163_v13 }
 0x77c   :  { %2651 = vmatpush.bf16.msrb.mxu3 %v8164_v28  ;;  %2664 = vmatpush.bf16.msra.mxu0 %v8398_v26 }
 0x77d   :  { %2677 = vmatpush.bf16.msra.mxu1 %v8399_v24  ;;  %2690 = vmatpush.bf16.msra.mxu2 %v8400_v12 }
 0x77e   :  { %2516 = vmatmul.bf16.vlgmr.msra.gmra.mxu3 %v2455_v10  ;;  %2529 = vmatmul.bf16.vlgmr.msrb.gmra.mxu0 %v2455_v10 }
 0x77f   :  { %2542 = vmatmul.bf16.vlgmr.msrb.gmra.mxu1 %v2455_v10  ;;  %2555 = vmatmul.bf16.vlgmr.msrb.gmra.mxu2 %v2455_v10  ;;  %v8425_v10 = vld [vmem:[#allocation26_spill] sm:$0xff] }
 0x780   :  { %2652 = vmatpush.bf16.msrb.mxu3 %v8401_v53  ;;  %2665 = vmatpush.bf16.msra.mxu0 %v8402_v44 }
 0x781   :  { %2678 = vmatpush.bf16.msra.mxu1 %v8403_v30  ;;  %2691 = vmatpush.bf16.msra.mxu2 %v8404_v37 }
 0x784   :  { %2653 = vmatpush.bf16.msrb.mxu3 %v8405_v33  ;;  %2666 = vmatpush.bf16.msra.mxu0 %v8406_v5  ;;  %v8452_v33 = vld [vmem:[#allocation52_spill] sm:$0xff] }
 0x785   :  { %2679 = vmatpush.bf16.msra.mxu1 %v8407_v63  ;;  %2692 = vmatpush.bf16.msra.mxu2 %v8408_v42 }
 0x788   :  { %2654 = vmatpush.bf16.msrb.mxu3 %v8409_v40  ;;  %2667 = vmatpush.bf16.msra.mxu0 %v8410_v9 }
 0x789   :  { %2680 = vmatpush.bf16.msra.mxu1 %v8411_v15  ;;  %2693 = vmatpush.bf16.msra.mxu2 %v8412_v19  ;;  %v8449_v19 = vld [vmem:[#allocation50_spill] sm:$0xff]  ;;  %v8450_v15 = vld [vmem:[#allocation51_spill] sm:$0xff] }
 0x78c   :  { %2655 = vmatpush.bf16.msrb.mxu3 %v8413_v46  ;;  %2668 = vmatpush.bf16.msra.mxu0 %v8414_v57 }
 0x78d   :  { %2681 = vmatpush.bf16.msra.mxu1 %v8416_v55  ;;  %2694 = vmatpush.bf16.msra.mxu2 %v8417_v23  ;;  %v8427_v55 = vld [vmem:[#allocation85_spill] sm:$0xff]  ;;  %v8428_v23 = vld [vmem:[#allocation86_spill] sm:$0xff] }
 0x790   :  { %2701 = vmatpush.bf16.msra.mxu3 %v8415_v32  ;;  %2715 = vmatpush.bf16.msrb.mxu0 %v8418_v22  ;;  %v8426_v32 = vld [vmem:[#allocation84_spill] sm:$0xff]  ;;  %v8429_v22 = vld [vmem:[#allocation27_spill] sm:$0xff] }
 0x791   :  { %2728 = vmatpush.bf16.msrb.mxu1 %v8419_v27  ;;  %2741 = vmatpush.bf16.msrb.mxu2 %v8420_v38  ;;  %v8430_v27 = vld [vmem:[#allocation88_spill] sm:$0xff]  ;;  %v8431_v38 = vld [vmem:[#allocation89_spill] sm:$0xff] }
 0x794   :  { %2702 = vmatpush.bf16.msra.mxu3 %v8421_v14  ;;  %2716 = vmatpush.bf16.msrb.mxu0 %v8422_v47  ;;  %v8432_v14 = vld [vmem:[#allocation90_spill] sm:$0xff]  ;;  %v8433_v47 = vld [vmem:[#allocation91_spill] sm:$0xff] }
 0x795   :  { %2729 = vmatpush.bf16.msrb.mxu1 %v8423_v0  ;;  %2742 = vmatpush.bf16.msrb.mxu2 %v8424_v34  ;;  %v8434_v0 = vld [vmem:[#allocation92_spill] sm:$0xff]  ;;  %v8435_v34 = vld [vmem:[#allocation93_spill] sm:$0xff] }
 0x798   :  { %2703 = vmatpush.bf16.msra.mxu3 %v8425_v10  ;;  %2717 = vmatpush.bf16.msrb.mxu0 %v8426_v32  ;;  %v8436_v10 = vld [vmem:[#allocation94_spill] sm:$0xff]  ;;  %v8437_v32 = vld [vmem:[#allocation29_spill] sm:$0xff] }
 0x799   :  { %2730 = vmatpush.bf16.msrb.mxu1 %v8427_v55  ;;  %2743 = vmatpush.bf16.msrb.mxu2 %v8428_v23  ;;  %v8438_v55 = vld [vmem:[#allocation96_spill] sm:$0xff]  ;;  %v8439_v23 = vld [vmem:[#allocation97_spill] sm:$0xff] }
 0x79c   :  { %2704 = vmatpush.bf16.msra.mxu3 %v8429_v22  ;;  %2718 = vmatpush.bf16.msrb.mxu0 %v8430_v27  ;;  %v8440_v22 = vld [vmem:[#allocation98_spill] sm:$0xff] }
 0x79d   :  { %2731 = vmatpush.bf16.msrb.mxu1 %v8431_v38  ;;  %2744 = vmatpush.bf16.msrb.mxu2 %v8432_v14  ;;  %v8441_v27 = vld [vmem:[#allocation30_spill] sm:$0xff]  ;;  %v8442_v38 = vld [vmem:[#allocation100_spill] sm:$0xff]  ;;  %v8443_v14 = vld [vmem:[#allocation101_spill] sm:$0xff] }
 0x7a0   :  { %2705 = vmatpush.bf16.msra.mxu3 %v8433_v47  ;;  %2719 = vmatpush.bf16.msrb.mxu0 %v8434_v0  ;;  %v8444_v47 = vld [vmem:[#allocation102_spill] sm:$0xff]  ;;  %v8445_v0 = vld [vmem:[#allocation55_spill] sm:$0xff] }
 0x7a1   :  { %2732 = vmatpush.bf16.msrb.mxu1 %v8435_v34  ;;  %2745 = vmatpush.bf16.msrb.mxu2 %v8436_v10  ;;  %v8446_v34 = vld [vmem:[#allocation104_spill] sm:$0xff]  ;;  %v8447_v10 = vld [vmem:[#allocation105_spill] sm:$0xff] }
 0x7a4   :  { %2706 = vmatpush.bf16.msra.mxu3 %v8437_v32  ;;  %2720 = vmatpush.bf16.msrb.mxu0 %v8438_v55  ;;  %v8448_v32 = vld [vmem:[#allocation106_spill] sm:$0xff] }
 0x7a5   :  { %2733 = vmatpush.bf16.msrb.mxu1 %v8439_v23  ;;  %2746 = vmatpush.bf16.msrb.mxu2 %v8440_v22 }
 0x7a8   :  { %2707 = vmatpush.bf16.msra.mxu3 %v8441_v27  ;;  %2721 = vmatpush.bf16.msrb.mxu0 %v8442_v38 }
 0x7a9   :  { %2734 = vmatpush.bf16.msrb.mxu1 %v8443_v14  ;;  %2747 = vmatpush.bf16.msrb.mxu2 %v8444_v47 }
 0x7ac   :  { %2708 = vmatpush.bf16.msra.mxu3 %v8445_v0  ;;  %2722 = vmatpush.bf16.msrb.mxu0 %v8446_v34 }
 0x7ad   :  { %2735 = vmatpush.bf16.msrb.mxu1 %v8447_v10  ;;  %2748 = vmatpush.bf16.msrb.mxu2 %v8448_v32 }
 0x7eb   :  { %v6909_v55 = vpop.f32.mrf.mxu0 }
 0x7ec   :  { %v6911_v23 = vpop.f32.mrf.mxu1 }
 0x7f1   :  { %v6913_v22 = vpop.f32.mrf.mxu3 }
 0x7f2   :  { %v6915_v27 = vpop.f32.mrf.mxu2 }
 0x7f3   :  { %v2480_v38 = vpop.f32.mrf.mxu0 }
 0x7f4   :  { %v2493_v14 = vpop.f32.mrf.mxu1 }
 0x7f9   :  { %v2467_v57 = vpop.f32.mrf.mxu3 }
 0x7fa   :  { %v2506_v47 = vpop.f32.mrf.mxu2 }
 0x7fb   :  { %v2530_v46 = vpop.f32.mrf.mxu0  ;;  %v8451_v47 = vld [vmem:[#allocation49_spill] sm:$0xff] }
 0x7fc   :  { %v2531_v0 = vadd.f32 %v2530_v46, %v6780_v48  ;;  %v2543_v34 = vpop.f32.mrf.mxu1 }
 0x7fd   :  { %v2544_v10 = vadd.f32 %v2543_v34, %v6774_v45 }
 0x7fe   :  { %v2561_v32 = vadd.f32 %v2531_v0, %v8449_v19 }
 0x7ff   :  { %v2562_v9 = vadd.f32 %v2544_v10, %v8450_v15 }
 0x800   :  { %v4795_v40 = vmul.f32 -1.442695, %v2561_v32 }
 0x801   :  { %v4796_v42 = vmul.f32 -1.442695, %v2562_v9  ;;  %v2517_v63 = vpop.f32.mrf.mxu3 }
 0x802   :  { %5115 = vpow2.f32 %v4795_v40  ;;  %v2518_v5 = vadd.f32 %v2517_v63, %v6778_v6  ;;  %v2556_v38 = vpop.f32.mrf.mxu2 }
 0x803   :  { %5117 = vpow2.f32 %v4796_v42  ;;  %v2557_v57 = vadd.f32 %v2556_v38, %v6776_v58  ;;  %v2532_v14 = vpop.f32.mrf.mxu0 }
 0x804   :  { %v2560_v48 = vadd.f32 %v2518_v5, %v8451_v47  ;;  %v2545_v46 = vpop.f32.mrf.mxu1 }
 0x805   :  { %v2563_v45 = vadd.f32 %v2557_v57, %v8452_v33 }
 0x806   :  { %v4794_v34 = vmul.f32 -1.442695, %v2560_v48 }
 0x807   :  { %v4797_v0 = vmul.f32 -1.442695, %v2563_v45 }
 0x808   :  { %v5116_v19 = vpop.eup %5115  ;;  %5119 = vpow2.f32 %v4794_v34 }
 0x809   :  { %v5118_v10 = vpop.eup %5117  ;;  %v2577_v9 = vadd.f32 1.0, %v5116_v19  ;;  %5121 = vpow2.f32 %v4797_v0  ;;  %v2519_v40 = vpop.f32.mrf.mxu3 }
 0x80a   :  { %v2578_v32 = vadd.f32 1.0, %v5118_v10  ;;  %v2558_v6 = vpop.f32.mrf.mxu2 }
 0x80b   :  { %5123 = vrcp.f32 %v2577_v9  ;;  %vm2600_vm3 = vweird.f32 %v2577_v9  ;;  %v2604_v37 = vand.u32 2147483647, %v2577_v9 }
 0x80c   :  { %5125 = vrcp.f32 %v2578_v32  ;;  %v2621_v34 = vand.u32 2147483648, %v2578_v32  ;;  %v2619_v40 = vand.u32 2147483647, %v2578_v32  ;;  %vm2615_vm2 = vweird.f32 %v2578_v32 }
 0x80d   :  { %vm2605_vm8 = vcmp.eq.f32.partialorder %v2604_v37, 8.507059e+37  ;;  %v8455_v37 = vld [vmem:[#allocation33_spill] sm:$0xff] }
 0x80e   :  { %v5120_v63 = vpop.eup %5119  ;;  %vm2620_vm6 = vcmp.eq.f32.partialorder %v2619_v40, 8.507059e+37 }
 0x80f   :  { %v5122_v58 = vpop.eup %5121  ;;  %v2576_v42 = vadd.f32 1.0, %v5120_v63 }
 0x810   :  { %v6925_v38 = vadd.f32 1.0, %v5122_v58  ;;  %v2606_v58 = vand.u32 2147483648, %v2577_v9 }
 0x811   :  { %v5124_v5 = vpop.eup %5123  ;;  %5127 = vrcp.f32 %v2576_v42  ;;  %v2589_v30 = vand.u32 2147483647, %v2576_v42  ;;  %vm2585_vm9 = vweird.f32 %v2576_v42 }
 0x812   :  { %v5126_v57 = vpop.eup %5125  ;;  %v2596_v14 = vmul.f32 %v5124_v5, %v2577_v9  ;;  %5129 = vrcp.f32 %v6925_v38  ;;  %vm2601_vm1 = vweird.f32 %v5124_v5  ;;  %v2607_v53 = vor.u32 1.1754944e-38, %v2606_v58 }
 0x813   :  { %v2611_v48 = vmul.f32 %v5126_v57, %v2578_v32  ;;  %vm2616_vm0 = vweird.f32 %v5126_v57  ;;  %vm6929_vm5 = vmor %vm2600_vm3, %vm2601_vm1  ;;  %vm2590_vm11 = vcmp.eq.f32.partialorder %v2589_v30, 8.507059e+37  ;;  %vm2630_vm13 = vweird.f32 %v6925_v38 }
 0x814   :  { %v2597_v46 = vsub.f32 1.0, %v2596_v14  ;;  %vm2617_vm4 = vmor %vm2615_vm2, %vm2616_vm0  ;;  %v2622_v14 = vor.u32 1.1754944e-38, %v2621_v34 }
 0x815   :  { %v2612_v19 = vsub.f32 1.0, %v2611_v48 }
 0x816   :  { %v2598_v45 = vmul.f32 %v5124_v5, %v2597_v46 }
 0x817   :  { %v5128_v0 = vpop.eup %5127  ;;  %v2613_v10 = vmul.f32 %v5126_v57, %v2612_v19 }
 0x818   :  { %v5130_v6 = vpop.eup %5129  ;;  %v2599_v33 = vadd.f32 %v5124_v5, %v2598_v45  ;;  %v2581_v63 = vmul.f32 %v5128_v0, %v2576_v42  ;;  %v2591_v45 = vand.u32 2147483648, %v2576_v42  ;;  %vm2586_vm7 = vweird.f32 %v5128_v0  ;;  %v8456_v42 = vld [vmem:[#allocation34_spill] sm:$0xff] }
 0x819   :  { %v2614_v15 = vadd.f32 %v5126_v57, %v2613_v10  ;;  %v2626_v47 = vmul.f32 %v5130_v6, %v6925_v38  ;;  %vm2587_vm10 = vmor %vm2585_vm9, %vm2586_vm7  ;;  %vm2631_vm12 = vweird.f32 %v5130_v6 }
 0x81a   :  { %v2582_v48 = vsub.f32 1.0, %v2581_v63  ;;  %v2603_v44 = vsel %vm6929_vm5, %v5124_v5, %v2599_v33  ;;  %v2592_v24 = vor.u32 1.1754944e-38, %v2591_v45  ;;  %vm2632_vm14 = vmor %vm2630_vm13, %vm2631_vm12  ;;  %v8463_v45 = vld [vmem:[#allocation41_spill] sm:$0xff] }
 0x81b   :  { %v2618_v19 = vsel %vm2617_vm4, %v5126_v57, %v2614_v15  ;;  %v2627_v9 = vsub.f32 1.0, %v2626_v47  ;;  %v2608_v63 = vsel %vm2605_vm8, %v2607_v53, %v2603_v44  ;;  %v2636_v47 = vand.u32 2147483648, %v6925_v38 }
 0x81c   :  { %v2623_v10 = vsel %vm2620_vm6, %v2622_v14, %v2618_v19  ;;  %v2583_v32 = vmul.f32 %v5128_v0, %v2582_v48  ;;  %v2642_v46 = vmul.f32 %v2608_v63, %v6728_v51  ;;  %v2634_v53 = vand.u32 2147483647, %v6925_v38  ;;  %v8457_v38 = vld [vmem:[#allocation35_spill] sm:$0xff]  ;;  %v8460_v14 = vld [vmem:[#allocation38_spill] sm:$0xff]  ;;  %v8468_v63 = vld [vmem:[#allocation24_spill] sm:$0xff] }
 0x81d   :  { %v2640_v12 = vmul.f32 2.0, %v2623_v10  ;;  %v2628_v40 = vmul.f32 %v5130_v6, %v2627_v9  ;;  %v2637_v44 = vor.u32 1.1754944e-38, %v2636_v47  ;;  %v8461_v48 = vld [vmem:[#allocation39_spill] sm:$0xff]  ;;  %v8464_v10 = vld [vmem:[#allocation42_spill] sm:$0xff]  ;;  %v8475_v47 = vld [vmem:[#allocation40_spill] sm:$0xff] }
 0x81e   :  { %v2584_v34 = vadd.f32 %v5128_v0, %v2583_v32  ;;  %vm2635_vm15 = vcmp.eq.f32.partialorder %v2634_v53, 8.507059e+37  ;;  %v8462_v19 = vld [vmem:[#allocation103_spill] sm:$0xff]  ;;  %v8476_v53 = vld [vmem:[#allocation44_spill] sm:$0xff] }
 0x81f   :  { %v4798_v26 = vadd.f32 -1.0, %v2640_v12  ;;  %v2629_v58 = vadd.f32 %v5130_v6, %v2628_v40  ;;  %v8465_v32 = vld [vmem:[#allocation43_spill] sm:$0xff]  ;;  %v8471_v40 = vld [vmem:[#allocation25_spill] sm:$0xff] }
 0x820   :  { %v2588_v15 = vsel %vm2587_vm10, %v5128_v0, %v2584_v34  ;;  %v8458_v0 = vld [vmem:[#allocation99_spill] sm:$0xff]  ;;  %v8467_v34 = vld [vmem:[#allocation45_spill] sm:$0xff] }
 0x821   :  { %v2593_v57 = vsel %vm2590_vm11, %v2592_v24, %v2588_v15  ;;  %v2633_v12 = vsel %vm2632_vm14, %v5130_v6, %v2629_v58  ;;  %v8459_v6 = vld [vmem:[#allocation37_spill] sm:$0xff]  ;;  %v8466_v9 = vld [vmem:[#allocation107_spill] sm:$0xff]  ;;  %v8469_v15 = vld [vmem:[#allocation46_spill] sm:$0xff] }
 0x822   :  { %v2643_v33 = vmul.f32 %v4798_v26, %v2593_v57  ;;  %v2638_v30 = vsel %vm2635_vm15, %v2637_v44, %v2633_v12  ;;  %v8470_v57 = vld [vmem:[#allocation47_spill] sm:$0xff]  ;;  %v8474_v58 = vld [vmem:[#allocation36_spill] sm:$0xff] }
 0x823   :  { %v8477_v12 = vld [vmem:[#allocation48_spill] sm:$0xff] }
 0x824   :  { %v6936_v5 = vadd.f32 %v2643_v33, %v2642_v46  ;;  %v8472_v46 = vld [vmem:[#allocation28_spill] sm:$0xff] }
 0x825   :  { %v8473_v33 = vld [vmem:[#allocation32_spill] sm:$0xff] }
 0x826   :  { %5131 = vtanh.f32 %v6936_v5 }
 0x82c   :  { %v5132_v24 = vpop.eup %5131 }
 0x82d   :  { %v2646_v51 = vmul.f32 %v5132_v24, %v2638_v30 }
 0x82f   :  { %v2647_v26 = vpack.c.bf16 %v2646_v51, %v2646_v51  ;;  %2700 = vst [vmem:[#allocation2 + $0x3] sm:$0x1] %v2646_v51 }
 0x831   :  { %2656 = vmatmul.bf16.vlgmr.msrb.gmra.mxu3 %v2647_v26  ;;  %2669 = vmatmul.bf16.vlgmr.msra.gmra.mxu0 %v2647_v26 }
 0x832   :  { %2682 = vmatmul.bf16.vlgmr.msra.gmra.mxu1 %v2647_v26  ;;  %2695 = vmatmul.bf16.vlgmr.msra.gmra.mxu2 %v2647_v26 }
 0x833   :  { %2754 = vmatpush.bf16.msrb.mxu3 %v8104_v41  ;;  %2855 = vmatpush.bf16.msra.mxu0 %v5637_v3 }
 0x834   :  { %2868 = vmatpush.bf16.msra.mxu1 %v5639_v7  ;;  %2881 = vmatpush.bf16.msra.mxu2 %v5641_v8 }
 0x837   :  { %2755 = vmatpush.bf16.msrb.mxu3 %v8105_v11  ;;  %2856 = vmatpush.bf16.msra.mxu0 %v5648_v16 }
 0x838   :  { %2869 = vmatpush.bf16.msra.mxu1 %v5650_v17  ;;  %2882 = vmatpush.bf16.msra.mxu2 %v5653_v21 }
 0x83b   :  { %2756 = vmatpush.bf16.msrb.mxu3 %v8106_v31  ;;  %2857 = vmatpush.bf16.msra.mxu0 %v5658_v29 }
 0x83c   :  { %2870 = vmatpush.bf16.msra.mxu1 %v8107_v54  ;;  %2883 = vmatpush.bf16.msra.mxu2 %v8108_v49 }
 0x83f   :  { %2757 = vmatpush.bf16.msrb.mxu3 %v8109_v35  ;;  %2858 = vmatpush.bf16.msra.mxu0 %v8110_v56 }
 0x840   :  { %2871 = vmatpush.bf16.msra.mxu1 %v8111_v39  ;;  %2884 = vmatpush.bf16.msra.mxu2 %v8220_v4 }
 0x841   :  { %2709 = vmatmul.bf16.vlgmr.msra.gmra.mxu3 %v2647_v26 }
 0x843   :  { %2758 = vmatpush.bf16.msrb.mxu3 %v8221_v36  ;;  %2859 = vmatpush.bf16.msra.mxu0 %v8455_v37 }
 0x844   :  { %2872 = vmatpush.bf16.msra.mxu1 %v8456_v42  ;;  %2885 = vmatpush.bf16.msra.mxu2 %v8457_v38 }
 0x847   :  { %2759 = vmatpush.bf16.msrb.mxu3 %v8458_v0  ;;  %2860 = vmatpush.bf16.msra.mxu0 %v8459_v6 }
 0x848   :  { %2873 = vmatpush.bf16.msra.mxu1 %v8460_v14  ;;  %2886 = vmatpush.bf16.msra.mxu2 %v8461_v48 }
 0x84b   :  { %2760 = vmatpush.bf16.msrb.mxu3 %v8462_v19  ;;  %2861 = vmatpush.bf16.msra.mxu0 %v8463_v45  ;;  %v8513_v19 = vld [vmem:[#allocation110_spill] sm:$0xff] }
 0x84c   :  { %2874 = vmatpush.bf16.msra.mxu1 %v8464_v10  ;;  %2887 = vmatpush.bf16.msra.mxu2 %v8465_v32 }
 0x84f   :  { %2761 = vmatpush.bf16.msrb.mxu3 %v8466_v9  ;;  %2862 = vmatpush.bf16.msra.mxu0 %v8467_v34  ;;  %v8481_v34 = vld [vmem:[#allocation114_spill] sm:$0xff]  ;;  %v8482_v9 = vld [vmem:[#allocation115_spill] sm:$0xff] }
 0x850   :  { %2875 = vmatpush.bf16.msra.mxu1 %v8469_v15  ;;  %2888 = vmatpush.bf16.msra.mxu2 %v8470_v57 }
 0x853   :  { %2894 = vmatpush.bf16.msra.mxu3 %v8468_v63 }
 0x857   :  { %2895 = vmatpush.bf16.msra.mxu3 %v8471_v40 }
 0x85b   :  { %2896 = vmatpush.bf16.msra.mxu3 %v8472_v46 }
 0x85f   :  { %2897 = vmatpush.bf16.msra.mxu3 %v8473_v33 }
 0x863   :  { %2898 = vmatpush.bf16.msra.mxu3 %v8474_v58  ;;  %v8478_v58 = vld [vmem:[#allocation56_spill] sm:$0xff] }
 0x867   :  { %2899 = vmatpush.bf16.msra.mxu3 %v8475_v47 }
 0x86b   :  { %2900 = vmatpush.bf16.msra.mxu3 %v8476_v53  ;;  %v8480_v53 = vld [vmem:[#allocation113_spill] sm:$0xff] }
 0x86f   :  { %2901 = vmatpush.bf16.msra.mxu3 %v8477_v12  ;;  %v8479_v12 = vld [vmem:[#allocation112_spill] sm:$0xff] }
 0x8ae   :  { %v6982_v44 = vpop.f32.mrf.mxu0 }
 0x8af   :  { %v6984_v24 = vpop.f32.mrf.mxu1 }
 0x8b4   :  { %v6986_v30 = vpop.f32.mrf.mxu3 }
 0x8b5   :  { %v6988_v51 = vpop.f32.mrf.mxu2 }
 0x8b6   :  { %v2672_v26 = vpop.f32.mrf.mxu0 }
 0x8b7   :  { %v2685_v46 = vpop.f32.mrf.mxu1  ;;  %v8490_v26 = vld [vmem:[#allocation123_spill] sm:$0xff] }
 0x8b8   :  { %v8483_v46 = vld [vmem:[#allocation116_spill] sm:$0xff] }
 0x8bc   :  { %v2659_v40 = vpop.f32.mrf.mxu3 }
 0x8bd   :  { %v2698_v33 = vpop.f32.mrf.mxu2  ;;  %v8484_v40 = vld [vmem:[#allocation117_spill] sm:$0xff] }
 0x8be   :  { %v8485_v33 = vld [vmem:[#allocation118_spill] sm:$0xff] }
 0x8c4   :  { %v2710_v57 = vpop.f32.mrf.mxu3 }
 0x8c5   :  { %v2711_v15 = vadd.f32 %v8478_v58, %v2710_v57  ;;  %v8487_v57 = vld [vmem:[#allocation120_spill] sm:$0xff]  ;;  %v8488_v58 = vld [vmem:[#allocation121_spill] sm:$0xff] }
 0x8c7   :  { %v2714_v47 = vpack.c.bf16 %v2711_v15, %v2711_v15  ;;  %v8486_v15 = vld [vmem:[#allocation119_spill] sm:$0xff] }
 0x8c9   :  { %2723 = vmatmul.bf16.vlgmr.msrb.gmra.mxu0 %v2714_v47  ;;  %2736 = vmatmul.bf16.vlgmr.msrb.gmra.mxu1 %v2714_v47 }
 0x8ca   :  { %2749 = vmatmul.bf16.vlgmr.msrb.gmra.mxu2 %v2714_v47  ;;  %2762 = vmatmul.bf16.vlgmr.msrb.gmra.mxu3 %v2714_v47  ;;  %v8489_v47 = vld [vmem:[#allocation122_spill] sm:$0xff] }
 0x8cb   :  { %2907 = vmatpush.bf16.msrb.mxu0 %v8479_v12  ;;  %2920 = vmatpush.bf16.msrb.mxu1 %v8480_v53  ;;  %v8511_v53 = vld [vmem:[#allocation108_spill] sm:$0xff]  ;;  %v8512_v12 = vld [vmem:[#allocation109_spill] sm:$0xff] }
 0x8cc   :  { %v2712_v63 = vpop.f32.mrf.mxu3  ;;  %2933 = vmatpush.bf16.msrb.mxu2 %v8481_v34  ;;  %2946 = vmatpush.bf16.msrb.mxu3 %v8482_v9  ;;  %v8492_v34 = vld [vmem:[#allocation125_spill] sm:$0xff]  ;;  %v8493_v9 = vld [vmem:[#allocation126_spill] sm:$0xff] }
 0x8cd   :  { %v8491_v63 = vld [vmem:[#allocation124_spill] sm:$0xff] }
 0x8cf   :  { %2908 = vmatpush.bf16.msrb.mxu0 %v8483_v46  ;;  %2921 = vmatpush.bf16.msrb.mxu1 %v8484_v40  ;;  %v8494_v46 = vld [vmem:[#allocation127_spill] sm:$0xff]  ;;  %v8495_v40 = vld [vmem:[#allocation128_spill] sm:$0xff] }
 0x8d0   :  { %2934 = vmatpush.bf16.msrb.mxu2 %v8485_v33  ;;  %2947 = vmatpush.bf16.msrb.mxu3 %v8486_v15  ;;  %v8496_v33 = vld [vmem:[#allocation129_spill] sm:$0xff]  ;;  %v8497_v15 = vld [vmem:[#allocation130_spill] sm:$0xff] }
 0x8d3   :  { %2909 = vmatpush.bf16.msrb.mxu0 %v8487_v57  ;;  %2922 = vmatpush.bf16.msrb.mxu1 %v8488_v58  ;;  %v8498_v57 = vld [vmem:[#allocation131_spill] sm:$0xff]  ;;  %v8499_v58 = vld [vmem:[#allocation132_spill] sm:$0xff] }
 0x8d4   :  { %2935 = vmatpush.bf16.msrb.mxu2 %v8489_v47  ;;  %2948 = vmatpush.bf16.msrb.mxu3 %v8490_v26  ;;  %v8500_v47 = vld [vmem:[#allocation133_spill] sm:$0xff]  ;;  %v8501_v26 = vld [vmem:[#allocation134_spill] sm:$0xff] }
 0x8d7   :  { %2910 = vmatpush.bf16.msrb.mxu0 %v8491_v63  ;;  %2923 = vmatpush.bf16.msrb.mxu1 %v8492_v34  ;;  %v8502_v63 = vld [vmem:[#allocation135_spill] sm:$0xff]  ;;  %v8503_v34 = vld [vmem:[#allocation136_spill] sm:$0xff] }
 0x8d8   :  { %2936 = vmatpush.bf16.msrb.mxu2 %v8493_v9  ;;  %2949 = vmatpush.bf16.msrb.mxu3 %v8494_v46  ;;  %v8504_v9 = vld [vmem:[#allocation137_spill] sm:$0xff]  ;;  %v8505_v46 = vld [vmem:[#allocation138_spill] sm:$0xff] }
 0x8db   :  { %2911 = vmatpush.bf16.msrb.mxu0 %v8495_v40  ;;  %2924 = vmatpush.bf16.msrb.mxu1 %v8496_v33  ;;  %v8506_v40 = vld [vmem:[#allocation139_spill] sm:$0xff]  ;;  %v8507_v33 = vld [vmem:[#allocation140_spill] sm:$0xff] }
 0x8dc   :  { %2937 = vmatpush.bf16.msrb.mxu2 %v8497_v15  ;;  %2950 = vmatpush.bf16.msrb.mxu3 %v8498_v57  ;;  %v8508_v15 = vld [vmem:[#allocation141_spill] sm:$0xff]  ;;  %v8509_v57 = vld [vmem:[#allocation142_spill] sm:$0xff] }
 0x8df   :  { %2912 = vmatpush.bf16.msrb.mxu0 %v8499_v58  ;;  %2925 = vmatpush.bf16.msrb.mxu1 %v8500_v47  ;;  %v8510_v58 = vld [vmem:[#allocation143_spill] sm:$0xff] }
 0x8e0   :  { %2938 = vmatpush.bf16.msrb.mxu2 %v8501_v26  ;;  %2951 = vmatpush.bf16.msrb.mxu3 %v8502_v63 }
 0x8e3   :  { %2913 = vmatpush.bf16.msrb.mxu0 %v8503_v34  ;;  %2926 = vmatpush.bf16.msrb.mxu1 %v8504_v9 }
 0x8e4   :  { %2939 = vmatpush.bf16.msrb.mxu2 %v8505_v46  ;;  %2952 = vmatpush.bf16.msrb.mxu3 %v8506_v40 }
 0x8e7   :  { %2914 = vmatpush.bf16.msrb.mxu0 %v8507_v33  ;;  %2927 = vmatpush.bf16.msrb.mxu1 %v8508_v15 }
 0x8e8   :  { %2940 = vmatpush.bf16.msrb.mxu2 %v8509_v57  ;;  %2953 = vmatpush.bf16.msrb.mxu3 %v8510_v58 }
 0x946   :  { %v2724_v47 = vpop.f32.mrf.mxu0  ;;  %v2737_v26 = vpop.f32.mrf.mxu1 }
 0x947   :  { %v2725_v63 = vadd.f32 %v2724_v47, %v6913_v22  ;;  %v2738_v34 = vadd.f32 %v2737_v26, %v6909_v55  ;;  %v8514_v47 = vld [vmem:[#allocation111_spill] sm:$0xff] }
 0x949   :  { %v2767_v9 = vadd.f32 %v2725_v63, %v8511_v53  ;;  %v2768_v46 = vadd.f32 %v2738_v34, %v8512_v12 }
 0x94b   :  { %v4799_v32 = vmul.f32 -1.442695, %v2767_v9  ;;  %v4800_v40 = vmul.f32 -1.442695, %v2768_v46 }
 0x94d   :  { %5133 = vpow2.f32 %v4799_v32  ;;  %v2750_v33 = vpop.f32.mrf.mxu2  ;;  %v2763_v10 = vpop.f32.mrf.mxu3 }
 0x94e   :  { %5135 = vpow2.f32 %v4800_v40  ;;  %v2751_v57 = vadd.f32 %v2750_v33, %v6911_v23  ;;  %v2764_v58 = vadd.f32 %v2763_v10, %v6915_v27  ;;  %v2726_v15 = vpop.f32.mrf.mxu0  ;;  %v2739_v45 = vpop.f32.mrf.mxu1 }
 0x950   :  { %v2769_v22 = vadd.f32 %v2751_v57, %v8513_v19  ;;  %v2770_v55 = vadd.f32 %v2764_v58, %v8514_v47 }
 0x952   :  { %v4801_v26 = vmul.f32 -1.442695, %v2769_v22  ;;  %v4802_v63 = vmul.f32 -1.442695, %v2770_v55 }
 0x953   :  { %v5134_v53 = vpop.eup %5133 }
 0x954   :  { %v5136_v34 = vpop.eup %5135  ;;  %v2783_v9 = vadd.f32 1.0, %v5134_v53  ;;  %5137 = vpow2.f32 %v4801_v26 }
 0x955   :  { %v2784_v32 = vadd.f32 1.0, %v5136_v34  ;;  %5139 = vpow2.f32 %v4802_v63  ;;  %v2752_v46 = vpop.f32.mrf.mxu2  ;;  %v2765_v40 = vpop.f32.mrf.mxu3 }
 0x956   :  { %5141 = vrcp.f32 %v2783_v9  ;;  %vm2792_vm6 = vweird.f32 %v2783_v9 }
 0x957   :  { %5143 = vrcp.f32 %v2784_v32  ;;  %vm2807_vm2 = vweird.f32 %v2784_v32  ;;  %v2813_v48 = vand.u32 2147483648, %v2784_v32 }
 0x95a   :  { %v5138_v23 = vpop.eup %5137 }
 0x95b   :  { %v5140_v27 = vpop.eup %5139  ;;  %v2785_v10 = vadd.f32 1.0, %v5138_v23 }
 0x95c   :  { %v5142_v45 = vpop.eup %5141  ;;  %v2786_v33 = vadd.f32 1.0, %v5140_v27  ;;  %v2811_v27 = vand.u32 2147483647, %v2784_v32 }
 0x95d   :  { %v5144_v15 = vpop.eup %5143  ;;  %5145 = vrcp.f32 %v2785_v10  ;;  %v2788_v57 = vmul.f32 %v5142_v45, %v2783_v9  ;;  %v2828_v19 = vand.u32 2147483648, %v2785_v10  ;;  %v2826_v23 = vand.u32 2147483647, %v2785_v10 }
 0x95e   :  { %v2803_v58 = vmul.f32 %v5144_v15, %v2784_v32  ;;  %5147 = vrcp.f32 %v2786_v33  ;;  %vm2808_vm0 = vweird.f32 %v5144_v15  ;;  %vm2793_vm3 = vweird.f32 %v5142_v45 }
 0x95f   :  { %v2789_v55 = vsub.f32 1.0, %v2788_v57  ;;  %vm7031_vm4 = vmor %vm2807_vm2, %vm2808_vm0  ;;  %vm2822_vm5 = vweird.f32 %v2785_v10  ;;  %vm2827_vm8 = vcmp.eq.f32.partialorder %v2826_v23, 8.507059e+37  ;;  %v2814_v32 = vor.u32 1.1754944e-38, %v2813_v48  ;;  %v8524_v23 = vld [vmem:[#allocation64_spill] sm:$0xff] }
 0x960   :  { %v2804_v22 = vsub.f32 1.0, %v2803_v58  ;;  %vm2794_vm9 = vmor %vm2792_vm6, %vm2793_vm3  ;;  %vm2812_vm10 = vcmp.eq.f32.partialorder %v2811_v27, 8.507059e+37  ;;  %v2843_v48 = vand.u32 2147483648, %v2786_v33  ;;  %vm2837_vm13 = vweird.f32 %v2786_v33  ;;  %v8525_v27 = vld [vmem:[#allocation65_spill] sm:$0xff] }
 0x961   :  { %v2790_v46 = vmul.f32 %v5142_v45, %v2789_v55  ;;  %v2829_v55 = vor.u32 1.1754944e-38, %v2828_v19 }
 0x962   :  { %v2805_v26 = vmul.f32 %v5144_v15, %v2804_v22  ;;  %v2798_v22 = vand.u32 2147483648, %v2783_v9 }
 0x963   :  { %v5146_v53 = vpop.eup %5145  ;;  %v2791_v6 = vadd.f32 %v5142_v45, %v2790_v46 }
 0x964   :  { %v2818_v34 = vmul.f32 %v5146_v53, %v2785_v10  ;;  %v5148_v63 = vpop.eup %5147  ;;  %v2806_v12 = vadd.f32 %v5144_v15, %v2805_v26  ;;  %vm2823_vm1 = vweird.f32 %v5146_v53  ;;  %v2796_v26 = vand.u32 2147483647, %v2783_v9 }
 0x965   :  { %v2833_v14 = vmul.f32 %v5148_v63, %v2786_v33  ;;  %vm2824_vm7 = vmor %vm2822_vm5, %vm2823_vm1  ;;  %v2795_v38 = vsel %vm2794_vm9, %v5142_v45, %v2791_v6  ;;  %v2799_v37 = vor.u32 1.1754944e-38, %v2798_v22  ;;  %vm2838_vm12 = vweird.f32 %v5148_v63  ;;  %v8527_v22 = vld [vmem:[#allocation67_spill] sm:$0xff] }
 0x966   :  { %v2819_v40 = vsub.f32 1.0, %v2818_v34  ;;  %v2810_v34 = vsel %vm7031_vm4, %v5144_v15, %v2806_v12  ;;  %vm2797_vm11 = vcmp.eq.f32.partialorder %v2796_v26, 8.507059e+37  ;;  %v2841_v6 = vand.u32 2147483647, %v2786_v33  ;;  %vm2839_vm14 = vmor %vm2837_vm13, %vm2838_vm12  ;;  %v8521_v33 = vld [vmem:[#allocation61_spill] sm:$0xff] }
 0x967   :  { %v2834_v0 = vsub.f32 1.0, %v2833_v14  ;;  %v2800_v36 = vsel %vm2797_vm11, %v2799_v37, %v2795_v38  ;;  %v2844_v45 = vor.u32 1.1754944e-38, %v2843_v48  ;;  %v8529_v26 = vld [vmem:[#allocation69_spill] sm:$0xff]  ;;  %v8539_v48 = vld [vmem:[#allocation78_spill] sm:$0xff] }
 0x968   :  { %v2820_v47 = vmul.f32 %v5146_v53, %v2819_v40  ;;  %vm2842_vm15 = vcmp.eq.f32.partialorder %v2841_v6, 8.507059e+37  ;;  %v7079_v6 = vld [vmem:[#allocation15 + $0x30] sm:$0xff] }
 0x969   :  { %v2835_v4 = vmul.f32 %v5148_v63, %v2834_v0  ;;  %v8520_v0 = vld [vmem:[#allocation60_spill] sm:$0xff]  ;;  %8540 = vst [vmem:[#allocation54_spill] sm:$0xff] %v7079_v6 }
 0x96a   :  { %v2821_v58 = vadd.f32 %v5146_v53, %v2820_v47  ;;  %v2815_v47 = vsel %vm2812_vm10, %v2814_v32, %v2810_v34  ;;  %v8530_v34 = vld [vmem:[#allocation70_spill] sm:$0xff]  ;;  %v8532_v32 = vld [vmem:[#allocation72_spill] sm:$0xff] }
 0x96b   :  { %v2849_v19 = vmul.f32 %v2815_v47, %v6839_v1  ;;  %v2836_v12 = vadd.f32 %v5148_v63, %v2835_v4  ;;  %v8517_v4 = vld [vmem:[#allocation57_spill] sm:$0xff]  ;;  %v8519_v1 = vld [vmem:[#allocation59_spill] sm:$0xff]  ;;  %v7071_v47 = vld [vmem:[#allocation15 + $0x38] sm:$0xff] }
 0x96c   :  { %v2825_v40 = vsel %vm2824_vm7, %v5146_v53, %v2821_v58  ;;  %v8522_v53 = vld [vmem:[#allocation62_spill] sm:$0xff]  ;;  %8534 = vst [vmem:[#allocation53_spill] sm:$0xff] %v7071_v47 }
 0x96d   :  { %v2830_v46 = vsel %vm2827_vm8, %v2829_v55, %v2825_v40  ;;  %v2840_v14 = vsel %vm2839_vm14, %v5148_v63, %v2836_v12  ;;  %v8523_v63 = vld [vmem:[#allocation63_spill] sm:$0xff]  ;;  %v8526_v58 = vld [vmem:[#allocation66_spill] sm:$0xff]  ;;  %v8528_v55 = vld [vmem:[#allocation68_spill] sm:$0xff] }
 0x96e   :  { %v2847_v42 = vmul.f32 2.0, %v2830_v46  ;;  %v8531_v40 = vld [vmem:[#allocation71_spill] sm:$0xff]  ;;  %v8533_v46 = vld [vmem:[#allocation73_spill] sm:$0xff] }
 0x96f   :  { %v8538_v12 = vld [vmem:[#allocation77_spill] sm:$0xff] }
 0x970   :  { %v4803_v10 = vadd.f32 -1.0, %v2847_v42  ;;  %v2845_v42 = vsel %vm2842_vm15, %v2844_v45, %v2840_v14  ;;  %v8541_v14 = vld [vmem:[#allocation80_spill] sm:$0xff]  ;;  %v8542_v45 = vld [vmem:[#allocation81_spill] sm:$0xff] }
 0x972   :  { %v2850_v9 = vmul.f32 %v4803_v10, %v2800_v36  ;;  %v8518_v36 = vld [vmem:[#allocation58_spill] sm:$0xff] }
 0x973   :  { %v8535_v10 = vld [vmem:[#allocation74_spill] sm:$0xff] }
 0x974   :  { %v7038_v57 = vadd.f32 %v2850_v9, %v2849_v19  ;;  %v8536_v19 = vld [vmem:[#allocation75_spill] sm:$0xff]  ;;  %v8537_v9 = vld [vmem:[#allocation76_spill] sm:$0xff] }
 0x976   :  { %5149 = vtanh.f32 %v7038_v57 }
 0x97c   :  { %v5150_v15 = vpop.eup %5149 }
 0x97d   :  { %v2853_v37 = vmul.f32 %v5150_v15, %v2845_v42  ;;  %v8543_v15 = vld [vmem:[#allocation82_spill] sm:$0xff]  ;;  %v7085_v42 = vld [vmem:[#allocation15 + $0x28] sm:$0xff] }
 0x97e   :  { %8544 = vst [vmem:[#allocation144_spill] sm:$0xff] %v7085_v42 }
 0x97f   :  { %v2854_v38 = vpack.c.bf16 %v2853_v37, %v2853_v37  ;;  %v8545_v37 = vld [vmem:[#allocation84_spill] sm:$0xff] }
 0x981   :  { %2863 = vmatmul.bf16.vlgmr.msra.gmra.mxu0 %v2854_v38  ;;  %2876 = vmatmul.bf16.vlgmr.msra.gmra.mxu1 %v2854_v38 }
 0x982   :  { %2889 = vmatmul.bf16.vlgmr.msra.gmra.mxu2 %v2854_v38  ;;  %2902 = vmatmul.bf16.vlgmr.msra.gmra.mxu3 %v2854_v38 }
 0x983   :  { %3047 = vmatpush.bf16.msra.mxu0 %v5729_v59  ;;  %3060 = vmatpush.bf16.msra.mxu1 %v5731_v60 }
 0x984   :  { %3073 = vmatpush.bf16.msra.mxu2 %v5733_v61  ;;  %3086 = vmatpush.bf16.msra.mxu3 %v5736_v2 }
 0x987   :  { %3048 = vmatpush.bf16.msra.mxu0 %v5742_v18  ;;  %3061 = vmatpush.bf16.msra.mxu1 %v8054_v62 }
 0x988   :  { %3074 = vmatpush.bf16.msra.mxu2 %v8055_v43  ;;  %3087 = vmatpush.bf16.msra.mxu3 %v8056_v25 }
 0x98b   :  { %3049 = vmatpush.bf16.msra.mxu0 %v8057_v50  ;;  %3062 = vmatpush.bf16.msra.mxu1 %v8058_v52 }
 0x98c   :  { %3075 = vmatpush.bf16.msra.mxu2 %v8059_v20  ;;  %3088 = vmatpush.bf16.msra.mxu3 %v8163_v13 }
 0x98f   :  { %3050 = vmatpush.bf16.msra.mxu0 %v8164_v28  ;;  %3063 = vmatpush.bf16.msra.mxu1 %v8517_v4 }
 0x990   :  { %3076 = vmatpush.bf16.msra.mxu2 %v8518_v36  ;;  %3089 = vmatpush.bf16.msra.mxu3 %v8519_v1 }
 0x991   :  { %2915 = vmatmul.bf16.vlgmr.msrb.gmra.mxu0 %v2854_v38  ;;  %2928 = vmatmul.bf16.vlgmr.msrb.gmra.mxu1 %v2854_v38 }
 0x992   :  { %2941 = vmatmul.bf16.vlgmr.msrb.gmra.mxu2 %v2854_v38  ;;  %2954 = vmatmul.bf16.vlgmr.msrb.gmra.mxu3 %v2854_v38  ;;  %v8546_v38 = vld [vmem:[#allocation85_spill] sm:$0xff] }
 0x993   :  { %3051 = vmatpush.bf16.msra.mxu0 %v8520_v0  ;;  %3064 = vmatpush.bf16.msra.mxu1 %v8521_v33 }
 0x994   :  { %3077 = vmatpush.bf16.msra.mxu2 %v8522_v53  ;;  %3090 = vmatpush.bf16.msra.mxu3 %v8523_v63 }
 0x997   :  { %3052 = vmatpush.bf16.msra.mxu0 %v8524_v23  ;;  %3065 = vmatpush.bf16.msra.mxu1 %v8525_v27 }
 0x998   :  { %3078 = vmatpush.bf16.msra.mxu2 %v8526_v58  ;;  %3091 = vmatpush.bf16.msra.mxu3 %v8527_v22  ;;  %v8570_v58 = vld [vmem:[#allocation51_spill] sm:$0xff] }
 0x99b   :  { %3053 = vmatpush.bf16.msra.mxu0 %v8528_v55  ;;  %3066 = vmatpush.bf16.msra.mxu1 %v8529_v26 }
 0x99c   :  { %3079 = vmatpush.bf16.msra.mxu2 %v8530_v34  ;;  %3092 = vmatpush.bf16.msra.mxu3 %v8531_v40 }
 0x99f   :  { %3054 = vmatpush.bf16.msra.mxu0 %v8532_v32  ;;  %3067 = vmatpush.bf16.msra.mxu1 %v8533_v46  ;;  %v8568_v46 = vld [vmem:[#allocation49_spill] sm:$0xff]  ;;  %v8569_v32 = vld [vmem:[#allocation50_spill] sm:$0xff] }
 0x9a0   :  { %3080 = vmatpush.bf16.msra.mxu2 %v8535_v10  ;;  %3093 = vmatpush.bf16.msra.mxu3 %v8536_v19 }
 0x9a3   :  { %3100 = vmatpush.bf16.msrb.mxu0 %v7071_v47  ;;  %3114 = vmatpush.bf16.msrb.mxu1 %v8537_v9 }
 0x9a4   :  { %3127 = vmatpush.bf16.msrb.mxu2 %v8538_v12  ;;  %3140 = vmatpush.bf16.msrb.mxu3 %v8539_v48  ;;  %v8547_v12 = vld [vmem:[#allocation86_spill] sm:$0xff]  ;;  %v7091_v48 = vld [vmem:[#allocation15 + $0x20] sm:$0xff] }
 0x9a5   :  { %8548 = vst [vmem:[#allocation145_spill] sm:$0xff] %v7091_v48 }
 0x9a7   :  { %3101 = vmatpush.bf16.msrb.mxu0 %v7079_v6  ;;  %3115 = vmatpush.bf16.msrb.mxu1 %v8541_v14  ;;  %v8549_v6 = vld [vmem:[#allocation88_spill] sm:$0xff]  ;;  %v8550_v14 = vld [vmem:[#allocation89_spill] sm:$0xff] }
 0x9a8   :  { %3128 = vmatpush.bf16.msrb.mxu2 %v8542_v45  ;;  %3141 = vmatpush.bf16.msrb.mxu3 %v8543_v15  ;;  %v8551_v45 = vld [vmem:[#allocation90_spill] sm:$0xff] }
 0x9a9   :  { %v7097_v15 = vld [vmem:[#allocation15 + $0x18] sm:$0xff] }
 0x9aa   :  { %8552 = vst [vmem:[#allocation146_spill] sm:$0xff] %v7097_v15 }
 0x9ab   :  { %3102 = vmatpush.bf16.msrb.mxu0 %v7085_v42  ;;  %3116 = vmatpush.bf16.msrb.mxu1 %v8545_v37  ;;  %v8553_v42 = vld [vmem:[#allocation92_spill] sm:$0xff]  ;;  %v8554_v37 = vld [vmem:[#allocation93_spill] sm:$0xff] }
 0x9ac   :  { %3129 = vmatpush.bf16.msrb.mxu2 %v8546_v38  ;;  %3142 = vmatpush.bf16.msrb.mxu3 %v8547_v12  ;;  %v8555_v38 = vld [vmem:[#allocation94_spill] sm:$0xff]  ;;  %v7103_v12 = vld [vmem:[#allocation15 + $0x10] sm:$0xff] }
 0x9ad   :  { %8556 = vst [vmem:[#allocation147_spill] sm:$0xff] %v7103_v12 }
 0x9af   :  { %3103 = vmatpush.bf16.msrb.mxu0 %v7091_v48  ;;  %3117 = vmatpush.bf16.msrb.mxu1 %v8549_v6  ;;  %v8557_v48 = vld [vmem:[#allocation96_spill] sm:$0xff]  ;;  %v8558_v6 = vld [vmem:[#allocation97_spill] sm:$0xff] }
 0x9b0   :  { %3130 = vmatpush.bf16.msrb.mxu2 %v8550_v14  ;;  %3143 = vmatpush.bf16.msrb.mxu3 %v8551_v45  ;;  %v8559_v14 = vld [vmem:[#allocation98_spill] sm:$0xff]  ;;  %v7109_v45 = vld [vmem:[#allocation15 + $0x8] sm:$0xff] }
 0x9b1   :  { %8560 = vst [vmem:[#allocation79_spill] sm:$0xff] %v7109_v45 }
 0x9b3   :  { %3104 = vmatpush.bf16.msrb.mxu0 %v7097_v15  ;;  %3118 = vmatpush.bf16.msrb.mxu1 %v8553_v42  ;;  %v8561_v15 = vld [vmem:[#allocation100_spill] sm:$0xff]  ;;  %v8562_v42 = vld [vmem:[#allocation101_spill] sm:$0xff] }
 0x9b4   :  { %3131 = vmatpush.bf16.msrb.mxu2 %v8554_v37  ;;  %3144 = vmatpush.bf16.msrb.mxu3 %v8555_v38  ;;  %v8563_v37 = vld [vmem:[#allocation102_spill] sm:$0xff]  ;;  %v7115_v38 = vld [vmem:[#allocation15] sm:$0xff] }
 0x9b5   :  { %8564 = vst [vmem:[#allocation83_spill] sm:$0xff] %v7115_v38 }
 0x9b7   :  { %3105 = vmatpush.bf16.msrb.mxu0 %v7103_v12  ;;  %3119 = vmatpush.bf16.msrb.mxu1 %v8557_v48  ;;  %v8565_v12 = vld [vmem:[#allocation104_spill] sm:$0xff]  ;;  %v8566_v48 = vld [vmem:[#allocation105_spill] sm:$0xff] }
 0x9b8   :  { %3132 = vmatpush.bf16.msrb.mxu2 %v8558_v6  ;;  %3145 = vmatpush.bf16.msrb.mxu3 %v8559_v14  ;;  %v8567_v6 = vld [vmem:[#allocation106_spill] sm:$0xff] }
 0x9bb   :  { %3106 = vmatpush.bf16.msrb.mxu0 %v7109_v45  ;;  %3120 = vmatpush.bf16.msrb.mxu1 %v8561_v15 }
 0x9bc   :  { %3133 = vmatpush.bf16.msrb.mxu2 %v8562_v42  ;;  %3146 = vmatpush.bf16.msrb.mxu3 %v8563_v37 }
 0x9bf   :  { %3107 = vmatpush.bf16.msrb.mxu0 %v7115_v38  ;;  %3121 = vmatpush.bf16.msrb.mxu1 %v8565_v12 }
 0x9c0   :  { %3134 = vmatpush.bf16.msrb.mxu2 %v8566_v48  ;;  %3147 = vmatpush.bf16.msrb.mxu3 %v8567_v6 }
 0x9fe   :  { %v7121_v14 = vpop.f32.mrf.mxu0  ;;  %v7123_v9 = vpop.f32.mrf.mxu1 }
 0xa05   :  { %v7125_v45 = vpop.f32.mrf.mxu2  ;;  %v7127_v15 = vpop.f32.mrf.mxu3 }
 0xa06   :  { %v2866_v42 = vpop.f32.mrf.mxu0  ;;  %v2879_v37 = vpop.f32.mrf.mxu1 }
 0xa0d   :  { %v2892_v19 = vpop.f32.mrf.mxu2  ;;  %v2905_v10 = vpop.f32.mrf.mxu3 }
 0xa0e   :  { %v2916_v47 = vpop.f32.mrf.mxu0  ;;  %v2929_v38 = vpop.f32.mrf.mxu1 }
 0xa0f   :  { %v2917_v12 = vadd.f32 %v2916_v47, %v6986_v30  ;;  %v2930_v48 = vadd.f32 %v2929_v38, %v6982_v44  ;;  %v8571_v47 = vld [vmem:[#allocation52_spill] sm:$0xff] }
 0xa11   :  { %v2959_v6 = vadd.f32 %v2917_v12, %v8568_v46  ;;  %v2960_v40 = vadd.f32 %v2930_v48, %v8569_v32 }
 0xa13   :  { %v4804_v34 = vmul.f32 -1.442695, %v2959_v6  ;;  %v4805_v26 = vmul.f32 -1.442695, %v2960_v40 }
 0xa15   :  { %5151 = vpow2.f32 %v4804_v34  ;;  %v2942_v55 = vpop.f32.mrf.mxu2  ;;  %v2955_v22 = vpop.f32.mrf.mxu3 }
 0xa16   :  { %5153 = vpow2.f32 %v4805_v26  ;;  %v2943_v42 = vadd.f32 %v2942_v55, %v6984_v24  ;;  %v2956_v10 = vadd.f32 %v2955_v22, %v6988_v51  ;;  %v2918_v19 = vpop.f32.mrf.mxu0  ;;  %v2931_v37 = vpop.f32.mrf.mxu1 }
 0xa18   :  { %v2961_v30 = vadd.f32 %v2943_v42, %v8570_v58  ;;  %v2962_v44 = vadd.f32 %v2956_v10, %v8571_v47 }
 0xa1a   :  { %v4806_v38 = vmul.f32 -1.442695, %v2961_v30  ;;  %v4807_v12 = vmul.f32 -1.442695, %v2962_v44 }
 0xa1b   :  { %v5152_v46 = vpop.eup %5151 }
 0xa1c   :  { %v5154_v48 = vpop.eup %5153  ;;  %v2975_v6 = vadd.f32 1.0, %v5152_v46  ;;  %5155 = vpow2.f32 %v4806_v38 }
 0xa1d   :  { %v2976_v34 = vadd.f32 1.0, %v5154_v48  ;;  %5157 = vpow2.f32 %v4807_v12  ;;  %v2944_v40 = vpop.f32.mrf.mxu2  ;;  %v2957_v26 = vpop.f32.mrf.mxu3 }
 0xa1e   :  { %5159 = vrcp.f32 %v2975_v6  ;;  %vm2984_vm6 = vweird.f32 %v2975_v6 }
 0xa1f   :  { %5161 = vrcp.f32 %v2976_v34  ;;  %vm2999_vm2 = vweird.f32 %v2976_v34  ;;  %v3005_v27 = vand.u32 2147483648, %v2976_v34 }
 0xa22   :  { %v5156_v24 = vpop.eup %5155 }
 0xa23   :  { %v5158_v51 = vpop.eup %5157  ;;  %v2977_v22 = vadd.f32 1.0, %v5156_v24 }
 0xa24   :  { %v5160_v55 = vpop.eup %5159  ;;  %v2978_v19 = vadd.f32 1.0, %v5158_v51  ;;  %v3003_v51 = vand.u32 2147483647, %v2976_v34 }
 0xa25   :  { %v5162_v42 = vpop.eup %5161  ;;  %5163 = vrcp.f32 %v2977_v22  ;;  %v2980_v10 = vmul.f32 %v5160_v55, %v2975_v6  ;;  %v3020_v58 = vand.u32 2147483648, %v2977_v22  ;;  %v3018_v24 = vand.u32 2147483647, %v2977_v22 }
 0xa26   :  { %v2995_v37 = vmul.f32 %v5162_v42, %v2976_v34  ;;  %5165 = vrcp.f32 %v2978_v19  ;;  %vm3000_vm0 = vweird.f32 %v5162_v42  ;;  %vm2985_vm3 = vweird.f32 %v5160_v55 }
 0xa27   :  { %v2981_v44 = vsub.f32 1.0, %v2980_v10  ;;  %vm7137_vm4 = vmor %vm2999_vm2, %vm3000_vm0  ;;  %vm3014_vm5 = vweird.f32 %v2977_v22  ;;  %vm3019_vm8 = vcmp.eq.f32.partialorder %v3018_v24, 8.507059e+37  ;;  %v3006_v34 = vor.u32 1.1754944e-38, %v3005_v27  ;;  %v8581_v24 = vld [vmem:[#allocation38_spill] sm:$0xff] }
 0xa28   :  { %v2996_v30 = vsub.f32 1.0, %v2995_v37  ;;  %vm2986_vm9 = vmor %vm2984_vm6, %vm2985_vm3  ;;  %vm3004_vm10 = vcmp.eq.f32.partialorder %v3003_v51, 8.507059e+37  ;;  %vm3029_vm13 = vweird.f32 %v2978_v19  ;;  %v8582_v51 = vld [vmem:[#allocation39_spill] sm:$0xff] }
 0xa29   :  { %v2982_v40 = vmul.f32 %v5160_v55, %v2981_v44  ;;  %v3021_v44 = vor.u32 1.1754944e-38, %v3020_v58 }
 0xa2a   :  { %v2997_v38 = vmul.f32 %v5162_v42, %v2996_v30  ;;  %v2990_v30 = vand.u32 2147483648, %v2975_v6 }
 0xa2b   :  { %v5164_v46 = vpop.eup %5163  ;;  %v2983_v63 = vadd.f32 %v5160_v55, %v2982_v40 }
 0xa2c   :  { %v3010_v48 = vmul.f32 %v5164_v46, %v2977_v22  ;;  %v5166_v12 = vpop.eup %5165  ;;  %v2998_v32 = vadd.f32 %v5162_v42, %v2997_v38  ;;  %vm3015_vm1 = vweird.f32 %v5164_v46  ;;  %v2988_v38 = vand.u32 2147483647, %v2975_v6 }
 0xa2d   :  { %v3025_v23 = vmul.f32 %v5166_v12, %v2978_v19  ;;  %vm3016_vm7 = vmor %vm3014_vm5, %vm3015_vm1  ;;  %v2987_v33 = vsel %vm2986_vm9, %v5160_v55, %v2983_v63  ;;  %v2991_v1 = vor.u32 1.1754944e-38, %v2990_v30  ;;  %vm3030_vm12 = vweird.f32 %v5166_v12  ;;  %v8584_v30 = vld [vmem:[#allocation41_spill] sm:$0xff] }
 0xa2e   :  { %v3011_v26 = vsub.f32 1.0, %v3010_v48  ;;  %v3002_v48 = vsel %vm7137_vm4, %v5162_v42, %v2998_v32  ;;  %vm2989_vm11 = vcmp.eq.f32.partialorder %v2988_v38, 8.507059e+37  ;;  %v3035_v42 = vand.u32 2147483648, %v2978_v19  ;;  %vm3031_vm14 = vmor %vm3029_vm13, %vm3030_vm12  ;;  %v8586_v38 = vld [vmem:[#allocation43_spill] sm:$0xff] }
 0xa2f   :  { %v3026_v53 = vsub.f32 1.0, %v3025_v23  ;;  %v2992_v36 = vsel %vm2989_vm11, %v2991_v1, %v2987_v33  ;;  %v3033_v63 = vand.u32 2147483647, %v2978_v19  ;;  %v8578_v19 = vld [vmem:[#allocation35_spill] sm:$0xff] }
 0xa30   :  { %v3012_v47 = vmul.f32 %v5164_v46, %v3011_v26  ;;  %v3036_v27 = vor.u32 1.1754944e-38, %v3035_v42  ;;  %v8596_v42 = vld [vmem:[#allocation40_spill] sm:$0xff] }
 0xa31   :  { %v3027_v4 = vmul.f32 %v5166_v12, %v3026_v53  ;;  %vm3034_vm15 = vcmp.eq.f32.partialorder %v3033_v63, 8.507059e+37  ;;  %v8577_v53 = vld [vmem:[#allocation34_spill] sm:$0xff]  ;;  %v8597_v63 = vld [vmem:[#allocation44_spill] sm:$0xff] }
 0xa32   :  { %v3013_v37 = vadd.f32 %v5164_v46, %v3012_v47  ;;  %v3007_v47 = vsel %vm3004_vm10, %v3006_v34, %v3002_v48  ;;  %v8587_v48 = vld [vmem:[#allocation107_spill] sm:$0xff]  ;;  %v8589_v34 = vld [vmem:[#allocation24_spill] sm:$0xff] }
 0xa33   :  { %v3041_v58 = vmul.f32 %v3007_v47, %v6936_v5  ;;  %v3028_v32 = vadd.f32 %v5166_v12, %v3027_v4  ;;  %v8574_v5 = vld [vmem:[#allocation31_spill] sm:$0xff] }
 0xa34   :  { %v3017_v26 = vsel %vm3016_vm7, %v5164_v46, %v3013_v37  ;;  %v8575_v4 = vld [vmem:[#allocation95_spill] sm:$0xff] }
 0xa35   :  { %v3022_v40 = vsel %vm3019_vm8, %v3021_v44, %v3017_v26  ;;  %v3032_v23 = vsel %vm3031_vm14, %v5166_v12, %v3028_v32  ;;  %v8579_v46 = vld [vmem:[#allocation99_spill] sm:$0xff]  ;;  %v8580_v12 = vld [vmem:[#allocation37_spill] sm:$0xff]  ;;  %v8585_v44 = vld [vmem:[#allocation42_spill] sm:$0xff] }
 0xa36   :  { %v3039_v0 = vmul.f32 2.0, %v3022_v40  ;;  %v8583_v37 = vld [vmem:[#allocation103_spill] sm:$0xff]  ;;  %v8588_v26 = vld [vmem:[#allocation45_spill] sm:$0xff]  ;;  %v8590_v40 = vld [vmem:[#allocation46_spill] sm:$0xff] }
 0xa37   :  { %v8591_v47 = vld [vmem:[#allocation47_spill] sm:$0xff]  ;;  %v8595_v32 = vld [vmem:[#allocation36_spill] sm:$0xff] }
 0xa38   :  { %v4808_v22 = vadd.f32 -1.0, %v3039_v0  ;;  %v3037_v0 = vsel %vm3034_vm15, %v3036_v27, %v3032_v23  ;;  %v8598_v23 = vld [vmem:[#allocation48_spill] sm:$0xff] }
 0xa3a   :  { %v3042_v6 = vmul.f32 %v4808_v22, %v2992_v36  ;;  %v8576_v36 = vld [vmem:[#allocation33_spill] sm:$0xff] }
 0xa3b   :  { %v8592_v22 = vld [vmem:[#allocation25_spill] sm:$0xff] }
 0xa3c   :  { %v7144_v10 = vadd.f32 %v3042_v6, %v3041_v58  ;;  %v8593_v58 = vld [vmem:[#allocation28_spill] sm:$0xff] }
 0xa3d   :  { %v8594_v6 = vld [vmem:[#allocation32_spill] sm:$0xff] }
 0xa3e   :  { %5167 = vtanh.f32 %v7144_v10 }
 0xa44   :  { %v5168_v55 = vpop.eup %5167 }
 0xa45   :  { %v3045_v1 = vmul.f32 %v5168_v55, %v3037_v0 }
 0xa47   :  { %v3046_v33 = vpack.c.bf16 %v3045_v1, %v3045_v1  ;;  %3099 = vst [vmem:[#allocation2 + $0x4] sm:$0x1] %v3045_v1 }
 0xa49   :  { %3055 = vmatmul.bf16.vlgmr.msra.gmra.mxu0 %v3046_v33  ;;  %3068 = vmatmul.bf16.vlgmr.msra.gmra.mxu1 %v3046_v33 }
 0xa4a   :  { %3081 = vmatmul.bf16.vlgmr.msra.gmra.mxu2 %v3046_v33  ;;  %3094 = vmatmul.bf16.vlgmr.msra.gmra.mxu3 %v3046_v33 }
 0xa4b   :  { %3153 = vmatpush.bf16.msra.mxu0 %v8104_v41  ;;  %3254 = vmatpush.bf16.msra.mxu1 %v5637_v3 }
 0xa4c   :  { %3267 = vmatpush.bf16.msra.mxu2 %v5639_v7  ;;  %3280 = vmatpush.bf16.msra.mxu3 %v5641_v8 }
 0xa4f   :  { %3154 = vmatpush.bf16.msra.mxu0 %v8105_v11  ;;  %3255 = vmatpush.bf16.msra.mxu1 %v5648_v16 }
 0xa50   :  { %3268 = vmatpush.bf16.msra.mxu2 %v5650_v17  ;;  %3281 = vmatpush.bf16.msra.mxu3 %v5653_v21 }
 0xa53   :  { %3155 = vmatpush.bf16.msra.mxu0 %v8106_v31  ;;  %3256 = vmatpush.bf16.msra.mxu1 %v5658_v29 }
 0xa54   :  { %3269 = vmatpush.bf16.msra.mxu2 %v8107_v54  ;;  %3282 = vmatpush.bf16.msra.mxu3 %v8108_v49 }
 0xa57   :  { %3156 = vmatpush.bf16.msra.mxu0 %v8109_v35  ;;  %3257 = vmatpush.bf16.msra.mxu1 %v8110_v56 }
 0xa58   :  { %3270 = vmatpush.bf16.msra.mxu2 %v8111_v39  ;;  %3283 = vmatpush.bf16.msra.mxu3 %v8574_v5 }
 0xa59   :  { %3108 = vmatmul.bf16.vlgmr.msrb.gmra.mxu0 %v3046_v33 }
 0xa5b   :  { %3157 = vmatpush.bf16.msra.mxu0 %v8575_v4  ;;  %3258 = vmatpush.bf16.msra.mxu1 %v8576_v36 }
 0xa5c   :  { %3271 = vmatpush.bf16.msra.mxu2 %v8577_v53  ;;  %3284 = vmatpush.bf16.msra.mxu3 %v8578_v19 }
 0xa5f   :  { %3158 = vmatpush.bf16.msra.mxu0 %v8579_v46  ;;  %3259 = vmatpush.bf16.msra.mxu1 %v8580_v12 }
 0xa60   :  { %3272 = vmatpush.bf16.msra.mxu2 %v8581_v24  ;;  %3285 = vmatpush.bf16.msra.mxu3 %v8582_v51 }
 0xa63   :  { %3159 = vmatpush.bf16.msra.mxu0 %v8583_v37  ;;  %3260 = vmatpush.bf16.msra.mxu1 %v8584_v30  ;;  %v8634_v30 = vld [vmem:[#allocation109_spill] sm:$0xff] }
 0xa64   :  { %3273 = vmatpush.bf16.msra.mxu2 %v8585_v44  ;;  %3286 = vmatpush.bf16.msra.mxu3 %v8586_v38 }
 0xa67   :  { %3160 = vmatpush.bf16.msra.mxu0 %v8587_v48  ;;  %3261 = vmatpush.bf16.msra.mxu1 %v8588_v26  ;;  %v8606_v26 = vld [vmem:[#allocation118_spill] sm:$0xff]  ;;  %v8633_v48 = vld [vmem:[#allocation111_spill] sm:$0xff] }
 0xa68   :  { %3274 = vmatpush.bf16.msra.mxu2 %v8590_v40  ;;  %3287 = vmatpush.bf16.msra.mxu3 %v8591_v47  ;;  %v8601_v40 = vld [vmem:[#allocation113_spill] sm:$0xff] }
 0xa6b   :  { %3293 = vmatpush.bf16.msrb.mxu0 %v8589_v34  ;;  %v8605_v34 = vld [vmem:[#allocation117_spill] sm:$0xff] }
 0xa6f   :  { %3294 = vmatpush.bf16.msrb.mxu0 %v8592_v22 }
 0xa73   :  { %3295 = vmatpush.bf16.msrb.mxu0 %v8593_v58 }
 0xa77   :  { %3296 = vmatpush.bf16.msrb.mxu0 %v8594_v6 }
 0xa7b   :  { %3297 = vmatpush.bf16.msrb.mxu0 %v8595_v32  ;;  %v8600_v32 = vld [vmem:[#allocation112_spill] sm:$0xff] }
 0xa7f   :  { %3298 = vmatpush.bf16.msrb.mxu0 %v8596_v42  ;;  %v7198_v42 = vld [vmem:[%s7645_s9] sm:$0x1] }
 0xa80   :  { %8599 = vst [vmem:[#allocation87_spill] sm:$0xff] %v7198_v42 }
 0xa83   :  { %3299 = vmatpush.bf16.msrb.mxu0 %v8597_v63 }
 0xa87   :  { %3300 = vmatpush.bf16.msrb.mxu0 %v8598_v23 }
 0xac6   :  { %v7187_v27 = vpop.f32.mrf.mxu0  ;;  %v7189_v55 = vpop.f32.mrf.mxu1 }
 0xacd   :  { %v7191_v0 = vpop.f32.mrf.mxu2  ;;  %v7193_v1 = vpop.f32.mrf.mxu3 }
 0xace   :  { %v3058_v33 = vpop.f32.mrf.mxu0  ;;  %v3071_v58 = vpop.f32.mrf.mxu1 }
 0xacf   :  { %v8604_v33 = vld [vmem:[#allocation116_spill] sm:$0xff] }
 0xad5   :  { %v3084_v22 = vpop.f32.mrf.mxu2  ;;  %v3097_v6 = vpop.f32.mrf.mxu3 }
 0xad6   :  { %v3109_v47 = vpop.f32.mrf.mxu0  ;;  %v8602_v22 = vld [vmem:[#allocation114_spill] sm:$0xff]  ;;  %v8603_v6 = vld [vmem:[#allocation115_spill] sm:$0xff] }
 0xad7   :  { %v3110_v23 = vadd.f32 %v7198_v42, %v3109_v47  ;;  %v8607_v47 = vld [vmem:[#allocation119_spill] sm:$0xff]  ;;  %v8632_v42 = vld [vmem:[#allocation108_spill] sm:$0xff] }
 0xad9   :  { %v3113_v63 = vpack.c.bf16 %v3110_v23, %v3110_v23  ;;  %v8608_v23 = vld [vmem:[#allocation120_spill] sm:$0xff] }
 0xadb   :  { %3122 = vmatmul.bf16.vlgmr.msrb.gmra.mxu1 %v3113_v63  ;;  %3135 = vmatmul.bf16.vlgmr.msrb.gmra.mxu2 %v3113_v63 }
 0xadc   :  { %3148 = vmatmul.bf16.vlgmr.msrb.gmra.mxu3 %v3113_v63  ;;  %3161 = vmatmul.bf16.vlgmr.msra.gmra.mxu0 %v3113_v63  ;;  %v8609_v63 = vld [vmem:[#allocation121_spill] sm:$0xff] }
 0xadd   :  { %3306 = vmatpush.bf16.msrb.mxu1 %v8600_v32  ;;  %3319 = vmatpush.bf16.msrb.mxu2 %v8601_v40  ;;  %v8610_v32 = vld [vmem:[#allocation122_spill] sm:$0xff]  ;;  %v8611_v40 = vld [vmem:[#allocation123_spill] sm:$0xff] }
 0xade   :  { %v3111_v58 = vpop.f32.mrf.mxu0  ;;  %3332 = vmatpush.bf16.msrb.mxu3 %v8602_v22  ;;  %3345 = vmatpush.bf16.msra.mxu0 %v8603_v6  ;;  %v8613_v22 = vld [vmem:[#allocation125_spill] sm:$0xff]  ;;  %v8614_v6 = vld [vmem:[#allocation126_spill] sm:$0xff] }
 0xadf   :  { %v8612_v58 = vld [vmem:[#allocation124_spill] sm:$0xff] }
 0xae1   :  { %3307 = vmatpush.bf16.msrb.mxu1 %v8604_v33  ;;  %3320 = vmatpush.bf16.msrb.mxu2 %v8605_v34  ;;  %v8615_v33 = vld [vmem:[#allocation127_spill] sm:$0xff]  ;;  %v8616_v34 = vld [vmem:[#allocation128_spill] sm:$0xff] }
 0xae2   :  { %3333 = vmatpush.bf16.msrb.mxu3 %v8606_v26  ;;  %3346 = vmatpush.bf16.msra.mxu0 %v8607_v47  ;;  %v8617_v26 = vld [vmem:[#allocation129_spill] sm:$0xff]  ;;  %v8618_v47 = vld [vmem:[#allocation130_spill] sm:$0xff] }
 0xae5   :  { %3308 = vmatpush.bf16.msrb.mxu1 %v8608_v23  ;;  %3321 = vmatpush.bf16.msrb.mxu2 %v8609_v63  ;;  %v8619_v23 = vld [vmem:[#allocation131_spill] sm:$0xff]  ;;  %v8620_v63 = vld [vmem:[#allocation132_spill] sm:$0xff] }
 0xae6   :  { %3334 = vmatpush.bf16.msrb.mxu3 %v8610_v32  ;;  %3347 = vmatpush.bf16.msra.mxu0 %v8611_v40  ;;  %v8621_v32 = vld [vmem:[#allocation133_spill] sm:$0xff]  ;;  %v8622_v40 = vld [vmem:[#allocation134_spill] sm:$0xff] }
 0xae9   :  { %3309 = vmatpush.bf16.msrb.mxu1 %v8612_v58  ;;  %3322 = vmatpush.bf16.msrb.mxu2 %v8613_v22  ;;  %v8623_v58 = vld [vmem:[#allocation135_spill] sm:$0xff]  ;;  %v8624_v22 = vld [vmem:[#allocation136_spill] sm:$0xff] }
 0xaea   :  { %3335 = vmatpush.bf16.msrb.mxu3 %v8614_v6  ;;  %3348 = vmatpush.bf16.msra.mxu0 %v8615_v33  ;;  %v8625_v6 = vld [vmem:[#allocation137_spill] sm:$0xff]  ;;  %v8626_v33 = vld [vmem:[#allocation138_spill] sm:$0xff] }
 0xaed   :  { %3310 = vmatpush.bf16.msrb.mxu1 %v8616_v34  ;;  %3323 = vmatpush.bf16.msrb.mxu2 %v8617_v26  ;;  %v8627_v34 = vld [vmem:[#allocation139_spill] sm:$0xff]  ;;  %v8628_v26 = vld [vmem:[#allocation140_spill] sm:$0xff] }
 0xaee   :  { %3336 = vmatpush.bf16.msrb.mxu3 %v8618_v47  ;;  %3349 = vmatpush.bf16.msra.mxu0 %v8619_v23  ;;  %v8629_v47 = vld [vmem:[#allocation141_spill] sm:$0xff]  ;;  %v8630_v23 = vld [vmem:[#allocation142_spill] sm:$0xff] }
 0xaf1   :  { %3311 = vmatpush.bf16.msrb.mxu1 %v8620_v63  ;;  %3324 = vmatpush.bf16.msrb.mxu2 %v8621_v32  ;;  %v8631_v63 = vld [vmem:[#allocation143_spill] sm:$0xff] }
 0xaf2   :  { %3337 = vmatpush.bf16.msrb.mxu3 %v8622_v40  ;;  %3350 = vmatpush.bf16.msra.mxu0 %v8623_v58 }
 0xaf5   :  { %3312 = vmatpush.bf16.msrb.mxu1 %v8624_v22  ;;  %3325 = vmatpush.bf16.msrb.mxu2 %v8625_v6 }
 0xaf6   :  { %3338 = vmatpush.bf16.msrb.mxu3 %v8626_v33  ;;  %3351 = vmatpush.bf16.msra.mxu0 %v8627_v34 }
 0xaf9   :  { %3313 = vmatpush.bf16.msrb.mxu1 %v8628_v26  ;;  %3326 = vmatpush.bf16.msrb.mxu2 %v8629_v47 }
 0xafa   :  { %3339 = vmatpush.bf16.msrb.mxu3 %v8630_v23  ;;  %3352 = vmatpush.bf16.msra.mxu0 %v8631_v63 }
 0xb58   :  { %v3123_v32 = vpop.f32.mrf.mxu1 }
 0xb59   :  { %v3124_v40 = vadd.f32 %v3123_v32, %v7121_v14  ;;  %v3162_v58 = vpop.f32.mrf.mxu0  ;;  %v8635_v32 = vld [vmem:[#allocation110_spill] sm:$0xff] }
 0xb5a   :  { %v3163_v22 = vadd.f32 %v3162_v58, %v7127_v15 }
 0xb5b   :  { %v3166_v6 = vadd.f32 %v3124_v40, %v8632_v42 }
 0xb5c   :  { %v3169_v33 = vadd.f32 %v3163_v22, %v8633_v48 }
 0xb5d   :  { %v4809_v38 = vmul.f32 -1.442695, %v3166_v6 }
 0xb5e   :  { %v3136_v34 = vpop.f32.mrf.mxu2  ;;  %v4812_v44 = vmul.f32 -1.442695, %v3169_v33 }
 0xb5f   :  { %5169 = vpow2.f32 %v4809_v38  ;;  %v3137_v26 = vadd.f32 %v3136_v34, %v7123_v9  ;;  %v3149_v47 = vpop.f32.mrf.mxu3 }
 0xb60   :  { %v3150_v23 = vadd.f32 %v3149_v47, %v7125_v45  ;;  %v3125_v63 = vpop.f32.mrf.mxu1  ;;  %5171 = vpow2.f32 %v4812_v44 }
 0xb61   :  { %v3167_v37 = vadd.f32 %v3137_v26, %v8634_v30  ;;  %v3164_v14 = vpop.f32.mrf.mxu0 }
 0xb62   :  { %v3168_v51 = vadd.f32 %v3150_v23, %v8635_v32 }
 0xb63   :  { %v4810_v15 = vmul.f32 -1.442695, %v3167_v37 }
 0xb64   :  { %v4811_v40 = vmul.f32 -1.442695, %v3168_v51 }
 0xb65   :  { %v5170_v58 = vpop.eup %5169  ;;  %5173 = vpow2.f32 %v4810_v15 }
 0xb66   :  { %v3182_v22 = vadd.f32 1.0, %v5170_v58  ;;  %5175 = vpow2.f32 %v4811_v40  ;;  %v3138_v38 = vpop.f32.mrf.mxu2  ;;  %v5172_v9 = vpop.eup %5171 }
 0xb67   :  { %v3151_v6 = vpop.f32.mrf.mxu3  ;;  %v7241_v26 = vadd.f32 1.0, %v5172_v9 }
 0xb68   :  { %5177 = vrcp.f32 %v3182_v22  ;;  %vm3191_vm6 = vweird.f32 %v3182_v22 }
 0xb69   :  { %vm3236_vm13 = vweird.f32 %v7241_v26 }
 0xb6b   :  { %v5174_v34 = vpop.eup %5173 }
 0xb6c   :  { %v5176_v33 = vpop.eup %5175  ;;  %v3183_v45 = vadd.f32 1.0, %v5174_v34 }
 0xb6d   :  { %v3184_v47 = vadd.f32 1.0, %v5176_v33 }
 0xb6e   :  { %v5178_v63 = vpop.eup %5177  ;;  %5179 = vrcp.f32 %v3183_v45  ;;  %vm3206_vm1 = vweird.f32 %v3183_v45  ;;  %v3210_v32 = vand.u32 2147483647, %v3183_v45  ;;  %v3212_v24 = vand.u32 2147483648, %v3183_v45 }
 0xb6f   :  { %5181 = vrcp.f32 %v3184_v47  ;;  %v3187_v37 = vmul.f32 %v5178_v63, %v3182_v22  ;;  %v3227_v34 = vand.u32 2147483648, %v3184_v47  ;;  %v3225_v33 = vand.u32 2147483647, %v3184_v47 }
 0xb70   :  { %5183 = vrcp.f32 %v7241_v26  ;;  %vm3192_vm3 = vweird.f32 %v5178_v63  ;;  %vm3221_vm5 = vweird.f32 %v3184_v47  ;;  %vm3211_vm10 = vcmp.eq.f32.partialorder %v3210_v32, 8.507059e+37  ;;  %v8639_v32 = vld [vmem:[#allocation58_spill] sm:$0xff] }
 0xb71   :  { %v3188_v44 = vsub.f32 1.0, %v3187_v37  ;;  %vm3226_vm8 = vcmp.eq.f32.partialorder %v3225_v33, 8.507059e+37  ;;  %vm3193_vm9 = vmor %vm3191_vm6, %vm3192_vm3  ;;  %v8645_v33 = vld [vmem:[#allocation64_spill] sm:$0xff] }
 0xb73   :  { %v3189_v38 = vmul.f32 %v5178_v63, %v3188_v44 }
 0xb74   :  { %v5180_v51 = vpop.eup %5179 }
 0xb75   :  { %v5182_v23 = vpop.eup %5181  ;;  %v3202_v14 = vmul.f32 %v5180_v51, %v3183_v45  ;;  %vm3207_vm0 = vweird.f32 %v5180_v51  ;;  %v3190_v37 = vadd.f32 %v5178_v63, %v3189_v38  ;;  %v3213_v45 = vor.u32 1.1754944e-38, %v3212_v24 }
 0xb76   :  { %v3217_v15 = vmul.f32 %v5182_v23, %v3184_v47  ;;  %v5184_v58 = vpop.eup %5183  ;;  %vm3222_vm2 = vweird.f32 %v5182_v23  ;;  %vm7245_vm4 = vmor %vm3206_vm1, %vm3207_vm0 }
 0xb77   :  { %v3203_v40 = vsub.f32 1.0, %v3202_v14  ;;  %v3232_v42 = vmul.f32 %v5184_v58, %v7241_v26  ;;  %v3197_v14 = vand.u32 2147483648, %v3182_v22  ;;  %vm3223_vm7 = vmor %vm3221_vm5, %vm3222_vm2  ;;  %v3194_v19 = vsel %vm3193_vm9, %v5178_v63, %v3190_v37  ;;  %v8640_v63 = vld [vmem:[#allocation59_spill] sm:$0xff]  ;;  %v8646_v37 = vld [vmem:[#allocation65_spill] sm:$0xff] }
 0xb78   :  { %v3218_v6 = vsub.f32 1.0, %v3217_v15  ;;  %v3228_v15 = vor.u32 1.1754944e-38, %v3227_v34  ;;  %vm3237_vm12 = vweird.f32 %v5184_v58 }
 0xb79   :  { %v3204_v30 = vmul.f32 %v5180_v51, %v3203_v40  ;;  %v3195_v40 = vand.u32 2147483647, %v3182_v22  ;;  %v3198_v36 = vor.u32 1.1754944e-38, %v3197_v14  ;;  %vm3238_vm14 = vmor %vm3236_vm13, %vm3237_vm12  ;;  %v8648_v14 = vld [vmem:[#allocation67_spill] sm:$0xff] }
 0xb7a   :  { %v3219_v9 = vmul.f32 %v5182_v23, %v3218_v6 }
 0xb7b   :  { %v3205_v48 = vadd.f32 %v5180_v51, %v3204_v30  ;;  %v3233_v30 = vsub.f32 1.0, %v3232_v42  ;;  %vm3196_vm11 = vcmp.eq.f32.partialorder %v3195_v40, 8.507059e+37  ;;  %v3242_v42 = vand.u32 2147483648, %v7241_v26  ;;  %v8650_v40 = vld [vmem:[#allocation69_spill] sm:$0xff] }
 0xb7c   :  { %v3220_v44 = vadd.f32 %v5182_v23, %v3219_v9  ;;  %v3199_v4 = vsel %vm3196_vm11, %v3198_v36, %v3194_v19 }
 0xb7d   :  { %v3209_v6 = vsel %vm7245_vm4, %v5180_v51, %v3205_v48  ;;  %v3234_v5 = vmul.f32 %v5184_v58, %v3233_v30  ;;  %v8642_v51 = vld [vmem:[#allocation61_spill] sm:$0xff]  ;;  %v8652_v30 = vld [vmem:[#allocation71_spill] sm:$0xff] }
 0xb7e   :  { %v3224_v46 = vsel %vm3223_vm7, %v5182_v23, %v3220_v44  ;;  %v3214_v9 = vsel %vm3211_vm10, %v3213_v45, %v3209_v6  ;;  %v8643_v23 = vld [vmem:[#allocation62_spill] sm:$0xff]  ;;  %v8653_v45 = vld [vmem:[#allocation72_spill] sm:$0xff] }
 0xb7f   :  { %v3229_v38 = vsel %vm3226_vm8, %v3228_v15, %v3224_v46  ;;  %v3248_v22 = vmul.f32 %v3214_v9, %v7038_v57  ;;  %v3235_v48 = vadd.f32 %v5184_v58, %v3234_v5  ;;  %v3240_v46 = vand.u32 2147483647, %v7241_v26  ;;  %v8638_v5 = vld [vmem:[#allocation57_spill] sm:$0xff]  ;;  %v8641_v26 = vld [vmem:[#allocation60_spill] sm:$0xff]  ;;  %v8647_v44 = vld [vmem:[#allocation66_spill] sm:$0xff] }
 0xb80   :  { %v3246_v53 = vmul.f32 2.0, %v3229_v38  ;;  %v8649_v15 = vld [vmem:[#allocation68_spill] sm:$0xff]  ;;  %v8651_v6 = vld [vmem:[#allocation70_spill] sm:$0xff]  ;;  %v8654_v38 = vld [vmem:[#allocation73_spill] sm:$0xff] }
 0xb81   :  { %v3239_v24 = vsel %vm3238_vm14, %v5184_v58, %v3235_v48  ;;  %vm3241_vm15 = vcmp.eq.f32.partialorder %v3240_v46, 8.507059e+37  ;;  %v8644_v58 = vld [vmem:[#allocation63_spill] sm:$0xff]  ;;  %v8655_v9 = vld [vmem:[#allocation53_spill] sm:$0xff]  ;;  %v8661_v46 = vld [vmem:[#allocation54_spill] sm:$0xff] }
 0xb82   :  { %v4813_v47 = vadd.f32 -1.0, %v3246_v53  ;;  %v3243_v53 = vor.u32 1.1754944e-38, %v3242_v42  ;;  %v8659_v48 = vld [vmem:[#allocation77_spill] sm:$0xff]  ;;  %v8660_v42 = vld [vmem:[#allocation78_spill] sm:$0xff] }
 0xb84   :  { %v3249_v34 = vmul.f32 %v4813_v47, %v3199_v4  ;;  %v3244_v19 = vsel %vm3241_vm15, %v3243_v53, %v3239_v24  ;;  %v8656_v47 = vld [vmem:[#allocation74_spill] sm:$0xff]  ;;  %v8662_v24 = vld [vmem:[#allocation80_spill] sm:$0xff]  ;;  %v8663_v53 = vld [vmem:[#allocation81_spill] sm:$0xff] }
 0xb86   :  { %v7252_v12 = vadd.f32 %v3249_v34, %v3248_v22  ;;  %v8657_v22 = vld [vmem:[#allocation75_spill] sm:$0xff]  ;;  %v8658_v34 = vld [vmem:[#allocation76_spill] sm:$0xff] }
 0xb88   :  { %5185 = vtanh.f32 %v7252_v12 }
 0xb8e   :  { %v5186_v36 = vpop.eup %5185 }
 0xb8f   :  { %v3252_v57 = vmul.f32 %v5186_v36, %v3244_v19  ;;  %v8664_v36 = vld [vmem:[#allocation82_spill] sm:$0xff]  ;;  %v8665_v19 = vld [vmem:[#allocation144_spill] sm:$0xff] }
 0xb91   :  { %v3253_v4 = vpack.c.bf16 %v3252_v57, %v3252_v57  ;;  %v8666_v57 = vld [vmem:[#allocation84_spill] sm:$0xff] }
 0xb93   :  { %3262 = vmatmul.bf16.vlgmr.msra.gmra.mxu1 %v3253_v4  ;;  %3275 = vmatmul.bf16.vlgmr.msra.gmra.mxu2 %v3253_v4 }
 0xb94   :  { %3288 = vmatmul.bf16.vlgmr.msra.gmra.mxu3 %v3253_v4  ;;  %3301 = vmatmul.bf16.vlgmr.msrb.gmra.mxu0 %v3253_v4 }
 0xb95   :  { %3446 = vmatpush.bf16.msra.mxu1 %v5729_v59  ;;  %3459 = vmatpush.bf16.msra.mxu2 %v5731_v60 }
 0xb96   :  { %3472 = vmatpush.bf16.msra.mxu3 %v5733_v61  ;;  %3485 = vmatpush.bf16.msrb.mxu0 %v5736_v2 }
 0xb99   :  { %3447 = vmatpush.bf16.msra.mxu1 %v5742_v18  ;;  %3460 = vmatpush.bf16.msra.mxu2 %v8054_v62 }
 0xb9a   :  { %3473 = vmatpush.bf16.msra.mxu3 %v8055_v43  ;;  %3486 = vmatpush.bf16.msrb.mxu0 %v8056_v25 }
 0xb9d   :  { %3448 = vmatpush.bf16.msra.mxu1 %v8057_v50  ;;  %3461 = vmatpush.bf16.msra.mxu2 %v8058_v52 }
 0xb9e   :  { %3474 = vmatpush.bf16.msra.mxu3 %v8059_v20  ;;  %3487 = vmatpush.bf16.msrb.mxu0 %v8163_v13 }
 0xba1   :  { %3449 = vmatpush.bf16.msra.mxu1 %v8164_v28  ;;  %3462 = vmatpush.bf16.msra.mxu2 %v8638_v5 }
 0xba2   :  { %3475 = vmatpush.bf16.msra.mxu3 %v8639_v32  ;;  %3488 = vmatpush.bf16.msrb.mxu0 %v8640_v63 }
 0xba3   :  { %3314 = vmatmul.bf16.vlgmr.msrb.gmra.mxu1 %v3253_v4  ;;  %3327 = vmatmul.bf16.vlgmr.msrb.gmra.mxu2 %v3253_v4 }
 0xba4   :  { %3340 = vmatmul.bf16.vlgmr.msrb.gmra.mxu3 %v3253_v4  ;;  %3353 = vmatmul.bf16.vlgmr.msra.gmra.mxu0 %v3253_v4  ;;  %v8667_v4 = vld [vmem:[#allocation85_spill] sm:$0xff] }
 0xba5   :  { %3450 = vmatpush.bf16.msra.mxu1 %v8641_v26  ;;  %3463 = vmatpush.bf16.msra.mxu2 %v8642_v51 }
 0xba6   :  { %3476 = vmatpush.bf16.msra.mxu3 %v8643_v23  ;;  %3489 = vmatpush.bf16.msrb.mxu0 %v8644_v58 }
 0xba9   :  { %3451 = vmatpush.bf16.msra.mxu1 %v8645_v33  ;;  %3464 = vmatpush.bf16.msra.mxu2 %v8646_v37 }
 0xbaa   :  { %3477 = vmatpush.bf16.msra.mxu3 %v8647_v44  ;;  %3490 = vmatpush.bf16.msrb.mxu0 %v8648_v14 }
 0xbad   :  { %3452 = vmatpush.bf16.msra.mxu1 %v8649_v15  ;;  %3465 = vmatpush.bf16.msra.mxu2 %v8650_v40 }
 0xbae   :  { %3478 = vmatpush.bf16.msra.mxu3 %v8651_v6  ;;  %3491 = vmatpush.bf16.msrb.mxu0 %v8652_v30 }
 0xbb1   :  { %3453 = vmatpush.bf16.msra.mxu1 %v8653_v45  ;;  %3466 = vmatpush.bf16.msra.mxu2 %v8654_v38  ;;  %v8689_v38 = vld [vmem:[#allocation49_spill] sm:$0xff]  ;;  %v8690_v45 = vld [vmem:[#allocation52_spill] sm:$0xff] }
 0xbb2   :  { %3479 = vmatpush.bf16.msra.mxu3 %v8656_v47  ;;  %3492 = vmatpush.bf16.msrb.mxu0 %v8657_v22 }
 0xbb5   :  { %3499 = vmatpush.bf16.msrb.mxu1 %v8655_v9  ;;  %3513 = vmatpush.bf16.msrb.mxu2 %v8658_v34  ;;  %v8668_v9 = vld [vmem:[#allocation86_spill] sm:$0xff]  ;;  %v8669_v34 = vld [vmem:[#allocation145_spill] sm:$0xff] }
 0xbb6   :  { %3526 = vmatpush.bf16.msrb.mxu3 %v8659_v48  ;;  %3539 = vmatpush.bf16.msra.mxu0 %v8660_v42  ;;  %v8670_v48 = vld [vmem:[#allocation88_spill] sm:$0xff]  ;;  %v8671_v42 = vld [vmem:[#allocation89_spill] sm:$0xff] }
 0xbb9   :  { %3500 = vmatpush.bf16.msrb.mxu1 %v8661_v46  ;;  %3514 = vmatpush.bf16.msrb.mxu2 %v8662_v24  ;;  %v8672_v46 = vld [vmem:[#allocation90_spill] sm:$0xff] }
 0xbba   :  { %3527 = vmatpush.bf16.msrb.mxu3 %v8663_v53  ;;  %3540 = vmatpush.bf16.msra.mxu0 %v8664_v36  ;;  %v8673_v24 = vld [vmem:[#allocation146_spill] sm:$0xff]  ;;  %v8674_v53 = vld [vmem:[#allocation92_spill] sm:$0xff]  ;;  %v8675_v36 = vld [vmem:[#allocation93_spill] sm:$0xff] }
 0xbbd   :  { %3501 = vmatpush.bf16.msrb.mxu1 %v8665_v19  ;;  %3515 = vmatpush.bf16.msrb.mxu2 %v8666_v57  ;;  %v8676_v19 = vld [vmem:[#allocation94_spill] sm:$0xff]  ;;  %v8677_v57 = vld [vmem:[#allocation147_spill] sm:$0xff] }
 0xbbe   :  { %3528 = vmatpush.bf16.msrb.mxu3 %v8667_v4  ;;  %3541 = vmatpush.bf16.msra.mxu0 %v8668_v9  ;;  %v8678_v4 = vld [vmem:[#allocation96_spill] sm:$0xff]  ;;  %v8679_v9 = vld [vmem:[#allocation97_spill] sm:$0xff] }
 0xbc1   :  { %3502 = vmatpush.bf16.msrb.mxu1 %v8669_v34  ;;  %3516 = vmatpush.bf16.msrb.mxu2 %v8670_v48  ;;  %v8680_v34 = vld [vmem:[#allocation98_spill] sm:$0xff]  ;;  %v8681_v48 = vld [vmem:[#allocation79_spill] sm:$0xff] }
 0xbc2   :  { %3529 = vmatpush.bf16.msrb.mxu3 %v8671_v42  ;;  %3542 = vmatpush.bf16.msra.mxu0 %v8672_v46  ;;  %v8682_v42 = vld [vmem:[#allocation100_spill] sm:$0xff]  ;;  %v8683_v46 = vld [vmem:[#allocation101_spill] sm:$0xff] }
 0xbc5   :  { %3503 = vmatpush.bf16.msrb.mxu1 %v8673_v24  ;;  %3517 = vmatpush.bf16.msrb.mxu2 %v8674_v53  ;;  %v8684_v24 = vld [vmem:[#allocation102_spill] sm:$0xff]  ;;  %v8685_v53 = vld [vmem:[#allocation83_spill] sm:$0xff] }
 0xbc6   :  { %3530 = vmatpush.bf16.msrb.mxu3 %v8675_v36  ;;  %3543 = vmatpush.bf16.msra.mxu0 %v8676_v19  ;;  %v8686_v36 = vld [vmem:[#allocation104_spill] sm:$0xff]  ;;  %v8687_v19 = vld [vmem:[#allocation105_spill] sm:$0xff] }
 0xbc9   :  { %3504 = vmatpush.bf16.msrb.mxu1 %v8677_v57  ;;  %3518 = vmatpush.bf16.msrb.mxu2 %v8678_v4  ;;  %v8688_v57 = vld [vmem:[#allocation106_spill] sm:$0xff] }
 0xbca   :  { %3531 = vmatpush.bf16.msrb.mxu3 %v8679_v9  ;;  %3544 = vmatpush.bf16.msra.mxu0 %v8680_v34 }
 0xbcd   :  { %3505 = vmatpush.bf16.msrb.mxu1 %v8681_v48  ;;  %3519 = vmatpush.bf16.msrb.mxu2 %v8682_v42 }
 0xbce   :  { %3532 = vmatpush.bf16.msrb.mxu3 %v8683_v46  ;;  %3545 = vmatpush.bf16.msra.mxu0 %v8684_v24 }
 0xbd1   :  { %3506 = vmatpush.bf16.msrb.mxu1 %v8685_v53  ;;  %3520 = vmatpush.bf16.msrb.mxu2 %v8686_v36 }
 0xbd2   :  { %3533 = vmatpush.bf16.msrb.mxu3 %v8687_v19  ;;  %3546 = vmatpush.bf16.msra.mxu0 %v8688_v57 }
 0xc10   :  { %v7322_v4 = vpop.f32.mrf.mxu1 }
 0xc11   :  { %v7324_v9 = vpop.f32.mrf.mxu0 }
 0xc16   :  { %v7326_v34 = vpop.f32.mrf.mxu2 }
 0xc17   :  { %v7328_v48 = vpop.f32.mrf.mxu3 }
 0xc18   :  { %v3265_v42 = vpop.f32.mrf.mxu1 }
 0xc19   :  { %v3304_v46 = vpop.f32.mrf.mxu0 }
 0xc1e   :  { %v3278_v22 = vpop.f32.mrf.mxu2 }
 0xc1f   :  { %v3291_v24 = vpop.f32.mrf.mxu3 }
 0xc20   :  { %v3315_v47 = vpop.f32.mrf.mxu1  ;;  %v8691_v24 = vld [vmem:[#allocation50_spill] sm:$0xff] }
 0xc21   :  { %v3316_v53 = vadd.f32 %v3315_v47, %v7187_v27  ;;  %v3354_v36 = vpop.f32.mrf.mxu0  ;;  %v8692_v47 = vld [vmem:[#allocation51_spill] sm:$0xff] }
 0xc22   :  { %v3355_v19 = vadd.f32 %v3354_v36, %v7193_v1 }
 0xc23   :  { %v3358_v57 = vadd.f32 %v3316_v53, %v8689_v38 }
 0xc24   :  { %v3361_v30 = vadd.f32 %v3355_v19, %v8690_v45 }
 0xc25   :  { %v4814_v6 = vmul.f32 -1.442695, %v3358_v57 }
 0xc26   :  { %v3328_v40 = vpop.f32.mrf.mxu2  ;;  %v4817_v42 = vmul.f32 -1.442695, %v3361_v30 }
 0xc27   :  { %5187 = vpow2.f32 %v4814_v6  ;;  %v3329_v15 = vadd.f32 %v3328_v40, %v7189_v55  ;;  %v3341_v14 = vpop.f32.mrf.mxu3 }
 0xc28   :  { %v3342_v22 = vadd.f32 %v3341_v14, %v7191_v0  ;;  %v3317_v46 = vpop.f32.mrf.mxu1  ;;  %5189 = vpow2.f32 %v4817_v42 }
 0xc29   :  { %v3359_v44 = vadd.f32 %v3329_v15, %v8691_v24  ;;  %v3356_v27 = vpop.f32.mrf.mxu0 }
 0xc2a   :  { %v3360_v37 = vadd.f32 %v3342_v22, %v8692_v47 }
 0xc2b   :  { %v4815_v1 = vmul.f32 -1.442695, %v3359_v44 }
 0xc2c   :  { %v4816_v36 = vmul.f32 -1.442695, %v3360_v37 }
 0xc2d   :  { %v5188_v53 = vpop.eup %5187  ;;  %5191 = vpow2.f32 %v4815_v1 }
 0xc2e   :  { %v3374_v19 = vadd.f32 1.0, %v5188_v53  ;;  %5193 = vpow2.f32 %v4816_v36  ;;  %v3330_v6 = vpop.f32.mrf.mxu2  ;;  %v5190_v55 = vpop.eup %5189 }
 0xc2f   :  { %v3343_v57 = vpop.f32.mrf.mxu3  ;;  %v7338_v15 = vadd.f32 1.0, %v5190_v55 }
 0xc30   :  { %5195 = vrcp.f32 %v3374_v19  ;;  %vm3383_vm6 = vweird.f32 %v3374_v19 }
 0xc31   :  { %vm3428_vm13 = vweird.f32 %v7338_v15 }
 0xc33   :  { %v5192_v40 = vpop.eup %5191 }
 0xc34   :  { %v5194_v30 = vpop.eup %5193  ;;  %v3375_v0 = vadd.f32 1.0, %v5192_v40 }
 0xc35   :  { %v3376_v14 = vadd.f32 1.0, %v5194_v30 }
 0xc36   :  { %v5196_v46 = vpop.eup %5195  ;;  %5197 = vrcp.f32 %v3375_v0  ;;  %vm3398_vm1 = vweird.f32 %v3375_v0  ;;  %v3402_v47 = vand.u32 2147483647, %v3375_v0  ;;  %v3404_v33 = vand.u32 2147483648, %v3375_v0 }
 0xc37   :  { %5199 = vrcp.f32 %v3376_v14  ;;  %v3379_v44 = vmul.f32 %v5196_v46, %v3374_v19  ;;  %v3419_v40 = vand.u32 2147483648, %v3376_v14  ;;  %v3417_v30 = vand.u32 2147483647, %v3376_v14 }
 0xc38   :  { %5201 = vrcp.f32 %v7338_v15  ;;  %vm3384_vm3 = vweird.f32 %v5196_v46  ;;  %vm3413_vm5 = vweird.f32 %v3376_v14  ;;  %vm3403_vm10 = vcmp.eq.f32.partialorder %v3402_v47, 8.507059e+37  ;;  %v8707_v47 = vld [vmem:[#allocation43_spill] sm:$0xff] }
 0xc39   :  { %v3380_v42 = vsub.f32 1.0, %v3379_v44  ;;  %vm3418_vm8 = vcmp.eq.f32.partialorder %v3417_v30, 8.507059e+37  ;;  %vm3385_vm9 = vmor %vm3383_vm6, %vm3384_vm3  ;;  %v8713_v30 = vld [vmem:[#allocation25_spill] sm:$0xff] }
 0xc3b   :  { %v3381_v6 = vmul.f32 %v5196_v46, %v3380_v42 }
 0xc3c   :  { %v5198_v37 = vpop.eup %5197 }
 0xc3d   :  { %v5200_v22 = vpop.eup %5199  ;;  %v3394_v27 = vmul.f32 %v5198_v37, %v3375_v0  ;;  %vm3399_vm0 = vweird.f32 %v5198_v37  ;;  %v3382_v44 = vadd.f32 %v5196_v46, %v3381_v6  ;;  %v3405_v0 = vor.u32 1.1754944e-38, %v3404_v33 }
 0xc3e   :  { %v3409_v1 = vmul.f32 %v5200_v22, %v3376_v14  ;;  %v5202_v53 = vpop.eup %5201  ;;  %vm3414_vm2 = vweird.f32 %v5200_v22  ;;  %vm7342_vm4 = vmor %vm3398_vm1, %vm3399_vm0 }
 0xc3f   :  { %v3395_v36 = vsub.f32 1.0, %v3394_v27  ;;  %v3424_v38 = vmul.f32 %v5202_v53, %v7338_v15  ;;  %v3389_v27 = vand.u32 2147483648, %v3374_v19  ;;  %vm3415_vm7 = vmor %vm3413_vm5, %vm3414_vm2  ;;  %v3386_v51 = vsel %vm3385_vm9, %v5196_v46, %v3382_v44  ;;  %v8708_v46 = vld [vmem:[#allocation107_spill] sm:$0xff]  ;;  %v8714_v44 = vld [vmem:[#allocation28_spill] sm:$0xff] }
 0xc40   :  { %v3410_v57 = vsub.f32 1.0, %v3409_v1  ;;  %v3420_v1 = vor.u32 1.1754944e-38, %v3419_v40  ;;  %vm3429_vm12 = vweird.f32 %v5202_v53 }
 0xc41   :  { %v3396_v24 = vmul.f32 %v5198_v37, %v3395_v36  ;;  %v3387_v36 = vand.u32 2147483647, %v3374_v19  ;;  %v3390_v63 = vor.u32 1.1754944e-38, %v3389_v27  ;;  %vm3430_vm14 = vmor %vm3428_vm13, %vm3429_vm12  ;;  %v8716_v27 = vld [vmem:[#allocation36_spill] sm:$0xff] }
 0xc42   :  { %v3411_v55 = vmul.f32 %v5200_v22, %v3410_v57 }
 0xc43   :  { %v3397_v45 = vadd.f32 %v5198_v37, %v3396_v24  ;;  %v3425_v24 = vsub.f32 1.0, %v3424_v38  ;;  %vm3388_vm11 = vcmp.eq.f32.partialorder %v3387_v36, 8.507059e+37  ;;  %v3434_v38 = vand.u32 2147483648, %v7338_v15  ;;  %v8718_v36 = vld [vmem:[#allocation44_spill] sm:$0xff] }
 0xc44   :  { %v3412_v42 = vadd.f32 %v5200_v22, %v3411_v55  ;;  %v3391_v32 = vsel %vm3388_vm11, %v3390_v63, %v3386_v51 }
 0xc45   :  { %v3401_v57 = vsel %vm7342_vm4, %v5198_v37, %v3397_v45  ;;  %v3426_v5 = vmul.f32 %v5202_v53, %v3425_v24  ;;  %v8710_v37 = vld [vmem:[#allocation24_spill] sm:$0xff] }
 0xc46   :  { %v3416_v23 = vsel %vm3415_vm7, %v5200_v22, %v3412_v42  ;;  %v3406_v55 = vsel %vm3403_vm10, %v3405_v0, %v3401_v57  ;;  %v8711_v22 = vld [vmem:[#allocation46_spill] sm:$0xff]  ;;  %v8715_v42 = vld [vmem:[#allocation32_spill] sm:$0xff] }
 0xc47   :  { %v3421_v6 = vsel %vm3418_vm8, %v3420_v1, %v3416_v23  ;;  %v3440_v19 = vmul.f32 %v3406_v55, %v7144_v10  ;;  %v3427_v45 = vadd.f32 %v5202_v53, %v3426_v5  ;;  %v3432_v23 = vand.u32 2147483647, %v7338_v15  ;;  %v8706_v5 = vld [vmem:[#allocation42_spill] sm:$0xff]  ;;  %v8709_v15 = vld [vmem:[#allocation45_spill] sm:$0xff]  ;;  %v8717_v1 = vld [vmem:[#allocation40_spill] sm:$0xff] }
 0xc48   :  { %v3438_v26 = vmul.f32 2.0, %v3421_v6  ;;  %v8719_v57 = vld [vmem:[#allocation48_spill] sm:$0xff] }
 0xc49   :  { %v3431_v33 = vsel %vm3430_vm14, %v5202_v53, %v3427_v45  ;;  %vm3433_vm15 = vcmp.eq.f32.partialorder %v3432_v23, 8.507059e+37  ;;  %v8712_v53 = vld [vmem:[#allocation47_spill] sm:$0xff] }
 0xc4a   :  { %v4818_v14 = vadd.f32 -1.0, %v3438_v26  ;;  %v3435_v26 = vor.u32 1.1754944e-38, %v3434_v38  ;;  %v8720_v23 = vld [vmem:[#allocation87_spill] sm:$0xff] }
 0xc4c   :  { %v3441_v40 = vmul.f32 %v4818_v14, %v3391_v32  ;;  %v3436_v51 = vsel %vm3433_vm15, %v3435_v26, %v3431_v33 }
 0xc4e   :  { %v7349_v58 = vadd.f32 %v3441_v40, %v3440_v19 }
 0xc50   :  { %5203 = vtanh.f32 %v7349_v58 }
 0xc56   :  { %v5204_v63 = vpop.eup %5203 }
 0xc57   :  { %v3444_v10 = vmul.f32 %v5204_v63, %v3436_v51  ;;  %v8721_v63 = vld [vmem:[#allocation112_spill] sm:$0xff]  ;;  %v8722_v51 = vld [vmem:[#allocation113_spill] sm:$0xff] }
 0xc59   :  { %v3445_v32 = vpack.c.bf16 %v3444_v10, %v3444_v10  ;;  %3498 = vst [vmem:[#allocation2 + $0x5] sm:$0x1] %v3444_v10 }
 0xc5b   :  { %3454 = vmatmul.bf16.vlgmr.msra.gmra.mxu1 %v3445_v32  ;;  %3467 = vmatmul.bf16.vlgmr.msra.gmra.mxu2 %v3445_v32 }
 0xc5c   :  { %3480 = vmatmul.bf16.vlgmr.msra.gmra.mxu3 %v3445_v32  ;;  %3493 = vmatmul.bf16.vlgmr.msrb.gmra.mxu0 %v3445_v32 }
 0xc5d   :  { %3552 = vmatpush.bf16.msra.mxu1 %v8104_v41  ;;  %3653 = vmatpush.bf16.msra.mxu2 %v5637_v3  ;;  %v8695_v3 = vld [vmem:[#allocation31_spill] sm:$0xff] }
 0xc5e   :  { %3666 = vmatpush.bf16.msra.mxu3 %v5639_v7  ;;  %3679 = vmatpush.bf16.msrb.mxu0 %v5641_v8  ;;  %v8696_v7 = vld [vmem:[#allocation95_spill] sm:$0xff]  ;;  %v8697_v8 = vld [vmem:[#allocation33_spill] sm:$0xff] }
 0xc61   :  { %3553 = vmatpush.bf16.msra.mxu1 %v8105_v11  ;;  %3654 = vmatpush.bf16.msra.mxu2 %v5648_v16  ;;  %v8698_v16 = vld [vmem:[#allocation34_spill] sm:$0xff] }
 0xc62   :  { %3667 = vmatpush.bf16.msra.mxu3 %v5650_v17  ;;  %3680 = vmatpush.bf16.msrb.mxu0 %v5653_v21  ;;  %v8699_v17 = vld [vmem:[#allocation35_spill] sm:$0xff] }
 0xc63   :  { %v8700_v21 = vld [vmem:[#allocation99_spill] sm:$0xff] }
 0xc65   :  { %3554 = vmatpush.bf16.msra.mxu1 %v8106_v31  ;;  %3655 = vmatpush.bf16.msra.mxu2 %v5658_v29  ;;  %v8701_v29 = vld [vmem:[#allocation37_spill] sm:$0xff] }
 0xc66   :  { %3668 = vmatpush.bf16.msra.mxu3 %v8107_v54  ;;  %3681 = vmatpush.bf16.msrb.mxu0 %v8108_v49  ;;  %v8702_v54 = vld [vmem:[#allocation38_spill] sm:$0xff]  ;;  %v8703_v49 = vld [vmem:[#allocation39_spill] sm:$0xff] }
 0xc69   :  { %3555 = vmatpush.bf16.msra.mxu1 %v8109_v35  ;;  %3656 = vmatpush.bf16.msra.mxu2 %v8110_v56  ;;  %v8704_v56 = vld [vmem:[#allocation103_spill] sm:$0xff] }
 0xc6a   :  { %3669 = vmatpush.bf16.msra.mxu3 %v8111_v39  ;;  %3682 = vmatpush.bf16.msrb.mxu0 %v8695_v3  ;;  %v8705_v39 = vld [vmem:[#allocation41_spill] sm:$0xff]  ;;  %v8724_v3 = vld [vmem:[#allocation115_spill] sm:$0xff] }
 0xc6b   :  { %3507 = vmatmul.bf16.vlgmr.msrb.gmra.mxu1 %v3445_v32  ;;  %v8723_v32 = vld [vmem:[#allocation114_spill] sm:$0xff] }
 0xc6d   :  { %3556 = vmatpush.bf16.msra.mxu1 %v8696_v7  ;;  %3657 = vmatpush.bf16.msra.mxu2 %v8697_v8  ;;  %v8725_v8 = vld [vmem:[#allocation116_spill] sm:$0xff] }
 0xc6e   :  { %3670 = vmatpush.bf16.msra.mxu3 %v8698_v16  ;;  %3683 = vmatpush.bf16.msrb.mxu0 %v8699_v17  ;;  %v8726_v16 = vld [vmem:[#allocation117_spill] sm:$0xff]  ;;  %v8727_v17 = vld [vmem:[#allocation118_spill] sm:$0xff] }
 0xc71   :  { %3557 = vmatpush.bf16.msra.mxu1 %v8700_v21  ;;  %3658 = vmatpush.bf16.msra.mxu2 %v8701_v29  ;;  %v8728_v29 = vld [vmem:[#allocation119_spill] sm:$0xff] }
 0xc72   :  { %3671 = vmatpush.bf16.msra.mxu3 %v8702_v54  ;;  %3684 = vmatpush.bf16.msrb.mxu0 %v8703_v49  ;;  %v8729_v54 = vld [vmem:[#allocation120_spill] sm:$0xff]  ;;  %v8730_v49 = vld [vmem:[#allocation121_spill] sm:$0xff] }
 0xc75   :  { %3558 = vmatpush.bf16.msra.mxu1 %v8704_v56  ;;  %3659 = vmatpush.bf16.msra.mxu2 %v8705_v39  ;;  %v8731_v39 = vld [vmem:[#allocation122_spill] sm:$0xff]  ;;  %v8756_v56 = vld [vmem:[#allocation109_spill] sm:$0xff] }
 0xc76   :  { %3672 = vmatpush.bf16.msra.mxu3 %v8706_v5  ;;  %3685 = vmatpush.bf16.msrb.mxu0 %v8707_v47  ;;  %v8732_v5 = vld [vmem:[#allocation123_spill] sm:$0xff]  ;;  %v8733_v47 = vld [vmem:[#allocation124_spill] sm:$0xff] }
 0xc79   :  { %3559 = vmatpush.bf16.msra.mxu1 %v8708_v46  ;;  %3660 = vmatpush.bf16.msra.mxu2 %v8709_v15  ;;  %v8734_v15 = vld [vmem:[#allocation125_spill] sm:$0xff] }
 0xc7a   :  { %3673 = vmatpush.bf16.msra.mxu3 %v8711_v22  ;;  %3686 = vmatpush.bf16.msrb.mxu0 %v8712_v53  ;;  %v8736_v22 = vld [vmem:[#allocation127_spill] sm:$0xff]  ;;  %v8737_v53 = vld [vmem:[#allocation128_spill] sm:$0xff] }
 0xc7d   :  { %3692 = vmatpush.bf16.msrb.mxu1 %v8710_v37  ;;  %v8735_v37 = vld [vmem:[#allocation126_spill] sm:$0xff] }
 0xc81   :  { %3693 = vmatpush.bf16.msrb.mxu1 %v8713_v30  ;;  %v8738_v30 = vld [vmem:[#allocation129_spill] sm:$0xff] }
 0xc85   :  { %3694 = vmatpush.bf16.msrb.mxu1 %v8714_v44  ;;  %v8739_v44 = vld [vmem:[#allocation130_spill] sm:$0xff] }
 0xc89   :  { %3695 = vmatpush.bf16.msrb.mxu1 %v8715_v42  ;;  %v8740_v42 = vld [vmem:[#allocation131_spill] sm:$0xff] }
 0xc8d   :  { %3696 = vmatpush.bf16.msrb.mxu1 %v8716_v27  ;;  %v8741_v27 = vld [vmem:[#allocation132_spill] sm:$0xff] }
 0xc91   :  { %3697 = vmatpush.bf16.msrb.mxu1 %v8717_v1  ;;  %v8742_v1 = vld [vmem:[#allocation133_spill] sm:$0xff] }
 0xc95   :  { %3698 = vmatpush.bf16.msrb.mxu1 %v8718_v36  ;;  %v8743_v36 = vld [vmem:[#allocation134_spill] sm:$0xff] }
 0xc99   :  { %3699 = vmatpush.bf16.msrb.mxu1 %v8719_v57  ;;  %v8744_v57 = vld [vmem:[#allocation135_spill] sm:$0xff] }
 0xcd8   :  { %v7395_v24 = vpop.f32.mrf.mxu1 }
 0xcd9   :  { %v7397_v0 = vpop.f32.mrf.mxu0 }
 0xcde   :  { %v7399_v6 = vpop.f32.mrf.mxu2 }
 0xcdf   :  { %v7401_v55 = vpop.f32.mrf.mxu3 }
 0xce0   :  { %v3457_v14 = vpop.f32.mrf.mxu1 }
 0xce1   :  { %v3496_v19 = vpop.f32.mrf.mxu0  ;;  %v8745_v14 = vld [vmem:[#allocation136_spill] sm:$0xff] }
 0xce2   :  { %v8746_v19 = vld [vmem:[#allocation137_spill] sm:$0xff] }
 0xce6   :  { %v3470_v40 = vpop.f32.mrf.mxu2 }
 0xce7   :  { %v3483_v45 = vpop.f32.mrf.mxu3  ;;  %v8747_v40 = vld [vmem:[#allocation138_spill] sm:$0xff] }
 0xce8   :  { %v3508_v38 = vpop.f32.mrf.mxu1  ;;  %v8748_v45 = vld [vmem:[#allocation139_spill] sm:$0xff] }
 0xce9   :  { %v3509_v33 = vadd.f32 %v8720_v23, %v3508_v38  ;;  %v8749_v38 = vld [vmem:[#allocation140_spill] sm:$0xff]  ;;  %v8750_v23 = vld [vmem:[#allocation141_spill] sm:$0xff] }
 0xceb   :  { %v3512_v26 = vpack.c.bf16 %v3509_v33, %v3509_v33  ;;  %v8751_v33 = vld [vmem:[#allocation142_spill] sm:$0xff] }
 0xced   :  { %3521 = vmatmul.bf16.vlgmr.msrb.gmra.mxu2 %v3512_v26  ;;  %3534 = vmatmul.bf16.vlgmr.msrb.gmra.mxu3 %v3512_v26 }
 0xcee   :  { %3547 = vmatmul.bf16.vlgmr.msra.gmra.mxu0 %v3512_v26  ;;  %3560 = vmatmul.bf16.vlgmr.msra.gmra.mxu1 %v3512_v26  ;;  %v8752_v26 = vld [vmem:[#allocation143_spill] sm:$0xff] }
 0xcef   :  { %3705 = vmatpush.bf16.msrb.mxu2 %v8721_v63  ;;  %3718 = vmatpush.bf16.msrb.mxu3 %v8722_v51 }
 0xcf0   :  { %v3510_v10 = vpop.f32.mrf.mxu1  ;;  %3731 = vmatpush.bf16.msra.mxu0 %v8723_v32  ;;  %3744 = vmatpush.bf16.msra.mxu1 %v8724_v3  ;;  %v8754_v3 = vld [vmem:[#allocation111_spill] sm:$0xff] }
 0xcf3   :  { %3706 = vmatpush.bf16.msrb.mxu2 %v8725_v8  ;;  %3719 = vmatpush.bf16.msrb.mxu3 %v8726_v16 }
 0xcf4   :  { %3732 = vmatpush.bf16.msra.mxu0 %v8727_v17  ;;  %3745 = vmatpush.bf16.msra.mxu1 %v8728_v29 }
 0xcf7   :  { %3707 = vmatpush.bf16.msrb.mxu2 %v8729_v54  ;;  %3720 = vmatpush.bf16.msrb.mxu3 %v8730_v49 }
 0xcf8   :  { %3733 = vmatpush.bf16.msra.mxu0 %v8731_v39  ;;  %3746 = vmatpush.bf16.msra.mxu1 %v8732_v5  ;;  %v8753_v5 = vld [vmem:[#allocation110_spill] sm:$0xff] }
 0xcfb   :  { %3708 = vmatpush.bf16.msrb.mxu2 %v8733_v47  ;;  %3721 = vmatpush.bf16.msrb.mxu3 %v8734_v15 }
 0xcfc   :  { %3734 = vmatpush.bf16.msra.mxu0 %v8735_v37  ;;  %3747 = vmatpush.bf16.msra.mxu1 %v8736_v22 }
 0xcff   :  { %3709 = vmatpush.bf16.msrb.mxu2 %v8737_v53  ;;  %3722 = vmatpush.bf16.msrb.mxu3 %v8738_v30 }
 0xd00   :  { %3735 = vmatpush.bf16.msra.mxu0 %v8739_v44  ;;  %3748 = vmatpush.bf16.msra.mxu1 %v8740_v42 }
 0xd03   :  { %3710 = vmatpush.bf16.msrb.mxu2 %v8741_v27  ;;  %3723 = vmatpush.bf16.msrb.mxu3 %v8742_v1 }
 0xd04   :  { %3736 = vmatpush.bf16.msra.mxu0 %v8743_v36  ;;  %3749 = vmatpush.bf16.msra.mxu1 %v8744_v57 }
 0xd07   :  { %3711 = vmatpush.bf16.msrb.mxu2 %v8745_v14  ;;  %3724 = vmatpush.bf16.msrb.mxu3 %v8746_v19 }
 0xd08   :  { %3737 = vmatpush.bf16.msra.mxu0 %v8747_v40  ;;  %3750 = vmatpush.bf16.msra.mxu1 %v8748_v45 }
 0xd0b   :  { %3712 = vmatpush.bf16.msrb.mxu2 %v8749_v38  ;;  %3725 = vmatpush.bf16.msrb.mxu3 %v8750_v23 }
 0xd0c   :  { %3738 = vmatpush.bf16.msra.mxu0 %v8751_v33  ;;  %3751 = vmatpush.bf16.msra.mxu1 %v8752_v26  ;;  %v8755_v26 = vld [vmem:[#allocation108_spill] sm:$0xff] }
 0xd6b   :  { %v3548_v10 = vpop.f32.mrf.mxu0  ;;  %v3561_v42 = vpop.f32.mrf.mxu1 }
 0xd6c   :  { %v3549_v57 = vadd.f32 %v3548_v10, %v7328_v48  ;;  %v3562_v22 = vadd.f32 %v3561_v42, %v7324_v9 }
 0xd6e   :  { %v3567_v29 = vadd.f32 %v3549_v57, %v8753_v5  ;;  %v3568_v46 = vadd.f32 %v3562_v22, %v8754_v3 }
 0xd70   :  { %v4821_v40 = vmul.f32 -1.442695, %v3567_v29  ;;  %v4822_v45 = vmul.f32 -1.442695, %v3568_v46  ;;  %v3522_v19 = vpop.f32.mrf.mxu2  ;;  %v3535_v38 = vpop.f32.mrf.mxu3 }
 0xd71   :  { %v3523_v23 = vadd.f32 %v3522_v19, %v7322_v4  ;;  %v3536_v33 = vadd.f32 %v3535_v38, %v7326_v34 }
 0xd72   :  { %5205 = vpow2.f32 %v4821_v40 }
 0xd73   :  { %5207 = vpow2.f32 %v4822_v45  ;;  %v3565_v14 = vadd.f32 %v3523_v23, %v8755_v26  ;;  %v3566_v48 = vadd.f32 %v3536_v33, %v8756_v56  ;;  %v3550_v10 = vpop.f32.mrf.mxu0  ;;  %v3563_v9 = vpop.f32.mrf.mxu1 }
 0xd75   :  { %v4819_v42 = vmul.f32 -1.442695, %v3565_v14  ;;  %v4820_v57 = vmul.f32 -1.442695, %v3566_v48 }
 0xd77   :  { %5209 = vpow2.f32 %v4819_v42 }
 0xd78   :  { %v5206_v22 = vpop.eup %5205  ;;  %5211 = vpow2.f32 %v4820_v57  ;;  %v3524_v46 = vpop.f32.mrf.mxu2 }
 0xd79   :  { %v3537_v29 = vpop.f32.mrf.mxu3  ;;  %v5208_v3 = vpop.eup %5207  ;;  %v3583_v5 = vadd.f32 1.0, %v5206_v22 }
 0xd7a   :  { %v7444_v4 = vadd.f32 1.0, %v5208_v3 }
 0xd7b   :  { %5213 = vrcp.f32 %v3583_v5  ;;  %v3624_v48 = vand.u32 2147483647, %v3583_v5  ;;  %v3626_v10 = vand.u32 2147483648, %v3583_v5  ;;  %vm3620_vm1 = vweird.f32 %v3583_v5 }
 0xd7c   :  { %5215 = vrcp.f32 %v7444_v4  ;;  %vm3635_vm13 = vweird.f32 %v7444_v4 }
 0xd7d   :  { %v5210_v34 = vpop.eup %5209  ;;  %vm3625_vm3 = vcmp.eq.f32.partialorder %v3624_v48, 8.507059e+37  ;;  %v3627_v29 = vor.u32 1.1754944e-38, %v3626_v10 }
 0xd7e   :  { %v5212_v19 = vpop.eup %5211  ;;  %v3581_v40 = vadd.f32 1.0, %v5210_v34 }
 0xd7f   :  { %v3582_v45 = vadd.f32 1.0, %v5212_v19 }
 0xd80   :  { %5217 = vrcp.f32 %v3581_v40  ;;  %v3594_v56 = vand.u32 2147483647, %v3581_v40  ;;  %vm3590_vm6 = vweird.f32 %v3581_v40 }
 0xd81   :  { %v5214_v38 = vpop.eup %5213  ;;  %5219 = vrcp.f32 %v3582_v45  ;;  %vm3605_vm8 = vweird.f32 %v3582_v45 }
 0xd82   :  { %v3616_v14 = vmul.f32 %v5214_v38, %v3583_v5  ;;  %v5216_v33 = vpop.eup %5215  ;;  %vm3621_vm0 = vweird.f32 %v5214_v38  ;;  %vm3595_vm9 = vcmp.eq.f32.partialorder %v3594_v56, 8.507059e+37 }
 0xd83   :  { %vm3622_vm2 = vmor %vm3620_vm1, %vm3621_vm0  ;;  %v3631_v34 = vmul.f32 %v5216_v33, %v7444_v4  ;;  %vm3636_vm12 = vweird.f32 %v5216_v33 }
 0xd84   :  { %v3617_v23 = vsub.f32 1.0, %v3616_v14  ;;  %v3596_v14 = vand.u32 2147483648, %v3581_v40  ;;  %vm3637_vm14 = vmor %vm3635_vm13, %vm3636_vm12 }
 0xd85   :  { %v3632_v5 = vsub.f32 1.0, %v3631_v34 }
 0xd86   :  { %v5218_v9 = vpop.eup %5217  ;;  %v3618_v42 = vmul.f32 %v5214_v38, %v3617_v23  ;;  %v3611_v23 = vand.u32 2147483648, %v3582_v45  ;;  %v3597_v48 = vor.u32 1.1754944e-38, %v3596_v14  ;;  %v8773_v14 = vld [vmem:[#allocation73_spill] sm:$0xff] }
 0xd87   :  { %v5220_v57 = vpop.eup %5219  ;;  %v3586_v3 = vmul.f32 %v5218_v9, %v3581_v40  ;;  %vm3591_vm4 = vweird.f32 %v5218_v9 }
 0xd88   :  { %v3619_v22 = vadd.f32 %v5214_v38, %v3618_v42  ;;  %v3601_v46 = vmul.f32 %v5220_v57, %v3582_v45  ;;  %vm3606_vm5 = vweird.f32 %v5220_v57  ;;  %v3609_v42 = vand.u32 2147483647, %v3582_v45  ;;  %vm3592_vm7 = vmor %vm3590_vm6, %vm3591_vm4 }
 0xd89   :  { %v3587_v19 = vsub.f32 1.0, %v3586_v3  ;;  %vm3607_vm10 = vmor %vm3605_vm8, %vm3606_vm5 }
 0xd8a   :  { %v3623_v26 = vsel %vm3622_vm2, %v5214_v38, %v3619_v22  ;;  %v3602_v36 = vsub.f32 1.0, %v3601_v46  ;;  %v3612_v22 = vor.u32 1.1754944e-38, %v3611_v23  ;;  %vm3610_vm11 = vcmp.eq.f32.partialorder %v3609_v42, 8.507059e+37  ;;  %v5295_v23 = vld [vmem:[#allocation15 + $0x38] sm:$0xff] }
 0xd8b   :  { %v3628_v1 = vsel %vm3625_vm3, %v3627_v29, %v3623_v26  ;;  %v3588_v27 = vmul.f32 %v5218_v9, %v3587_v19  ;;  %v3633_v29 = vmul.f32 %v5216_v33, %v3632_v5  ;;  %v8774_v42 = vld [vmem:[#allocation74_spill] sm:$0xff]  ;;  %v8775_v5 = vld [vmem:[#allocation75_spill] sm:$0xff] }
 0xd8c   :  { %v3645_v21 = vmul.f32 2.0, %v3628_v1  ;;  %v3603_v44 = vmul.f32 %v5220_v57, %v3602_v36 }
 0xd8d   :  { %v3589_v30 = vadd.f32 %v5218_v9, %v3588_v27  ;;  %v3634_v27 = vadd.f32 %v5216_v33, %v3633_v29  ;;  %v5297_v29 = vld [vmem:[#allocation15 + $0x28] sm:$0xff] }
 0xd8e   :  { %v3604_v10 = vadd.f32 %v5220_v57, %v3603_v44  ;;  %v4823_v3 = vadd.f32 -1.0, %v3645_v21  ;;  %v3641_v44 = vand.u32 2147483648, %v7444_v4  ;;  %v3639_v21 = vand.u32 2147483647, %v7444_v4  ;;  %v8770_v4 = vld [vmem:[#allocation70_spill] sm:$0xff] }
 0xd8f   :  { %v3593_v38 = vsel %vm3592_vm7, %v5218_v9, %v3589_v30  ;;  %v3638_v56 = vsel %vm3637_vm14, %v5216_v33, %v3634_v27  ;;  %v8771_v33 = vld [vmem:[#allocation71_spill] sm:$0xff] }
 0xd90   :  { %v3598_v26 = vsel %vm3595_vm9, %v3597_v48, %v3593_v38  ;;  %v3608_v46 = vsel %vm3607_vm10, %v5220_v57, %v3604_v10  ;;  %v3642_v30 = vor.u32 1.1754944e-38, %v3641_v44  ;;  %vm3640_vm15 = vcmp.eq.f32.partialorder %v3639_v21, 8.507059e+37  ;;  %v8772_v57 = vld [vmem:[#allocation72_spill] sm:$0xff]  ;;  %v8777_v10 = vld [vmem:[#allocation77_spill] sm:$0xff]  ;;  %v5298_v27 = vld [vmem:[#allocation15 + $0x20] sm:$0xff] }
 0xd91   :  { %v3648_v1 = vmul.f32 %v4823_v3, %v3598_v26  ;;  %v3613_v36 = vsel %vm3610_vm11, %v3612_v22, %v3608_v46  ;;  %v8776_v48 = vld [vmem:[#allocation76_spill] sm:$0xff]  ;;  %v8778_v3 = vld [vmem:[#allocation78_spill] sm:$0xff]  ;;  %v5296_v38 = vld [vmem:[#allocation15 + $0x30] sm:$0xff] }
 0xd92   :  { %v3647_v19 = vmul.f32 %v3613_v36, %v7252_v12  ;;  %v3643_v45 = vsel %vm3640_vm15, %v3642_v30, %v3638_v56  ;;  %v8779_v22 = vld [vmem:[#allocation80_spill] sm:$0xff]  ;;  %v8780_v26 = vld [vmem:[#allocation81_spill] sm:$0xff]  ;;  %v8781_v46 = vld [vmem:[#allocation82_spill] sm:$0xff] }
 0xd93   :  { %v8783_v36 = vld [vmem:[#allocation85_spill] sm:$0xff]  ;;  %v8785_v44 = vld [vmem:[#allocation88_spill] sm:$0xff]  ;;  %v8787_v56 = vld [vmem:[#allocation90_spill] sm:$0xff] }
 0xd94   :  { %v7449_v34 = vadd.f32 %v3648_v1, %v3647_v19  ;;  %v8782_v1 = vld [vmem:[#allocation84_spill] sm:$0xff]  ;;  %v8784_v19 = vld [vmem:[#allocation86_spill] sm:$0xff]  ;;  %v8786_v21 = vld [vmem:[#allocation89_spill] sm:$0xff] }
 0xd95   :  { %v5299_v30 = vld [vmem:[#allocation15 + $0x18] sm:$0xff] }
 0xd96   :  { %5221 = vtanh.f32 %v7449_v34 }
 0xd9c   :  { %v5222_v40 = vpop.eup %5221 }
 0xd9d   :  { %v3651_v9 = vmul.f32 %v5222_v40, %v3643_v45  ;;  %v8788_v40 = vld [vmem:[#allocation92_spill] sm:$0xff]  ;;  %v8789_v45 = vld [vmem:[#allocation93_spill] sm:$0xff] }
 0xd9f   :  { %v3652_v12 = vpack.c.bf16 %v3651_v9, %v3651_v9  ;;  %v8790_v9 = vld [vmem:[#allocation94_spill] sm:$0xff] }
 0xda1   :  { %3661 = vmatmul.bf16.vlgmr.msra.gmra.mxu2 %v3652_v12  ;;  %3674 = vmatmul.bf16.vlgmr.msra.gmra.mxu3 %v3652_v12 }
 0xda2   :  { %3687 = vmatmul.bf16.vlgmr.msrb.gmra.mxu0 %v3652_v12  ;;  %3700 = vmatmul.bf16.vlgmr.msrb.gmra.mxu1 %v3652_v12 }
 0xda3   :  { %3845 = vmatpush.bf16.msra.mxu2 %v5729_v59  ;;  %3858 = vmatpush.bf16.msra.mxu3 %v5731_v60  ;;  %v8757_v59 = vld [vmem:[#allocation57_spill] sm:$0xff]  ;;  %v8758_v60 = vld [vmem:[#allocation58_spill] sm:$0xff] }
 0xda4   :  { %3871 = vmatpush.bf16.msrb.mxu0 %v5733_v61  ;;  %3884 = vmatpush.bf16.msrb.mxu1 %v5736_v2  ;;  %v8759_v61 = vld [vmem:[#allocation59_spill] sm:$0xff]  ;;  %v8760_v2 = vld [vmem:[#allocation60_spill] sm:$0xff] }
 0xda7   :  { %3846 = vmatpush.bf16.msra.mxu2 %v5742_v18  ;;  %3859 = vmatpush.bf16.msra.mxu3 %v8054_v62  ;;  %v8761_v18 = vld [vmem:[#allocation61_spill] sm:$0xff]  ;;  %v8762_v62 = vld [vmem:[#allocation62_spill] sm:$0xff] }
 0xda8   :  { %3872 = vmatpush.bf16.msrb.mxu0 %v8055_v43  ;;  %3885 = vmatpush.bf16.msrb.mxu1 %v8056_v25  ;;  %v8763_v43 = vld [vmem:[#allocation63_spill] sm:$0xff]  ;;  %v8764_v25 = vld [vmem:[#allocation64_spill] sm:$0xff] }
 0xdab   :  { %3847 = vmatpush.bf16.msra.mxu2 %v8057_v50  ;;  %3860 = vmatpush.bf16.msra.mxu3 %v8058_v52  ;;  %v8765_v50 = vld [vmem:[#allocation65_spill] sm:$0xff]  ;;  %v8766_v52 = vld [vmem:[#allocation66_spill] sm:$0xff] }
 0xdac   :  { %3873 = vmatpush.bf16.msrb.mxu0 %v8059_v20  ;;  %3886 = vmatpush.bf16.msrb.mxu1 %v8163_v13  ;;  %v8767_v20 = vld [vmem:[#allocation67_spill] sm:$0xff]  ;;  %v8768_v13 = vld [vmem:[#allocation68_spill] sm:$0xff] }
 0xdaf   :  { %3848 = vmatpush.bf16.msra.mxu2 %v8164_v28  ;;  %3861 = vmatpush.bf16.msra.mxu3 %v8757_v59  ;;  %v8769_v28 = vld [vmem:[#allocation69_spill] sm:$0xff]  ;;  %v8791_v59 = vld [vmem:[#allocation96_spill] sm:$0xff] }
 0xdb0   :  { %3874 = vmatpush.bf16.msrb.mxu0 %v8758_v60  ;;  %3887 = vmatpush.bf16.msrb.mxu1 %v8759_v61  ;;  %v8792_v60 = vld [vmem:[#allocation97_spill] sm:$0xff]  ;;  %v8793_v61 = vld [vmem:[#allocation98_spill] sm:$0xff] }
 0xdb1   :  { %3713 = vmatmul.bf16.vlgmr.msrb.gmra.mxu2 %v3652_v12  ;;  %3726 = vmatmul.bf16.vlgmr.msrb.gmra.mxu3 %v3652_v12 }
 0xdb2   :  { %3739 = vmatmul.bf16.vlgmr.msra.gmra.mxu0 %v3652_v12  ;;  %3752 = vmatmul.bf16.vlgmr.msra.gmra.mxu1 %v3652_v12  ;;  %v5300_v12 = vld [vmem:[#allocation15 + $0x10] sm:$0xff] }
 0xdb3   :  { %3849 = vmatpush.bf16.msra.mxu2 %v8760_v2  ;;  %3862 = vmatpush.bf16.msra.mxu3 %v8761_v18  ;;  %v5301_v2 = vld [vmem:[#allocation15 + $0x8] sm:$0xff] }
 0xdb4   :  { %3875 = vmatpush.bf16.msrb.mxu0 %v8762_v62  ;;  %3888 = vmatpush.bf16.msrb.mxu1 %v8763_v43  ;;  %v8794_v18 = vld [vmem:[#allocation100_spill] sm:$0xff]  ;;  %v8795_v62 = vld [vmem:[#allocation101_spill] sm:$0xff]  ;;  %v8796_v43 = vld [vmem:[#allocation102_spill] sm:$0xff] }
 0xdb7   :  { %3850 = vmatpush.bf16.msra.mxu2 %v8764_v25  ;;  %3863 = vmatpush.bf16.msra.mxu3 %v8765_v50  ;;  %v5302_v25 = vld [vmem:[#allocation15] sm:$0xff]  ;;  %v8797_v50 = vld [vmem:[#allocation104_spill] sm:$0xff] }
 0xdb8   :  { %3876 = vmatpush.bf16.msrb.mxu0 %v8766_v52  ;;  %3889 = vmatpush.bf16.msrb.mxu1 %v8767_v20  ;;  %v8798_v52 = vld [vmem:[#allocation105_spill] sm:$0xff]  ;;  %v8799_v20 = vld [vmem:[#allocation106_spill] sm:$0xff] }
 0xdbb   :  { %3851 = vmatpush.bf16.msra.mxu2 %v8768_v13  ;;  %3864 = vmatpush.bf16.msra.mxu3 %v8769_v28 }
 0xdbc   :  { %3877 = vmatpush.bf16.msrb.mxu0 %v8770_v4  ;;  %3890 = vmatpush.bf16.msrb.mxu1 %v8771_v33 }
 0xdbf   :  { %3852 = vmatpush.bf16.msra.mxu2 %v8772_v57  ;;  %3865 = vmatpush.bf16.msra.mxu3 %v8773_v14 }
 0xdc0   :  { %3878 = vmatpush.bf16.msrb.mxu0 %v8774_v42  ;;  %3891 = vmatpush.bf16.msrb.mxu1 %v8775_v5 }
 0xdc3   :  { %3898 = vmatpush.bf16.msrb.mxu2 %v5295_v23  ;;  %3912 = vmatpush.bf16.msrb.mxu3 %v8776_v48 }
 0xdc4   :  { %3925 = vmatpush.bf16.msra.mxu0 %v8777_v10  ;;  %3938 = vmatpush.bf16.msra.mxu1 %v8778_v3 }
 0xdc7   :  { %3899 = vmatpush.bf16.msrb.mxu2 %v5296_v38  ;;  %3913 = vmatpush.bf16.msrb.mxu3 %v8779_v22  ;;  %v8800_v38 = vld [vmem:[#allocation51_spill] sm:$0xff] }
 0xdc8   :  { %3926 = vmatpush.bf16.msra.mxu0 %v8780_v26  ;;  %3939 = vmatpush.bf16.msra.mxu1 %v8781_v46  ;;  %v8801_v26 = vld [vmem:[#allocation52_spill] sm:$0xff] }
 0xdcb   :  { %3900 = vmatpush.bf16.msrb.mxu2 %v5297_v29  ;;  %3914 = vmatpush.bf16.msrb.mxu3 %v8782_v1 }
 0xdcc   :  { %3927 = vmatpush.bf16.msra.mxu0 %v8783_v36  ;;  %3940 = vmatpush.bf16.msra.mxu1 %v8784_v19 }
 0xdcf   :  { %3901 = vmatpush.bf16.msrb.mxu2 %v5298_v27  ;;  %3915 = vmatpush.bf16.msrb.mxu3 %v8785_v44 }
 0xdd0   :  { %3928 = vmatpush.bf16.msra.mxu0 %v8786_v21  ;;  %3941 = vmatpush.bf16.msra.mxu1 %v8787_v56  ;;  %v8802_v21 = vld [vmem:[#allocation49_spill] sm:$0xff] }
 0xdd3   :  { %3902 = vmatpush.bf16.msrb.mxu2 %v5299_v30  ;;  %3916 = vmatpush.bf16.msrb.mxu3 %v8788_v40  ;;  %v8803_v30 = vld [vmem:[#allocation50_spill] sm:$0xff] }
 0xdd4   :  { %3929 = vmatpush.bf16.msra.mxu0 %v8789_v45  ;;  %3942 = vmatpush.bf16.msra.mxu1 %v8790_v9 }
 0xdd7   :  { %3903 = vmatpush.bf16.msrb.mxu2 %v5300_v12  ;;  %3917 = vmatpush.bf16.msrb.mxu3 %v8791_v59 }
 0xdd8   :  { %3930 = vmatpush.bf16.msra.mxu0 %v8792_v60  ;;  %3943 = vmatpush.bf16.msra.mxu1 %v8793_v61 }
 0xddb   :  { %3904 = vmatpush.bf16.msrb.mxu2 %v5301_v2  ;;  %3918 = vmatpush.bf16.msrb.mxu3 %v8794_v18 }
 0xddc   :  { %3931 = vmatpush.bf16.msra.mxu0 %v8795_v62  ;;  %3944 = vmatpush.bf16.msra.mxu1 %v8796_v43 }
 0xddf   :  { %3905 = vmatpush.bf16.msrb.mxu2 %v5302_v25  ;;  %3919 = vmatpush.bf16.msrb.mxu3 %v8797_v50 }
 0xde0   :  { %3932 = vmatpush.bf16.msra.mxu0 %v8798_v52  ;;  %3945 = vmatpush.bf16.msra.mxu1 %v8799_v20 }
 0xe1f   :  { %v7511_v13 = vpop.f32.mrf.mxu0  ;;  %v7513_v28 = vpop.f32.mrf.mxu1 }
 0xe24   :  { %v7515_v4 = vpop.f32.mrf.mxu2  ;;  %v7517_v33 = vpop.f32.mrf.mxu3 }
 0xe27   :  { %v3690_v57 = vpop.f32.mrf.mxu0  ;;  %v3703_v14 = vpop.f32.mrf.mxu1 }
 0xe2c   :  { %v3664_v23 = vpop.f32.mrf.mxu2  ;;  %v3677_v42 = vpop.f32.mrf.mxu3 }
 0xe2f   :  { %v3740_v5 = vpop.f32.mrf.mxu0  ;;  %v3753_v48 = vpop.f32.mrf.mxu1 }
 0xe30   :  { %v3741_v10 = vadd.f32 %v3740_v5, %v7401_v55  ;;  %v3754_v3 = vadd.f32 %v3753_v48, %v7397_v0 }
 0xe32   :  { %v3759_v22 = vadd.f32 %v3741_v10, %v8800_v38  ;;  %v3760_v46 = vadd.f32 %v3754_v3, %v8801_v26 }
 0xe34   :  { %v4826_v29 = vmul.f32 -1.442695, %v3759_v22  ;;  %v4827_v1 = vmul.f32 -1.442695, %v3760_v46  ;;  %v3714_v36 = vpop.f32.mrf.mxu2  ;;  %v3727_v19 = vpop.f32.mrf.mxu3 }
 0xe35   :  { %v3715_v27 = vadd.f32 %v3714_v36, %v7395_v24  ;;  %v3728_v44 = vadd.f32 %v3727_v19, %v7399_v6 }
 0xe36   :  { %5223 = vpow2.f32 %v4826_v29 }
 0xe37   :  { %5225 = vpow2.f32 %v4827_v1  ;;  %v3757_v56 = vadd.f32 %v3715_v27, %v8802_v21  ;;  %v3758_v55 = vadd.f32 %v3728_v44, %v8803_v30  ;;  %v3742_v40 = vpop.f32.mrf.mxu0  ;;  %v3755_v0 = vpop.f32.mrf.mxu1 }
 0xe39   :  { %v4824_v45 = vmul.f32 -1.442695, %v3757_v56  ;;  %v4825_v9 = vmul.f32 -1.442695, %v3758_v55 }
 0xe3b   :  { %5227 = vpow2.f32 %v4824_v45 }
 0xe3c   :  { %v5224_v12 = vpop.eup %5223  ;;  %5229 = vpow2.f32 %v4825_v9  ;;  %v3716_v59 = vpop.f32.mrf.mxu2 }
 0xe3d   :  { %v3729_v60 = vpop.f32.mrf.mxu3  ;;  %v5226_v61 = vpop.eup %5225  ;;  %v3775_v2 = vadd.f32 1.0, %v5224_v12 }
 0xe3e   :  { %v7527_v24 = vadd.f32 1.0, %v5226_v61 }
 0xe3f   :  { %5231 = vrcp.f32 %v3775_v2  ;;  %v3816_v57 = vand.u32 2147483647, %v3775_v2  ;;  %v3818_v14 = vand.u32 2147483648, %v3775_v2  ;;  %vm3812_vm1 = vweird.f32 %v3775_v2 }
 0xe40   :  { %5233 = vrcp.f32 %v7527_v24  ;;  %vm3827_vm13 = vweird.f32 %v7527_v24 }
 0xe41   :  { %v5228_v6 = vpop.eup %5227  ;;  %vm3817_vm3 = vcmp.eq.f32.partialorder %v3816_v57, 8.507059e+37  ;;  %v3819_v22 = vor.u32 1.1754944e-38, %v3818_v14 }
 0xe42   :  { %v5230_v18 = vpop.eup %5229  ;;  %v3773_v62 = vadd.f32 1.0, %v5228_v6 }
 0xe43   :  { %v3774_v43 = vadd.f32 1.0, %v5230_v18 }
 0xe44   :  { %5235 = vrcp.f32 %v3773_v62  ;;  %v3786_v36 = vand.u32 2147483647, %v3773_v62  ;;  %v3788_v19 = vand.u32 2147483648, %v3773_v62  ;;  %vm3782_vm6 = vweird.f32 %v3773_v62 }
 0xe45   :  { %v5232_v25 = vpop.eup %5231  ;;  %5237 = vrcp.f32 %v3774_v43  ;;  %v3803_v55 = vand.u32 2147483648, %v3774_v43  ;;  %v3801_v45 = vand.u32 2147483647, %v3774_v43  ;;  %vm3797_vm8 = vweird.f32 %v3774_v43 }
 0xe46   :  { %v3808_v50 = vmul.f32 %v5232_v25, %v3775_v2  ;;  %v5234_v20 = vpop.eup %5233  ;;  %vm3813_vm0 = vweird.f32 %v5232_v25  ;;  %v3789_v59 = vor.u32 1.1754944e-38, %v3788_v19  ;;  %vm3787_vm9 = vcmp.eq.f32.partialorder %v3786_v36, 8.507059e+37 }
 0xe47   :  { %vm3814_vm2 = vmor %vm3812_vm1, %vm3813_vm0  ;;  %v3823_v46 = vmul.f32 %v5234_v20, %v7527_v24  ;;  %v3804_v6 = vor.u32 1.1754944e-38, %v3803_v55  ;;  %vm3802_vm11 = vcmp.eq.f32.partialorder %v3801_v45, 8.507059e+37  ;;  %vm3828_vm12 = vweird.f32 %v5234_v20  ;;  %v5303_v45 = vld [vmem:[%s7645_s9] sm:$0x1]  ;;  %s5545_s9 = smov [#allocation17]  }
 0xe48   :  { %v3809_v52 = vsub.f32 1.0, %v3808_v50  ;;  %vm3829_vm14 = vmor %vm3827_vm13, %vm3828_vm12  ;;  %s4199_s15 = sshll.u32 %s5545_s9, 4  ;;  %s4200_s15 = int_to_ptr.vmem [resolvable:$true] %s4199_s15 }
 0xe49   :  { %v3824_v9 = vsub.f32 1.0, %v3823_v46  ;;  %v8824_v46 = vld [vmem:[#allocation139_spill] sm:$0xff] }
 0xe4a   :  { %v5236_v23 = vpop.eup %5235  ;;  %v3810_v42 = vmul.f32 %v5232_v25, %v3809_v52 }
 0xe4b   :  { %v5238_v5 = vpop.eup %5237  ;;  %v3778_v48 = vmul.f32 %v5236_v23, %v3773_v62  ;;  %vm3783_vm4 = vweird.f32 %v5236_v23  ;;  %v3825_v50 = vmul.f32 %v5234_v20, %v3824_v9 }
 0xe4c   :  { %v3811_v10 = vadd.f32 %v5232_v25, %v3810_v42  ;;  %v3793_v3 = vmul.f32 %v5238_v5, %v3774_v43  ;;  %vm3798_vm5 = vweird.f32 %v5238_v5  ;;  %vm3784_vm7 = vmor %vm3782_vm6, %vm3783_vm4  ;;  %v3831_v43 = vand.u32 2147483647, %v7527_v24 }
 0xe4d   :  { %v3779_v29 = vsub.f32 1.0, %v3778_v48  ;;  %vm3799_vm10 = vmor %vm3797_vm8, %vm3798_vm5  ;;  %v3826_v62 = vadd.f32 %v5234_v20, %v3825_v50  ;;  %v3833_v48 = vand.u32 2147483648, %v7527_v24  ;;  %v8822_v24 = vld [vmem:[#allocation131_spill] sm:$0xff]  ;;  %v8827_v50 = vld [vmem:[#allocation110_spill] sm:$0xff] }
 0xe4e   :  { %v3815_v1 = vsel %vm3814_vm2, %v5232_v25, %v3811_v10  ;;  %v3794_v27 = vsub.f32 1.0, %v3793_v3  ;;  %vm3832_vm15 = vcmp.eq.f32.partialorder %v3831_v43, 8.507059e+37 }
 0xe4f   :  { %v3820_v44 = vsel %vm3817_vm3, %v3819_v22, %v3815_v1  ;;  %v3780_v56 = vmul.f32 %v5236_v23, %v3779_v29  ;;  %v8825_v29 = vld [vmem:[#allocation143_spill] sm:$0xff] }
 0xe50   :  { %v3837_v40 = vmul.f32 2.0, %v3820_v44  ;;  %v3795_v0 = vmul.f32 %v5238_v5, %v3794_v27 }
 0xe51   :  { %v3781_v12 = vadd.f32 %v5236_v23, %v3780_v56 }
 0xe52   :  { %v3796_v60 = vadd.f32 %v5238_v5, %v3795_v0  ;;  %v4828_v61 = vadd.f32 -1.0, %v3837_v40 }
 0xe53   :  { %v3785_v2 = vsel %vm3784_vm7, %v5236_v23, %v3781_v12  ;;  %v3830_v23 = vsel %vm3829_vm14, %v5234_v20, %v3826_v62  ;;  %v8823_v20 = vld [vmem:[#allocation135_spill] sm:$0xff] }
 0xe54   :  { %v3790_v18 = vsel %vm3787_vm9, %v3789_v59, %v3785_v2  ;;  %v3800_v25 = vsel %vm3799_vm10, %v5238_v5, %v3796_v60  ;;  %v3834_v5 = vor.u32 1.1754944e-38, %v3833_v48 }
 0xe55   :  { %v3840_v52 = vmul.f32 %v4828_v61, %v3790_v18  ;;  %v3805_v57 = vsel %vm3802_vm11, %v3804_v6, %v3800_v25  ;;  %v8826_v18 = vld [vmem:[#allocation109_spill] sm:$0xff] }
 0xe56   :  { %v3839_v14 = vmul.f32 %v3805_v57, %v7349_v58  ;;  %v3835_v3 = vsel %vm3832_vm15, %v3834_v5, %v3830_v23 }
 0xe58   :  { %v7532_v42 = vadd.f32 %v3840_v52, %v3839_v14 }
 0xe5a   :  { %5239 = vtanh.f32 %v7532_v42 }
 0xe60   :  { %v5240_v10 = vpop.eup %5239 }
 0xe61   :  { %v3843_v22 = vmul.f32 %v5240_v10, %v3835_v3  ;;  %v8828_v10 = vld [vmem:[#allocation108_spill] sm:$0xff] }
 0xe63   :  { %v3844_v58 = vpack.c.bf16 %v3843_v22, %v3843_v22  ;;  %3897 = vst [vmem:[#allocation2 + $0x6] sm:$0x1] %v3843_v22  ;;  %v8829_v22 = vld [vmem:[#allocation111_spill] sm:$0xff] }
 0xe65   :  { %3853 = vmatmul.bf16.vlgmr.msra.gmra.mxu2 %v3844_v58  ;;  %3866 = vmatmul.bf16.vlgmr.msra.gmra.mxu3 %v3844_v58 }
 0xe66   :  { %3879 = vmatmul.bf16.vlgmr.msrb.gmra.mxu0 %v3844_v58  ;;  %3892 = vmatmul.bf16.vlgmr.msrb.gmra.mxu1 %v3844_v58 }
 0xe67   :  { %3951 = vmatpush.bf16.msra.mxu2 %v8104_v41  ;;  %4052 = vmatpush.bf16.msra.mxu3 %v8721_v63  ;;  %v8804_v41 = vld [vmem:[#allocation129_spill] sm:$0xff]  ;;  %v8807_v63 = vld [vmem:[#allocation132_spill] sm:$0xff] }
 0xe68   :  { %4065 = vmatpush.bf16.msrb.mxu0 %v8722_v51  ;;  %4078 = vmatpush.bf16.msrb.mxu1 %v8723_v32  ;;  %v8809_v51 = vld [vmem:[#allocation134_spill] sm:$0xff]  ;;  %v8810_v32 = vld [vmem:[#allocation103_spill] sm:$0xff] }
 0xe6b   :  { %3952 = vmatpush.bf16.msra.mxu2 %v8105_v11  ;;  %4053 = vmatpush.bf16.msra.mxu3 %v8725_v8  ;;  %v8805_v11 = vld [vmem:[#allocation130_spill] sm:$0xff]  ;;  %v8811_v8 = vld [vmem:[#allocation136_spill] sm:$0xff] }
 0xe6c   :  { %4066 = vmatpush.bf16.msrb.mxu0 %v8726_v16  ;;  %4079 = vmatpush.bf16.msrb.mxu1 %v8727_v17  ;;  %v8812_v16 = vld [vmem:[#allocation137_spill] sm:$0xff]  ;;  %v8814_v17 = vld [vmem:[#allocation107_spill] sm:$0xff] }
 0xe6f   :  { %3953 = vmatpush.bf16.msra.mxu2 %v8106_v31  ;;  %4054 = vmatpush.bf16.msra.mxu3 %v8729_v54  ;;  %v8806_v31 = vld [vmem:[#allocation99_spill] sm:$0xff]  ;;  %v8815_v54 = vld [vmem:[#allocation140_spill] sm:$0xff] }
 0xe70   :  { %4067 = vmatpush.bf16.msrb.mxu0 %v8730_v49  ;;  %4080 = vmatpush.bf16.msrb.mxu1 %v8731_v39  ;;  %v8816_v49 = vld [vmem:[#allocation115_spill] sm:$0xff]  ;;  %v8817_v39 = vld [vmem:[#allocation141_spill] sm:$0xff] }
 0xe73   :  { %3954 = vmatpush.bf16.msra.mxu2 %v8109_v35  ;;  %4055 = vmatpush.bf16.msra.mxu3 %v8733_v47  ;;  %v8808_v35 = vld [vmem:[#allocation133_spill] sm:$0xff]  ;;  %v8818_v47 = vld [vmem:[#allocation142_spill] sm:$0xff] }
 0xe74   :  { %4068 = vmatpush.bf16.msrb.mxu0 %v8734_v15  ;;  %4081 = vmatpush.bf16.msrb.mxu1 %v8735_v37  ;;  %v8819_v15 = vld [vmem:[#allocation119_spill] sm:$0xff] }
 0xe75   :  { %3906 = vmatmul.bf16.vlgmr.msrb.gmra.mxu2 %v3844_v58  ;;  %v8820_v37 = vld [vmem:[#allocation123_spill] sm:$0xff] }
 0xe77   :  { %3955 = vmatpush.bf16.msra.mxu2 %v8696_v7  ;;  %4056 = vmatpush.bf16.msra.mxu3 %v8737_v53  ;;  %v8813_v7 = vld [vmem:[#allocation138_spill] sm:$0xff]  ;;  %v8821_v53 = vld [vmem:[#allocation127_spill] sm:$0xff] }
 0xe78   :  { %4069 = vmatpush.bf16.msrb.mxu0 %v8804_v41  ;;  %4082 = vmatpush.bf16.msrb.mxu1 %v8805_v11 }
 0xe7b   :  { %3956 = vmatpush.bf16.msra.mxu2 %v8806_v31  ;;  %4057 = vmatpush.bf16.msra.mxu3 %v8807_v63 }
 0xe7c   :  { %4070 = vmatpush.bf16.msrb.mxu0 %v8808_v35  ;;  %4083 = vmatpush.bf16.msrb.mxu1 %v8809_v51 }
 0xe7f   :  { %3957 = vmatpush.bf16.msra.mxu2 %v8810_v32  ;;  %4058 = vmatpush.bf16.msra.mxu3 %v8811_v8 }
 0xe80   :  { %4071 = vmatpush.bf16.msrb.mxu0 %v8812_v16  ;;  %4084 = vmatpush.bf16.msrb.mxu1 %v8813_v7 }
 0xe83   :  { %3958 = vmatpush.bf16.msra.mxu2 %v8814_v17  ;;  %4059 = vmatpush.bf16.msra.mxu3 %v8815_v54 }
 0xe84   :  { %4072 = vmatpush.bf16.msrb.mxu0 %v8817_v39  ;;  %4085 = vmatpush.bf16.msrb.mxu1 %v8818_v47 }
 0xe87   :  { %4091 = vmatpush.bf16.msrb.mxu2 %v8816_v49 }
 0xe8b   :  { %4092 = vmatpush.bf16.msrb.mxu2 %v8819_v15 }
 0xe8f   :  { %4093 = vmatpush.bf16.msrb.mxu2 %v8820_v37 }
 0xe93   :  { %4094 = vmatpush.bf16.msrb.mxu2 %v8821_v53 }
 0xe97   :  { %4095 = vmatpush.bf16.msrb.mxu2 %v8822_v24 }
 0xe9b   :  { %4096 = vmatpush.bf16.msrb.mxu2 %v8823_v20 }
 0xe9f   :  { %4097 = vmatpush.bf16.msrb.mxu2 %v8824_v46 }
 0xea3   :  { %4098 = vmatpush.bf16.msrb.mxu2 %v8825_v29 }
 0xee3   :  { %v7578_v1 = vpop.f32.mrf.mxu0  ;;  %v7580_v36 = vpop.f32.mrf.mxu1 }
 0xee8   :  { %v7582_v19 = vpop.f32.mrf.mxu2  ;;  %v7584_v27 = vpop.f32.mrf.mxu3 }
 0xeeb   :  { %v3882_v44 = vpop.f32.mrf.mxu0  ;;  %v3895_v56 = vpop.f32.mrf.mxu1 }
 0xef0   :  { %v3856_v55 = vpop.f32.mrf.mxu2  ;;  %v3869_v40 = vpop.f32.mrf.mxu3 }
 0xef8   :  { %v3907_v0 = vpop.f32.mrf.mxu2 }
 0xef9   :  { %v3908_v9 = vadd.f32 %v5303_v45, %v3907_v0 }
 0xefb   :  { %v3911_v12 = vpack.c.bf16 %v3908_v9, %v3908_v9 }
 0xefd   :  { %3920 = vmatmul.bf16.vlgmr.msrb.gmra.mxu3 %v3911_v12  ;;  %3933 = vmatmul.bf16.vlgmr.msra.gmra.mxu0 %v3911_v12 }
 0xefe   :  { %3946 = vmatmul.bf16.vlgmr.msra.gmra.mxu1 %v3911_v12  ;;  %3959 = vmatmul.bf16.vlgmr.msra.gmra.mxu2 %v3911_v12 }
 0xf00   :  { %v3909_v59 = vpop.f32.mrf.mxu2 }
 0xf7a   :  { %v3934_v60 = vpop.f32.mrf.mxu0 }
 0xf7b   :  { %v3935_v61 = vadd.f32 %v3934_v60, %v7517_v33  ;;  %v3947_v2 = vpop.f32.mrf.mxu1 }
 0xf7c   :  { %v3948_v6 = vadd.f32 %v3947_v2, %v7511_v13 }
 0xf7d   :  { %v3965_v25 = vadd.f32 %v3935_v61, %v8826_v18 }
 0xf7e   :  { %v3966_v52 = vadd.f32 %v3948_v6, %v8827_v50 }
 0xf7f   :  { %v4830_v57 = vmul.f32 -1.442695, %v3965_v25 }
 0xf80   :  { %v4831_v14 = vmul.f32 -1.442695, %v3966_v52  ;;  %v3921_v62 = vpop.f32.mrf.mxu3 }
 0xf81   :  { %5241 = vpow2.f32 %v4830_v57  ;;  %v3922_v48 = vadd.f32 %v3921_v62, %v7515_v4  ;;  %v3960_v43 = vpop.f32.mrf.mxu2 }
 0xf82   :  { %5243 = vpow2.f32 %v4831_v14  ;;  %v3961_v23 = vadd.f32 %v3960_v43, %v7513_v28  ;;  %v3936_v5 = vpop.f32.mrf.mxu0 }
 0xf83   :  { %v3964_v33 = vadd.f32 %v3922_v48, %v8828_v10  ;;  %v3949_v3 = vpop.f32.mrf.mxu1 }
 0xf84   :  { %v3967_v13 = vadd.f32 %v3961_v23, %v8829_v22 }
 0xf85   :  { %v4829_v58 = vmul.f32 -1.442695, %v3964_v33 }
 0xf86   :  { %v4832_v41 = vmul.f32 -1.442695, %v3967_v13 }
 0xf87   :  { %v5242_v11 = vpop.eup %5241  ;;  %5245 = vpow2.f32 %v4829_v58 }
 0xf88   :  { %v5244_v31 = vpop.eup %5243  ;;  %v3981_v63 = vadd.f32 1.0, %v5242_v11  ;;  %5247 = vpow2.f32 %v4832_v41  ;;  %v3923_v35 = vpop.f32.mrf.mxu3 }
 0xf89   :  { %v3982_v51 = vadd.f32 1.0, %v5244_v31  ;;  %v3962_v4 = vpop.f32.mrf.mxu2 }
 0xf8a   :  { %5249 = vrcp.f32 %v3981_v63  ;;  %v4010_v56 = vand.u32 2147483648, %v3981_v63  ;;  %vm4004_vm3 = vweird.f32 %v3981_v63  ;;  %v4008_v0 = vand.u32 2147483647, %v3981_v63 }
 0xf8b   :  { %5251 = vrcp.f32 %v3982_v51  ;;  %v4025_v37 = vand.u32 2147483648, %v3982_v51  ;;  %v4023_v20 = vand.u32 2147483647, %v3982_v51  ;;  %vm4019_vm2 = vweird.f32 %v3982_v51 }
 0xf8c   :  { %v4011_v25 = vor.u32 1.1754944e-38, %v4010_v56  ;;  %vm4009_vm8 = vcmp.eq.f32.partialorder %v4008_v0, 8.507059e+37 }
 0xf8d   :  { %v5246_v32 = vpop.eup %5245  ;;  %v4026_v45 = vor.u32 1.1754944e-38, %v4025_v37  ;;  %vm4024_vm6 = vcmp.eq.f32.partialorder %v4023_v20, 8.507059e+37 }
 0xf8e   :  { %v5248_v28 = vpop.eup %5247  ;;  %v3980_v8 = vadd.f32 1.0, %v5246_v32 }
 0xf8f   :  { %v7597_v16 = vadd.f32 1.0, %v5248_v28 }
 0xf90   :  { %v5250_v7 = vpop.eup %5249  ;;  %5253 = vrcp.f32 %v3980_v8  ;;  %v3993_v60 = vand.u32 2147483647, %v3980_v8  ;;  %v3995_v61 = vand.u32 2147483648, %v3980_v8  ;;  %vm3989_vm9 = vweird.f32 %v3980_v8 }
 0xf91   :  { %v5252_v17 = vpop.eup %5251  ;;  %v4000_v54 = vmul.f32 %v5250_v7, %v3981_v63  ;;  %5255 = vrcp.f32 %v7597_v16  ;;  %vm4005_vm1 = vweird.f32 %v5250_v7  ;;  %v4040_v13 = vand.u32 2147483648, %v7597_v16 }
 0xf92   :  { %v4015_v49 = vmul.f32 %v5252_v17, %v3982_v51  ;;  %vm4020_vm0 = vweird.f32 %v5252_v17  ;;  %vm7601_vm5 = vmor %vm4004_vm3, %vm4005_vm1  ;;  %v3996_v62 = vor.u32 1.1754944e-38, %v3995_v61  ;;  %vm3994_vm11 = vcmp.eq.f32.partialorder %v3993_v60, 8.507059e+37 }
 0xf93   :  { %v4001_v39 = vsub.f32 1.0, %v4000_v54  ;;  %vm4021_vm4 = vmor %vm4019_vm2, %vm4020_vm0  ;;  %vm4034_vm13 = vweird.f32 %v7597_v16  ;;  %v4038_v58 = vand.u32 2147483647, %v7597_v16  ;;  %v4041_v11 = vor.u32 1.1754944e-38, %v4040_v13 }
 0xf94   :  { %v4016_v47 = vsub.f32 1.0, %v4015_v49 }
 0xf95   :  { %v4002_v15 = vmul.f32 %v5250_v7, %v4001_v39  ;;  %vm4039_vm15 = vcmp.eq.f32.partialorder %v4038_v58, 8.507059e+37 }
 0xf96   :  { %v5254_v53 = vpop.eup %5253  ;;  %v4017_v24 = vmul.f32 %v5252_v17, %v4016_v47 }
 0xf97   :  { %v5256_v46 = vpop.eup %5255  ;;  %v4003_v29 = vadd.f32 %v5250_v7, %v4002_v15  ;;  %v3985_v44 = vmul.f32 %v5254_v53, %v3980_v8  ;;  %vm3990_vm7 = vweird.f32 %v5254_v53 }
 0xf98   :  { %v4018_v55 = vadd.f32 %v5252_v17, %v4017_v24  ;;  %v4030_v40 = vmul.f32 %v5256_v46, %v7597_v16  ;;  %vm3991_vm10 = vmor %vm3989_vm9, %vm3990_vm7  ;;  %vm4035_vm12 = vweird.f32 %v5256_v46 }
 0xf99   :  { %v3986_v9 = vsub.f32 1.0, %v3985_v44  ;;  %v4007_v2 = vsel %vm7601_vm5, %v5250_v7, %v4003_v29  ;;  %vm4036_vm14 = vmor %vm4034_vm13, %vm4035_vm12 }
 0xf9a   :  { %v4022_v59 = vsel %vm4021_vm4, %v5252_v17, %v4018_v55  ;;  %v4031_v52 = vsub.f32 1.0, %v4030_v40  ;;  %v4012_v14 = vsel %vm4009_vm8, %v4011_v25, %v4007_v2 }
 0xf9b   :  { %v4027_v6 = vsel %vm4024_vm6, %v4026_v45, %v4022_v59  ;;  %v3987_v18 = vmul.f32 %v5254_v53, %v3986_v9  ;;  %v4046_v10 = vmul.f32 %v4012_v14, %v7449_v34 }
 0xf9c   :  { %v4044_v50 = vmul.f32 2.0, %v4027_v6  ;;  %v4032_v5 = vmul.f32 %v5256_v46, %v4031_v52 }
 0xf9d   :  { %v3988_v57 = vadd.f32 %v5254_v53, %v3987_v18 }
 0xf9e   :  { %v4833_v48 = vadd.f32 -1.0, %v4044_v50  ;;  %v4033_v22 = vadd.f32 %v5256_v46, %v4032_v5 }
 0xf9f   :  { %v3992_v43 = vsel %vm3991_vm10, %v5254_v53, %v3988_v57 }
 0xfa0   :  { %v3997_v23 = vsel %vm3994_vm11, %v3996_v62, %v3992_v43  ;;  %v4037_v41 = vsel %vm4036_vm14, %v5256_v46, %v4033_v22 }
 0xfa1   :  { %v4047_v33 = vmul.f32 %v4833_v48, %v3997_v23  ;;  %v4042_v63 = vsel %vm4039_vm15, %v4041_v11, %v4037_v41 }
 0xfa3   :  { %v4048_v3 = vadd.f32 %v4047_v33, %v4046_v10 }
 0xfa5   :  { %5257 = vtanh.f32 %v4048_v3 }
 0xfab   :  { %v5258_v31 = vpop.eup %5257 }
 0xfac   :  { %v4050_v35 = vmul.f32 %v5258_v31, %v4042_v63 }
 0xfae   :  { %v4051_v51 = vpack.c.bf16 %v4050_v35, %v4050_v35 }
 0xfb0   :  { %4060 = vmatmul.bf16.vlgmr.msra.gmra.mxu3 %v4051_v51  ;;  %4073 = vmatmul.bf16.vlgmr.msrb.gmra.mxu0 %v4051_v51 }
 0xfb1   :  { %4086 = vmatmul.bf16.vlgmr.msrb.gmra.mxu1 %v4051_v51  ;;  %4099 = vmatmul.bf16.vlgmr.msrb.gmra.mxu2 %v4051_v51 }
0x102d   :  { %v4074_v34 = vpop.f32.mrf.mxu0 }
0x102e   :  { %v4075_v4 = vadd.f32 %v4074_v34, %v7584_v27  ;;  %v4087_v32 = vpop.f32.mrf.mxu1 }
0x102f   :  { %v4088_v28 = vadd.f32 %v4087_v32, %v7578_v1 }
0x1030   :  { %v4105_v8 = vadd.f32 %v4075_v4, %v8803_v30 }
0x1031   :  { %v4106_v16 = vadd.f32 %v4088_v28, %v8800_v38 }
0x1032   :  { %v4835_v7 = vmul.f32 -1.442695, %v4105_v8 }
0x1033   :  { %v4836_v17 = vmul.f32 -1.442695, %v4106_v16  ;;  %v4061_v54 = vpop.f32.mrf.mxu3 }
0x1034   :  { %5259 = vpow2.f32 %v4835_v7  ;;  %v4062_v49 = vadd.f32 %v4061_v54, %v7582_v19  ;;  %v4100_v39 = vpop.f32.mrf.mxu2 }
0x1035   :  { %5261 = vpow2.f32 %v4836_v17  ;;  %v4101_v47 = vadd.f32 %v4100_v39, %v7580_v36  ;;  %v4076_v15 = vpop.f32.mrf.mxu0 }
0x1036   :  { %v4104_v27 = vadd.f32 %v4062_v49, %v8802_v21  ;;  %v4089_v37 = vpop.f32.mrf.mxu1 }
0x1037   :  { %v4107_v1 = vadd.f32 %v4101_v47, %v8801_v26 }
0x1038   :  { %v4834_v53 = vmul.f32 -1.442695, %v4104_v27 }
0x1039   :  { %v4837_v30 = vmul.f32 -1.442695, %v4107_v1 }
0x103a   :  { %v5260_v24 = vpop.eup %5259  ;;  %5263 = vpow2.f32 %v4834_v53 }
0x103b   :  { %v5262_v38 = vpop.eup %5261  ;;  %v4121_v20 = vadd.f32 1.0, %v5260_v24  ;;  %5265 = vpow2.f32 %v4837_v30  ;;  %v4063_v46 = vpop.f32.mrf.mxu3 }
0x103c   :  { %v4122_v29 = vadd.f32 1.0, %v5262_v38  ;;  %v4102_v19 = vpop.f32.mrf.mxu2 }
0x103d   :  { %5267 = vrcp.f32 %v4121_v20  ;;  %v4150_v50 = vand.u32 2147483648, %v4121_v20  ;;  %vm4144_vm3 = vweird.f32 %v4121_v20  ;;  %v4148_v14 = vand.u32 2147483647, %v4121_v20 }
0x103e   :  { %5269 = vrcp.f32 %v4122_v29  ;;  %v4165_v59 = vand.u32 2147483648, %v4122_v29  ;;  %v4163_v2 = vand.u32 2147483647, %v4122_v29  ;;  %vm4159_vm2 = vweird.f32 %v4122_v29 }
0x103f   :  { %v4151_v13 = vor.u32 1.1754944e-38, %v4150_v50  ;;  %vm4149_vm8 = vcmp.eq.f32.partialorder %v4148_v14, 8.507059e+37 }
0x1040   :  { %v5264_v44 = vpop.eup %5263  ;;  %v4166_v62 = vor.u32 1.1754944e-38, %v4165_v59  ;;  %vm4164_vm6 = vcmp.eq.f32.partialorder %v4163_v2, 8.507059e+37 }
0x1041   :  { %v5266_v36 = vpop.eup %5265  ;;  %v4120_v56 = vadd.f32 1.0, %v5264_v44 }
0x1042   :  { %v7619_v55 = vadd.f32 1.0, %v5266_v36 }
0x1043   :  { %v5268_v21 = vpop.eup %5267  ;;  %5271 = vrcp.f32 %v4120_v56  ;;  %v4133_v5 = vand.u32 2147483647, %v4120_v56  ;;  %v4135_v10 = vand.u32 2147483648, %v4120_v56  ;;  %vm4129_vm9 = vweird.f32 %v4120_v56 }
0x1044   :  { %v5270_v26 = vpop.eup %5269  ;;  %v4140_v40 = vmul.f32 %v5268_v21, %v4121_v20  ;;  %5273 = vrcp.f32 %v7619_v55  ;;  %vm4145_vm1 = vweird.f32 %v5268_v21  ;;  %v4180_v7 = vand.u32 2147483648, %v7619_v55 }
0x1045   :  { %v4155_v0 = vmul.f32 %v5270_v26, %v4122_v29  ;;  %vm4160_vm0 = vweird.f32 %v5270_v26  ;;  %vm7623_vm5 = vmor %vm4144_vm3, %vm4145_vm1  ;;  %v4136_v63 = vor.u32 1.1754944e-38, %v4135_v10  ;;  %vm4134_vm11 = vcmp.eq.f32.partialorder %v4133_v5, 8.507059e+37 }
0x1046   :  { %v4141_v45 = vsub.f32 1.0, %v4140_v40  ;;  %vm4161_vm4 = vmor %vm4159_vm2, %vm4160_vm0  ;;  %vm4174_vm13 = vweird.f32 %v7619_v55  ;;  %v4178_v17 = vand.u32 2147483647, %v7619_v55  ;;  %v4181_v49 = vor.u32 1.1754944e-38, %v4180_v7 }
0x1047   :  { %v4156_v9 = vsub.f32 1.0, %v4155_v0 }
0x1048   :  { %v4142_v12 = vmul.f32 %v5268_v21, %v4141_v45  ;;  %vm4179_vm15 = vcmp.eq.f32.partialorder %v4178_v17, 8.507059e+37 }
0x1049   :  { %v5272_v60 = vpop.eup %5271  ;;  %v4157_v61 = vmul.f32 %v5270_v26, %v4156_v9 }
0x104a   :  { %v5274_v6 = vpop.eup %5273  ;;  %v4143_v18 = vadd.f32 %v5268_v21, %v4142_v12  ;;  %v4125_v25 = vmul.f32 %v5272_v60, %v4120_v56  ;;  %vm4130_vm7 = vweird.f32 %v5272_v60 }
0x104b   :  { %v4158_v52 = vadd.f32 %v5270_v26, %v4157_v61  ;;  %v4170_v57 = vmul.f32 %v5274_v6, %v7619_v55  ;;  %vm4131_vm10 = vmor %vm4129_vm9, %vm4130_vm7  ;;  %vm4175_vm12 = vweird.f32 %v5274_v6 }
0x104c   :  { %v4126_v48 = vsub.f32 1.0, %v4125_v25  ;;  %v4147_v33 = vsel %vm7623_vm5, %v5268_v21, %v4143_v18  ;;  %vm4176_vm14 = vmor %vm4174_vm13, %vm4175_vm12 }
0x104d   :  { %v4162_v23 = vsel %vm4161_vm4, %v5270_v26, %v4158_v52  ;;  %v4171_v41 = vsub.f32 1.0, %v4170_v57  ;;  %v4152_v31 = vsel %vm4149_vm8, %v4151_v13, %v4147_v33 }
0x104e   :  { %v4167_v3 = vsel %vm4164_vm6, %v4166_v62, %v4162_v23  ;;  %v4127_v22 = vmul.f32 %v5272_v60, %v4126_v48  ;;  %v4186_v32 = vmul.f32 %v4152_v31, %v7532_v42 }
0x104f   :  { %v4184_v58 = vmul.f32 2.0, %v4167_v3  ;;  %v4172_v4 = vmul.f32 %v5274_v6, %v4171_v41 }
0x1050   :  { %v4128_v11 = vadd.f32 %v5272_v60, %v4127_v22 }
0x1051   :  { %v4838_v35 = vadd.f32 -1.0, %v4184_v58  ;;  %v4173_v16 = vadd.f32 %v5274_v6, %v4172_v4 }
0x1052   :  { %v4132_v51 = vsel %vm4131_vm10, %v5272_v60, %v4128_v11 }
0x1053   :  { %v4137_v34 = vsel %vm4134_vm11, %v4136_v63, %v4132_v51  ;;  %v4177_v54 = vsel %vm4176_vm14, %v5274_v6, %v4173_v16 }
0x1054   :  { %v4187_v28 = vmul.f32 %v4838_v35, %v4137_v34  ;;  %v4182_v47 = vsel %vm4179_vm15, %v4181_v49, %v4177_v54 }
0x1056   :  { %v4188_v8 = vadd.f32 %v4187_v28, %v4186_v32 }
0x1058   :  { %5275 = vtanh.f32 %v4188_v8 }
0x105e   :  { %v5276_v39 = vpop.eup %5275 }
0x105f   :  { %v4190_v15 = vmul.f32 %v5276_v39, %v4182_v47 }
0x1061   :  { %4191 = vst [vmem:[#allocation2 + $0x7] sm:$0x1] %v4190_v15 }
0x1068   :  { %v4192_v42 = vld [vmem:[#allocation2] sm:$0xff] }
0x1069   :  { %4193 = vst [vmem:[#allocation17] sm:$0xff] %v4192_v42 }
0x106a   :  { %4204 = dma.vmem_to_hbm [thread:$0]  %s4200_s15, 128, %s4202_s17, [#allocation5]  }
0x106b   :  { %5530 = dma.done.wait [#allocation5], 128  }
0x106c   :  { %5531 = vsyncadd [#allocation5], 4294967168 }
0x106d   :  { %4209 = vsyncpa [#allocation4], 1 }
0x106e   :  { %4210 = vsyncpa [#allocation7], 1 }
0x106f   :  { %4211 = vsyncpa [#allocation10], 1 }
0x1070   :  { %4212 = vsyncpa [#allocation13], 1 }
0x1071   :  { %4213 = vsyncpa [#allocation16], 1 }
0x1072   :  { %4214 = vsyncpa [#allocation5], 1 }

</bundles_post_ra>
